<compile_context>
chip_gen: v7x
topology: tpu7x:2x2x1
jax: 0.10.0
libtpu: 0.0.40
codegen_flags: <defaults>
</compile_context>

<pallas_src>
import functools

import jax
import jax.numpy as jnp
from jax.experimental import pallas as pl
from jax.experimental.pallas import tpu as pltpu


WEIGHT_DTYPE = jnp.bfloat16
LANE = 128
SUBLANE = 8


def _round_up(x, m):
    return ((x + m - 1) // m) * m


# ---------------------------------------------------------------------------
# Fused kernel: the entire Linear(+ReLU) chain in one invocation.
# ---------------------------------------------------------------------------
def _fused_mlp_kernel(*refs, layer_plan, num_w_slabs, num_b_slabs):
    """refs = (x_ref, w_slab_0..w_slab_{W-1}, b_slab_0..b_slab_{B-1}, o_ref).

    layer_plan[li] = (w_slab_idx, idx_in_w_slab, b_slab_idx, idx_in_b_slab,
    relu) with all indices static Python ints, so every slab access is a
    zero-cost static slice. Weights/biases are VMEM-resident for the whole
    chain; activations stay on chip (bf16 between layers, f32 accumulation).
    """
    x_ref = refs[0]
    w_slabs = refs[1:1 + num_w_slabs]
    b_slabs = refs[1 + num_w_slabs:1 + num_w_slabs + num_b_slabs]
    o_ref = refs[-1]

    h = x_ref[...]                                   # (M_pad, K0_pad) bf16
    last = len(layer_plan) - 1
    for li, (ws, wi, bs, bi, relu) in enumerate(layer_plan):
        w = w_slabs[ws][wi]                          # (K, N)  bf16, static index
        b = b_slabs[bs][pl.ds(bi, 1), :]             # (1, N)  f32, static slice
        acc = jnp.dot(h, w, preferred_element_type=jnp.float32) + b
        if relu:
            acc = jnp.maximum(acc, 0.0)
        # Single cast per layer: keep the inter-layer activation in bf16,
        # except the final (classifier) output which stays f32.
        h = acc if li == last else acc.astype(jnp.bfloat16)
    o_ref[...] = h.astype(o_ref.dtype)


# ---------------------------------------------------------------------------
# Network definition (scaled-down MLPNet46): 46 Linear layers.
# ---------------------------------------------------------------------------
def block_layer_dims(input_dim, inner_dim, output_dim):
    # Block.ffn = Linear -> ReLU -> Linear -> ReLU -> Linear -> ReLU
    return [
        (input_dim, inner_dim, True),
        (inner_dim, inner_dim, True),
        (inner_dim, output_dim, True),
    ]


def mlpnet46_layer_dims(in_dim, num_classes):
    layers = []
    layers += block_layer_dims(in_dim, 512, 256)            # ffn0
    for _ in range(3):                                       # stage1
        layers += block_layer_dims(256, 512, 256)
    layers += block_layer_dims(256, 512, 128)                # ffn1
    for _ in range(3):                                       # stage2
        layers += block_layer_dims(128, 256, 128)
    layers += block_layer_dims(128, 256, 64)                 # ffn2
    for _ in range(6):                                       # stage3
        layers += block_layer_dims(64, 128, 64)
    layers.append((64, num_classes, False))                  # cls (no ReLU)
    return layers


def init_params(key, layer_dims):
    """He-style init. Weights stored as (in, out) (transposed vs PyTorch).

    Every layer's K and N are zero-padded up to a multiple of 128 so the
    whole chain is lane-dense and slab packing by shape is trivial. Zero
    padding is exact: padded output columns are 0 (zero weight cols + zero
    bias, ReLU(0)=0), so padded input rows of the next layer never matter.
    """
    weights, biases = [], []
    for (k_in, n_out, _) in layer_dims:
        key, wk, bk = jax.random.split(key, 3)
        w = jax.random.normal(wk, (k_in, n_out), jnp.float32) * jnp.sqrt(2.0 / k_in)
        b = jax.random.normal(bk, (n_out,), jnp.float32) * 0.01
        k_pad = _round_up(k_in, LANE)
        n_pad = _round_up(n_out, LANE)
        w = jnp.pad(w, ((0, k_pad - k_in), (0, n_pad - n_out)))
        b = jnp.pad(b, (0, n_pad - n_out))
        weights.append(w.astype(WEIGHT_DTYPE))
        biases.append(b.astype(jnp.float32))
    return weights, biases


def pack_params(weights, biases, relu_flags):
    """Group same-shaped weights / same-width biases into stacked slabs.

    Returns (w_slabs, b_slabs, layer_plan) where layer_plan[li] =
    (w_slab_idx, idx_in_w_slab, b_slab_idx, idx_in_b_slab, relu).
    For this net: 10 weight slabs + 4 bias slabs instead of 92 buffers.
    """
    w_groups, w_order = {}, []
    for i, w in enumerate(weights):
        if w.shape not in w_groups:
            w_groups[w.shape] = []
            w_order.append(w.shape)
        w_groups[w.shape].append(i)

    b_groups, b_order = {}, []
    for i, b in enumerate(biases):
        n = b.shape[0]
        if n not in b_groups:
            b_groups[n] = []
            b_order.append(n)
        b_groups[n].append(i)

    w_slabs = tuple(jnp.stack([weights[i] for i in w_groups[s]]) for s in w_order)
    b_slabs = tuple(jnp.stack([biases[i] for i in b_groups[n]]) for n in b_order)

    plan = []
    for i in range(len(weights)):
        s = weights[i].shape
        n = biases[i].shape[0]
        plan.append((
            w_order.index(s), w_groups[s].index(i),
            b_order.index(n), b_groups[n].index(i),
            bool(relu_flags[i]),
        ))
    return w_slabs, b_slabs, tuple(plan)


# ---------------------------------------------------------------------------
# Forward: one fused pallas_call for the whole network.
# ---------------------------------------------------------------------------
def mlpnet46_forward(x_nchw, w_slabs, b_slabs, layer_plan, num_classes):
    B = x_nchw.shape[0]
    x = x_nchw.reshape(B, -1)                        # nn.Flatten (row-major)

    k0_pad = w_slabs[layer_plan[0][0]].shape[1]      # first layer's padded K
    n_out_pad = w_slabs[layer_plan[-1][0]].shape[2]  # classifier padded width

    # Pad batch to a sublane multiple and input features to the padded K0,
    # and cast to bf16 once (halves the input DMA). Rows are independent.
    m_pad = _round_up(B, SUBLANE)
    x = jnp.pad(x, ((0, m_pad - B), (0, k0_pad - x.shape[1]))).astype(jnp.bfloat16)

    kernel = functools.partial(
        _fused_mlp_kernel,
        layer_plan=layer_plan,
        num_w_slabs=len(w_slabs),
        num_b_slabs=len(b_slabs),
    )

    out_padded = pl.pallas_call(
        kernel,
        out_shape=jax.ShapeDtypeStruct((m_pad, n_out_pad), jnp.float32),
        # No grid: single invocation, all slabs fully resident in VMEM.
        in_specs=[
            pl.BlockSpec(memory_space=pltpu.MemorySpace.VMEM)
            for _ in range(1 + len(w_slabs) + len(b_slabs))
        ],
        out_specs=pl.BlockSpec(memory_space=pltpu.MemorySpace.VMEM),
        compiler_params=pltpu.CompilerParams(
            # Actual footprint: ~7.5 MB bf16 weights + ~48 KB biases + tiny
            # activations/IO. 16 MiB gives >2x headroom while leaving XLA
            # plenty of scoped VMEM on every generation (incl. v7x's 64 MiB).
            vmem_limit_bytes=16 * 1024 * 1024,
        ),
    )(x, *w_slabs, *b_slabs)

    return out_padded[:B, :num_classes]


# ---------------------------------------------------------------------------
# Pure-JAX reference with matching numerics (bf16 weights, f32 accumulation).
# ---------------------------------------------------------------------------
def reference_forward(x_nchw, weights, biases, relu_flags, num_classes):
    B = x_nchw.shape[0]
    h = x_nchw.reshape(B, -1).astype(jnp.bfloat16)
    k0_pad = weights[0].shape[0]
    h = jnp.pad(h, ((0, 0), (0, k0_pad - h.shape[1])))
    last = len(weights) - 1
    for i, (w, b, r) in enumerate(zip(weights, biases, relu_flags)):
        acc = jnp.dot(h, w, preferred_element_type=jnp.float32) + b[None, :]
        if r:
            acc = jnp.maximum(acc, 0.0)
        h = acc if i == last else acc.astype(jnp.bfloat16)
    return h[:, :num_classes]


# ---------------------------------------------------------------------------
# Main
# ---------------------------------------------------------------------------
if __name__ == "__main__":
    B, C, H, W = 2, 3, 16, 16
    NUM_CLASSES = 1000
    IN_DIM = C * H * W

    layer_dims = mlpnet46_layer_dims(IN_DIM, NUM_CLASSES)
    relu_flags = tuple(r for (_, _, r) in layer_dims)
    assert len(layer_dims) == 46

    key = jax.random.PRNGKey(0)
    key, xk = jax.random.split(key)
    x = jax.random.normal(xk, (B, C, H, W), jnp.float32)

    weights, biases = init_params(key, layer_dims)
    w_slabs, b_slabs, layer_plan = pack_params(weights, biases, relu_flags)

    fwd = jax.jit(functools.partial(
        mlpnet46_forward, layer_plan=layer_plan, num_classes=NUM_CLASSES))

    out = fwd(x, w_slabs, b_slabs)
    jax.block_until_ready(out)

    assert out.shape == (B, NUM_CLASSES), out.shape
    assert out.dtype == jnp.float32

    # Tolerance check vs a pure-JAX reference with the same bf16 numerics.
    ref_fn = jax.jit(functools.partial(
        reference_forward, relu_flags=relu_flags, num_classes=NUM_CLASSES))
    ref = ref_fn(x, weights, biases)
    jax.block_until_ready(ref)
    rel_err = float(jnp.max(jnp.abs(out - ref)) / (jnp.max(jnp.abs(ref)) + 1e-6))
    assert rel_err < 3e-2, f"kernel mismatch vs reference: rel_err={rel_err}"

    print("KERNEL_OK")
</pallas_src>

<mosaic_0001>
module attributes {stable_mosaic.version = 11 : i64} {
  func.func @_fused_mlp_kernel(%arg0: memref<8x768xbf16, #tpu.memory_space<vmem>>, %arg1: memref<1x768x512xbf16, #tpu.memory_space<vmem>>, %arg2: memref<5x512x512xbf16, #tpu.memory_space<vmem>>, %arg3: memref<4x512x256xbf16, #tpu.memory_space<vmem>>, %arg4: memref<4x256x512xbf16, #tpu.memory_space<vmem>>, %arg5: memref<1x512x128xbf16, #tpu.memory_space<vmem>>, %arg6: memref<4x128x256xbf16, #tpu.memory_space<vmem>>, %arg7: memref<4x256x256xbf16, #tpu.memory_space<vmem>>, %arg8: memref<4x256x128xbf16, #tpu.memory_space<vmem>>, %arg9: memref<18x128x128xbf16, #tpu.memory_space<vmem>>, %arg10: memref<1x128x1024xbf16, #tpu.memory_space<vmem>>, %arg11: memref<10x512xf32, #tpu.memory_space<vmem>>, %arg12: memref<12x256xf32, #tpu.memory_space<vmem>>, %arg13: memref<23x128xf32, #tpu.memory_space<vmem>>, %arg14: memref<1x1024xf32, #tpu.memory_space<vmem>>, %arg15: memref<8x1024xf32, #tpu.memory_space<vmem>>) attributes {dimension_semantics = [], scalar_prefetch = 0 : i64, scratch_operands = 0 : i64, tpu.core_type = #tpu.core_type<tc>} {
    %c0 = arith.constant 0 : index
    %c0_0 = arith.constant 0 : index
    %0 = vector.load %arg0[%c0, %c0_0] : memref<8x768xbf16, #tpu.memory_space<vmem>>, vector<8x768xbf16>
    %c0_1 = arith.constant 0 : index
    %c0_2 = arith.constant 0 : index
    %c0_3 = arith.constant 0 : index
    %1 = vector.load %arg1[%c0_1, %c0_2, %c0_3] : memref<1x768x512xbf16, #tpu.memory_space<vmem>>, vector<1x768x512xbf16>
    %2 = vector.shape_cast %1 : vector<1x768x512xbf16> to vector<768x512xbf16>
    %c0_4 = arith.constant 0 : index
    %c0_5 = arith.constant 0 : index
    %3 = vector.load %arg11[%c0_4, %c0_5] : memref<10x512xf32, #tpu.memory_space<vmem>>, vector<1x512xf32>
    %cst = arith.constant dense<0.000000e+00> : vector<8x512xf32>
    %4 = tpu.matmul %0, %2, %cst {dimension_numbers = #tpu.dot_dimension_numbers<[1], [0], [0], [1], [0, 0, 1, 1], [], []>} : vector<8x768xbf16>, vector<768x512xbf16>, vector<8x512xf32> -> vector<8x512xf32>
    %5 = vector.broadcast %3 : vector<1x512xf32> to vector<8x512xf32>
    %6 = arith.addf %4, %5 : vector<8x512xf32>
    %cst_6 = arith.constant 0.000000e+00 : f32
    %7 = vector.broadcast %cst_6 : f32 to vector<8x512xf32>
    %8 = arith.maximumf %6, %7 : vector<8x512xf32>
    %9 = arith.truncf %8 : vector<8x512xf32> to vector<8x512xbf16>
    %c0_7 = arith.constant 0 : index
    %c0_8 = arith.constant 0 : index
    %c0_9 = arith.constant 0 : index
    %10 = vector.load %arg2[%c0_7, %c0_8, %c0_9] : memref<5x512x512xbf16, #tpu.memory_space<vmem>>, vector<1x512x512xbf16>
    %11 = vector.shape_cast %10 : vector<1x512x512xbf16> to vector<512x512xbf16>
    %c1 = arith.constant 1 : index
    %c0_10 = arith.constant 0 : index
    %12 = vector.load %arg11[%c1, %c0_10] : memref<10x512xf32, #tpu.memory_space<vmem>>, vector<1x512xf32>
    %cst_11 = arith.constant dense<0.000000e+00> : vector<8x512xf32>
    %13 = tpu.matmul %9, %11, %cst_11 {dimension_numbers = #tpu.dot_dimension_numbers<[1], [0], [0], [1], [0, 0, 1, 1], [], []>} : vector<8x512xbf16>, vector<512x512xbf16>, vector<8x512xf32> -> vector<8x512xf32>
    %14 = vector.broadcast %12 : vector<1x512xf32> to vector<8x512xf32>
    %15 = arith.addf %13, %14 : vector<8x512xf32>
    %cst_12 = arith.constant 0.000000e+00 : f32
    %16 = vector.broadcast %cst_12 : f32 to vector<8x512xf32>
    %17 = arith.maximumf %15, %16 : vector<8x512xf32>
    %18 = arith.truncf %17 : vector<8x512xf32> to vector<8x512xbf16>
    %c0_13 = arith.constant 0 : index
    %c0_14 = arith.constant 0 : index
    %c0_15 = arith.constant 0 : index
    %19 = vector.load %arg3[%c0_13, %c0_14, %c0_15] : memref<4x512x256xbf16, #tpu.memory_space<vmem>>, vector<1x512x256xbf16>
    %20 = vector.shape_cast %19 : vector<1x512x256xbf16> to vector<512x256xbf16>
    %c0_16 = arith.constant 0 : index
    %c0_17 = arith.constant 0 : index
    %21 = vector.load %arg12[%c0_16, %c0_17] : memref<12x256xf32, #tpu.memory_space<vmem>>, vector<1x256xf32>
    %cst_18 = arith.constant dense<0.000000e+00> : vector<8x256xf32>
    %22 = tpu.matmul %18, %20, %cst_18 {dimension_numbers = #tpu.dot_dimension_numbers<[1], [0], [0], [1], [0, 0, 1, 1], [], []>} : vector<8x512xbf16>, vector<512x256xbf16>, vector<8x256xf32> -> vector<8x256xf32>
    %23 = vector.broadcast %21 : vector<1x256xf32> to vector<8x256xf32>
    %24 = arith.addf %22, %23 : vector<8x256xf32>
    %cst_19 = arith.constant 0.000000e+00 : f32
    %25 = vector.broadcast %cst_19 : f32 to vector<8x256xf32>
    %26 = arith.maximumf %24, %25 : vector<8x256xf32>
    %27 = arith.truncf %26 : vector<8x256xf32> to vector<8x256xbf16>
    %c0_20 = arith.constant 0 : index
    %c0_21 = arith.constant 0 : index
    %c0_22 = arith.constant 0 : index
    %28 = vector.load %arg4[%c0_20, %c0_21, %c0_22] : memref<4x256x512xbf16, #tpu.memory_space<vmem>>, vector<1x256x512xbf16>
    %29 = vector.shape_cast %28 : vector<1x256x512xbf16> to vector<256x512xbf16>
    %c2 = arith.constant 2 : index
    %c0_23 = arith.constant 0 : index
    %30 = vector.load %arg11[%c2, %c0_23] : memref<10x512xf32, #tpu.memory_space<vmem>>, vector<1x512xf32>
    %cst_24 = arith.constant dense<0.000000e+00> : vector<8x512xf32>
    %31 = tpu.matmul %27, %29, %cst_24 {dimension_numbers = #tpu.dot_dimension_numbers<[1], [0], [0], [1], [0, 0, 1, 1], [], []>} : vector<8x256xbf16>, vector<256x512xbf16>, vector<8x512xf32> -> vector<8x512xf32>
    %32 = vector.broadcast %30 : vector<1x512xf32> to vector<8x512xf32>
    %33 = arith.addf %31, %32 : vector<8x512xf32>
    %cst_25 = arith.constant 0.000000e+00 : f32
    %34 = vector.broadcast %cst_25 : f32 to vector<8x512xf32>
    %35 = arith.maximumf %33, %34 : vector<8x512xf32>
    %36 = arith.truncf %35 : vector<8x512xf32> to vector<8x512xbf16>
    %c1_26 = arith.constant 1 : index
    %c0_27 = arith.constant 0 : index
    %c0_28 = arith.constant 0 : index
    %37 = vector.load %arg2[%c1_26, %c0_27, %c0_28] : memref<5x512x512xbf16, #tpu.memory_space<vmem>>, vector<1x512x512xbf16>
    %38 = vector.shape_cast %37 : vector<1x512x512xbf16> to vector<512x512xbf16>
    %c3 = arith.constant 3 : index
    %c0_29 = arith.constant 0 : index
    %39 = vector.load %arg11[%c3, %c0_29] : memref<10x512xf32, #tpu.memory_space<vmem>>, vector<1x512xf32>
    %cst_30 = arith.constant dense<0.000000e+00> : vector<8x512xf32>
    %40 = tpu.matmul %36, %38, %cst_30 {dimension_numbers = #tpu.dot_dimension_numbers<[1], [0], [0], [1], [0, 0, 1, 1], [], []>} : vector<8x512xbf16>, vector<512x512xbf16>, vector<8x512xf32> -> vector<8x512xf32>
    %41 = vector.broadcast %39 : vector<1x512xf32> to vector<8x512xf32>
    %42 = arith.addf %40, %41 : vector<8x512xf32>
    %cst_31 = arith.constant 0.000000e+00 : f32
    %43 = vector.broadcast %cst_31 : f32 to vector<8x512xf32>
    %44 = arith.maximumf %42, %43 : vector<8x512xf32>
    %45 = arith.truncf %44 : vector<8x512xf32> to vector<8x512xbf16>
    %c1_32 = arith.constant 1 : index
    %c0_33 = arith.constant 0 : index
    %c0_34 = arith.constant 0 : index
    %46 = vector.load %arg3[%c1_32, %c0_33, %c0_34] : memref<4x512x256xbf16, #tpu.memory_space<vmem>>, vector<1x512x256xbf16>
    %47 = vector.shape_cast %46 : vector<1x512x256xbf16> to vector<512x256xbf16>
    %c1_35 = arith.constant 1 : index
    %c0_36 = arith.constant 0 : index
    %48 = vector.load %arg12[%c1_35, %c0_36] : memref<12x256xf32, #tpu.memory_space<vmem>>, vector<1x256xf32>
    %cst_37 = arith.constant dense<0.000000e+00> : vector<8x256xf32>
    %49 = tpu.matmul %45, %47, %cst_37 {dimension_numbers = #tpu.dot_dimension_numbers<[1], [0], [0], [1], [0, 0, 1, 1], [], []>} : vector<8x512xbf16>, vector<512x256xbf16>, vector<8x256xf32> -> vector<8x256xf32>
    %50 = vector.broadcast %48 : vector<1x256xf32> to vector<8x256xf32>
    %51 = arith.addf %49, %50 : vector<8x256xf32>
    %cst_38 = arith.constant 0.000000e+00 : f32
    %52 = vector.broadcast %cst_38 : f32 to vector<8x256xf32>
    %53 = arith.maximumf %51, %52 : vector<8x256xf32>
    %54 = arith.truncf %53 : vector<8x256xf32> to vector<8x256xbf16>
    %c1_39 = arith.constant 1 : index
    %c0_40 = arith.constant 0 : index
    %c0_41 = arith.constant 0 : index
    %55 = vector.load %arg4[%c1_39, %c0_40, %c0_41] : memref<4x256x512xbf16, #tpu.memory_space<vmem>>, vector<1x256x512xbf16>
    %56 = vector.shape_cast %55 : vector<1x256x512xbf16> to vector<256x512xbf16>
    %c4 = arith.constant 4 : index
    %c0_42 = arith.constant 0 : index
    %57 = vector.load %arg11[%c4, %c0_42] : memref<10x512xf32, #tpu.memory_space<vmem>>, vector<1x512xf32>
    %cst_43 = arith.constant dense<0.000000e+00> : vector<8x512xf32>
    %58 = tpu.matmul %54, %56, %cst_43 {dimension_numbers = #tpu.dot_dimension_numbers<[1], [0], [0], [1], [0, 0, 1, 1], [], []>} : vector<8x256xbf16>, vector<256x512xbf16>, vector<8x512xf32> -> vector<8x512xf32>
    %59 = vector.broadcast %57 : vector<1x512xf32> to vector<8x512xf32>
    %60 = arith.addf %58, %59 : vector<8x512xf32>
    %cst_44 = arith.constant 0.000000e+00 : f32
    %61 = vector.broadcast %cst_44 : f32 to vector<8x512xf32>
    %62 = arith.maximumf %60, %61 : vector<8x512xf32>
    %63 = arith.truncf %62 : vector<8x512xf32> to vector<8x512xbf16>
    %c2_45 = arith.constant 2 : index
    %c0_46 = arith.constant 0 : index
    %c0_47 = arith.constant 0 : index
    %64 = vector.load %arg2[%c2_45, %c0_46, %c0_47] : memref<5x512x512xbf16, #tpu.memory_space<vmem>>, vector<1x512x512xbf16>
    %65 = vector.shape_cast %64 : vector<1x512x512xbf16> to vector<512x512xbf16>
    %c5 = arith.constant 5 : index
    %c0_48 = arith.constant 0 : index
    %66 = vector.load %arg11[%c5, %c0_48] : memref<10x512xf32, #tpu.memory_space<vmem>>, vector<1x512xf32>
    %cst_49 = arith.constant dense<0.000000e+00> : vector<8x512xf32>
    %67 = tpu.matmul %63, %65, %cst_49 {dimension_numbers = #tpu.dot_dimension_numbers<[1], [0], [0], [1], [0, 0, 1, 1], [], []>} : vector<8x512xbf16>, vector<512x512xbf16>, vector<8x512xf32> -> vector<8x512xf32>
    %68 = vector.broadcast %66 : vector<1x512xf32> to vector<8x512xf32>
    %69 = arith.addf %67, %68 : vector<8x512xf32>
    %cst_50 = arith.constant 0.000000e+00 : f32
    %70 = vector.broadcast %cst_50 : f32 to vector<8x512xf32>
    %71 = arith.maximumf %69, %70 : vector<8x512xf32>
    %72 = arith.truncf %71 : vector<8x512xf32> to vector<8x512xbf16>
    %c2_51 = arith.constant 2 : index
    %c0_52 = arith.constant 0 : index
    %c0_53 = arith.constant 0 : index
    %73 = vector.load %arg3[%c2_51, %c0_52, %c0_53] : memref<4x512x256xbf16, #tpu.memory_space<vmem>>, vector<1x512x256xbf16>
    %74 = vector.shape_cast %73 : vector<1x512x256xbf16> to vector<512x256xbf16>
    %c2_54 = arith.constant 2 : index
    %c0_55 = arith.constant 0 : index
    %75 = vector.load %arg12[%c2_54, %c0_55] : memref<12x256xf32, #tpu.memory_space<vmem>>, vector<1x256xf32>
    %cst_56 = arith.constant dense<0.000000e+00> : vector<8x256xf32>
    %76 = tpu.matmul %72, %74, %cst_56 {dimension_numbers = #tpu.dot_dimension_numbers<[1], [0], [0], [1], [0, 0, 1, 1], [], []>} : vector<8x512xbf16>, vector<512x256xbf16>, vector<8x256xf32> -> vector<8x256xf32>
    %77 = vector.broadcast %75 : vector<1x256xf32> to vector<8x256xf32>
    %78 = arith.addf %76, %77 : vector<8x256xf32>
    %cst_57 = arith.constant 0.000000e+00 : f32
    %79 = vector.broadcast %cst_57 : f32 to vector<8x256xf32>
    %80 = arith.maximumf %78, %79 : vector<8x256xf32>
    %81 = arith.truncf %80 : vector<8x256xf32> to vector<8x256xbf16>
    %c2_58 = arith.constant 2 : index
    %c0_59 = arith.constant 0 : index
    %c0_60 = arith.constant 0 : index
    %82 = vector.load %arg4[%c2_58, %c0_59, %c0_60] : memref<4x256x512xbf16, #tpu.memory_space<vmem>>, vector<1x256x512xbf16>
    %83 = vector.shape_cast %82 : vector<1x256x512xbf16> to vector<256x512xbf16>
    %c6 = arith.constant 6 : index
    %c0_61 = arith.constant 0 : index
    %84 = vector.load %arg11[%c6, %c0_61] : memref<10x512xf32, #tpu.memory_space<vmem>>, vector<1x512xf32>
    %cst_62 = arith.constant dense<0.000000e+00> : vector<8x512xf32>
    %85 = tpu.matmul %81, %83, %cst_62 {dimension_numbers = #tpu.dot_dimension_numbers<[1], [0], [0], [1], [0, 0, 1, 1], [], []>} : vector<8x256xbf16>, vector<256x512xbf16>, vector<8x512xf32> -> vector<8x512xf32>
    %86 = vector.broadcast %84 : vector<1x512xf32> to vector<8x512xf32>
    %87 = arith.addf %85, %86 : vector<8x512xf32>
    %cst_63 = arith.constant 0.000000e+00 : f32
    %88 = vector.broadcast %cst_63 : f32 to vector<8x512xf32>
    %89 = arith.maximumf %87, %88 : vector<8x512xf32>
    %90 = arith.truncf %89 : vector<8x512xf32> to vector<8x512xbf16>
    %c3_64 = arith.constant 3 : index
    %c0_65 = arith.constant 0 : index
    %c0_66 = arith.constant 0 : index
    %91 = vector.load %arg2[%c3_64, %c0_65, %c0_66] : memref<5x512x512xbf16, #tpu.memory_space<vmem>>, vector<1x512x512xbf16>
    %92 = vector.shape_cast %91 : vector<1x512x512xbf16> to vector<512x512xbf16>
    %c7 = arith.constant 7 : index
    %c0_67 = arith.constant 0 : index
    %93 = vector.load %arg11[%c7, %c0_67] : memref<10x512xf32, #tpu.memory_space<vmem>>, vector<1x512xf32>
    %cst_68 = arith.constant dense<0.000000e+00> : vector<8x512xf32>
    %94 = tpu.matmul %90, %92, %cst_68 {dimension_numbers = #tpu.dot_dimension_numbers<[1], [0], [0], [1], [0, 0, 1, 1], [], []>} : vector<8x512xbf16>, vector<512x512xbf16>, vector<8x512xf32> -> vector<8x512xf32>
    %95 = vector.broadcast %93 : vector<1x512xf32> to vector<8x512xf32>
    %96 = arith.addf %94, %95 : vector<8x512xf32>
    %cst_69 = arith.constant 0.000000e+00 : f32
    %97 = vector.broadcast %cst_69 : f32 to vector<8x512xf32>
    %98 = arith.maximumf %96, %97 : vector<8x512xf32>
    %99 = arith.truncf %98 : vector<8x512xf32> to vector<8x512xbf16>
    %c3_70 = arith.constant 3 : index
    %c0_71 = arith.constant 0 : index
    %c0_72 = arith.constant 0 : index
    %100 = vector.load %arg3[%c3_70, %c0_71, %c0_72] : memref<4x512x256xbf16, #tpu.memory_space<vmem>>, vector<1x512x256xbf16>
    %101 = vector.shape_cast %100 : vector<1x512x256xbf16> to vector<512x256xbf16>
    %c3_73 = arith.constant 3 : index
    %c0_74 = arith.constant 0 : index
    %102 = vector.load %arg12[%c3_73, %c0_74] : memref<12x256xf32, #tpu.memory_space<vmem>>, vector<1x256xf32>
    %cst_75 = arith.constant dense<0.000000e+00> : vector<8x256xf32>
    %103 = tpu.matmul %99, %101, %cst_75 {dimension_numbers = #tpu.dot_dimension_numbers<[1], [0], [0], [1], [0, 0, 1, 1], [], []>} : vector<8x512xbf16>, vector<512x256xbf16>, vector<8x256xf32> -> vector<8x256xf32>
    %104 = vector.broadcast %102 : vector<1x256xf32> to vector<8x256xf32>
    %105 = arith.addf %103, %104 : vector<8x256xf32>
    %cst_76 = arith.constant 0.000000e+00 : f32
    %106 = vector.broadcast %cst_76 : f32 to vector<8x256xf32>
    %107 = arith.maximumf %105, %106 : vector<8x256xf32>
    %108 = arith.truncf %107 : vector<8x256xf32> to vector<8x256xbf16>
    %c3_77 = arith.constant 3 : index
    %c0_78 = arith.constant 0 : index
    %c0_79 = arith.constant 0 : index
    %109 = vector.load %arg4[%c3_77, %c0_78, %c0_79] : memref<4x256x512xbf16, #tpu.memory_space<vmem>>, vector<1x256x512xbf16>
    %110 = vector.shape_cast %109 : vector<1x256x512xbf16> to vector<256x512xbf16>
    %c8 = arith.constant 8 : index
    %c0_80 = arith.constant 0 : index
    %111 = vector.load %arg11[%c8, %c0_80] : memref<10x512xf32, #tpu.memory_space<vmem>>, vector<1x512xf32>
    %cst_81 = arith.constant dense<0.000000e+00> : vector<8x512xf32>
    %112 = tpu.matmul %108, %110, %cst_81 {dimension_numbers = #tpu.dot_dimension_numbers<[1], [0], [0], [1], [0, 0, 1, 1], [], []>} : vector<8x256xbf16>, vector<256x512xbf16>, vector<8x512xf32> -> vector<8x512xf32>
    %113 = vector.broadcast %111 : vector<1x512xf32> to vector<8x512xf32>
    %114 = arith.addf %112, %113 : vector<8x512xf32>
    %cst_82 = arith.constant 0.000000e+00 : f32
    %115 = vector.broadcast %cst_82 : f32 to vector<8x512xf32>
    %116 = arith.maximumf %114, %115 : vector<8x512xf32>
    %117 = arith.truncf %116 : vector<8x512xf32> to vector<8x512xbf16>
    %c4_83 = arith.constant 4 : index
    %c0_84 = arith.constant 0 : index
    %c0_85 = arith.constant 0 : index
    %118 = vector.load %arg2[%c4_83, %c0_84, %c0_85] : memref<5x512x512xbf16, #tpu.memory_space<vmem>>, vector<1x512x512xbf16>
    %119 = vector.shape_cast %118 : vector<1x512x512xbf16> to vector<512x512xbf16>
    %c9 = arith.constant 9 : index
    %c0_86 = arith.constant 0 : index
    %120 = vector.load %arg11[%c9, %c0_86] : memref<10x512xf32, #tpu.memory_space<vmem>>, vector<1x512xf32>
    %cst_87 = arith.constant dense<0.000000e+00> : vector<8x512xf32>
    %121 = tpu.matmul %117, %119, %cst_87 {dimension_numbers = #tpu.dot_dimension_numbers<[1], [0], [0], [1], [0, 0, 1, 1], [], []>} : vector<8x512xbf16>, vector<512x512xbf16>, vector<8x512xf32> -> vector<8x512xf32>
    %122 = vector.broadcast %120 : vector<1x512xf32> to vector<8x512xf32>
    %123 = arith.addf %121, %122 : vector<8x512xf32>
    %cst_88 = arith.constant 0.000000e+00 : f32
    %124 = vector.broadcast %cst_88 : f32 to vector<8x512xf32>
    %125 = arith.maximumf %123, %124 : vector<8x512xf32>
    %126 = arith.truncf %125 : vector<8x512xf32> to vector<8x512xbf16>
    %c0_89 = arith.constant 0 : index
    %c0_90 = arith.constant 0 : index
    %c0_91 = arith.constant 0 : index
    %127 = vector.load %arg5[%c0_89, %c0_90, %c0_91] : memref<1x512x128xbf16, #tpu.memory_space<vmem>>, vector<1x512x128xbf16>
    %128 = vector.shape_cast %127 : vector<1x512x128xbf16> to vector<512x128xbf16>
    %c0_92 = arith.constant 0 : index
    %c0_93 = arith.constant 0 : index
    %129 = vector.load %arg13[%c0_92, %c0_93] : memref<23x128xf32, #tpu.memory_space<vmem>>, vector<1x128xf32>
    %cst_94 = arith.constant dense<0.000000e+00> : vector<8x128xf32>
    %130 = tpu.matmul %126, %128, %cst_94 {dimension_numbers = #tpu.dot_dimension_numbers<[1], [0], [0], [1], [0, 0, 1, 1], [], []>} : vector<8x512xbf16>, vector<512x128xbf16>, vector<8x128xf32> -> vector<8x128xf32>
    %131 = vector.broadcast %129 : vector<1x128xf32> to vector<8x128xf32>
    %132 = arith.addf %130, %131 : vector<8x128xf32>
    %cst_95 = arith.constant 0.000000e+00 : f32
    %133 = vector.broadcast %cst_95 : f32 to vector<8x128xf32>
    %134 = arith.maximumf %132, %133 : vector<8x128xf32>
    %135 = arith.truncf %134 : vector<8x128xf32> to vector<8x128xbf16>
    %c0_96 = arith.constant 0 : index
    %c0_97 = arith.constant 0 : index
    %c0_98 = arith.constant 0 : index
    %136 = vector.load %arg6[%c0_96, %c0_97, %c0_98] : memref<4x128x256xbf16, #tpu.memory_space<vmem>>, vector<1x128x256xbf16>
    %137 = vector.shape_cast %136 : vector<1x128x256xbf16> to vector<128x256xbf16>
    %c4_99 = arith.constant 4 : index
    %c0_100 = arith.constant 0 : index
    %138 = vector.load %arg12[%c4_99, %c0_100] : memref<12x256xf32, #tpu.memory_space<vmem>>, vector<1x256xf32>
    %cst_101 = arith.constant dense<0.000000e+00> : vector<8x256xf32>
    %139 = tpu.matmul %135, %137, %cst_101 {dimension_numbers = #tpu.dot_dimension_numbers<[1], [0], [0], [1], [0, 0, 1, 1], [], []>} : vector<8x128xbf16>, vector<128x256xbf16>, vector<8x256xf32> -> vector<8x256xf32>
    %140 = vector.broadcast %138 : vector<1x256xf32> to vector<8x256xf32>
    %141 = arith.addf %139, %140 : vector<8x256xf32>
    %cst_102 = arith.constant 0.000000e+00 : f32
    %142 = vector.broadcast %cst_102 : f32 to vector<8x256xf32>
    %143 = arith.maximumf %141, %142 : vector<8x256xf32>
    %144 = arith.truncf %143 : vector<8x256xf32> to vector<8x256xbf16>
    %c0_103 = arith.constant 0 : index
    %c0_104 = arith.constant 0 : index
    %c0_105 = arith.constant 0 : index
    %145 = vector.load %arg7[%c0_103, %c0_104, %c0_105] : memref<4x256x256xbf16, #tpu.memory_space<vmem>>, vector<1x256x256xbf16>
    %146 = vector.shape_cast %145 : vector<1x256x256xbf16> to vector<256x256xbf16>
    %c5_106 = arith.constant 5 : index
    %c0_107 = arith.constant 0 : index
    %147 = vector.load %arg12[%c5_106, %c0_107] : memref<12x256xf32, #tpu.memory_space<vmem>>, vector<1x256xf32>
    %cst_108 = arith.constant dense<0.000000e+00> : vector<8x256xf32>
    %148 = tpu.matmul %144, %146, %cst_108 {dimension_numbers = #tpu.dot_dimension_numbers<[1], [0], [0], [1], [0, 0, 1, 1], [], []>} : vector<8x256xbf16>, vector<256x256xbf16>, vector<8x256xf32> -> vector<8x256xf32>
    %149 = vector.broadcast %147 : vector<1x256xf32> to vector<8x256xf32>
    %150 = arith.addf %148, %149 : vector<8x256xf32>
    %cst_109 = arith.constant 0.000000e+00 : f32
    %151 = vector.broadcast %cst_109 : f32 to vector<8x256xf32>
    %152 = arith.maximumf %150, %151 : vector<8x256xf32>
    %153 = arith.truncf %152 : vector<8x256xf32> to vector<8x256xbf16>
    %c0_110 = arith.constant 0 : index
    %c0_111 = arith.constant 0 : index
    %c0_112 = arith.constant 0 : index
    %154 = vector.load %arg8[%c0_110, %c0_111, %c0_112] : memref<4x256x128xbf16, #tpu.memory_space<vmem>>, vector<1x256x128xbf16>
    %155 = vector.shape_cast %154 : vector<1x256x128xbf16> to vector<256x128xbf16>
    %c1_113 = arith.constant 1 : index
    %c0_114 = arith.constant 0 : index
    %156 = vector.load %arg13[%c1_113, %c0_114] : memref<23x128xf32, #tpu.memory_space<vmem>>, vector<1x128xf32>
    %cst_115 = arith.constant dense<0.000000e+00> : vector<8x128xf32>
    %157 = tpu.matmul %153, %155, %cst_115 {dimension_numbers = #tpu.dot_dimension_numbers<[1], [0], [0], [1], [0, 0, 1, 1], [], []>} : vector<8x256xbf16>, vector<256x128xbf16>, vector<8x128xf32> -> vector<8x128xf32>
    %158 = vector.broadcast %156 : vector<1x128xf32> to vector<8x128xf32>
    %159 = arith.addf %157, %158 : vector<8x128xf32>
    %cst_116 = arith.constant 0.000000e+00 : f32
    %160 = vector.broadcast %cst_116 : f32 to vector<8x128xf32>
    %161 = arith.maximumf %159, %160 : vector<8x128xf32>
    %162 = arith.truncf %161 : vector<8x128xf32> to vector<8x128xbf16>
    %c1_117 = arith.constant 1 : index
    %c0_118 = arith.constant 0 : index
    %c0_119 = arith.constant 0 : index
    %163 = vector.load %arg6[%c1_117, %c0_118, %c0_119] : memref<4x128x256xbf16, #tpu.memory_space<vmem>>, vector<1x128x256xbf16>
    %164 = vector.shape_cast %163 : vector<1x128x256xbf16> to vector<128x256xbf16>
    %c6_120 = arith.constant 6 : index
    %c0_121 = arith.constant 0 : index
    %165 = vector.load %arg12[%c6_120, %c0_121] : memref<12x256xf32, #tpu.memory_space<vmem>>, vector<1x256xf32>
    %cst_122 = arith.constant dense<0.000000e+00> : vector<8x256xf32>
    %166 = tpu.matmul %162, %164, %cst_122 {dimension_numbers = #tpu.dot_dimension_numbers<[1], [0], [0], [1], [0, 0, 1, 1], [], []>} : vector<8x128xbf16>, vector<128x256xbf16>, vector<8x256xf32> -> vector<8x256xf32>
    %167 = vector.broadcast %165 : vector<1x256xf32> to vector<8x256xf32>
    %168 = arith.addf %166, %167 : vector<8x256xf32>
    %cst_123 = arith.constant 0.000000e+00 : f32
    %169 = vector.broadcast %cst_123 : f32 to vector<8x256xf32>
    %170 = arith.maximumf %168, %169 : vector<8x256xf32>
    %171 = arith.truncf %170 : vector<8x256xf32> to vector<8x256xbf16>
    %c1_124 = arith.constant 1 : index
    %c0_125 = arith.constant 0 : index
    %c0_126 = arith.constant 0 : index
    %172 = vector.load %arg7[%c1_124, %c0_125, %c0_126] : memref<4x256x256xbf16, #tpu.memory_space<vmem>>, vector<1x256x256xbf16>
    %173 = vector.shape_cast %172 : vector<1x256x256xbf16> to vector<256x256xbf16>
    %c7_127 = arith.constant 7 : index
    %c0_128 = arith.constant 0 : index
    %174 = vector.load %arg12[%c7_127, %c0_128] : memref<12x256xf32, #tpu.memory_space<vmem>>, vector<1x256xf32>
    %cst_129 = arith.constant dense<0.000000e+00> : vector<8x256xf32>
    %175 = tpu.matmul %171, %173, %cst_129 {dimension_numbers = #tpu.dot_dimension_numbers<[1], [0], [0], [1], [0, 0, 1, 1], [], []>} : vector<8x256xbf16>, vector<256x256xbf16>, vector<8x256xf32> -> vector<8x256xf32>
    %176 = vector.broadcast %174 : vector<1x256xf32> to vector<8x256xf32>
    %177 = arith.addf %175, %176 : vector<8x256xf32>
    %cst_130 = arith.constant 0.000000e+00 : f32
    %178 = vector.broadcast %cst_130 : f32 to vector<8x256xf32>
    %179 = arith.maximumf %177, %178 : vector<8x256xf32>
    %180 = arith.truncf %179 : vector<8x256xf32> to vector<8x256xbf16>
    %c1_131 = arith.constant 1 : index
    %c0_132 = arith.constant 0 : index
    %c0_133 = arith.constant 0 : index
    %181 = vector.load %arg8[%c1_131, %c0_132, %c0_133] : memref<4x256x128xbf16, #tpu.memory_space<vmem>>, vector<1x256x128xbf16>
    %182 = vector.shape_cast %181 : vector<1x256x128xbf16> to vector<256x128xbf16>
    %c2_134 = arith.constant 2 : index
    %c0_135 = arith.constant 0 : index
    %183 = vector.load %arg13[%c2_134, %c0_135] : memref<23x128xf32, #tpu.memory_space<vmem>>, vector<1x128xf32>
    %cst_136 = arith.constant dense<0.000000e+00> : vector<8x128xf32>
    %184 = tpu.matmul %180, %182, %cst_136 {dimension_numbers = #tpu.dot_dimension_numbers<[1], [0], [0], [1], [0, 0, 1, 1], [], []>} : vector<8x256xbf16>, vector<256x128xbf16>, vector<8x128xf32> -> vector<8x128xf32>
    %185 = vector.broadcast %183 : vector<1x128xf32> to vector<8x128xf32>
    %186 = arith.addf %184, %185 : vector<8x128xf32>
    %cst_137 = arith.constant 0.000000e+00 : f32
    %187 = vector.broadcast %cst_137 : f32 to vector<8x128xf32>
    %188 = arith.maximumf %186, %187 : vector<8x128xf32>
    %189 = arith.truncf %188 : vector<8x128xf32> to vector<8x128xbf16>
    %c2_138 = arith.constant 2 : index
    %c0_139 = arith.constant 0 : index
    %c0_140 = arith.constant 0 : index
    %190 = vector.load %arg6[%c2_138, %c0_139, %c0_140] : memref<4x128x256xbf16, #tpu.memory_space<vmem>>, vector<1x128x256xbf16>
    %191 = vector.shape_cast %190 : vector<1x128x256xbf16> to vector<128x256xbf16>
    %c8_141 = arith.constant 8 : index
    %c0_142 = arith.constant 0 : index
    %192 = vector.load %arg12[%c8_141, %c0_142] : memref<12x256xf32, #tpu.memory_space<vmem>>, vector<1x256xf32>
    %cst_143 = arith.constant dense<0.000000e+00> : vector<8x256xf32>
    %193 = tpu.matmul %189, %191, %cst_143 {dimension_numbers = #tpu.dot_dimension_numbers<[1], [0], [0], [1], [0, 0, 1, 1], [], []>} : vector<8x128xbf16>, vector<128x256xbf16>, vector<8x256xf32> -> vector<8x256xf32>
    %194 = vector.broadcast %192 : vector<1x256xf32> to vector<8x256xf32>
    %195 = arith.addf %193, %194 : vector<8x256xf32>
    %cst_144 = arith.constant 0.000000e+00 : f32
    %196 = vector.broadcast %cst_144 : f32 to vector<8x256xf32>
    %197 = arith.maximumf %195, %196 : vector<8x256xf32>
    %198 = arith.truncf %197 : vector<8x256xf32> to vector<8x256xbf16>
    %c2_145 = arith.constant 2 : index
    %c0_146 = arith.constant 0 : index
    %c0_147 = arith.constant 0 : index
    %199 = vector.load %arg7[%c2_145, %c0_146, %c0_147] : memref<4x256x256xbf16, #tpu.memory_space<vmem>>, vector<1x256x256xbf16>
    %200 = vector.shape_cast %199 : vector<1x256x256xbf16> to vector<256x256xbf16>
    %c9_148 = arith.constant 9 : index
    %c0_149 = arith.constant 0 : index
    %201 = vector.load %arg12[%c9_148, %c0_149] : memref<12x256xf32, #tpu.memory_space<vmem>>, vector<1x256xf32>
    %cst_150 = arith.constant dense<0.000000e+00> : vector<8x256xf32>
    %202 = tpu.matmul %198, %200, %cst_150 {dimension_numbers = #tpu.dot_dimension_numbers<[1], [0], [0], [1], [0, 0, 1, 1], [], []>} : vector<8x256xbf16>, vector<256x256xbf16>, vector<8x256xf32> -> vector<8x256xf32>
    %203 = vector.broadcast %201 : vector<1x256xf32> to vector<8x256xf32>
    %204 = arith.addf %202, %203 : vector<8x256xf32>
    %cst_151 = arith.constant 0.000000e+00 : f32
    %205 = vector.broadcast %cst_151 : f32 to vector<8x256xf32>
    %206 = arith.maximumf %204, %205 : vector<8x256xf32>
    %207 = arith.truncf %206 : vector<8x256xf32> to vector<8x256xbf16>
    %c2_152 = arith.constant 2 : index
    %c0_153 = arith.constant 0 : index
    %c0_154 = arith.constant 0 : index
    %208 = vector.load %arg8[%c2_152, %c0_153, %c0_154] : memref<4x256x128xbf16, #tpu.memory_space<vmem>>, vector<1x256x128xbf16>
    %209 = vector.shape_cast %208 : vector<1x256x128xbf16> to vector<256x128xbf16>
    %c3_155 = arith.constant 3 : index
    %c0_156 = arith.constant 0 : index
    %210 = vector.load %arg13[%c3_155, %c0_156] : memref<23x128xf32, #tpu.memory_space<vmem>>, vector<1x128xf32>
    %cst_157 = arith.constant dense<0.000000e+00> : vector<8x128xf32>
    %211 = tpu.matmul %207, %209, %cst_157 {dimension_numbers = #tpu.dot_dimension_numbers<[1], [0], [0], [1], [0, 0, 1, 1], [], []>} : vector<8x256xbf16>, vector<256x128xbf16>, vector<8x128xf32> -> vector<8x128xf32>
    %212 = vector.broadcast %210 : vector<1x128xf32> to vector<8x128xf32>
    %213 = arith.addf %211, %212 : vector<8x128xf32>
    %cst_158 = arith.constant 0.000000e+00 : f32
    %214 = vector.broadcast %cst_158 : f32 to vector<8x128xf32>
    %215 = arith.maximumf %213, %214 : vector<8x128xf32>
    %216 = arith.truncf %215 : vector<8x128xf32> to vector<8x128xbf16>
    %c3_159 = arith.constant 3 : index
    %c0_160 = arith.constant 0 : index
    %c0_161 = arith.constant 0 : index
    %217 = vector.load %arg6[%c3_159, %c0_160, %c0_161] : memref<4x128x256xbf16, #tpu.memory_space<vmem>>, vector<1x128x256xbf16>
    %218 = vector.shape_cast %217 : vector<1x128x256xbf16> to vector<128x256xbf16>
    %c10 = arith.constant 10 : index
    %c0_162 = arith.constant 0 : index
    %219 = vector.load %arg12[%c10, %c0_162] : memref<12x256xf32, #tpu.memory_space<vmem>>, vector<1x256xf32>
    %cst_163 = arith.constant dense<0.000000e+00> : vector<8x256xf32>
    %220 = tpu.matmul %216, %218, %cst_163 {dimension_numbers = #tpu.dot_dimension_numbers<[1], [0], [0], [1], [0, 0, 1, 1], [], []>} : vector<8x128xbf16>, vector<128x256xbf16>, vector<8x256xf32> -> vector<8x256xf32>
    %221 = vector.broadcast %219 : vector<1x256xf32> to vector<8x256xf32>
    %222 = arith.addf %220, %221 : vector<8x256xf32>
    %cst_164 = arith.constant 0.000000e+00 : f32
    %223 = vector.broadcast %cst_164 : f32 to vector<8x256xf32>
    %224 = arith.maximumf %222, %223 : vector<8x256xf32>
    %225 = arith.truncf %224 : vector<8x256xf32> to vector<8x256xbf16>
    %c3_165 = arith.constant 3 : index
    %c0_166 = arith.constant 0 : index
    %c0_167 = arith.constant 0 : index
    %226 = vector.load %arg7[%c3_165, %c0_166, %c0_167] : memref<4x256x256xbf16, #tpu.memory_space<vmem>>, vector<1x256x256xbf16>
    %227 = vector.shape_cast %226 : vector<1x256x256xbf16> to vector<256x256xbf16>
    %c11 = arith.constant 11 : index
    %c0_168 = arith.constant 0 : index
    %228 = vector.load %arg12[%c11, %c0_168] : memref<12x256xf32, #tpu.memory_space<vmem>>, vector<1x256xf32>
    %cst_169 = arith.constant dense<0.000000e+00> : vector<8x256xf32>
    %229 = tpu.matmul %225, %227, %cst_169 {dimension_numbers = #tpu.dot_dimension_numbers<[1], [0], [0], [1], [0, 0, 1, 1], [], []>} : vector<8x256xbf16>, vector<256x256xbf16>, vector<8x256xf32> -> vector<8x256xf32>
    %230 = vector.broadcast %228 : vector<1x256xf32> to vector<8x256xf32>
    %231 = arith.addf %229, %230 : vector<8x256xf32>
    %cst_170 = arith.constant 0.000000e+00 : f32
    %232 = vector.broadcast %cst_170 : f32 to vector<8x256xf32>
    %233 = arith.maximumf %231, %232 : vector<8x256xf32>
    %234 = arith.truncf %233 : vector<8x256xf32> to vector<8x256xbf16>
    %c3_171 = arith.constant 3 : index
    %c0_172 = arith.constant 0 : index
    %c0_173 = arith.constant 0 : index
    %235 = vector.load %arg8[%c3_171, %c0_172, %c0_173] : memref<4x256x128xbf16, #tpu.memory_space<vmem>>, vector<1x256x128xbf16>
    %236 = vector.shape_cast %235 : vector<1x256x128xbf16> to vector<256x128xbf16>
    %c4_174 = arith.constant 4 : index
    %c0_175 = arith.constant 0 : index
    %237 = vector.load %arg13[%c4_174, %c0_175] : memref<23x128xf32, #tpu.memory_space<vmem>>, vector<1x128xf32>
    %cst_176 = arith.constant dense<0.000000e+00> : vector<8x128xf32>
    %238 = tpu.matmul %234, %236, %cst_176 {dimension_numbers = #tpu.dot_dimension_numbers<[1], [0], [0], [1], [0, 0, 1, 1], [], []>} : vector<8x256xbf16>, vector<256x128xbf16>, vector<8x128xf32> -> vector<8x128xf32>
    %239 = vector.broadcast %237 : vector<1x128xf32> to vector<8x128xf32>
    %240 = arith.addf %238, %239 : vector<8x128xf32>
    %cst_177 = arith.constant 0.000000e+00 : f32
    %241 = vector.broadcast %cst_177 : f32 to vector<8x128xf32>
    %242 = arith.maximumf %240, %241 : vector<8x128xf32>
    %243 = arith.truncf %242 : vector<8x128xf32> to vector<8x128xbf16>
    %c0_178 = arith.constant 0 : index
    %c0_179 = arith.constant 0 : index
    %c0_180 = arith.constant 0 : index
    %244 = vector.load %arg9[%c0_178, %c0_179, %c0_180] : memref<18x128x128xbf16, #tpu.memory_space<vmem>>, vector<1x128x128xbf16>
    %245 = vector.shape_cast %244 : vector<1x128x128xbf16> to vector<128x128xbf16>
    %c5_181 = arith.constant 5 : index
    %c0_182 = arith.constant 0 : index
    %246 = vector.load %arg13[%c5_181, %c0_182] : memref<23x128xf32, #tpu.memory_space<vmem>>, vector<1x128xf32>
    %cst_183 = arith.constant dense<0.000000e+00> : vector<8x128xf32>
    %247 = tpu.matmul %243, %245, %cst_183 {dimension_numbers = #tpu.dot_dimension_numbers<[1], [0], [0], [1], [0, 0, 1, 1], [], []>} : vector<8x128xbf16>, vector<128x128xbf16>, vector<8x128xf32> -> vector<8x128xf32>
    %248 = vector.broadcast %246 : vector<1x128xf32> to vector<8x128xf32>
    %249 = arith.addf %247, %248 : vector<8x128xf32>
    %cst_184 = arith.constant 0.000000e+00 : f32
    %250 = vector.broadcast %cst_184 : f32 to vector<8x128xf32>
    %251 = arith.maximumf %249, %250 : vector<8x128xf32>
    %252 = arith.truncf %251 : vector<8x128xf32> to vector<8x128xbf16>
    %c1_185 = arith.constant 1 : index
    %c0_186 = arith.constant 0 : index
    %c0_187 = arith.constant 0 : index
    %253 = vector.load %arg9[%c1_185, %c0_186, %c0_187] : memref<18x128x128xbf16, #tpu.memory_space<vmem>>, vector<1x128x128xbf16>
    %254 = vector.shape_cast %253 : vector<1x128x128xbf16> to vector<128x128xbf16>
    %c6_188 = arith.constant 6 : index
    %c0_189 = arith.constant 0 : index
    %255 = vector.load %arg13[%c6_188, %c0_189] : memref<23x128xf32, #tpu.memory_space<vmem>>, vector<1x128xf32>
    %cst_190 = arith.constant dense<0.000000e+00> : vector<8x128xf32>
    %256 = tpu.matmul %252, %254, %cst_190 {dimension_numbers = #tpu.dot_dimension_numbers<[1], [0], [0], [1], [0, 0, 1, 1], [], []>} : vector<8x128xbf16>, vector<128x128xbf16>, vector<8x128xf32> -> vector<8x128xf32>
    %257 = vector.broadcast %255 : vector<1x128xf32> to vector<8x128xf32>
    %258 = arith.addf %256, %257 : vector<8x128xf32>
    %cst_191 = arith.constant 0.000000e+00 : f32
    %259 = vector.broadcast %cst_191 : f32 to vector<8x128xf32>
    %260 = arith.maximumf %258, %259 : vector<8x128xf32>
    %261 = arith.truncf %260 : vector<8x128xf32> to vector<8x128xbf16>
    %c2_192 = arith.constant 2 : index
    %c0_193 = arith.constant 0 : index
    %c0_194 = arith.constant 0 : index
    %262 = vector.load %arg9[%c2_192, %c0_193, %c0_194] : memref<18x128x128xbf16, #tpu.memory_space<vmem>>, vector<1x128x128xbf16>
    %263 = vector.shape_cast %262 : vector<1x128x128xbf16> to vector<128x128xbf16>
    %c7_195 = arith.constant 7 : index
    %c0_196 = arith.constant 0 : index
    %264 = vector.load %arg13[%c7_195, %c0_196] : memref<23x128xf32, #tpu.memory_space<vmem>>, vector<1x128xf32>
    %cst_197 = arith.constant dense<0.000000e+00> : vector<8x128xf32>
    %265 = tpu.matmul %261, %263, %cst_197 {dimension_numbers = #tpu.dot_dimension_numbers<[1], [0], [0], [1], [0, 0, 1, 1], [], []>} : vector<8x128xbf16>, vector<128x128xbf16>, vector<8x128xf32> -> vector<8x128xf32>
    %266 = vector.broadcast %264 : vector<1x128xf32> to vector<8x128xf32>
    %267 = arith.addf %265, %266 : vector<8x128xf32>
    %cst_198 = arith.constant 0.000000e+00 : f32
    %268 = vector.broadcast %cst_198 : f32 to vector<8x128xf32>
    %269 = arith.maximumf %267, %268 : vector<8x128xf32>
    %270 = arith.truncf %269 : vector<8x128xf32> to vector<8x128xbf16>
    %c3_199 = arith.constant 3 : index
    %c0_200 = arith.constant 0 : index
    %c0_201 = arith.constant 0 : index
    %271 = vector.load %arg9[%c3_199, %c0_200, %c0_201] : memref<18x128x128xbf16, #tpu.memory_space<vmem>>, vector<1x128x128xbf16>
    %272 = vector.shape_cast %271 : vector<1x128x128xbf16> to vector<128x128xbf16>
    %c8_202 = arith.constant 8 : index
    %c0_203 = arith.constant 0 : index
    %273 = vector.load %arg13[%c8_202, %c0_203] : memref<23x128xf32, #tpu.memory_space<vmem>>, vector<1x128xf32>
    %cst_204 = arith.constant dense<0.000000e+00> : vector<8x128xf32>
    %274 = tpu.matmul %270, %272, %cst_204 {dimension_numbers = #tpu.dot_dimension_numbers<[1], [0], [0], [1], [0, 0, 1, 1], [], []>} : vector<8x128xbf16>, vector<128x128xbf16>, vector<8x128xf32> -> vector<8x128xf32>
    %275 = vector.broadcast %273 : vector<1x128xf32> to vector<8x128xf32>
    %276 = arith.addf %274, %275 : vector<8x128xf32>
    %cst_205 = arith.constant 0.000000e+00 : f32
    %277 = vector.broadcast %cst_205 : f32 to vector<8x128xf32>
    %278 = arith.maximumf %276, %277 : vector<8x128xf32>
    %279 = arith.truncf %278 : vector<8x128xf32> to vector<8x128xbf16>
    %c4_206 = arith.constant 4 : index
    %c0_207 = arith.constant 0 : index
    %c0_208 = arith.constant 0 : index
    %280 = vector.load %arg9[%c4_206, %c0_207, %c0_208] : memref<18x128x128xbf16, #tpu.memory_space<vmem>>, vector<1x128x128xbf16>
    %281 = vector.shape_cast %280 : vector<1x128x128xbf16> to vector<128x128xbf16>
    %c9_209 = arith.constant 9 : index
    %c0_210 = arith.constant 0 : index
    %282 = vector.load %arg13[%c9_209, %c0_210] : memref<23x128xf32, #tpu.memory_space<vmem>>, vector<1x128xf32>
    %cst_211 = arith.constant dense<0.000000e+00> : vector<8x128xf32>
    %283 = tpu.matmul %279, %281, %cst_211 {dimension_numbers = #tpu.dot_dimension_numbers<[1], [0], [0], [1], [0, 0, 1, 1], [], []>} : vector<8x128xbf16>, vector<128x128xbf16>, vector<8x128xf32> -> vector<8x128xf32>
    %284 = vector.broadcast %282 : vector<1x128xf32> to vector<8x128xf32>
    %285 = arith.addf %283, %284 : vector<8x128xf32>
    %cst_212 = arith.constant 0.000000e+00 : f32
    %286 = vector.broadcast %cst_212 : f32 to vector<8x128xf32>
    %287 = arith.maximumf %285, %286 : vector<8x128xf32>
    %288 = arith.truncf %287 : vector<8x128xf32> to vector<8x128xbf16>
    %c5_213 = arith.constant 5 : index
    %c0_214 = arith.constant 0 : index
    %c0_215 = arith.constant 0 : index
    %289 = vector.load %arg9[%c5_213, %c0_214, %c0_215] : memref<18x128x128xbf16, #tpu.memory_space<vmem>>, vector<1x128x128xbf16>
    %290 = vector.shape_cast %289 : vector<1x128x128xbf16> to vector<128x128xbf16>
    %c10_216 = arith.constant 10 : index
    %c0_217 = arith.constant 0 : index
    %291 = vector.load %arg13[%c10_216, %c0_217] : memref<23x128xf32, #tpu.memory_space<vmem>>, vector<1x128xf32>
    %cst_218 = arith.constant dense<0.000000e+00> : vector<8x128xf32>
    %292 = tpu.matmul %288, %290, %cst_218 {dimension_numbers = #tpu.dot_dimension_numbers<[1], [0], [0], [1], [0, 0, 1, 1], [], []>} : vector<8x128xbf16>, vector<128x128xbf16>, vector<8x128xf32> -> vector<8x128xf32>
    %293 = vector.broadcast %291 : vector<1x128xf32> to vector<8x128xf32>
    %294 = arith.addf %292, %293 : vector<8x128xf32>
    %cst_219 = arith.constant 0.000000e+00 : f32
    %295 = vector.broadcast %cst_219 : f32 to vector<8x128xf32>
    %296 = arith.maximumf %294, %295 : vector<8x128xf32>
    %297 = arith.truncf %296 : vector<8x128xf32> to vector<8x128xbf16>
    %c6_220 = arith.constant 6 : index
    %c0_221 = arith.constant 0 : index
    %c0_222 = arith.constant 0 : index
    %298 = vector.load %arg9[%c6_220, %c0_221, %c0_222] : memref<18x128x128xbf16, #tpu.memory_space<vmem>>, vector<1x128x128xbf16>
    %299 = vector.shape_cast %298 : vector<1x128x128xbf16> to vector<128x128xbf16>
    %c11_223 = arith.constant 11 : index
    %c0_224 = arith.constant 0 : index
    %300 = vector.load %arg13[%c11_223, %c0_224] : memref<23x128xf32, #tpu.memory_space<vmem>>, vector<1x128xf32>
    %cst_225 = arith.constant dense<0.000000e+00> : vector<8x128xf32>
    %301 = tpu.matmul %297, %299, %cst_225 {dimension_numbers = #tpu.dot_dimension_numbers<[1], [0], [0], [1], [0, 0, 1, 1], [], []>} : vector<8x128xbf16>, vector<128x128xbf16>, vector<8x128xf32> -> vector<8x128xf32>
    %302 = vector.broadcast %300 : vector<1x128xf32> to vector<8x128xf32>
    %303 = arith.addf %301, %302 : vector<8x128xf32>
    %cst_226 = arith.constant 0.000000e+00 : f32
    %304 = vector.broadcast %cst_226 : f32 to vector<8x128xf32>
    %305 = arith.maximumf %303, %304 : vector<8x128xf32>
    %306 = arith.truncf %305 : vector<8x128xf32> to vector<8x128xbf16>
    %c7_227 = arith.constant 7 : index
    %c0_228 = arith.constant 0 : index
    %c0_229 = arith.constant 0 : index
    %307 = vector.load %arg9[%c7_227, %c0_228, %c0_229] : memref<18x128x128xbf16, #tpu.memory_space<vmem>>, vector<1x128x128xbf16>
    %308 = vector.shape_cast %307 : vector<1x128x128xbf16> to vector<128x128xbf16>
    %c12 = arith.constant 12 : index
    %c0_230 = arith.constant 0 : index
    %309 = vector.load %arg13[%c12, %c0_230] : memref<23x128xf32, #tpu.memory_space<vmem>>, vector<1x128xf32>
    %cst_231 = arith.constant dense<0.000000e+00> : vector<8x128xf32>
    %310 = tpu.matmul %306, %308, %cst_231 {dimension_numbers = #tpu.dot_dimension_numbers<[1], [0], [0], [1], [0, 0, 1, 1], [], []>} : vector<8x128xbf16>, vector<128x128xbf16>, vector<8x128xf32> -> vector<8x128xf32>
    %311 = vector.broadcast %309 : vector<1x128xf32> to vector<8x128xf32>
    %312 = arith.addf %310, %311 : vector<8x128xf32>
    %cst_232 = arith.constant 0.000000e+00 : f32
    %313 = vector.broadcast %cst_232 : f32 to vector<8x128xf32>
    %314 = arith.maximumf %312, %313 : vector<8x128xf32>
    %315 = arith.truncf %314 : vector<8x128xf32> to vector<8x128xbf16>
    %c8_233 = arith.constant 8 : index
    %c0_234 = arith.constant 0 : index
    %c0_235 = arith.constant 0 : index
    %316 = vector.load %arg9[%c8_233, %c0_234, %c0_235] : memref<18x128x128xbf16, #tpu.memory_space<vmem>>, vector<1x128x128xbf16>
    %317 = vector.shape_cast %316 : vector<1x128x128xbf16> to vector<128x128xbf16>
    %c13 = arith.constant 13 : index
    %c0_236 = arith.constant 0 : index
    %318 = vector.load %arg13[%c13, %c0_236] : memref<23x128xf32, #tpu.memory_space<vmem>>, vector<1x128xf32>
    %cst_237 = arith.constant dense<0.000000e+00> : vector<8x128xf32>
    %319 = tpu.matmul %315, %317, %cst_237 {dimension_numbers = #tpu.dot_dimension_numbers<[1], [0], [0], [1], [0, 0, 1, 1], [], []>} : vector<8x128xbf16>, vector<128x128xbf16>, vector<8x128xf32> -> vector<8x128xf32>
    %320 = vector.broadcast %318 : vector<1x128xf32> to vector<8x128xf32>
    %321 = arith.addf %319, %320 : vector<8x128xf32>
    %cst_238 = arith.constant 0.000000e+00 : f32
    %322 = vector.broadcast %cst_238 : f32 to vector<8x128xf32>
    %323 = arith.maximumf %321, %322 : vector<8x128xf32>
    %324 = arith.truncf %323 : vector<8x128xf32> to vector<8x128xbf16>
    %c9_239 = arith.constant 9 : index
    %c0_240 = arith.constant 0 : index
    %c0_241 = arith.constant 0 : index
    %325 = vector.load %arg9[%c9_239, %c0_240, %c0_241] : memref<18x128x128xbf16, #tpu.memory_space<vmem>>, vector<1x128x128xbf16>
    %326 = vector.shape_cast %325 : vector<1x128x128xbf16> to vector<128x128xbf16>
    %c14 = arith.constant 14 : index
    %c0_242 = arith.constant 0 : index
    %327 = vector.load %arg13[%c14, %c0_242] : memref<23x128xf32, #tpu.memory_space<vmem>>, vector<1x128xf32>
    %cst_243 = arith.constant dense<0.000000e+00> : vector<8x128xf32>
    %328 = tpu.matmul %324, %326, %cst_243 {dimension_numbers = #tpu.dot_dimension_numbers<[1], [0], [0], [1], [0, 0, 1, 1], [], []>} : vector<8x128xbf16>, vector<128x128xbf16>, vector<8x128xf32> -> vector<8x128xf32>
    %329 = vector.broadcast %327 : vector<1x128xf32> to vector<8x128xf32>
    %330 = arith.addf %328, %329 : vector<8x128xf32>
    %cst_244 = arith.constant 0.000000e+00 : f32
    %331 = vector.broadcast %cst_244 : f32 to vector<8x128xf32>
    %332 = arith.maximumf %330, %331 : vector<8x128xf32>
    %333 = arith.truncf %332 : vector<8x128xf32> to vector<8x128xbf16>
    %c10_245 = arith.constant 10 : index
    %c0_246 = arith.constant 0 : index
    %c0_247 = arith.constant 0 : index
    %334 = vector.load %arg9[%c10_245, %c0_246, %c0_247] : memref<18x128x128xbf16, #tpu.memory_space<vmem>>, vector<1x128x128xbf16>
    %335 = vector.shape_cast %334 : vector<1x128x128xbf16> to vector<128x128xbf16>
    %c15 = arith.constant 15 : index
    %c0_248 = arith.constant 0 : index
    %336 = vector.load %arg13[%c15, %c0_248] : memref<23x128xf32, #tpu.memory_space<vmem>>, vector<1x128xf32>
    %cst_249 = arith.constant dense<0.000000e+00> : vector<8x128xf32>
    %337 = tpu.matmul %333, %335, %cst_249 {dimension_numbers = #tpu.dot_dimension_numbers<[1], [0], [0], [1], [0, 0, 1, 1], [], []>} : vector<8x128xbf16>, vector<128x128xbf16>, vector<8x128xf32> -> vector<8x128xf32>
    %338 = vector.broadcast %336 : vector<1x128xf32> to vector<8x128xf32>
    %339 = arith.addf %337, %338 : vector<8x128xf32>
    %cst_250 = arith.constant 0.000000e+00 : f32
    %340 = vector.broadcast %cst_250 : f32 to vector<8x128xf32>
    %341 = arith.maximumf %339, %340 : vector<8x128xf32>
    %342 = arith.truncf %341 : vector<8x128xf32> to vector<8x128xbf16>
    %c11_251 = arith.constant 11 : index
    %c0_252 = arith.constant 0 : index
    %c0_253 = arith.constant 0 : index
    %343 = vector.load %arg9[%c11_251, %c0_252, %c0_253] : memref<18x128x128xbf16, #tpu.memory_space<vmem>>, vector<1x128x128xbf16>
    %344 = vector.shape_cast %343 : vector<1x128x128xbf16> to vector<128x128xbf16>
    %c16 = arith.constant 16 : index
    %c0_254 = arith.constant 0 : index
    %345 = vector.load %arg13[%c16, %c0_254] : memref<23x128xf32, #tpu.memory_space<vmem>>, vector<1x128xf32>
    %cst_255 = arith.constant dense<0.000000e+00> : vector<8x128xf32>
    %346 = tpu.matmul %342, %344, %cst_255 {dimension_numbers = #tpu.dot_dimension_numbers<[1], [0], [0], [1], [0, 0, 1, 1], [], []>} : vector<8x128xbf16>, vector<128x128xbf16>, vector<8x128xf32> -> vector<8x128xf32>
    %347 = vector.broadcast %345 : vector<1x128xf32> to vector<8x128xf32>
    %348 = arith.addf %346, %347 : vector<8x128xf32>
    %cst_256 = arith.constant 0.000000e+00 : f32
    %349 = vector.broadcast %cst_256 : f32 to vector<8x128xf32>
    %350 = arith.maximumf %348, %349 : vector<8x128xf32>
    %351 = arith.truncf %350 : vector<8x128xf32> to vector<8x128xbf16>
    %c12_257 = arith.constant 12 : index
    %c0_258 = arith.constant 0 : index
    %c0_259 = arith.constant 0 : index
    %352 = vector.load %arg9[%c12_257, %c0_258, %c0_259] : memref<18x128x128xbf16, #tpu.memory_space<vmem>>, vector<1x128x128xbf16>
    %353 = vector.shape_cast %352 : vector<1x128x128xbf16> to vector<128x128xbf16>
    %c17 = arith.constant 17 : index
    %c0_260 = arith.constant 0 : index
    %354 = vector.load %arg13[%c17, %c0_260] : memref<23x128xf32, #tpu.memory_space<vmem>>, vector<1x128xf32>
    %cst_261 = arith.constant dense<0.000000e+00> : vector<8x128xf32>
    %355 = tpu.matmul %351, %353, %cst_261 {dimension_numbers = #tpu.dot_dimension_numbers<[1], [0], [0], [1], [0, 0, 1, 1], [], []>} : vector<8x128xbf16>, vector<128x128xbf16>, vector<8x128xf32> -> vector<8x128xf32>
    %356 = vector.broadcast %354 : vector<1x128xf32> to vector<8x128xf32>
    %357 = arith.addf %355, %356 : vector<8x128xf32>
    %cst_262 = arith.constant 0.000000e+00 : f32
    %358 = vector.broadcast %cst_262 : f32 to vector<8x128xf32>
    %359 = arith.maximumf %357, %358 : vector<8x128xf32>
    %360 = arith.truncf %359 : vector<8x128xf32> to vector<8x128xbf16>
    %c13_263 = arith.constant 13 : index
    %c0_264 = arith.constant 0 : index
    %c0_265 = arith.constant 0 : index
    %361 = vector.load %arg9[%c13_263, %c0_264, %c0_265] : memref<18x128x128xbf16, #tpu.memory_space<vmem>>, vector<1x128x128xbf16>
    %362 = vector.shape_cast %361 : vector<1x128x128xbf16> to vector<128x128xbf16>
    %c18 = arith.constant 18 : index
    %c0_266 = arith.constant 0 : index
    %363 = vector.load %arg13[%c18, %c0_266] : memref<23x128xf32, #tpu.memory_space<vmem>>, vector<1x128xf32>
    %cst_267 = arith.constant dense<0.000000e+00> : vector<8x128xf32>
    %364 = tpu.matmul %360, %362, %cst_267 {dimension_numbers = #tpu.dot_dimension_numbers<[1], [0], [0], [1], [0, 0, 1, 1], [], []>} : vector<8x128xbf16>, vector<128x128xbf16>, vector<8x128xf32> -> vector<8x128xf32>
    %365 = vector.broadcast %363 : vector<1x128xf32> to vector<8x128xf32>
    %366 = arith.addf %364, %365 : vector<8x128xf32>
    %cst_268 = arith.constant 0.000000e+00 : f32
    %367 = vector.broadcast %cst_268 : f32 to vector<8x128xf32>
    %368 = arith.maximumf %366, %367 : vector<8x128xf32>
    %369 = arith.truncf %368 : vector<8x128xf32> to vector<8x128xbf16>
    %c14_269 = arith.constant 14 : index
    %c0_270 = arith.constant 0 : index
    %c0_271 = arith.constant 0 : index
    %370 = vector.load %arg9[%c14_269, %c0_270, %c0_271] : memref<18x128x128xbf16, #tpu.memory_space<vmem>>, vector<1x128x128xbf16>
    %371 = vector.shape_cast %370 : vector<1x128x128xbf16> to vector<128x128xbf16>
    %c19 = arith.constant 19 : index
    %c0_272 = arith.constant 0 : index
    %372 = vector.load %arg13[%c19, %c0_272] : memref<23x128xf32, #tpu.memory_space<vmem>>, vector<1x128xf32>
    %cst_273 = arith.constant dense<0.000000e+00> : vector<8x128xf32>
    %373 = tpu.matmul %369, %371, %cst_273 {dimension_numbers = #tpu.dot_dimension_numbers<[1], [0], [0], [1], [0, 0, 1, 1], [], []>} : vector<8x128xbf16>, vector<128x128xbf16>, vector<8x128xf32> -> vector<8x128xf32>
    %374 = vector.broadcast %372 : vector<1x128xf32> to vector<8x128xf32>
    %375 = arith.addf %373, %374 : vector<8x128xf32>
    %cst_274 = arith.constant 0.000000e+00 : f32
    %376 = vector.broadcast %cst_274 : f32 to vector<8x128xf32>
    %377 = arith.maximumf %375, %376 : vector<8x128xf32>
    %378 = arith.truncf %377 : vector<8x128xf32> to vector<8x128xbf16>
    %c15_275 = arith.constant 15 : index
    %c0_276 = arith.constant 0 : index
    %c0_277 = arith.constant 0 : index
    %379 = vector.load %arg9[%c15_275, %c0_276, %c0_277] : memref<18x128x128xbf16, #tpu.memory_space<vmem>>, vector<1x128x128xbf16>
    %380 = vector.shape_cast %379 : vector<1x128x128xbf16> to vector<128x128xbf16>
    %c20 = arith.constant 20 : index
    %c0_278 = arith.constant 0 : index
    %381 = vector.load %arg13[%c20, %c0_278] : memref<23x128xf32, #tpu.memory_space<vmem>>, vector<1x128xf32>
    %cst_279 = arith.constant dense<0.000000e+00> : vector<8x128xf32>
    %382 = tpu.matmul %378, %380, %cst_279 {dimension_numbers = #tpu.dot_dimension_numbers<[1], [0], [0], [1], [0, 0, 1, 1], [], []>} : vector<8x128xbf16>, vector<128x128xbf16>, vector<8x128xf32> -> vector<8x128xf32>
    %383 = vector.broadcast %381 : vector<1x128xf32> to vector<8x128xf32>
    %384 = arith.addf %382, %383 : vector<8x128xf32>
    %cst_280 = arith.constant 0.000000e+00 : f32
    %385 = vector.broadcast %cst_280 : f32 to vector<8x128xf32>
    %386 = arith.maximumf %384, %385 : vector<8x128xf32>
    %387 = arith.truncf %386 : vector<8x128xf32> to vector<8x128xbf16>
    %c16_281 = arith.constant 16 : index
    %c0_282 = arith.constant 0 : index
    %c0_283 = arith.constant 0 : index
    %388 = vector.load %arg9[%c16_281, %c0_282, %c0_283] : memref<18x128x128xbf16, #tpu.memory_space<vmem>>, vector<1x128x128xbf16>
    %389 = vector.shape_cast %388 : vector<1x128x128xbf16> to vector<128x128xbf16>
    %c21 = arith.constant 21 : index
    %c0_284 = arith.constant 0 : index
    %390 = vector.load %arg13[%c21, %c0_284] : memref<23x128xf32, #tpu.memory_space<vmem>>, vector<1x128xf32>
    %cst_285 = arith.constant dense<0.000000e+00> : vector<8x128xf32>
    %391 = tpu.matmul %387, %389, %cst_285 {dimension_numbers = #tpu.dot_dimension_numbers<[1], [0], [0], [1], [0, 0, 1, 1], [], []>} : vector<8x128xbf16>, vector<128x128xbf16>, vector<8x128xf32> -> vector<8x128xf32>
    %392 = vector.broadcast %390 : vector<1x128xf32> to vector<8x128xf32>
    %393 = arith.addf %391, %392 : vector<8x128xf32>
    %cst_286 = arith.constant 0.000000e+00 : f32
    %394 = vector.broadcast %cst_286 : f32 to vector<8x128xf32>
    %395 = arith.maximumf %393, %394 : vector<8x128xf32>
    %396 = arith.truncf %395 : vector<8x128xf32> to vector<8x128xbf16>
    %c17_287 = arith.constant 17 : index
    %c0_288 = arith.constant 0 : index
    %c0_289 = arith.constant 0 : index
    %397 = vector.load %arg9[%c17_287, %c0_288, %c0_289] : memref<18x128x128xbf16, #tpu.memory_space<vmem>>, vector<1x128x128xbf16>
    %398 = vector.shape_cast %397 : vector<1x128x128xbf16> to vector<128x128xbf16>
    %c22 = arith.constant 22 : index
    %c0_290 = arith.constant 0 : index
    %399 = vector.load %arg13[%c22, %c0_290] : memref<23x128xf32, #tpu.memory_space<vmem>>, vector<1x128xf32>
    %cst_291 = arith.constant dense<0.000000e+00> : vector<8x128xf32>
    %400 = tpu.matmul %396, %398, %cst_291 {dimension_numbers = #tpu.dot_dimension_numbers<[1], [0], [0], [1], [0, 0, 1, 1], [], []>} : vector<8x128xbf16>, vector<128x128xbf16>, vector<8x128xf32> -> vector<8x128xf32>
    %401 = vector.broadcast %399 : vector<1x128xf32> to vector<8x128xf32>
    %402 = arith.addf %400, %401 : vector<8x128xf32>
    %cst_292 = arith.constant 0.000000e+00 : f32
    %403 = vector.broadcast %cst_292 : f32 to vector<8x128xf32>
    %404 = arith.maximumf %402, %403 : vector<8x128xf32>
    %405 = arith.truncf %404 : vector<8x128xf32> to vector<8x128xbf16>
    %c0_293 = arith.constant 0 : index
    %c0_294 = arith.constant 0 : index
    %c0_295 = arith.constant 0 : index
    %406 = vector.load %arg10[%c0_293, %c0_294, %c0_295] : memref<1x128x1024xbf16, #tpu.memory_space<vmem>>, vector<1x128x1024xbf16>
    %407 = vector.shape_cast %406 : vector<1x128x1024xbf16> to vector<128x1024xbf16>
    %c0_296 = arith.constant 0 : index
    %c0_297 = arith.constant 0 : index
    %408 = vector.load %arg14[%c0_296, %c0_297] : memref<1x1024xf32, #tpu.memory_space<vmem>>, vector<1x1024xf32>
    %cst_298 = arith.constant dense<0.000000e+00> : vector<8x1024xf32>
    %409 = tpu.matmul %405, %407, %cst_298 {dimension_numbers = #tpu.dot_dimension_numbers<[1], [0], [0], [1], [0, 0, 1, 1], [], []>} : vector<8x128xbf16>, vector<128x1024xbf16>, vector<8x1024xf32> -> vector<8x1024xf32>
    %410 = vector.broadcast %408 : vector<1x1024xf32> to vector<8x1024xf32>
    %411 = arith.addf %409, %410 : vector<8x1024xf32>
    %c0_299 = arith.constant 0 : index
    %c0_300 = arith.constant 0 : index
    %412 = vector.load %arg15[%c0_299, %c0_300] : memref<8x1024xf32, #tpu.memory_space<vmem>>, vector<8x1024xf32>
    tpu.vector_store %arg15[%c0_299, %c0_300], %411 {strides = array<i32>} : memref<8x1024xf32, #tpu.memory_space<vmem>>, vector<8x1024xf32>,
    return
  }
}

</mosaic_0001>

<bundles_post_ra>
// kernel: mlpnet46_forward.1
= control target key start
LH: loop header
LB: loop body
LE: loop exit
PB: predicated region body
PF: predicated region fallthrough
CT: control target
= control target key end

     0   :  { %20 = vsyncpa [#allocation3], 0  ;;  %s21974_s0 = inlined_call_operand.vmem [shape: bf16[8,768], index: 0, kind: input, shape index: {}]   ;;  %s21975_s1 = inlined_call_operand.hbm [shape: bf16[1,768,512], index: 1, kind: input, shape index: {}]   ;;  %s21976_s2 = inlined_call_operand.hbm [shape: bf16[5,512,512], index: 2, kind: input, shape index: {}]   ;;  %s21977_s3 = inlined_call_operand.hbm [shape: bf16[4,512,256], index: 3, kind: input, shape index: {}]   ;;  %s21978_s4 = inlined_call_operand.hbm [shape: bf16[4,256,512], index: 4, kind: input, shape index: {}]   ;;  %s21979_s5 = inlined_call_operand.hbm [shape: bf16[1,512,128], index: 5, kind: input, shape index: {}]   ;;  %s21980_s6 = inlined_call_operand.hbm [shape: bf16[4,128,256], index: 6, kind: input, shape index: {}]   ;;  %s21981_s7 = inlined_call_operand.hbm [shape: bf16[4,256,256], index: 7, kind: input, shape index: {}]   ;;  %s21982_s8 = inlined_call_operand.hbm [shape: bf16[4,256,128], index: 8, kind: input, shape index: {}]   ;;  %s21983_s9 = inlined_call_operand.hbm [shape: bf16[18,128,128], index: 9, kind: input, shape index: {}]   ;;  %s21984_s10 = inlined_call_operand.hbm [shape: bf16[1,128,1024], index: 10, kind: input, shape index: {}]   ;;  %s21985_s11 = inlined_call_operand.hbm [shape: f32[10,512], index: 11, kind: input, shape index: {}]   ;;  %s21986_s12 = inlined_call_operand.hbm [shape: f32[12,256], index: 12, kind: input, shape index: {}]   ;;  %s21987_s13 = inlined_call_operand.hbm [shape: f32[23,128], index: 13, kind: input, shape index: {}]   ;;  %s21988_s14 = inlined_call_operand.hbm [shape: f32[1,1024], index: 14, kind: input, shape index: {}]   ;;  %s21989_s15 = inlined_call_operand.vmem [shape: f32[8,1024], index: 15, kind: output, shape index: {}]  }
   0x1   :  { %21 = vsyncpa [#allocation5], 0 }
   0x2   :  { %22 = vsyncpa [#allocation8], 0 }
   0x3   :  { %23 = vsyncpa [#allocation11], 0 }
   0x4   :  { %24 = vsyncpa [#allocation14], 0 }
   0x5   :  { %25 = vsyncpa [#allocation17], 0 }
   0x6   :  { %26 = vsyncpa [#allocation20], 0 }
   0x7   :  { %27 = vsyncpa [#allocation23], 0  ;;  %s21254_s18 = smov [#allocation4]   ;;  %s21255_s20 = smov [#allocation7]  }
   0x8   :  { %s47_s19 = sshll.u32 %s21254_s18, 4  ;;  %s71_s21 = sshll.u32 %s21255_s20, 4  ;;  %s48_s19 = int_to_ptr.vmem [resolvable:$true] %s47_s19  ;;  %s21359_s21 = int_to_ptr.vmem [resolvable:$true] %s71_s21 }
   0x9   :  { %s20930_s24 = scalar_lea.hbm %s21976_s2, 81920 }
   0xa   :  { %p20931_p0 = scmp.ne.s32.totalorder %s21976_s2, %s20930_s24  ;;  %p20934_p1 = scmp.lt.u32.totalorder %s20930_s24, %s21976_s2 }
   0xc   :  { %p20936_p2 = pnand %p20934_p1, %p20931_p0 }
   0xe   :  { %20939 = shalt.err (!%p20936_p2)
}
   0xf   :  { %s20940_s29 = scalar_lea.vmem %s48_s19, 81920  ;;  %p20945_p4 = scmp.lt.s32.totalorder %s48_s19, %s48_s19 }
  0x10   :  { %p20941_p3 = scmp.ne.s32.totalorder %s48_s19, %s20940_s29  ;;  %p20946_p5 = scmp.lt.s32.totalorder %s20940_s29, %s20940_s29 }
  0x12   :  { %p20947_p6 = por %p20946_p5, %p20945_p4 }
  0x14   :  { %p20948_p7 = pnand %p20947_p6, %p20941_p3 }
  0x16   :  { %20951 = shalt.err (!%p20948_p7)
}
  0x17   :  { %s21990_s30 = smov 256   ;;  %s21257_s16 = smov 16  }
  0x18   :  { %53 = dma.hbm_to_vmem [thread:$0]  %s21976_s2, 81920, %s48_s19, [#allocation5], %s21990_s30, %s21990_s30, %s21257_s16  }
  0x19   :  { %s20952_s23 = scalar_lea.hbm %s21978_s4, 32768 }
  0x1a   :  { %p20953_p8 = scmp.ne.s32.totalorder %s21978_s4, %s20952_s23  ;;  %p20956_p9 = scmp.lt.u32.totalorder %s20952_s23, %s21978_s4 }
  0x1c   :  { %p20958_p10 = pnand %p20956_p9, %p20953_p8 }
  0x1e   :  { %20961 = shalt.err (!%p20958_p10)
}
  0x1f   :  { %s20962_s28 = scalar_lea.vmem %s21359_s21, 32768  ;;  %p20967_p12 = scmp.lt.s32.totalorder %s21359_s21, %s21359_s21 }
  0x20   :  { %p20963_p11 = scmp.ne.s32.totalorder %s21359_s21, %s20962_s28  ;;  %p20968_p13 = scmp.lt.s32.totalorder %s20962_s28, %s20962_s28 }
  0x22   :  { %p20969_p0 = por %p20968_p13, %p20967_p12 }
  0x24   :  { %p20970_p1 = pnand %p20969_p0, %p20963_p11 }
  0x26   :  { %20973 = shalt.err (!%p20970_p1)
}
  0x27   :  { %77 = dma.hbm_to_vmem [thread:$0]  %s21978_s4, 32768, %s21359_s21, [#allocation8], %s21990_s30, %s21990_s30, %s21257_s16  }
  0x28   :  { %s21258_s29 = smov [#allocation10]   ;;  %s20974_s22 = scalar_lea.hbm %s21980_s6, 8192 }
  0x29   :  { %s95_s17 = sshll.u32 %s21258_s29, 4  ;;  %p20975_p2 = scmp.ne.s32.totalorder %s21980_s6, %s20974_s22  ;;  %s96_s17 = int_to_ptr.vmem [resolvable:$true] %s95_s17 }
  0x2a   :  { %p20978_p3 = scmp.lt.u32.totalorder %s20974_s22, %s21980_s6 }
  0x2c   :  { %p20980_p4 = pnand %p20978_p3, %p20975_p2 }
  0x2e   :  { %20983 = shalt.err (!%p20980_p4)
}
  0x2f   :  { %s20984_s27 = scalar_lea.vmem %s96_s17, 8192  ;;  %p20989_p6 = scmp.lt.s32.totalorder %s96_s17, %s96_s17 }
  0x30   :  { %p20985_p5 = scmp.ne.s32.totalorder %s96_s17, %s20984_s27  ;;  %p20990_p7 = scmp.lt.s32.totalorder %s20984_s27, %s20984_s27 }
  0x32   :  { %p20991_p8 = por %p20990_p7, %p20989_p6 }
  0x34   :  { %p20992_p9 = pnand %p20991_p8, %p20985_p5 }
  0x36   :  { %20995 = shalt.err (!%p20992_p9)
}
  0x37   :  { %s21259_s4 = smov 128   ;;  %s21260_s21 = smov 8  }
  0x38   :  { %101 = dma.hbm_to_vmem [thread:$0]  %s21980_s6, 8192, %s96_s17, [#allocation11], %s21259_s4, %s21259_s4, %s21260_s21  }
  0x39   :  { %s21261_s19 = smov [#allocation13]   ;;  %s21262_s18 = smov [#allocation16]  }
  0x3a   :  { %s119_s29 = sshll.u32 %s21261_s19, 4  ;;  %s143_s20 = sshll.u32 %s21262_s18, 4  ;;  %s120_s29 = int_to_ptr.vmem [resolvable:$true] %s119_s29  ;;  %s144_s20 = int_to_ptr.vmem [resolvable:$true] %s143_s20 }
  0x3b   :  { %s20996_s24 = scalar_lea.hbm %s21982_s8, 8192 }
  0x3c   :  { %p20997_p10 = scmp.ne.s32.totalorder %s21982_s8, %s20996_s24  ;;  %p21000_p11 = scmp.lt.u32.totalorder %s20996_s24, %s21982_s8 }
  0x3e   :  { %p21002_p12 = pnand %p21000_p11, %p20997_p10 }
  0x40   :  { %21005 = shalt.err (!%p21002_p12)
}
  0x41   :  { %s21006_s6 = scalar_lea.vmem %s120_s29, 8192  ;;  %p21011_p0 = scmp.lt.s32.totalorder %s120_s29, %s120_s29 }
  0x42   :  { %p21007_p13 = scmp.ne.s32.totalorder %s120_s29, %s21006_s6  ;;  %p21012_p1 = scmp.lt.s32.totalorder %s21006_s6, %s21006_s6 }
  0x44   :  { %p21013_p2 = por %p21012_p1, %p21011_p0 }
  0x46   :  { %p21014_p3 = pnand %p21013_p2, %p21007_p13 }
  0x48   :  { %21017 = shalt.err (!%p21014_p3)
}
  0x49   :  { %s21992_s17 = smov 64   ;;  %s21994_s28 = smov 4  }
  0x4a   :  { %125 = dma.hbm_to_vmem [thread:$0]  %s21982_s8, 8192, %s120_s29, [#allocation14], %s21992_s17, %s21992_s17, %s21994_s28  }
  0x4b   :  { %s21018_s22 = scalar_lea.hbm %s21984_s10, 8192 }
  0x4c   :  { %p21019_p4 = scmp.ne.s32.totalorder %s21984_s10, %s21018_s22  ;;  %p21022_p5 = scmp.lt.u32.totalorder %s21018_s22, %s21984_s10 }
  0x4e   :  { %p21024_p6 = pnand %p21022_p5, %p21019_p4 }
  0x50   :  { %21027 = shalt.err (!%p21024_p6)
}
  0x51   :  { %s21028_s27 = scalar_lea.vmem %s144_s20, 8192  ;;  %p21033_p8 = scmp.lt.s32.totalorder %s144_s20, %s144_s20 }
  0x52   :  { %p21029_p7 = scmp.ne.s32.totalorder %s144_s20, %s21028_s27  ;;  %p21034_p9 = scmp.lt.s32.totalorder %s21028_s27, %s21028_s27 }
  0x54   :  { %p21035_p10 = por %p21034_p9, %p21033_p8 }
  0x56   :  { %p21036_p11 = pnand %p21035_p10, %p21029_p7 }
  0x58   :  { %21039 = shalt.err (!%p21036_p11)
}
  0x59   :  { %s21265_s8 = smov 512   ;;  %s21266_s29 = smov 32  }
  0x5a   :  { %149 = dma.hbm_to_vmem [thread:$0]  %s21984_s10, 8192, %s144_s20, [#allocation17], %s21265_s8, %s21265_s8, %s21266_s29  }
  0x5b   :  { %s21267_s19 = smov [#allocation19]   ;;  %s21268_s18 = smov [#allocation2]  }
  0x5c   :  { %s167_s30 = sshll.u32 %s21267_s19, 4  ;;  %s35_s22 = sshll.u32 %s21268_s18, 4  ;;  %s168_s30 = int_to_ptr.vmem [resolvable:$true] %s167_s30  ;;  %s36_s22 = int_to_ptr.vmem [resolvable:$true] %s35_s22 }
  0x5d   :  { %s21040_s25 = scalar_lea.hbm %s21986_s12, 512 }
  0x5e   :  { %p21041_p12 = scmp.ne.s32.totalorder %s21986_s12, %s21040_s25  ;;  %p21044_p13 = scmp.lt.u32.totalorder %s21040_s25, %s21986_s12 }
  0x60   :  { %p21046_p0 = pnand %p21044_p13, %p21041_p12 }
  0x62   :  { %21049 = shalt.err (!%p21046_p0)
}
  0x63   :  { %s21050_s10 = scalar_lea.vmem %s168_s30, 512  ;;  %p21055_p2 = scmp.lt.s32.totalorder %s168_s30, %s168_s30 }
  0x64   :  { %p21051_p1 = scmp.ne.s32.totalorder %s168_s30, %s21050_s10  ;;  %p21056_p3 = scmp.lt.s32.totalorder %s21050_s10, %s21050_s10 }
  0x66   :  { %p21057_p4 = por %p21056_p3, %p21055_p2 }
  0x68   :  { %p21058_p5 = pnand %p21057_p4, %p21051_p1 }
  0x6a   :  { %21061 = shalt.err (!%p21058_p5)
}
  0x6b   :  { %s21996_s20 = smov 256   ;;  %s21062_s28 = scalar_lea.hbm %s21975_s1, 24576 }
  0x6c   :  { %173 = dma.hbm_to_vmem [thread:$0]  %s21986_s12, 512, %s168_s30, [#allocation20], %s21996_s20, %s21996_s20, %s21257_s16  }
  0x6d   :  { %p21063_p6 = scmp.ne.s32.totalorder %s21975_s1, %s21062_s28  ;;  %p21066_p7 = scmp.lt.u32.totalorder %s21062_s28, %s21975_s1 }
  0x6f   :  { %p21068_p8 = pnand %p21066_p7, %p21063_p6 }
  0x71   :  { %21071 = shalt.err (!%p21068_p8)
}
  0x72   :  { %s21072_s26 = scalar_lea.vmem %s36_s22, 24576  ;;  %p21077_p10 = scmp.lt.s32.totalorder %s36_s22, %s36_s22 }
  0x73   :  { %p21073_p9 = scmp.ne.s32.totalorder %s36_s22, %s21072_s26  ;;  %p21078_p11 = scmp.lt.s32.totalorder %s21072_s26, %s21072_s26 }
  0x75   :  { %p21079_p12 = por %p21078_p11, %p21077_p10 }
  0x77   :  { %p21080_p13 = pnand %p21079_p12, %p21073_p9 }
  0x79   :  { %21083 = shalt.err (!%p21080_p13)
}
  0x7a   :  { %41 = dma.hbm_to_vmem [thread:$0]  %s21975_s1, 24576, %s36_s22, [#allocation3], %s21996_s20, %s21996_s20, %s21257_s16  }
  0x7b   :  { %s21269_s27 = smov [#allocation6]   ;;  %s21270_s6 = smov [#allocation9]  }
  0x7c   :  { %s59_s10 = sshll.u32 %s21269_s27, 4  ;;  %s83_s2 = sshll.u32 %s21270_s6, 4  ;;  %s60_s10 = int_to_ptr.vmem [resolvable:$true] %s59_s10  ;;  %s84_s2 = int_to_ptr.vmem [resolvable:$true] %s83_s2 }
  0x7d   :  { %s21084_s28 = scalar_lea.hbm %s21977_s3, 32768 }
  0x7e   :  { %p21085_p0 = scmp.ne.s32.totalorder %s21977_s3, %s21084_s28  ;;  %p21088_p1 = scmp.lt.u32.totalorder %s21084_s28, %s21977_s3 }
  0x80   :  { %p21090_p2 = pnand %p21088_p1, %p21085_p0 }
  0x82   :  { %21093 = shalt.err (!%p21090_p2)
}
  0x83   :  { %s21094_s1 = scalar_lea.vmem %s60_s10, 32768  ;;  %p21099_p4 = scmp.lt.s32.totalorder %s60_s10, %s60_s10 }
  0x84   :  { %p21095_p3 = scmp.ne.s32.totalorder %s60_s10, %s21094_s1  ;;  %p21100_p5 = scmp.lt.s32.totalorder %s21094_s1, %s21094_s1 }
  0x86   :  { %p21101_p6 = por %p21100_p5, %p21099_p4 }
  0x88   :  { %p21102_p7 = pnand %p21101_p6, %p21095_p3 }
  0x8a   :  { %21105 = shalt.err (!%p21102_p7)
}
  0x8b   :  { %65 = dma.hbm_to_vmem [thread:$0]  %s21977_s3, 32768, %s60_s10, [#allocation5], %s21259_s4, %s21259_s4, %s21260_s21  }
  0x8c   :  { %s21106_s12 = scalar_lea.hbm %s21979_s5, 4096 }
  0x8d   :  { %p21107_p8 = scmp.ne.s32.totalorder %s21979_s5, %s21106_s12  ;;  %p21110_p9 = scmp.lt.u32.totalorder %s21106_s12, %s21979_s5 }
  0x8f   :  { %p21112_p10 = pnand %p21110_p9, %p21107_p8 }
  0x91   :  { %21115 = shalt.err (!%p21112_p10)
}
  0x92   :  { %s21116_s17 = scalar_lea.vmem %s84_s2, 4096  ;;  %p21121_p12 = scmp.lt.s32.totalorder %s84_s2, %s84_s2 }
  0x93   :  { %p21117_p11 = scmp.ne.s32.totalorder %s84_s2, %s21116_s17  ;;  %p21122_p13 = scmp.lt.s32.totalorder %s21116_s17, %s21116_s17 }
  0x95   :  { %p21123_p0 = por %p21122_p13, %p21121_p12 }
  0x97   :  { %p21124_p1 = pnand %p21123_p0, %p21117_p11 }
  0x99   :  { %21127 = shalt.err (!%p21124_p1)
}
  0x9a   :  { %s21997_s3 = smov 4   ;;  %s21998_s10 = smov 64  }
  0x9b   :  { %89 = dma.hbm_to_vmem [thread:$0]  %s21979_s5, 4096, %s84_s2, [#allocation8], %s21998_s10, %s21998_s10, %s21997_s3  }
  0x9c   :  { %s21271_s23 = smov [#allocation12]   ;;  %s21272_s25 = smov [#allocation15]  }
  0x9d   :  { %s107_s24 = sshll.u32 %s21271_s23, 4  ;;  %s131_s1 = sshll.u32 %s21272_s25, 4  ;;  %s108_s24 = int_to_ptr.vmem [resolvable:$true] %s107_s24  ;;  %s132_s1 = int_to_ptr.vmem [resolvable:$true] %s131_s1 }
  0x9e   :  { %s21128_s20 = scalar_lea.hbm %s21981_s7, 16384 }
  0x9f   :  { %p21129_p2 = scmp.ne.s32.totalorder %s21981_s7, %s21128_s20  ;;  %p21132_p3 = scmp.lt.u32.totalorder %s21128_s20, %s21981_s7 }
  0xa1   :  { %p21134_p4 = pnand %p21132_p3, %p21129_p2 }
  0xa3   :  { %21137 = shalt.err (!%p21134_p4)
}
  0xa4   :  { %s21138_s5 = scalar_lea.vmem %s108_s24, 16384  ;;  %p21143_p6 = scmp.lt.s32.totalorder %s108_s24, %s108_s24 }
  0xa5   :  { %p21139_p5 = scmp.ne.s32.totalorder %s108_s24, %s21138_s5  ;;  %p21144_p7 = scmp.lt.s32.totalorder %s21138_s5, %s21138_s5 }
  0xa7   :  { %p21145_p8 = por %p21144_p7, %p21143_p6 }
  0xa9   :  { %p21146_p9 = pnand %p21145_p8, %p21139_p5 }
  0xab   :  { %21149 = shalt.err (!%p21146_p9)
}
  0xac   :  { %113 = dma.hbm_to_vmem [thread:$0]  %s21981_s7, 16384, %s108_s24, [#allocation11], %s21259_s4, %s21259_s4, %s21260_s21  }
  0xad   :  { %s21150_s28 = scalar_lea.hbm %s21983_s9, 18432 }
  0xae   :  { %p21151_p10 = scmp.ne.s32.totalorder %s21983_s9, %s21150_s28  ;;  %p21154_p11 = scmp.lt.u32.totalorder %s21150_s28, %s21983_s9 }
  0xb0   :  { %p21156_p12 = pnand %p21154_p11, %p21151_p10 }
  0xb2   :  { %21159 = shalt.err (!%p21156_p12)
}
  0xb3   :  { %s21160_s22 = scalar_lea.vmem %s132_s1, 18432  ;;  %p21165_p0 = scmp.lt.s32.totalorder %s132_s1, %s132_s1 }
  0xb4   :  { %p21161_p13 = scmp.ne.s32.totalorder %s132_s1, %s21160_s22  ;;  %p21166_p1 = scmp.lt.s32.totalorder %s21160_s22, %s21160_s22 }
  0xb6   :  { %p21167_p2 = por %p21166_p1, %p21165_p0 }
  0xb8   :  { %p21168_p3 = pnand %p21167_p2, %p21161_p13 }
  0xba   :  { %21171 = shalt.err (!%p21168_p3)
}
  0xbb   :  { %137 = dma.hbm_to_vmem [thread:$0]  %s21983_s9, 18432, %s132_s1, [#allocation14], %s21998_s10, %s21998_s10, %s21997_s3  }
  0xbc   :  { %s21273_s20 = smov [#allocation18]   ;;  %s21274_s12 = smov [#allocation21]  }
  0xbd   :  { %s155_s26 = sshll.u32 %s21273_s20, 4  ;;  %s179_s30 = sshll.u32 %s21274_s12, 4  ;;  %s156_s26 = int_to_ptr.vmem [resolvable:$true] %s155_s26  ;;  %s180_s30 = int_to_ptr.vmem [resolvable:$true] %s179_s30 }
  0xbe   :  { %s21172_s2 = scalar_lea.hbm %s21985_s11, 1024 }
  0xbf   :  { %p21173_p4 = scmp.ne.s32.totalorder %s21985_s11, %s21172_s2  ;;  %p21176_p5 = scmp.lt.u32.totalorder %s21172_s2, %s21985_s11 }
  0xc1   :  { %p21178_p6 = pnand %p21176_p5, %p21173_p4 }
  0xc3   :  { %21181 = shalt.err (!%p21178_p6)
}
  0xc4   :  { %s21182_s9 = scalar_lea.vmem %s156_s26, 1024  ;;  %p21187_p8 = scmp.lt.s32.totalorder %s156_s26, %s156_s26 }
  0xc5   :  { %p21183_p7 = scmp.ne.s32.totalorder %s156_s26, %s21182_s9  ;;  %p21188_p9 = scmp.lt.s32.totalorder %s21182_s9, %s21182_s9 }
  0xc7   :  { %p21189_p10 = por %p21188_p9, %p21187_p8 }
  0xc9   :  { %p21190_p11 = pnand %p21189_p10, %p21183_p7 }
  0xcb   :  { %21193 = shalt.err (!%p21190_p11)
}
  0xcc   :  { %161 = dma.hbm_to_vmem [thread:$0]  %s21985_s11, 1024, %s156_s26, [#allocation17], %s21265_s8, %s21265_s8, %s21266_s29  }
  0xcd   :  { %s21194_s23 = scalar_lea.hbm %s21987_s13, 384 }
  0xce   :  { %p21195_p12 = scmp.ne.s32.totalorder %s21987_s13, %s21194_s23  ;;  %p21198_p13 = scmp.lt.u32.totalorder %s21194_s23, %s21987_s13 }
  0xd0   :  { %p21200_p0 = pnand %p21198_p13, %p21195_p12 }
  0xd2   :  { %21203 = shalt.err (!%p21200_p0)
}
  0xd3   :  { %s21204_s24 = scalar_lea.vmem %s180_s30, 384  ;;  %p21209_p2 = scmp.lt.s32.totalorder %s180_s30, %s180_s30 }
  0xd4   :  { %p21205_p1 = scmp.ne.s32.totalorder %s180_s30, %s21204_s24  ;;  %p21210_p3 = scmp.lt.s32.totalorder %s21204_s24, %s21204_s24 }
  0xd6   :  { %p21211_p4 = por %p21210_p3, %p21209_p2 }
  0xd8   :  { %p21212_p5 = pnand %p21211_p4, %p21205_p1 }
  0xda   :  { %21215 = shalt.err (!%p21212_p5)
}
  0xdb   :  { %185 = dma.hbm_to_vmem [thread:$0]  %s21987_s13, 384, %s180_s30, [#allocation20], %s21259_s4, %s21259_s4, %s21260_s21  }
  0xdc   :  { %s21275_s29 = smov [#allocation22]   ;;  %s21216_s27 = scalar_lea.hbm %s21988_s14, 128 }
  0xdd   :  { %s192_s20 = sshll.u32 %s21275_s29, 4  ;;  %p21217_p6 = scmp.ne.s32.totalorder %s21988_s14, %s21216_s27  ;;  %s193_s20 = int_to_ptr.vmem [resolvable:$true] %s192_s20 }
  0xde   :  { %p21220_p7 = scmp.lt.u32.totalorder %s21216_s27, %s21988_s14 }
  0xe0   :  { %p21222_p8 = pnand %p21220_p7, %p21217_p6 }
  0xe2   :  { %21225 = shalt.err (!%p21222_p8)
}
  0xe3   :  { %s21226_s17 = scalar_lea.vmem %s193_s20, 128  ;;  %p21231_p10 = scmp.lt.s32.totalorder %s193_s20, %s193_s20 }
  0xe4   :  { %p21227_p9 = scmp.ne.s32.totalorder %s193_s20, %s21226_s17  ;;  %p21232_p11 = scmp.lt.s32.totalorder %s21226_s17, %s21226_s17 }
  0xe6   :  { %p21233_p12 = por %p21232_p11, %p21231_p10 }
  0xe8   :  { %p21234_p13 = pnand %p21233_p12, %p21227_p9 }
  0xea   :  { %21237 = shalt.err (!%p21234_p13)
}
  0xeb   :  { %195 = dma.hbm_to_vmem [thread:$0]  %s21988_s14, 128, %s193_s20, [#allocation23]  }
  0xec   :  { %21238 = dma.done.wait [#allocation3], 24576  }
  0xed   :  { %21239 = vsyncadd [#allocation3], 4294942720 }
  0xee   :  { %21240 = dma.done.wait [#allocation5], 114688  }
  0xef   :  { %21241 = vsyncadd [#allocation5], 4294852608 }
  0xf0   :  { %21242 = dma.done.wait [#allocation8], 36864  }
  0xf1   :  { %21243 = vsyncadd [#allocation8], 4294930432 }
  0xf2   :  { %21244 = dma.done.wait [#allocation11], 24576  }
  0xf3   :  { %21245 = vsyncadd [#allocation11], 4294942720 }
  0xf4   :  { %21246 = dma.done.wait [#allocation14], 26624  }
  0xf5   :  { %21247 = vsyncadd [#allocation14], 4294940672 }
  0xf6   :  { %21248 = dma.done.wait [#allocation17], 9216  }
  0xf7   :  { %21249 = vsyncadd [#allocation17], 4294958080 }
  0xf8   :  { %21250 = dma.done.wait [#allocation20], 896  }
  0xf9   :  { %21251 = vsyncadd [#allocation20], 4294966400 }
  0xfa   :  { %21252 = dma.done.wait [#allocation23], 128  }
  0xfb   :  { %21253 = vsyncadd [#allocation23], 4294967168  ;;  %v18380_v0 = vld [vmem:[#allocation2 + $0x4] ss:$16 sps:$4 sm:$0xff]   ;;  %v18382_v1 = vld [vmem:[#allocation2 + $0xc] ss:$16 sps:$4 sm:$0xff]  }
  0xfc   :  { %1437 = vmatprep.subr.bf16.mxu0 %v18380_v0  ;;  %v18384_v2 = vld [vmem:[#allocation2] ss:$16 sps:$4 sm:$0xff]   ;;  %v18385_v3 = vld [vmem:[#allocation2 + $0x8] ss:$16 sps:$4 sm:$0xff]   ;;  %1560 = vmatprep.subr.bf16.mxu1 %v18382_v1  ;;  %v18386_v4 = vld [vmem:[#allocation2 + $0x24] ss:$16 sps:$4 sm:$0xff]  }
  0xfd   :  { %1438 = vmatpush1.bf16.msra.mxu0 %v18384_v2  ;;  %1561 = vmatpush1.bf16.msra.mxu1 %v18385_v3  ;;  %v18388_v5 = vld [vmem:[#allocation2 + $0x2c] ss:$16 sps:$4 sm:$0xff]   ;;  %v18390_v6 = vld [vmem:[#allocation2 + $0x20] ss:$16 sps:$4 sm:$0xff]   ;;  %v18391_v7 = vld [vmem:[#allocation2 + $0x28] ss:$16 sps:$4 sm:$0xff]  }
  0xfe   :  { %1439 = vmatprep.subr.bf16.mxu0 %v18386_v4  ;;  %1562 = vmatprep.subr.bf16.mxu1 %v18388_v5  ;;  %v18392_v8 = vld [vmem:[#allocation2 + $0x44] ss:$16 sps:$4 sm:$0xff]   ;;  %v18394_v9 = vld [vmem:[#allocation2 + $0x4c] ss:$16 sps:$4 sm:$0xff]   ;;  %v18396_v10 = vld [vmem:[#allocation2 + $0x40] ss:$16 sps:$4 sm:$0xff]  }
  0xff   :  { %v18397_v11 = vld [vmem:[#allocation2 + $0x48] ss:$16 sps:$4 sm:$0xff]   ;;  %v18398_v12 = vld [vmem:[#allocation2 + $0x64] ss:$16 sps:$4 sm:$0xff]   ;;  %v18400_v13 = vld [vmem:[#allocation2 + $0x6c] ss:$16 sps:$4 sm:$0xff]  }
 0x100   :  { %v18402_v14 = vld [vmem:[#allocation2 + $0x60] ss:$16 sps:$4 sm:$0xff]   ;;  %v18403_v15 = vld [vmem:[#allocation2 + $0x68] ss:$16 sps:$4 sm:$0xff]   ;;  %v18404_v16 = vld [vmem:[#allocation2 + $0x84] ss:$16 sps:$4 sm:$0xff]  }
 0x101   :  { %1440 = vmatpush1.bf16.msra.mxu0 %v18390_v6  ;;  %1563 = vmatpush1.bf16.msra.mxu1 %v18391_v7  ;;  %v18406_v17 = vld [vmem:[#allocation2 + $0x8c] ss:$16 sps:$4 sm:$0xff]   ;;  %v18408_v18 = vld [vmem:[#allocation2 + $0x80] ss:$16 sps:$4 sm:$0xff]   ;;  %v18409_v19 = vld [vmem:[#allocation2 + $0x88] ss:$16 sps:$4 sm:$0xff]  }
 0x102   :  { %1441 = vmatprep.subr.bf16.mxu0 %v18392_v8  ;;  %1564 = vmatprep.subr.bf16.mxu1 %v18394_v9  ;;  %v18410_v20 = vld [vmem:[#allocation2 + $0xa4] ss:$16 sps:$4 sm:$0xff]   ;;  %v18412_v21 = vld [vmem:[#allocation2 + $0xac] ss:$16 sps:$4 sm:$0xff]   ;;  %v18414_v22 = vld [vmem:[#allocation2 + $0xa0] ss:$16 sps:$4 sm:$0xff]  }
 0x103   :  { %v18415_v23 = vld [vmem:[#allocation2 + $0xa8] ss:$16 sps:$4 sm:$0xff]   ;;  %v18416_v24 = vld [vmem:[#allocation2 + $0xc4] ss:$16 sps:$4 sm:$0xff]   ;;  %v18418_v25 = vld [vmem:[#allocation2 + $0xcc] ss:$16 sps:$4 sm:$0xff]  }
 0x104   :  { %v18420_v26 = vld [vmem:[#allocation2 + $0xc0] ss:$16 sps:$4 sm:$0xff]   ;;  %v18421_v27 = vld [vmem:[#allocation2 + $0xc8] ss:$16 sps:$4 sm:$0xff]   ;;  %v18422_v28 = vld [vmem:[#allocation2 + $0xe4] ss:$16 sps:$4 sm:$0xff]  }
 0x105   :  { %1442 = vmatpush1.bf16.msra.mxu0 %v18396_v10  ;;  %1565 = vmatpush1.bf16.msra.mxu1 %v18397_v11  ;;  %v18424_v29 = vld [vmem:[#allocation2 + $0xec] ss:$16 sps:$4 sm:$0xff]   ;;  %v18426_v30 = vld [vmem:[#allocation2 + $0xe0] ss:$16 sps:$4 sm:$0xff]   ;;  %v18427_v31 = vld [vmem:[#allocation2 + $0xe8] ss:$16 sps:$4 sm:$0xff]  }
 0x106   :  { %1443 = vmatprep.subr.bf16.mxu0 %v18398_v12  ;;  %1566 = vmatprep.subr.bf16.mxu1 %v18400_v13  ;;  %v18428_v32 = vld [vmem:[#allocation2 + $0x104] ss:$16 sps:$4 sm:$0xff]   ;;  %v18430_v33 = vld [vmem:[#allocation2 + $0x10c] ss:$16 sps:$4 sm:$0xff]   ;;  %v18432_v34 = vld [vmem:[#allocation2 + $0x100] ss:$16 sps:$4 sm:$0xff]  }
 0x107   :  { %v18433_v35 = vld [vmem:[#allocation2 + $0x108] ss:$16 sps:$4 sm:$0xff]   ;;  %v18434_v36 = vld [vmem:[#allocation2 + $0x124] ss:$16 sps:$4 sm:$0xff]   ;;  %v18436_v37 = vld [vmem:[#allocation2 + $0x12c] ss:$16 sps:$4 sm:$0xff]  }
 0x108   :  { %v18438_v38 = vld [vmem:[#allocation2 + $0x120] ss:$16 sps:$4 sm:$0xff]   ;;  %v18439_v39 = vld [vmem:[#allocation2 + $0x128] ss:$16 sps:$4 sm:$0xff]   ;;  %v18440_v40 = vld [vmem:[#allocation2 + $0x144] ss:$16 sps:$4 sm:$0xff]  }
 0x109   :  { %1444 = vmatpush1.bf16.msra.mxu0 %v18402_v14  ;;  %1567 = vmatpush1.bf16.msra.mxu1 %v18403_v15  ;;  %v18442_v41 = vld [vmem:[#allocation2 + $0x14c] ss:$16 sps:$4 sm:$0xff]   ;;  %v18444_v42 = vld [vmem:[#allocation2 + $0x140] ss:$16 sps:$4 sm:$0xff]   ;;  %v18445_v43 = vld [vmem:[#allocation2 + $0x148] ss:$16 sps:$4 sm:$0xff]  }
 0x10a   :  { %1445 = vmatprep.subr.bf16.mxu0 %v18404_v16  ;;  %1568 = vmatprep.subr.bf16.mxu1 %v18406_v17  ;;  %v18446_v44 = vld [vmem:[#allocation2 + $0x164] ss:$16 sps:$4 sm:$0xff]   ;;  %v18448_v45 = vld [vmem:[#allocation2 + $0x16c] ss:$16 sps:$4 sm:$0xff]   ;;  %v18450_v47 = vld [vmem:[#allocation2 + $0x160] ss:$16 sps:$4 sm:$0xff]  }
 0x10b   :  { %v239_v46 = vld [vmem:[%s21974_s0] sm:$0xff]  ;;  %v18451_v49 = vld [vmem:[#allocation2 + $0x168] ss:$16 sps:$4 sm:$0xff]   ;;  %v18454_v51 = vld [vmem:[#allocation2 + $0x18c] ss:$16 sps:$4 sm:$0xff]   ;;  %vm21278_vm0 = vmmov 0  }
 0x10c   :  { %v15729_v48 = vcombine.high %v239_v46, %v239_v46  ;;  %v18452_v50 = vld [vmem:[#allocation2 + $0x184] ss:$16 sps:$4 sm:$0xff]   ;;  %v18456_v52 = vld [vmem:[#allocation2 + $0x180] ss:$16 sps:$4 sm:$0xff]   ;;  %v18457_v53 = vld [vmem:[#allocation2 + $0x188] ss:$16 sps:$4 sm:$0xff]   ;;  %v15728_v4 = vcombine.low %v239_v46, %v239_v46 }
 0x10d   :  { %1446 = vmatpush1.bf16.msra.mxu0 %v18408_v18  ;;  %1569 = vmatpush1.bf16.msra.mxu1 %v18409_v19  ;;  %v18458_v54 = vld [vmem:[#allocation2 + $0x1a4] ss:$16 sps:$4 sm:$0xff]   ;;  %v18460_v55 = vld [vmem:[#allocation2 + $0x1ac] ss:$16 sps:$4 sm:$0xff]   ;;  %v18462_v56 = vld [vmem:[#allocation2 + $0x1a0] ss:$16 sps:$4 sm:$0xff]  }
 0x10e   :  { %1447 = vmatprep.subr.bf16.mxu0 %v18410_v20  ;;  %1570 = vmatprep.subr.bf16.mxu1 %v18412_v21  ;;  %v18463_v57 = vld [vmem:[#allocation2 + $0x1a8] ss:$16 sps:$4 sm:$0xff]   ;;  %v18464_v58 = vld [vmem:[#allocation2 + $0x1c4] ss:$16 sps:$4 sm:$0xff]   ;;  %v18466_v59 = vld [vmem:[#allocation2 + $0x1cc] ss:$16 sps:$4 sm:$0xff]  }
 0x10f   :  { %1469 = vmatprep.mubr.bf16.mxu0 %v15729_v48  ;;  %1592 = vmatprep.mubr.bf16.mxu1 %v15729_v48  ;;  %v18468_v60 = vld [vmem:[#allocation2 + $0x1c0] ss:$16 sps:$4 sm:$0xff]   ;;  %v18469_v61 = vld [vmem:[#allocation2 + $0x1c8] ss:$16 sps:$4 sm:$0xff]   ;;  %v18470_v62 = vld [vmem:[#allocation2 + $0x1e4] ss:$16 sps:$4 sm:$0xff]  }
 0x110   :  { %v18472_v63 = vld [vmem:[#allocation2 + $0x1ec] ss:$16 sps:$4 sm:$0xff]   ;;  %v18474_v0 = vld [vmem:[#allocation2 + $0x1e0] ss:$16 sps:$4 sm:$0xff]   ;;  %v18475_v1 = vld [vmem:[#allocation2 + $0x1e8] ss:$16 sps:$4 sm:$0xff]  }
 0x111   :  { %1448 = vmatpush1.bf16.msra.mxu0 %v18414_v22  ;;  %1571 = vmatpush1.bf16.msra.mxu1 %v18415_v23  ;;  %v18480_v2 = vld [vmem:[#allocation2 + $0x204] ss:$16 sps:$4 sm:$0xff]   ;;  %v18483_v3 = vld [vmem:[#allocation2 + $0x20c] ss:$16 sps:$4 sm:$0xff]   ;;  %v18478_v5 = vld [vmem:[#allocation2 + $0x200] ss:$16 sps:$4 sm:$0xff]  }
 0x112   :  { %1449 = vmatprep.subr.bf16.mxu0 %v18416_v24  ;;  %1572 = vmatprep.subr.bf16.mxu1 %v18418_v25  ;;  %v18481_v6 = vld [vmem:[#allocation2 + $0x208] ss:$16 sps:$4 sm:$0xff]   ;;  %v18486_v7 = vld [vmem:[#allocation2 + $0x224] ss:$16 sps:$4 sm:$0xff]   ;;  %v18489_v8 = vld [vmem:[#allocation2 + $0x22c] ss:$16 sps:$4 sm:$0xff]  }
 0x113   :  { %v18484_v9 = vld [vmem:[#allocation2 + $0x220] ss:$16 sps:$4 sm:$0xff]   ;;  %v18487_v10 = vld [vmem:[#allocation2 + $0x228] ss:$16 sps:$4 sm:$0xff]   ;;  %v18492_v11 = vld [vmem:[#allocation2 + $0x244] ss:$16 sps:$4 sm:$0xff]  }
 0x114   :  { %v18495_v12 = vld [vmem:[#allocation2 + $0x24c] ss:$16 sps:$4 sm:$0xff]   ;;  %v18490_v13 = vld [vmem:[#allocation2 + $0x240] ss:$16 sps:$4 sm:$0xff]   ;;  %v18493_v14 = vld [vmem:[#allocation2 + $0x248] ss:$16 sps:$4 sm:$0xff]  }
 0x115   :  { %1450 = vmatpush1.bf16.msra.mxu0 %v18420_v26  ;;  %1573 = vmatpush1.bf16.msra.mxu1 %v18421_v27  ;;  %v18498_v15 = vld [vmem:[#allocation2 + $0x264] ss:$16 sps:$4 sm:$0xff]   ;;  %v18501_v16 = vld [vmem:[#allocation2 + $0x26c] ss:$16 sps:$4 sm:$0xff]   ;;  %v18496_v17 = vld [vmem:[#allocation2 + $0x260] ss:$16 sps:$4 sm:$0xff]  }
 0x116   :  { %1451 = vmatprep.subr.bf16.mxu0 %v18422_v28  ;;  %1574 = vmatprep.subr.bf16.mxu1 %v18424_v29  ;;  %v18499_v18 = vld [vmem:[#allocation2 + $0x268] ss:$16 sps:$4 sm:$0xff]   ;;  %v18504_v19 = vld [vmem:[#allocation2 + $0x284] ss:$16 sps:$4 sm:$0xff]   ;;  %v18507_v20 = vld [vmem:[#allocation2 + $0x28c] ss:$16 sps:$4 sm:$0xff]  }
 0x117   :  { %v18502_v21 = vld [vmem:[#allocation2 + $0x280] ss:$16 sps:$4 sm:$0xff]   ;;  %v18505_v22 = vld [vmem:[#allocation2 + $0x288] ss:$16 sps:$4 sm:$0xff]   ;;  %v18510_v23 = vld [vmem:[#allocation2 + $0x2a4] ss:$16 sps:$4 sm:$0xff]  }
 0x118   :  { %v18513_v24 = vld [vmem:[#allocation2 + $0x2ac] ss:$16 sps:$4 sm:$0xff]   ;;  %v18508_v25 = vld [vmem:[#allocation2 + $0x2a0] ss:$16 sps:$4 sm:$0xff]   ;;  %v18511_v26 = vld [vmem:[#allocation2 + $0x2a8] ss:$16 sps:$4 sm:$0xff]  }
 0x119   :  { %1452 = vmatpush1.bf16.msra.mxu0 %v18426_v30  ;;  %1575 = vmatpush1.bf16.msra.mxu1 %v18427_v31  ;;  %v18516_v27 = vld [vmem:[#allocation2 + $0x2c4] ss:$16 sps:$4 sm:$0xff]   ;;  %v18519_v28 = vld [vmem:[#allocation2 + $0x2cc] ss:$16 sps:$4 sm:$0xff]   ;;  %v18514_v31 = vld [vmem:[#allocation2 + $0x2c0] ss:$16 sps:$4 sm:$0xff]  }
 0x11a   :  { %1453 = vmatprep.subr.bf16.mxu0 %v18428_v32  ;;  %1576 = vmatprep.subr.bf16.mxu1 %v18430_v33  ;;  %v21579_v29 = vld [vmem:[%s21974_s0 + $0x8] sm:$0xff]  ;;  %v18522_v33 = vld [vmem:[#allocation2 + $0x2e4] ss:$16 sps:$4 sm:$0xff]  }
 0x11b   :  { %v15731_v30 = vcombine.high %v21579_v29, %v21579_v29  ;;  %v18517_v32 = vld [vmem:[#allocation2 + $0x2c8] ss:$16 sps:$4 sm:$0xff]   ;;  %v18543_v46 = vld [vmem:[#allocation2 + $0x34c] ss:$16 sps:$4 sm:$0xff]  }
 0x11c   :  { %v18541_v48 = vld [vmem:[#allocation2 + $0x348] ss:$16 sps:$4 sm:$0xff]  }
 0x11d   :  { %1454 = vmatpush1.bf16.msra.mxu0 %v18432_v34  ;;  %1577 = vmatpush1.bf16.msra.mxu1 %v18433_v35  ;;  %v18525_v34 = vld [vmem:[#allocation2 + $0x2ec] ss:$16 sps:$4 sm:$0xff]   ;;  %v18520_v35 = vld [vmem:[#allocation2 + $0x2e0] ss:$16 sps:$4 sm:$0xff]  }
 0x11e   :  { %1455 = vmatprep.subr.bf16.mxu0 %v18434_v36  ;;  %1578 = vmatprep.subr.bf16.mxu1 %v18436_v37  ;;  %v18523_v36 = vld [vmem:[#allocation2 + $0x2e8] ss:$16 sps:$4 sm:$0xff]   ;;  %v18528_v37 = vld [vmem:[#allocation2 + $0x304] ss:$16 sps:$4 sm:$0xff]  }
 0x121   :  { %1456 = vmatpush1.bf16.msra.mxu0 %v18438_v38  ;;  %1579 = vmatpush1.bf16.msra.mxu1 %v18439_v39  ;;  %v18531_v38 = vld [vmem:[#allocation2 + $0x30c] ss:$16 sps:$4 sm:$0xff]   ;;  %v18526_v39 = vld [vmem:[#allocation2 + $0x300] ss:$16 sps:$4 sm:$0xff]  }
 0x122   :  { %1457 = vmatprep.subr.bf16.mxu0 %v18440_v40  ;;  %1580 = vmatprep.subr.bf16.mxu1 %v18442_v41  ;;  %v18529_v40 = vld [vmem:[#allocation2 + $0x308] ss:$16 sps:$4 sm:$0xff]   ;;  %v18534_v41 = vld [vmem:[#allocation2 + $0x324] ss:$16 sps:$4 sm:$0xff]  }
 0x125   :  { %1458 = vmatpush1.bf16.msra.mxu0 %v18444_v42  ;;  %1581 = vmatpush1.bf16.msra.mxu1 %v18445_v43  ;;  %v18537_v42 = vld [vmem:[#allocation2 + $0x32c] ss:$16 sps:$4 sm:$0xff]   ;;  %v18532_v43 = vld [vmem:[#allocation2 + $0x320] ss:$16 sps:$4 sm:$0xff]  }
 0x126   :  { %1459 = vmatprep.subr.bf16.mxu0 %v18446_v44  ;;  %1582 = vmatprep.subr.bf16.mxu1 %v18448_v45  ;;  %v18535_v44 = vld [vmem:[#allocation2 + $0x328] ss:$16 sps:$4 sm:$0xff]   ;;  %v18540_v45 = vld [vmem:[#allocation2 + $0x344] ss:$16 sps:$4 sm:$0xff]  }
 0x129   :  { %1460 = vmatpush1.bf16.msra.mxu0 %v18450_v47  ;;  %1583 = vmatpush1.bf16.msra.mxu1 %v18451_v49  ;;  %v18538_v47 = vld [vmem:[#allocation2 + $0x340] ss:$16 sps:$4 sm:$0xff]   ;;  %v18546_v49 = vld [vmem:[#allocation2 + $0x364] ss:$16 sps:$4 sm:$0xff]  }
 0x12a   :  { %1461 = vmatprep.subr.bf16.mxu0 %v18452_v50  ;;  %1584 = vmatprep.subr.bf16.mxu1 %v18454_v51  ;;  %v18549_v50 = vld [vmem:[#allocation2 + $0x36c] ss:$16 sps:$4 sm:$0xff]   ;;  %v18544_v51 = vld [vmem:[#allocation2 + $0x360] ss:$16 sps:$4 sm:$0xff]  }
 0x12d   :  { %1462 = vmatpush1.bf16.msra.mxu0 %v18456_v52  ;;  %1585 = vmatpush1.bf16.msra.mxu1 %v18457_v53  ;;  %v18547_v52 = vld [vmem:[#allocation2 + $0x368] ss:$16 sps:$4 sm:$0xff]   ;;  %v18552_v53 = vld [vmem:[#allocation2 + $0x384] ss:$16 sps:$4 sm:$0xff]  }
 0x12e   :  { %1463 = vmatprep.subr.bf16.mxu0 %v18458_v54  ;;  %1586 = vmatprep.subr.bf16.mxu1 %v18460_v55  ;;  %v18555_v54 = vld [vmem:[#allocation2 + $0x38c] ss:$16 sps:$4 sm:$0xff]   ;;  %v18550_v55 = vld [vmem:[#allocation2 + $0x380] ss:$16 sps:$4 sm:$0xff]  }
 0x131   :  { %1464 = vmatpush1.bf16.msra.mxu0 %v18462_v56  ;;  %1587 = vmatpush1.bf16.msra.mxu1 %v18463_v57  ;;  %v18553_v56 = vld [vmem:[#allocation2 + $0x388] ss:$16 sps:$4 sm:$0xff]   ;;  %v18558_v57 = vld [vmem:[#allocation2 + $0x3a4] ss:$16 sps:$4 sm:$0xff]  }
 0x132   :  { %1465 = vmatprep.subr.bf16.mxu0 %v18464_v58  ;;  %1588 = vmatprep.subr.bf16.mxu1 %v18466_v59  ;;  %v18561_v58 = vld [vmem:[#allocation2 + $0x3ac] ss:$16 sps:$4 sm:$0xff]   ;;  %v18556_v59 = vld [vmem:[#allocation2 + $0x3a0] ss:$16 sps:$4 sm:$0xff]  }
 0x135   :  { %1466 = vmatpush1.bf16.msra.mxu0 %v18468_v60  ;;  %1589 = vmatpush1.bf16.msra.mxu1 %v18469_v61  ;;  %v18559_v60 = vld [vmem:[#allocation2 + $0x3a8] ss:$16 sps:$4 sm:$0xff]   ;;  %v18564_v61 = vld [vmem:[#allocation2 + $0x3c4] ss:$16 sps:$4 sm:$0xff]  }
 0x136   :  { %1467 = vmatprep.subr.bf16.mxu0 %v18470_v62  ;;  %1590 = vmatprep.subr.bf16.mxu1 %v18472_v63  ;;  %v18567_v62 = vld [vmem:[#allocation2 + $0x3cc] ss:$16 sps:$4 sm:$0xff]   ;;  %v18562_v63 = vld [vmem:[#allocation2 + $0x3c0] ss:$16 sps:$4 sm:$0xff]  }
 0x139   :  { %1468 = vmatpush1.bf16.msra.mxu0 %v18474_v0  ;;  %1591 = vmatpush1.bf16.msra.mxu1 %v18475_v1  ;;  %v18565_v0 = vld [vmem:[#allocation2 + $0x3c8] ss:$16 sps:$4 sm:$0xff]   ;;  %v18570_v1 = vld [vmem:[#allocation2 + $0x3e4] ss:$16 sps:$4 sm:$0xff]  }
 0x13a   :  { %1478 = vmatprep.subr.bf16.mxu0 %v18480_v2  ;;  %1601 = vmatprep.subr.bf16.mxu1 %v18483_v3  ;;  %v18573_v2 = vld [vmem:[#allocation2 + $0x3ec] ss:$16 sps:$4 sm:$0xff]   ;;  %v18568_v3 = vld [vmem:[#allocation2 + $0x3e0] ss:$16 sps:$4 sm:$0xff]  }
 0x13c   :  { %1470 = vmatmul.mubr.bf16.vlgmr.msra.gmra.mrb[0].mxu0 %v15728_v4  ;;  %1593 = vmatmul.mubr.bf16.vlgmr.msra.gmra.mrb[0].mxu1 %v15728_v4  ;;  %v18571_v4 = vld [vmem:[#allocation2 + $0x3e8] ss:$16 sps:$4 sm:$0xff]  }
 0x13d   :  { %1479 = vmatpush1.bf16.msra.mxu0 %v18478_v5  ;;  %1602 = vmatpush1.bf16.msra.mxu1 %v18481_v6  ;;  %v18578_v5 = vld [vmem:[#allocation2 + $0x404] ss:$16 sps:$4 sm:$0xff]   ;;  %v18581_v6 = vld [vmem:[#allocation2 + $0x40c] ss:$16 sps:$4 sm:$0xff]  }
 0x13e   :  { %1480 = vmatprep.subr.bf16.mxu0 %v18486_v7  ;;  %1603 = vmatprep.subr.bf16.mxu1 %v18489_v8  ;;  %v15730_v7 = vcombine.low %v21579_v29, %v21579_v29  ;;  %v18576_v8 = vld [vmem:[#allocation2 + $0x400] ss:$16 sps:$4 sm:$0xff]   ;;  %v18611_v29 = vld [vmem:[#allocation2 + $0x4ac] ss:$16 sps:$4 sm:$0xff]  }
 0x13f   :  { %1510 = vmatprep.mubr.bf16.mxu0 %v15731_v30  ;;  %1633 = vmatprep.mubr.bf16.mxu1 %v15731_v30  ;;  %v18606_v30 = vld [vmem:[#allocation2 + $0x4a0] ss:$16 sps:$4 sm:$0xff]  }
 0x141   :  { %1481 = vmatpush1.bf16.msra.mxu0 %v18484_v9  ;;  %1604 = vmatpush1.bf16.msra.mxu1 %v18487_v10  ;;  %v18579_v9 = vld [vmem:[#allocation2 + $0x408] ss:$16 sps:$4 sm:$0xff]   ;;  %v18584_v10 = vld [vmem:[#allocation2 + $0x424] ss:$16 sps:$4 sm:$0xff]  }
 0x142   :  { %1482 = vmatprep.subr.bf16.mxu0 %v18492_v11  ;;  %1605 = vmatprep.subr.bf16.mxu1 %v18495_v12  ;;  %v21588_v11 = vld [vmem:[%s21974_s0 + $0x10] sm:$0xff]  ;;  %v18587_v12 = vld [vmem:[#allocation2 + $0x42c] ss:$16 sps:$4 sm:$0xff]  }
 0x145   :  { %1483 = vmatpush1.bf16.msra.mxu0 %v18490_v13  ;;  %1606 = vmatpush1.bf16.msra.mxu1 %v18493_v14  ;;  %v15733_v13 = vcombine.high %v21588_v11, %v21588_v11  ;;  %v18582_v14 = vld [vmem:[#allocation2 + $0x420] ss:$16 sps:$4 sm:$0xff]  }
 0x146   :  { %1484 = vmatprep.subr.bf16.mxu0 %v18498_v15  ;;  %1607 = vmatprep.subr.bf16.mxu1 %v18501_v16  ;;  %v18585_v15 = vld [vmem:[#allocation2 + $0x428] ss:$16 sps:$4 sm:$0xff]   ;;  %v18590_v16 = vld [vmem:[#allocation2 + $0x444] ss:$16 sps:$4 sm:$0xff]  }
 0x149   :  { %1485 = vmatpush1.bf16.msra.mxu0 %v18496_v17  ;;  %1608 = vmatpush1.bf16.msra.mxu1 %v18499_v18  ;;  %v18593_v17 = vld [vmem:[#allocation2 + $0x44c] ss:$16 sps:$4 sm:$0xff]   ;;  %v18588_v18 = vld [vmem:[#allocation2 + $0x440] ss:$16 sps:$4 sm:$0xff]  }
 0x14a   :  { %1486 = vmatprep.subr.bf16.mxu0 %v18504_v19  ;;  %1609 = vmatprep.subr.bf16.mxu1 %v18507_v20  ;;  %v18591_v19 = vld [vmem:[#allocation2 + $0x448] ss:$16 sps:$4 sm:$0xff]   ;;  %v18596_v20 = vld [vmem:[#allocation2 + $0x464] ss:$16 sps:$4 sm:$0xff]  }
 0x14d   :  { %1487 = vmatpush1.bf16.msra.mxu0 %v18502_v21  ;;  %1610 = vmatpush1.bf16.msra.mxu1 %v18505_v22  ;;  %v18599_v21 = vld [vmem:[#allocation2 + $0x46c] ss:$16 sps:$4 sm:$0xff]   ;;  %v18594_v22 = vld [vmem:[#allocation2 + $0x460] ss:$16 sps:$4 sm:$0xff]  }
 0x14e   :  { %1488 = vmatprep.subr.bf16.mxu0 %v18510_v23  ;;  %1611 = vmatprep.subr.bf16.mxu1 %v18513_v24  ;;  %v18597_v23 = vld [vmem:[#allocation2 + $0x468] ss:$16 sps:$4 sm:$0xff]   ;;  %v18602_v24 = vld [vmem:[#allocation2 + $0x484] ss:$16 sps:$4 sm:$0xff]  }
 0x151   :  { %1489 = vmatpush1.bf16.msra.mxu0 %v18508_v25  ;;  %1612 = vmatpush1.bf16.msra.mxu1 %v18511_v26  ;;  %v18605_v25 = vld [vmem:[#allocation2 + $0x48c] ss:$16 sps:$4 sm:$0xff]   ;;  %v18600_v26 = vld [vmem:[#allocation2 + $0x480] ss:$16 sps:$4 sm:$0xff]  }
 0x152   :  { %1490 = vmatprep.subr.bf16.mxu0 %v18516_v27  ;;  %1613 = vmatprep.subr.bf16.mxu1 %v18519_v28  ;;  %v18603_v27 = vld [vmem:[#allocation2 + $0x488] ss:$16 sps:$4 sm:$0xff]   ;;  %v18608_v28 = vld [vmem:[#allocation2 + $0x4a4] ss:$16 sps:$4 sm:$0xff]  }
 0x155   :  { %1491 = vmatpush1.bf16.msra.mxu0 %v18514_v31  ;;  %1614 = vmatpush1.bf16.msra.mxu1 %v18517_v32  ;;  %v18609_v31 = vld [vmem:[#allocation2 + $0x4a8] ss:$16 sps:$4 sm:$0xff]   ;;  %v18614_v32 = vld [vmem:[#allocation2 + $0x4c4] ss:$16 sps:$4 sm:$0xff]  }
 0x156   :  { %1492 = vmatprep.subr.bf16.mxu0 %v18522_v33  ;;  %1615 = vmatprep.subr.bf16.mxu1 %v18525_v34  ;;  %v18617_v33 = vld [vmem:[#allocation2 + $0x4cc] ss:$16 sps:$4 sm:$0xff]   ;;  %v18612_v34 = vld [vmem:[#allocation2 + $0x4c0] ss:$16 sps:$4 sm:$0xff]  }
 0x159   :  { %1493 = vmatpush1.bf16.msra.mxu0 %v18520_v35  ;;  %1616 = vmatpush1.bf16.msra.mxu1 %v18523_v36  ;;  %v18615_v35 = vld [vmem:[#allocation2 + $0x4c8] ss:$16 sps:$4 sm:$0xff]   ;;  %v18620_v36 = vld [vmem:[#allocation2 + $0x4e4] ss:$16 sps:$4 sm:$0xff]  }
 0x15a   :  { %1494 = vmatprep.subr.bf16.mxu0 %v18528_v37  ;;  %1617 = vmatprep.subr.bf16.mxu1 %v18531_v38  ;;  %v18623_v37 = vld [vmem:[#allocation2 + $0x4ec] ss:$16 sps:$4 sm:$0xff]   ;;  %v18618_v38 = vld [vmem:[#allocation2 + $0x4e0] ss:$16 sps:$4 sm:$0xff]  }
 0x15d   :  { %1495 = vmatpush1.bf16.msra.mxu0 %v18526_v39  ;;  %1618 = vmatpush1.bf16.msra.mxu1 %v18529_v40  ;;  %v18621_v39 = vld [vmem:[#allocation2 + $0x4e8] ss:$16 sps:$4 sm:$0xff]   ;;  %v18626_v40 = vld [vmem:[#allocation2 + $0x504] ss:$16 sps:$4 sm:$0xff]  }
 0x15e   :  { %1496 = vmatprep.subr.bf16.mxu0 %v18534_v41  ;;  %1619 = vmatprep.subr.bf16.mxu1 %v18537_v42  ;;  %v18629_v41 = vld [vmem:[#allocation2 + $0x50c] ss:$16 sps:$4 sm:$0xff]   ;;  %v18624_v42 = vld [vmem:[#allocation2 + $0x500] ss:$16 sps:$4 sm:$0xff]  }
 0x161   :  { %1497 = vmatpush1.bf16.msra.mxu0 %v18532_v43  ;;  %1620 = vmatpush1.bf16.msra.mxu1 %v18535_v44  ;;  %v18627_v43 = vld [vmem:[#allocation2 + $0x508] ss:$16 sps:$4 sm:$0xff]   ;;  %v18632_v44 = vld [vmem:[#allocation2 + $0x524] ss:$16 sps:$4 sm:$0xff]  }
 0x162   :  { %1498 = vmatprep.subr.bf16.mxu0 %v18540_v45  ;;  %1621 = vmatprep.subr.bf16.mxu1 %v18543_v46  ;;  %v18635_v45 = vld [vmem:[#allocation2 + $0x52c] ss:$16 sps:$4 sm:$0xff]   ;;  %v18630_v46 = vld [vmem:[#allocation2 + $0x520] ss:$16 sps:$4 sm:$0xff]  }
 0x165   :  { %1499 = vmatpush1.bf16.msra.mxu0 %v18538_v47  ;;  %1622 = vmatpush1.bf16.msra.mxu1 %v18541_v48  ;;  %v18633_v47 = vld [vmem:[#allocation2 + $0x528] ss:$16 sps:$4 sm:$0xff]   ;;  %v18638_v48 = vld [vmem:[#allocation2 + $0x544] ss:$16 sps:$4 sm:$0xff]  }
 0x166   :  { %1500 = vmatprep.subr.bf16.mxu0 %v18546_v49  ;;  %1623 = vmatprep.subr.bf16.mxu1 %v18549_v50  ;;  %v18641_v49 = vld [vmem:[#allocation2 + $0x54c] ss:$16 sps:$4 sm:$0xff]   ;;  %v18636_v50 = vld [vmem:[#allocation2 + $0x540] ss:$16 sps:$4 sm:$0xff]  }
 0x169   :  { %1501 = vmatpush1.bf16.msra.mxu0 %v18544_v51  ;;  %1624 = vmatpush1.bf16.msra.mxu1 %v18547_v52  ;;  %v18639_v51 = vld [vmem:[#allocation2 + $0x548] ss:$16 sps:$4 sm:$0xff]   ;;  %v18644_v52 = vld [vmem:[#allocation2 + $0x564] ss:$16 sps:$4 sm:$0xff]  }
 0x16a   :  { %1502 = vmatprep.subr.bf16.mxu0 %v18552_v53  ;;  %1625 = vmatprep.subr.bf16.mxu1 %v18555_v54  ;;  %v18647_v53 = vld [vmem:[#allocation2 + $0x56c] ss:$16 sps:$4 sm:$0xff]   ;;  %v18642_v54 = vld [vmem:[#allocation2 + $0x560] ss:$16 sps:$4 sm:$0xff]  }
 0x16d   :  { %1503 = vmatpush1.bf16.msra.mxu0 %v18550_v55  ;;  %1626 = vmatpush1.bf16.msra.mxu1 %v18553_v56  ;;  %v18645_v55 = vld [vmem:[#allocation2 + $0x568] ss:$16 sps:$4 sm:$0xff]   ;;  %v18650_v56 = vld [vmem:[#allocation2 + $0x584] ss:$16 sps:$4 sm:$0xff]  }
 0x16e   :  { %1504 = vmatprep.subr.bf16.mxu0 %v18558_v57  ;;  %1627 = vmatprep.subr.bf16.mxu1 %v18561_v58  ;;  %v18653_v57 = vld [vmem:[#allocation2 + $0x58c] ss:$16 sps:$4 sm:$0xff]   ;;  %v18648_v58 = vld [vmem:[#allocation2 + $0x580] ss:$16 sps:$4 sm:$0xff]  }
 0x171   :  { %1505 = vmatpush1.bf16.msra.mxu0 %v18556_v59  ;;  %1628 = vmatpush1.bf16.msra.mxu1 %v18559_v60  ;;  %v18651_v59 = vld [vmem:[#allocation2 + $0x588] ss:$16 sps:$4 sm:$0xff]   ;;  %v18656_v60 = vld [vmem:[#allocation2 + $0x5a4] ss:$16 sps:$4 sm:$0xff]  }
 0x172   :  { %1506 = vmatprep.subr.bf16.mxu0 %v18564_v61  ;;  %1629 = vmatprep.subr.bf16.mxu1 %v18567_v62  ;;  %v18659_v61 = vld [vmem:[#allocation2 + $0x5ac] ss:$16 sps:$4 sm:$0xff]   ;;  %v18654_v62 = vld [vmem:[#allocation2 + $0x5a0] ss:$16 sps:$4 sm:$0xff]  }
 0x175   :  { %1507 = vmatpush1.bf16.msra.mxu0 %v18562_v63  ;;  %1630 = vmatpush1.bf16.msra.mxu1 %v18565_v0  ;;  %v18657_v63 = vld [vmem:[#allocation2 + $0x5a8] ss:$16 sps:$4 sm:$0xff]   ;;  %v18662_v0 = vld [vmem:[#allocation2 + $0x5c4] ss:$16 sps:$4 sm:$0xff]  }
 0x176   :  { %1508 = vmatprep.subr.bf16.mxu0 %v18570_v1  ;;  %1631 = vmatprep.subr.bf16.mxu1 %v18573_v2  ;;  %v18665_v1 = vld [vmem:[#allocation2 + $0x5cc] ss:$16 sps:$4 sm:$0xff]   ;;  %v18660_v2 = vld [vmem:[#allocation2 + $0x5c0] ss:$16 sps:$4 sm:$0xff]  }
 0x179   :  { %1509 = vmatpush1.bf16.msra.mxu0 %v18568_v3  ;;  %1632 = vmatpush1.bf16.msra.mxu1 %v18571_v4  ;;  %v18663_v3 = vld [vmem:[#allocation2 + $0x5c8] ss:$16 sps:$4 sm:$0xff]   ;;  %v18668_v4 = vld [vmem:[#allocation2 + $0x5e4] ss:$16 sps:$4 sm:$0xff]  }
 0x17a   :  { %1519 = vmatprep.subr.bf16.mxu0 %v18578_v5  ;;  %1642 = vmatprep.subr.bf16.mxu1 %v18581_v6  ;;  %v18671_v5 = vld [vmem:[#allocation2 + $0x5ec] ss:$16 sps:$4 sm:$0xff]   ;;  %v18666_v6 = vld [vmem:[#allocation2 + $0x5e0] ss:$16 sps:$4 sm:$0xff]  }
 0x17c   :  { %1511 = vmatmul.mubr.bf16.vlgmr.msra.gmra.mrb[0].mxu0 %v15730_v7  ;;  %1634 = vmatmul.mubr.bf16.vlgmr.msra.gmra.mrb[0].mxu1 %v15730_v7  ;;  %v18669_v7 = vld [vmem:[#allocation2 + $0x5e8] ss:$16 sps:$4 sm:$0xff]  }
 0x17d   :  { %1520 = vmatpush1.bf16.msra.mxu0 %v18576_v8  ;;  %1643 = vmatpush1.bf16.msra.mxu1 %v18579_v9  ;;  %v18676_v8 = vld [vmem:[#allocation4 + $0x4] ss:$16 sps:$4 sm:$0xff]   ;;  %v18679_v9 = vld [vmem:[#allocation4 + $0xc] ss:$16 sps:$4 sm:$0xff]  }
 0x17e   :  { %1521 = vmatprep.subr.bf16.mxu0 %v18584_v10  ;;  %1644 = vmatprep.subr.bf16.mxu1 %v18587_v12  ;;  %v18674_v10 = vld [vmem:[#allocation4] ss:$16 sps:$4 sm:$0xff]   ;;  %v18677_v12 = vld [vmem:[#allocation4 + $0x8] ss:$16 sps:$4 sm:$0xff]  }
 0x17f   :  { %1551 = vmatprep.mubr.bf16.mxu0 %v15733_v13  ;;  %1674 = vmatprep.mubr.bf16.mxu1 %v15733_v13  ;;  %v15732_v13 = vcombine.low %v21588_v11, %v21588_v11  ;;  %v18697_v11 = vld [vmem:[#allocation4 + $0x6c] ss:$16 sps:$4 sm:$0xff]  }
 0x181   :  { %1522 = vmatpush1.bf16.msra.mxu0 %v18582_v14  ;;  %1645 = vmatpush1.bf16.msra.mxu1 %v18585_v15  ;;  %v18682_v14 = vld [vmem:[#allocation4 + $0x24] ss:$16 sps:$4 sm:$0xff]   ;;  %v18685_v15 = vld [vmem:[#allocation4 + $0x2c] ss:$16 sps:$4 sm:$0xff]  }
 0x182   :  { %1523 = vmatprep.subr.bf16.mxu0 %v18590_v16  ;;  %1646 = vmatprep.subr.bf16.mxu1 %v18593_v17  ;;  %v18680_v16 = vld [vmem:[#allocation4 + $0x20] ss:$16 sps:$4 sm:$0xff]   ;;  %v18683_v17 = vld [vmem:[#allocation4 + $0x28] ss:$16 sps:$4 sm:$0xff]  }
 0x185   :  { %1524 = vmatpush1.bf16.msra.mxu0 %v18588_v18  ;;  %1647 = vmatpush1.bf16.msra.mxu1 %v18591_v19  ;;  %v18688_v18 = vld [vmem:[#allocation4 + $0x44] ss:$16 sps:$4 sm:$0xff]   ;;  %v18691_v19 = vld [vmem:[#allocation4 + $0x4c] ss:$16 sps:$4 sm:$0xff]  }
 0x186   :  { %1525 = vmatprep.subr.bf16.mxu0 %v18596_v20  ;;  %1648 = vmatprep.subr.bf16.mxu1 %v18599_v21  ;;  %v18686_v20 = vld [vmem:[#allocation4 + $0x40] ss:$16 sps:$4 sm:$0xff]   ;;  %v18689_v21 = vld [vmem:[#allocation4 + $0x48] ss:$16 sps:$4 sm:$0xff]  }
 0x189   :  { %1526 = vmatpush1.bf16.msra.mxu0 %v18594_v22  ;;  %1649 = vmatpush1.bf16.msra.mxu1 %v18597_v23  ;;  %v18694_v22 = vld [vmem:[#allocation4 + $0x64] ss:$16 sps:$4 sm:$0xff]   ;;  %v18692_v23 = vld [vmem:[#allocation4 + $0x60] ss:$16 sps:$4 sm:$0xff]  }
 0x18a   :  { %1527 = vmatprep.subr.bf16.mxu0 %v18602_v24  ;;  %1650 = vmatprep.subr.bf16.mxu1 %v18605_v25  ;;  %v18695_v24 = vld [vmem:[#allocation4 + $0x68] ss:$16 sps:$4 sm:$0xff]   ;;  %v18700_v25 = vld [vmem:[#allocation4 + $0x84] ss:$16 sps:$4 sm:$0xff]  }
 0x18d   :  { %1528 = vmatpush1.bf16.msra.mxu0 %v18600_v26  ;;  %1651 = vmatpush1.bf16.msra.mxu1 %v18603_v27  ;;  %v18703_v26 = vld [vmem:[#allocation4 + $0x8c] ss:$16 sps:$4 sm:$0xff]   ;;  %v18698_v27 = vld [vmem:[#allocation4 + $0x80] ss:$16 sps:$4 sm:$0xff]  }
 0x18e   :  { %1529 = vmatprep.subr.bf16.mxu0 %v18608_v28  ;;  %1652 = vmatprep.subr.bf16.mxu1 %v18611_v29  ;;  %v18701_v28 = vld [vmem:[#allocation4 + $0x88] ss:$16 sps:$4 sm:$0xff]   ;;  %v18706_v29 = vld [vmem:[#allocation4 + $0xa4] ss:$16 sps:$4 sm:$0xff]  }
 0x191   :  { %1530 = vmatpush1.bf16.msra.mxu0 %v18606_v30  ;;  %1653 = vmatpush1.bf16.msra.mxu1 %v18609_v31  ;;  %v18709_v30 = vld [vmem:[#allocation4 + $0xac] ss:$16 sps:$4 sm:$0xff]   ;;  %v18704_v31 = vld [vmem:[#allocation4 + $0xa0] ss:$16 sps:$4 sm:$0xff]  }
 0x192   :  { %1531 = vmatprep.subr.bf16.mxu0 %v18614_v32  ;;  %1654 = vmatprep.subr.bf16.mxu1 %v18617_v33  ;;  %v18707_v32 = vld [vmem:[#allocation4 + $0xa8] ss:$16 sps:$4 sm:$0xff]   ;;  %v18712_v33 = vld [vmem:[#allocation4 + $0xc4] ss:$16 sps:$4 sm:$0xff]  }
 0x195   :  { %1532 = vmatpush1.bf16.msra.mxu0 %v18612_v34  ;;  %1655 = vmatpush1.bf16.msra.mxu1 %v18615_v35  ;;  %v18715_v34 = vld [vmem:[#allocation4 + $0xcc] ss:$16 sps:$4 sm:$0xff]   ;;  %v18710_v35 = vld [vmem:[#allocation4 + $0xc0] ss:$16 sps:$4 sm:$0xff]  }
 0x196   :  { %1533 = vmatprep.subr.bf16.mxu0 %v18620_v36  ;;  %1656 = vmatprep.subr.bf16.mxu1 %v18623_v37  ;;  %v18713_v36 = vld [vmem:[#allocation4 + $0xc8] ss:$16 sps:$4 sm:$0xff]   ;;  %v18718_v37 = vld [vmem:[#allocation4 + $0xe4] ss:$16 sps:$4 sm:$0xff]  }
 0x199   :  { %1534 = vmatpush1.bf16.msra.mxu0 %v18618_v38  ;;  %1657 = vmatpush1.bf16.msra.mxu1 %v18621_v39  ;;  %v18721_v38 = vld [vmem:[#allocation4 + $0xec] ss:$16 sps:$4 sm:$0xff]   ;;  %v18716_v39 = vld [vmem:[#allocation4 + $0xe0] ss:$16 sps:$4 sm:$0xff]  }
 0x19a   :  { %1535 = vmatprep.subr.bf16.mxu0 %v18626_v40  ;;  %1658 = vmatprep.subr.bf16.mxu1 %v18629_v41  ;;  %v18719_v40 = vld [vmem:[#allocation4 + $0xe8] ss:$16 sps:$4 sm:$0xff]   ;;  %v18724_v41 = vld [vmem:[#allocation4 + $0x104] ss:$16 sps:$4 sm:$0xff]  }
 0x19d   :  { %1536 = vmatpush1.bf16.msra.mxu0 %v18624_v42  ;;  %1659 = vmatpush1.bf16.msra.mxu1 %v18627_v43  ;;  %v18727_v42 = vld [vmem:[#allocation4 + $0x10c] ss:$16 sps:$4 sm:$0xff]   ;;  %v18722_v43 = vld [vmem:[#allocation4 + $0x100] ss:$16 sps:$4 sm:$0xff]  }
 0x19e   :  { %1537 = vmatprep.subr.bf16.mxu0 %v18632_v44  ;;  %1660 = vmatprep.subr.bf16.mxu1 %v18635_v45  ;;  %v18725_v44 = vld [vmem:[#allocation4 + $0x108] ss:$16 sps:$4 sm:$0xff]   ;;  %v18730_v45 = vld [vmem:[#allocation4 + $0x124] ss:$16 sps:$4 sm:$0xff]  }
 0x1a1   :  { %1538 = vmatpush1.bf16.msra.mxu0 %v18630_v46  ;;  %1661 = vmatpush1.bf16.msra.mxu1 %v18633_v47  ;;  %v18733_v46 = vld [vmem:[#allocation4 + $0x12c] ss:$16 sps:$4 sm:$0xff]   ;;  %v18728_v47 = vld [vmem:[#allocation4 + $0x120] ss:$16 sps:$4 sm:$0xff]  }
 0x1a2   :  { %1539 = vmatprep.subr.bf16.mxu0 %v18638_v48  ;;  %1662 = vmatprep.subr.bf16.mxu1 %v18641_v49  ;;  %v18731_v48 = vld [vmem:[#allocation4 + $0x128] ss:$16 sps:$4 sm:$0xff]   ;;  %v18736_v49 = vld [vmem:[#allocation4 + $0x144] ss:$16 sps:$4 sm:$0xff]  }
 0x1a5   :  { %1540 = vmatpush1.bf16.msra.mxu0 %v18636_v50  ;;  %1663 = vmatpush1.bf16.msra.mxu1 %v18639_v51  ;;  %v18739_v50 = vld [vmem:[#allocation4 + $0x14c] ss:$16 sps:$4 sm:$0xff]   ;;  %v18734_v51 = vld [vmem:[#allocation4 + $0x140] ss:$16 sps:$4 sm:$0xff]  }
 0x1a6   :  { %1541 = vmatprep.subr.bf16.mxu0 %v18644_v52  ;;  %1664 = vmatprep.subr.bf16.mxu1 %v18647_v53  ;;  %v18737_v52 = vld [vmem:[#allocation4 + $0x148] ss:$16 sps:$4 sm:$0xff]   ;;  %v18742_v53 = vld [vmem:[#allocation4 + $0x164] ss:$16 sps:$4 sm:$0xff]  }
 0x1a9   :  { %1542 = vmatpush1.bf16.msra.mxu0 %v18642_v54  ;;  %1665 = vmatpush1.bf16.msra.mxu1 %v18645_v55  ;;  %v18745_v54 = vld [vmem:[#allocation4 + $0x16c] ss:$16 sps:$4 sm:$0xff]   ;;  %v18740_v55 = vld [vmem:[#allocation4 + $0x160] ss:$16 sps:$4 sm:$0xff]  }
 0x1aa   :  { %1543 = vmatprep.subr.bf16.mxu0 %v18650_v56  ;;  %1666 = vmatprep.subr.bf16.mxu1 %v18653_v57  ;;  %v18743_v56 = vld [vmem:[#allocation4 + $0x168] ss:$16 sps:$4 sm:$0xff]   ;;  %v18748_v57 = vld [vmem:[#allocation4 + $0x184] ss:$16 sps:$4 sm:$0xff]  }
 0x1ad   :  { %1544 = vmatpush1.bf16.msra.mxu0 %v18648_v58  ;;  %1667 = vmatpush1.bf16.msra.mxu1 %v18651_v59  ;;  %v18751_v58 = vld [vmem:[#allocation4 + $0x18c] ss:$16 sps:$4 sm:$0xff]   ;;  %v18746_v59 = vld [vmem:[#allocation4 + $0x180] ss:$16 sps:$4 sm:$0xff]  }
 0x1ae   :  { %1545 = vmatprep.subr.bf16.mxu0 %v18656_v60  ;;  %1668 = vmatprep.subr.bf16.mxu1 %v18659_v61  ;;  %v18749_v60 = vld [vmem:[#allocation4 + $0x188] ss:$16 sps:$4 sm:$0xff]   ;;  %v18754_v61 = vld [vmem:[#allocation4 + $0x1a4] ss:$16 sps:$4 sm:$0xff]  }
 0x1b1   :  { %1546 = vmatpush1.bf16.msra.mxu0 %v18654_v62  ;;  %1669 = vmatpush1.bf16.msra.mxu1 %v18657_v63  ;;  %v18757_v62 = vld [vmem:[#allocation4 + $0x1ac] ss:$16 sps:$4 sm:$0xff]   ;;  %v18752_v63 = vld [vmem:[#allocation4 + $0x1a0] ss:$16 sps:$4 sm:$0xff]  }
 0x1b2   :  { %1547 = vmatprep.subr.bf16.mxu0 %v18662_v0  ;;  %1670 = vmatprep.subr.bf16.mxu1 %v18665_v1  ;;  %v18755_v0 = vld [vmem:[#allocation4 + $0x1a8] ss:$16 sps:$4 sm:$0xff]   ;;  %v18760_v1 = vld [vmem:[#allocation4 + $0x1c4] ss:$16 sps:$4 sm:$0xff]  }
 0x1b5   :  { %1548 = vmatpush1.bf16.msra.mxu0 %v18660_v2  ;;  %1671 = vmatpush1.bf16.msra.mxu1 %v18663_v3  ;;  %v18763_v2 = vld [vmem:[#allocation4 + $0x1cc] ss:$16 sps:$4 sm:$0xff]   ;;  %v18758_v3 = vld [vmem:[#allocation4 + $0x1c0] ss:$16 sps:$4 sm:$0xff]  }
 0x1b6   :  { %1549 = vmatprep.subr.bf16.mxu0 %v18668_v4  ;;  %1672 = vmatprep.subr.bf16.mxu1 %v18671_v5  ;;  %v18761_v4 = vld [vmem:[#allocation4 + $0x1c8] ss:$16 sps:$4 sm:$0xff]   ;;  %v18766_v5 = vld [vmem:[#allocation4 + $0x1e4] ss:$16 sps:$4 sm:$0xff]  }
 0x1b9   :  { %1550 = vmatpush1.bf16.msra.mxu0 %v18666_v6  ;;  %1673 = vmatpush1.bf16.msra.mxu1 %v18669_v7  ;;  %v18769_v6 = vld [vmem:[#allocation4 + $0x1ec] ss:$16 sps:$4 sm:$0xff]   ;;  %v18764_v7 = vld [vmem:[#allocation4 + $0x1e0] ss:$16 sps:$4 sm:$0xff]  }
 0x1ba   :  { %2482 = vmatprep.subr.bf16.mxu0 %v18676_v8  ;;  %2564 = vmatprep.subr.bf16.mxu1 %v18679_v9  ;;  %v18767_v8 = vld [vmem:[#allocation4 + $0x1e8] ss:$16 sps:$4 sm:$0xff]   ;;  %v18772_v9 = vld [vmem:[#allocation4 + $0x204] ss:$16 sps:$4 sm:$0xff]  }
 0x1bc   :  { %1552 = vmatmul.mubr.bf16.vlgmr.msra.gmra.mrb[0].mxu0 %v15732_v13  ;;  %1675 = vmatmul.mubr.bf16.vlgmr.msra.gmra.mrb[0].mxu1 %v15732_v13 }
 0x1bd   :  { %2483 = vmatpush1.bf16.msra.mxu0 %v18674_v10  ;;  %2565 = vmatpush1.bf16.msra.mxu1 %v18677_v12  ;;  %v18775_v10 = vld [vmem:[#allocation4 + $0x20c] ss:$16 sps:$4 sm:$0xff]   ;;  %v436_v12 = vlaneseq }
 0x1be   :  { %2484 = vmatprep.subr.bf16.mxu0 %v18682_v14  ;;  %2566 = vmatprep.subr.bf16.mxu1 %v18685_v15  ;;  %v21599_v15 = vld [vmem:[#allocation18] ss:$8 sm:$0xf] }
 0x1bf   :  { %v21594_v13 = vshrl.u32 %v436_v12, 7  ;;  %v18832_v12 = vld [vmem:[#allocation4 + $0x344] ss:$16 sps:$4 sm:$0xff]  }
 0x1c1   :  { %2485 = vmatpush1.bf16.msra.mxu0 %v18680_v16  ;;  %2567 = vmatpush1.bf16.msra.mxu1 %v18683_v17  ;;  %v21597_v14 = vsub.s32 0, %v21594_v13  ;;  %v21602_v16 = vsub.s32 1, %v21594_v13  ;;  %v21605_v17 = vsub.s32 3, %v21594_v13 }
 0x1c2   :  { %2486 = vmatprep.subr.bf16.mxu0 %v18688_v18  ;;  %2568 = vmatprep.subr.bf16.mxu1 %v18691_v19 }
 0x1c3   :  { %v439_v18 = vrot.slane %v21599_v15, %v21597_v14  ;;  %v443_v19 = vrot.slane %v21599_v15, %v21602_v16 }
 0x1c5   :  { %2487 = vmatpush1.bf16.msra.mxu0 %v18686_v20  ;;  %2569 = vmatpush1.bf16.msra.mxu1 %v18689_v21  ;;  %v451_v20 = vrot.slane %v21599_v15, %v21605_v17 }
 0x1c6   :  { %2488 = vmatprep.subr.bf16.mxu0 %v18694_v22  ;;  %2570 = vmatprep.subr.bf16.mxu1 %v18697_v11 }
 0x1c9   :  { %2489 = vmatpush1.bf16.msra.mxu0 %v18692_v23  ;;  %2571 = vmatpush1.bf16.msra.mxu1 %v18695_v24 }
 0x1ca   :  { %2490 = vmatprep.subr.bf16.mxu0 %v18700_v25  ;;  %2572 = vmatprep.subr.bf16.mxu1 %v18703_v26 }
 0x1cd   :  { %2491 = vmatpush1.bf16.msra.mxu0 %v18698_v27  ;;  %2573 = vmatpush1.bf16.msra.mxu1 %v18701_v28 }
 0x1ce   :  { %2492 = vmatprep.subr.bf16.mxu0 %v18706_v29  ;;  %2574 = vmatprep.subr.bf16.mxu1 %v18709_v30 }
 0x1d1   :  { %2493 = vmatpush1.bf16.msra.mxu0 %v18704_v31  ;;  %2575 = vmatpush1.bf16.msra.mxu1 %v18707_v32 }
 0x1d2   :  { %2494 = vmatprep.subr.bf16.mxu0 %v18712_v33  ;;  %2576 = vmatprep.subr.bf16.mxu1 %v18715_v34  ;;  %v18770_v33 = vld [vmem:[#allocation4 + $0x200] ss:$16 sps:$4 sm:$0xff]   ;;  %v18773_v34 = vld [vmem:[#allocation4 + $0x208] ss:$16 sps:$4 sm:$0xff]  }
 0x1d5   :  { %2495 = vmatpush1.bf16.msra.mxu0 %v18710_v35  ;;  %2577 = vmatpush1.bf16.msra.mxu1 %v18713_v36 }
 0x1d6   :  { %2496 = vmatprep.subr.bf16.mxu0 %v18718_v37  ;;  %2578 = vmatprep.subr.bf16.mxu1 %v18721_v38  ;;  %v18778_v37 = vld [vmem:[#allocation4 + $0x224] ss:$16 sps:$4 sm:$0xff]   ;;  %v18781_v38 = vld [vmem:[#allocation4 + $0x22c] ss:$16 sps:$4 sm:$0xff]  }
 0x1d9   :  { %2497 = vmatpush1.bf16.msra.mxu0 %v18716_v39  ;;  %2579 = vmatpush1.bf16.msra.mxu1 %v18719_v40  ;;  %v18776_v40 = vld [vmem:[#allocation4 + $0x220] ss:$16 sps:$4 sm:$0xff]  }
 0x1da   :  { %2498 = vmatprep.subr.bf16.mxu0 %v18724_v41  ;;  %2580 = vmatprep.subr.bf16.mxu1 %v18727_v42  ;;  %v18779_v41 = vld [vmem:[#allocation4 + $0x228] ss:$16 sps:$4 sm:$0xff]  }
 0x1dd   :  { %2499 = vmatpush1.bf16.msra.mxu0 %v18722_v43  ;;  %2581 = vmatpush1.bf16.msra.mxu1 %v18725_v44  ;;  %v18784_v43 = vld [vmem:[#allocation4 + $0x244] ss:$16 sps:$4 sm:$0xff]   ;;  %v18787_v44 = vld [vmem:[#allocation4 + $0x24c] ss:$16 sps:$4 sm:$0xff]  }
 0x1de   :  { %2500 = vmatprep.subr.bf16.mxu0 %v18730_v45  ;;  %2582 = vmatprep.subr.bf16.mxu1 %v18733_v46  ;;  %v18782_v45 = vld [vmem:[#allocation4 + $0x240] ss:$16 sps:$4 sm:$0xff]   ;;  %v18785_v46 = vld [vmem:[#allocation4 + $0x248] ss:$16 sps:$4 sm:$0xff]  }
 0x1e1   :  { %2501 = vmatpush1.bf16.msra.mxu0 %v18728_v47  ;;  %2583 = vmatpush1.bf16.msra.mxu1 %v18731_v48  ;;  %v18790_v47 = vld [vmem:[#allocation4 + $0x264] ss:$16 sps:$4 sm:$0xff]   ;;  %v18793_v48 = vld [vmem:[#allocation4 + $0x26c] ss:$16 sps:$4 sm:$0xff]  }
 0x1e2   :  { %2502 = vmatprep.subr.bf16.mxu0 %v18736_v49  ;;  %2584 = vmatprep.subr.bf16.mxu1 %v18739_v50  ;;  %v18788_v49 = vld [vmem:[#allocation4 + $0x260] ss:$16 sps:$4 sm:$0xff]   ;;  %v18791_v50 = vld [vmem:[#allocation4 + $0x268] ss:$16 sps:$4 sm:$0xff]  }
 0x1e5   :  { %2503 = vmatpush1.bf16.msra.mxu0 %v18734_v51  ;;  %2585 = vmatpush1.bf16.msra.mxu1 %v18737_v52  ;;  %v18796_v51 = vld [vmem:[#allocation4 + $0x284] ss:$16 sps:$4 sm:$0xff]   ;;  %v18799_v52 = vld [vmem:[#allocation4 + $0x28c] ss:$16 sps:$4 sm:$0xff]  }
 0x1e6   :  { %2504 = vmatprep.subr.bf16.mxu0 %v18742_v53  ;;  %2586 = vmatprep.subr.bf16.mxu1 %v18745_v54  ;;  %v18794_v53 = vld [vmem:[#allocation4 + $0x280] ss:$16 sps:$4 sm:$0xff]   ;;  %v18797_v54 = vld [vmem:[#allocation4 + $0x288] ss:$16 sps:$4 sm:$0xff]  }
 0x1e9   :  { %2505 = vmatpush1.bf16.msra.mxu0 %v18740_v55  ;;  %2587 = vmatpush1.bf16.msra.mxu1 %v18743_v56  ;;  %v18802_v55 = vld [vmem:[#allocation4 + $0x2a4] ss:$16 sps:$4 sm:$0xff]   ;;  %v18805_v56 = vld [vmem:[#allocation4 + $0x2ac] ss:$16 sps:$4 sm:$0xff]  }
 0x1ea   :  { %2506 = vmatprep.subr.bf16.mxu0 %v18748_v57  ;;  %2588 = vmatprep.subr.bf16.mxu1 %v18751_v58  ;;  %v18800_v57 = vld [vmem:[#allocation4 + $0x2a0] ss:$16 sps:$4 sm:$0xff]   ;;  %v18803_v58 = vld [vmem:[#allocation4 + $0x2a8] ss:$16 sps:$4 sm:$0xff]  }
 0x1ed   :  { %2507 = vmatpush1.bf16.msra.mxu0 %v18746_v59  ;;  %2589 = vmatpush1.bf16.msra.mxu1 %v18749_v60  ;;  %v18808_v59 = vld [vmem:[#allocation4 + $0x2c4] ss:$16 sps:$4 sm:$0xff]   ;;  %v18811_v60 = vld [vmem:[#allocation4 + $0x2cc] ss:$16 sps:$4 sm:$0xff]  }
 0x1ee   :  { %2508 = vmatprep.subr.bf16.mxu0 %v18754_v61  ;;  %2590 = vmatprep.subr.bf16.mxu1 %v18757_v62  ;;  %v18806_v61 = vld [vmem:[#allocation4 + $0x2c0] ss:$16 sps:$4 sm:$0xff]   ;;  %v18809_v62 = vld [vmem:[#allocation4 + $0x2c8] ss:$16 sps:$4 sm:$0xff]  }
 0x1f1   :  { %2509 = vmatpush1.bf16.msra.mxu0 %v18752_v63  ;;  %2591 = vmatpush1.bf16.msra.mxu1 %v18755_v0  ;;  %v18814_v63 = vld [vmem:[#allocation4 + $0x2e4] ss:$16 sps:$4 sm:$0xff]   ;;  %v18817_v0 = vld [vmem:[#allocation4 + $0x2ec] ss:$16 sps:$4 sm:$0xff]  }
 0x1f2   :  { %2510 = vmatprep.subr.bf16.mxu0 %v18760_v1  ;;  %2592 = vmatprep.subr.bf16.mxu1 %v18763_v2  ;;  %v18812_v1 = vld [vmem:[#allocation4 + $0x2e0] ss:$16 sps:$4 sm:$0xff]   ;;  %v18815_v2 = vld [vmem:[#allocation4 + $0x2e8] ss:$16 sps:$4 sm:$0xff]  }
 0x1f5   :  { %2511 = vmatpush1.bf16.msra.mxu0 %v18758_v3  ;;  %2593 = vmatpush1.bf16.msra.mxu1 %v18761_v4  ;;  %v18820_v3 = vld [vmem:[#allocation4 + $0x304] ss:$16 sps:$4 sm:$0xff]   ;;  %v18823_v4 = vld [vmem:[#allocation4 + $0x30c] ss:$16 sps:$4 sm:$0xff]  }
 0x1f6   :  { %2512 = vmatprep.subr.bf16.mxu0 %v18766_v5  ;;  %2594 = vmatprep.subr.bf16.mxu1 %v18769_v6  ;;  %v18818_v5 = vld [vmem:[#allocation4 + $0x300] ss:$16 sps:$4 sm:$0xff]   ;;  %v18821_v6 = vld [vmem:[#allocation4 + $0x308] ss:$16 sps:$4 sm:$0xff]  }
 0x1f9   :  { %2513 = vmatpush1.bf16.msra.mxu0 %v18764_v7  ;;  %2595 = vmatpush1.bf16.msra.mxu1 %v18767_v8  ;;  %v18826_v7 = vld [vmem:[#allocation4 + $0x324] ss:$16 sps:$4 sm:$0xff]   ;;  %v18829_v8 = vld [vmem:[#allocation4 + $0x32c] ss:$16 sps:$4 sm:$0xff]  }
 0x1fa   :  { %2523 = vmatprep.subr.bf16.mxu0 %v18772_v9  ;;  %2605 = vmatprep.subr.bf16.mxu1 %v18775_v10  ;;  %v18824_v9 = vld [vmem:[#allocation4 + $0x320] ss:$16 sps:$4 sm:$0xff]   ;;  %v18827_v10 = vld [vmem:[#allocation4 + $0x328] ss:$16 sps:$4 sm:$0xff]  }
 0x28f   :  { %v1553_v21 = vpop.f32.mrb[0].mxu0  ;;  %v21613_v22 = vpop.f32.mrb[0].mxu1 }
 0x290   :  { %v18251_v11 = vadd.f32 %v1553_v21, %v439_v18  ;;  %v1555_v23 = vpop.f32.mrb[1].mxu0  ;;  %v1678_v24 = vpop.f32.mrb[1].mxu1  ;;  %v18835_v18 = vld [vmem:[#allocation4 + $0x34c] ss:$16 sps:$4 sm:$0xff]   ;;  %v18838_v21 = vld [vmem:[#allocation4 + $0x364] ss:$16 sps:$4 sm:$0xff]  }
 0x291   :  { %v18252_v25 = vadd.f32 %v1555_v23, %v443_v19  ;;  %v18254_v26 = vadd.f32 %v1678_v24, %v451_v20  ;;  %v1557_v27 = vpop.f32.mrb[2].mxu0  ;;  %v1680_v28 = vpop.f32.mrb[2].mxu1  ;;  %v18830_v19 = vld [vmem:[#allocation4 + $0x340] ss:$16 sps:$4 sm:$0xff]   ;;  %v18833_v20 = vld [vmem:[#allocation4 + $0x348] ss:$16 sps:$4 sm:$0xff]  }
 0x292   :  { %v1683_v29 = vmax.f32 %v18251_v11, 0.0  ;;  %v1558_v30 = vpop.f32.mrb[3].mxu0  ;;  %v1681_v31 = vpop.f32.mrb[3].mxu1  ;;  %v18841_v11 = vld [vmem:[#allocation4 + $0x36c] ss:$16 sps:$4 sm:$0xff]  }
 0x293   :  { %v1684_v32 = vmax.f32 %v18252_v25, 0.0  ;;  %v1686_v35 = vmax.f32 %v18254_v26, 0.0  ;;  %v18836_v23 = vld [vmem:[#allocation4 + $0x360] ss:$16 sps:$4 sm:$0xff]   ;;  %v18839_v24 = vld [vmem:[#allocation4 + $0x368] ss:$16 sps:$4 sm:$0xff]  }
 0x294   :  { %v1687_v39 = vpack.c.bf16 %v1683_v29, %v1683_v29  ;;  %v18844_v25 = vld [vmem:[#allocation4 + $0x384] ss:$16 sps:$4 sm:$0xff]   ;;  %v18847_v26 = vld [vmem:[#allocation4 + $0x38c] ss:$16 sps:$4 sm:$0xff]   ;;  %v18842_v27 = vld [vmem:[#allocation4 + $0x380] ss:$16 sps:$4 sm:$0xff]  }
 0x295   :  { %v1688_v36 = vpack.c.bf16 %v1684_v32, %v1684_v32  ;;  %v1690_v42 = vpack.c.bf16 %v1686_v35, %v1686_v35  ;;  %v18845_v28 = vld [vmem:[#allocation4 + $0x388] ss:$16 sps:$4 sm:$0xff]   ;;  %v18850_v29 = vld [vmem:[#allocation4 + $0x3a4] ss:$16 sps:$4 sm:$0xff]   ;;  %v18853_v30 = vld [vmem:[#allocation4 + $0x3ac] ss:$16 sps:$4 sm:$0xff]  }
 0x296   :  { %v21616_v31 = vsub.s32 2, %v21594_v13  ;;  %v18848_v32 = vld [vmem:[#allocation4 + $0x3a0] ss:$16 sps:$4 sm:$0xff]   ;;  %v18859_v35 = vld [vmem:[#allocation4 + $0x3cc] ss:$16 sps:$4 sm:$0xff]  }
 0x297   :  { %2514 = vmatprep.mubr.bf16.mxu0 %v1688_v36  ;;  %2596 = vmatprep.mubr.bf16.mxu1 %v1688_v36 }
 0x298   :  { %2515 = vmatmul.mubr.bf16.vlgmr.msra.gmra.mrb[4].mxu0 %v1687_v39  ;;  %2597 = vmatmul.mubr.bf16.vlgmr.msra.gmra.mrb[4].mxu1 %v1687_v39  ;;  %v447_v36 = vrot.slane %v21599_v15, %v21616_v31  ;;  %v18862_v39 = vld [vmem:[#allocation4 + $0x3e4] ss:$16 sps:$4 sm:$0xff]   ;;  %v18866_v15 = vld [vmem:[#allocation6] ss:$8 sps:$4 sm:$0xff]  }
 0x299   :  { %2524 = vmatpush1.bf16.msra.mxu0 %v18770_v33  ;;  %2606 = vmatpush1.bf16.msra.mxu1 %v18773_v34  ;;  %v18851_v33 = vld [vmem:[#allocation4 + $0x3a8] ss:$16 sps:$4 sm:$0xff]   ;;  %v18856_v34 = vld [vmem:[#allocation4 + $0x3c4] ss:$16 sps:$4 sm:$0xff]  }
 0x29a   :  { %2555 = vmatprep.mubr.bf16.mxu0 %v1690_v42  ;;  %2637 = vmatprep.mubr.bf16.mxu1 %v1690_v42  ;;  %v18860_v42 = vld [vmem:[#allocation4 + $0x3e0] ss:$16 sps:$4 sm:$0xff]  }
 0x29b   :  { %2525 = vmatprep.subr.bf16.mxu0 %v18778_v37  ;;  %2607 = vmatprep.subr.bf16.mxu1 %v18781_v38  ;;  %v18854_v37 = vld [vmem:[#allocation4 + $0x3c0] ss:$16 sps:$4 sm:$0xff]   ;;  %v18857_v38 = vld [vmem:[#allocation4 + $0x3c8] ss:$16 sps:$4 sm:$0xff]  }
 0x29d   :  { %2526 = vmatpush1.bf16.msra.mxu0 %v18776_v40  ;;  %2608 = vmatpush1.bf16.msra.mxu1 %v18779_v41  ;;  %v18865_v40 = vld [vmem:[#allocation4 + $0x3ec] ss:$16 sps:$4 sm:$0xff]   ;;  %v18253_v41 = vadd.f32 %v21613_v22, %v447_v36  ;;  %v18988_v36 = vld [vmem:[#allocation7 + $0x104] ss:$16 sps:$4 sm:$0xff]  }
 0x29e   :  { %2527 = vmatprep.subr.bf16.mxu0 %v18784_v43  ;;  %2609 = vmatprep.subr.bf16.mxu1 %v18787_v44  ;;  %v18863_v43 = vld [vmem:[#allocation4 + $0x3e8] ss:$16 sps:$4 sm:$0xff]   ;;  %v18868_v44 = vld [vmem:[#allocation6 + $0x4] ss:$8 sps:$4 sm:$0xff]  }
 0x29f   :  { %v18874_v22 = vld [vmem:[#allocation6 + $0x24] ss:$8 sps:$4 sm:$0xff]  }
 0x2a1   :  { %2528 = vmatpush1.bf16.msra.mxu0 %v18782_v45  ;;  %2610 = vmatpush1.bf16.msra.mxu1 %v18785_v46  ;;  %v1685_v45 = vmax.f32 %v18253_v41, 0.0  ;;  %v18871_v46 = vld [vmem:[#allocation6 + $0x14] ss:$8 sps:$4 sm:$0xff]   ;;  %v18992_v41 = vld [vmem:[#allocation7 + $0x140] ss:$16 sps:$4 sm:$0xff]  }
 0x2a2   :  { %2529 = vmatprep.subr.bf16.mxu0 %v18790_v47  ;;  %2611 = vmatprep.subr.bf16.mxu1 %v18793_v48  ;;  %v18869_v48 = vld [vmem:[#allocation6 + $0x10] ss:$8 sps:$4 sm:$0xff]  }
 0x2a3   :  { %v1689_v47 = vpack.c.bf16 %v1685_v45, %v1685_v45  ;;  %v18998_v45 = vld [vmem:[#allocation7 + $0x180] ss:$16 sps:$4 sm:$0xff]  }
 0x2a5   :  { %2530 = vmatpush1.bf16.msra.mxu0 %v18788_v49  ;;  %2612 = vmatpush1.bf16.msra.mxu1 %v18791_v50  ;;  %v18872_v49 = vld [vmem:[#allocation6 + $0x20] ss:$8 sps:$4 sm:$0xff]   ;;  %v18877_v50 = vld [vmem:[#allocation6 + $0x34] ss:$8 sps:$4 sm:$0xff]  }
 0x2a6   :  { %2531 = vmatprep.subr.bf16.mxu0 %v18796_v51  ;;  %2613 = vmatprep.subr.bf16.mxu1 %v18799_v52  ;;  %v18875_v51 = vld [vmem:[#allocation6 + $0x30] ss:$8 sps:$4 sm:$0xff]   ;;  %v18880_v52 = vld [vmem:[#allocation6 + $0x44] ss:$8 sps:$4 sm:$0xff]  }
 0x2a9   :  { %2532 = vmatpush1.bf16.msra.mxu0 %v18794_v53  ;;  %2614 = vmatpush1.bf16.msra.mxu1 %v18797_v54  ;;  %v18878_v53 = vld [vmem:[#allocation6 + $0x40] ss:$8 sps:$4 sm:$0xff]   ;;  %v18883_v54 = vld [vmem:[#allocation6 + $0x54] ss:$8 sps:$4 sm:$0xff]  }
 0x2aa   :  { %2533 = vmatprep.subr.bf16.mxu0 %v18802_v55  ;;  %2615 = vmatprep.subr.bf16.mxu1 %v18805_v56  ;;  %v18881_v55 = vld [vmem:[#allocation6 + $0x50] ss:$8 sps:$4 sm:$0xff]   ;;  %v18886_v56 = vld [vmem:[#allocation6 + $0x64] ss:$8 sps:$4 sm:$0xff]  }
 0x2ad   :  { %2534 = vmatpush1.bf16.msra.mxu0 %v18800_v57  ;;  %2616 = vmatpush1.bf16.msra.mxu1 %v18803_v58  ;;  %v18884_v57 = vld [vmem:[#allocation6 + $0x60] ss:$8 sps:$4 sm:$0xff]   ;;  %v18889_v58 = vld [vmem:[#allocation6 + $0x74] ss:$8 sps:$4 sm:$0xff]  }
 0x2ae   :  { %2535 = vmatprep.subr.bf16.mxu0 %v18808_v59  ;;  %2617 = vmatprep.subr.bf16.mxu1 %v18811_v60  ;;  %v18887_v59 = vld [vmem:[#allocation6 + $0x70] ss:$8 sps:$4 sm:$0xff]   ;;  %v18892_v60 = vld [vmem:[#allocation6 + $0x84] ss:$8 sps:$4 sm:$0xff]  }
 0x2b1   :  { %2536 = vmatpush1.bf16.msra.mxu0 %v18806_v61  ;;  %2618 = vmatpush1.bf16.msra.mxu1 %v18809_v62  ;;  %v18890_v61 = vld [vmem:[#allocation6 + $0x80] ss:$8 sps:$4 sm:$0xff]   ;;  %v18895_v62 = vld [vmem:[#allocation6 + $0x94] ss:$8 sps:$4 sm:$0xff]  }
 0x2b2   :  { %2537 = vmatprep.subr.bf16.mxu0 %v18814_v63  ;;  %2619 = vmatprep.subr.bf16.mxu1 %v18817_v0  ;;  %v18893_v63 = vld [vmem:[#allocation6 + $0x90] ss:$8 sps:$4 sm:$0xff]   ;;  %v18898_v0 = vld [vmem:[#allocation6 + $0xa4] ss:$8 sps:$4 sm:$0xff]  }
 0x2b5   :  { %2538 = vmatpush1.bf16.msra.mxu0 %v18812_v1  ;;  %2620 = vmatpush1.bf16.msra.mxu1 %v18815_v2  ;;  %v18896_v1 = vld [vmem:[#allocation6 + $0xa0] ss:$8 sps:$4 sm:$0xff]   ;;  %v18901_v2 = vld [vmem:[#allocation6 + $0xb4] ss:$8 sps:$4 sm:$0xff]  }
 0x2b6   :  { %2539 = vmatprep.subr.bf16.mxu0 %v18820_v3  ;;  %2621 = vmatprep.subr.bf16.mxu1 %v18823_v4  ;;  %v18899_v3 = vld [vmem:[#allocation6 + $0xb0] ss:$8 sps:$4 sm:$0xff]   ;;  %v18904_v4 = vld [vmem:[#allocation6 + $0xc4] ss:$8 sps:$4 sm:$0xff]  }
 0x2b9   :  { %2540 = vmatpush1.bf16.msra.mxu0 %v18818_v5  ;;  %2622 = vmatpush1.bf16.msra.mxu1 %v18821_v6  ;;  %v18902_v5 = vld [vmem:[#allocation6 + $0xc0] ss:$8 sps:$4 sm:$0xff]   ;;  %v18907_v6 = vld [vmem:[#allocation6 + $0xd4] ss:$8 sps:$4 sm:$0xff]  }
 0x2ba   :  { %2541 = vmatprep.subr.bf16.mxu0 %v18826_v7  ;;  %2623 = vmatprep.subr.bf16.mxu1 %v18829_v8  ;;  %v18905_v7 = vld [vmem:[#allocation6 + $0xd0] ss:$8 sps:$4 sm:$0xff]   ;;  %v18910_v8 = vld [vmem:[#allocation6 + $0xe4] ss:$8 sps:$4 sm:$0xff]  }
 0x2bd   :  { %2542 = vmatpush1.bf16.msra.mxu0 %v18824_v9  ;;  %2624 = vmatpush1.bf16.msra.mxu1 %v18827_v10  ;;  %v18908_v9 = vld [vmem:[#allocation6 + $0xe0] ss:$8 sps:$4 sm:$0xff]   ;;  %v18913_v10 = vld [vmem:[#allocation6 + $0xf4] ss:$8 sps:$4 sm:$0xff]  }
 0x2be   :  { %2543 = vmatprep.subr.bf16.mxu0 %v18832_v12  ;;  %2625 = vmatprep.subr.bf16.mxu1 %v18835_v18  ;;  %v18911_v12 = vld [vmem:[#allocation6 + $0xf0] ss:$8 sps:$4 sm:$0xff]   ;;  %v18916_v18 = vld [vmem:[#allocation6 + $0x104] ss:$8 sps:$4 sm:$0xff]  }
 0x2c1   :  { %2544 = vmatpush1.bf16.msra.mxu0 %v18830_v19  ;;  %2626 = vmatpush1.bf16.msra.mxu1 %v18833_v20  ;;  %v18962_v19 = vld [vmem:[#allocation7] ss:$16 sps:$4 sm:$0xff]   ;;  %v18964_v20 = vld [vmem:[#allocation7 + $0x4] ss:$16 sps:$4 sm:$0xff]  }
 0x2c2   :  { %2545 = vmatprep.subr.bf16.mxu0 %v18838_v21  ;;  %2627 = vmatprep.subr.bf16.mxu1 %v18841_v11  ;;  %v18967_v21 = vld [vmem:[#allocation7 + $0x24] ss:$16 sps:$4 sm:$0xff]   ;;  %v18965_v11 = vld [vmem:[#allocation7 + $0x20] ss:$16 sps:$4 sm:$0xff]  }
 0x2c5   :  { %2546 = vmatpush1.bf16.msra.mxu0 %v18836_v23  ;;  %2628 = vmatpush1.bf16.msra.mxu1 %v18839_v24  ;;  %v18970_v23 = vld [vmem:[#allocation7 + $0x44] ss:$16 sps:$4 sm:$0xff]   ;;  %v18968_v24 = vld [vmem:[#allocation7 + $0x40] ss:$16 sps:$4 sm:$0xff]  }
 0x2c6   :  { %2547 = vmatprep.subr.bf16.mxu0 %v18844_v25  ;;  %2629 = vmatprep.subr.bf16.mxu1 %v18847_v26  ;;  %v18973_v25 = vld [vmem:[#allocation7 + $0x64] ss:$16 sps:$4 sm:$0xff]   ;;  %v18971_v26 = vld [vmem:[#allocation7 + $0x60] ss:$16 sps:$4 sm:$0xff]  }
 0x2c9   :  { %2548 = vmatpush1.bf16.msra.mxu0 %v18842_v27  ;;  %2630 = vmatpush1.bf16.msra.mxu1 %v18845_v28  ;;  %v18976_v27 = vld [vmem:[#allocation7 + $0x84] ss:$16 sps:$4 sm:$0xff]   ;;  %v18974_v28 = vld [vmem:[#allocation7 + $0x80] ss:$16 sps:$4 sm:$0xff]  }
 0x2ca   :  { %2549 = vmatprep.subr.bf16.mxu0 %v18850_v29  ;;  %2631 = vmatprep.subr.bf16.mxu1 %v18853_v30  ;;  %v18979_v29 = vld [vmem:[#allocation7 + $0xa4] ss:$16 sps:$4 sm:$0xff]   ;;  %v18977_v30 = vld [vmem:[#allocation7 + $0xa0] ss:$16 sps:$4 sm:$0xff]  }
 0x2cd   :  { %2550 = vmatpush1.bf16.msra.mxu0 %v18848_v32  ;;  %2632 = vmatpush1.bf16.msra.mxu1 %v18851_v33  ;;  %v18982_v32 = vld [vmem:[#allocation7 + $0xc4] ss:$16 sps:$4 sm:$0xff]   ;;  %v18980_v33 = vld [vmem:[#allocation7 + $0xc0] ss:$16 sps:$4 sm:$0xff]  }
 0x2ce   :  { %2551 = vmatprep.subr.bf16.mxu0 %v18856_v34  ;;  %2633 = vmatprep.subr.bf16.mxu1 %v18859_v35  ;;  %v18985_v34 = vld [vmem:[#allocation7 + $0xe4] ss:$16 sps:$4 sm:$0xff]   ;;  %v18983_v35 = vld [vmem:[#allocation7 + $0xe0] ss:$16 sps:$4 sm:$0xff]  }
 0x2d1   :  { %2552 = vmatpush1.bf16.msra.mxu0 %v18854_v37  ;;  %2634 = vmatpush1.bf16.msra.mxu1 %v18857_v38  ;;  %v18986_v37 = vld [vmem:[#allocation7 + $0x100] ss:$16 sps:$4 sm:$0xff]   ;;  %v18991_v38 = vld [vmem:[#allocation7 + $0x124] ss:$16 sps:$4 sm:$0xff]  }
 0x2d2   :  { %2553 = vmatprep.subr.bf16.mxu0 %v18862_v39  ;;  %2635 = vmatprep.subr.bf16.mxu1 %v18865_v40  ;;  %v18989_v39 = vld [vmem:[#allocation7 + $0x120] ss:$16 sps:$4 sm:$0xff]   ;;  %v18994_v40 = vld [vmem:[#allocation7 + $0x144] ss:$16 sps:$4 sm:$0xff]  }
 0x2d5   :  { %2554 = vmatpush1.bf16.msra.mxu0 %v18860_v42  ;;  %2636 = vmatpush1.bf16.msra.mxu1 %v18863_v43  ;;  %v18997_v42 = vld [vmem:[#allocation7 + $0x164] ss:$16 sps:$4 sm:$0xff]   ;;  %v18995_v43 = vld [vmem:[#allocation7 + $0x160] ss:$16 sps:$4 sm:$0xff]  }
 0x2d6   :  { %3050 = vmatprep.subr.bf16.mxu0 %v18868_v44  ;;  %3543 = vmatprep.subr.bf16.mxu1 %v18964_v20  ;;  %v19000_v44 = vld [vmem:[#allocation7 + $0x184] ss:$16 sps:$4 sm:$0xff]   ;;  %v18926_v20 = vld [vmem:[#allocation6 + $0x140] ss:$8 sps:$4 sm:$0xff]  }
 0x2d8   :  { %2556 = vmatmul.mubr.bf16.vlgmr.msra.gmra.mrb[4].mxu0 %v1689_v47  ;;  %2638 = vmatmul.mubr.bf16.vlgmr.msra.gmra.mrb[4].mxu1 %v1689_v47  ;;  %v19001_v47 = vld [vmem:[#allocation7 + $0x1a0] ss:$16 sps:$4 sm:$0xff]  }
 0x2d9   :  { %3051 = vmatpush1.bf16.msra.mxu0 %v18866_v15  ;;  %3544 = vmatpush1.bf16.msra.mxu1 %v18962_v19  ;;  %v19003_v15 = vld [vmem:[#allocation7 + $0x1a4] ss:$16 sps:$4 sm:$0xff]  }
 0x2da   :  { %3052 = vmatprep.subr.bf16.mxu0 %v18871_v46  ;;  %3545 = vmatprep.subr.bf16.mxu1 %v18967_v21  ;;  %v1820_v46 = vld [vmem:[#allocation18 + $0x1] ss:$8 sm:$0xf]  ;;  %v18928_v19 = vld [vmem:[#allocation6 + $0x144] ss:$8 sps:$4 sm:$0xff]  }
 0x2db   :  { %v18931_v21 = vld [vmem:[#allocation6 + $0x154] ss:$8 sps:$4 sm:$0xff]  }
 0x2dd   :  { %3053 = vmatpush1.bf16.msra.mxu0 %v18869_v48  ;;  %3546 = vmatpush1.bf16.msra.mxu1 %v18965_v11  ;;  %v1825_v48 = vrot.slane %v1820_v46, %v21597_v14  ;;  %v18929_v11 = vld [vmem:[#allocation6 + $0x150] ss:$8 sps:$4 sm:$0xff]  }
 0x2de   :  { %3054 = vmatprep.subr.bf16.mxu0 %v18874_v22  ;;  %3547 = vmatprep.subr.bf16.mxu1 %v18970_v23  ;;  %v1829_v22 = vrot.slane %v1820_v46, %v21602_v16  ;;  %v18934_v23 = vld [vmem:[#allocation6 + $0x164] ss:$8 sps:$4 sm:$0xff]  }
 0x2e1   :  { %3055 = vmatpush1.bf16.msra.mxu0 %v18872_v49  ;;  %3548 = vmatpush1.bf16.msra.mxu1 %v18968_v24  ;;  %v1837_v49 = vrot.slane %v1820_v46, %v21605_v17  ;;  %v18932_v24 = vld [vmem:[#allocation6 + $0x160] ss:$8 sps:$4 sm:$0xff]  }
 0x2e2   :  { %3056 = vmatprep.subr.bf16.mxu0 %v18877_v50  ;;  %3549 = vmatprep.subr.bf16.mxu1 %v18973_v25  ;;  %v18937_v25 = vld [vmem:[#allocation6 + $0x174] ss:$8 sps:$4 sm:$0xff]  }
 0x2e5   :  { %3057 = vmatpush1.bf16.msra.mxu0 %v18875_v51  ;;  %3550 = vmatpush1.bf16.msra.mxu1 %v18971_v26  ;;  %v18935_v26 = vld [vmem:[#allocation6 + $0x170] ss:$8 sps:$4 sm:$0xff]  }
 0x2e6   :  { %3058 = vmatprep.subr.bf16.mxu0 %v18880_v52  ;;  %3551 = vmatprep.subr.bf16.mxu1 %v18976_v27  ;;  %v18940_v27 = vld [vmem:[#allocation6 + $0x184] ss:$8 sps:$4 sm:$0xff]  }
 0x2e9   :  { %3059 = vmatpush1.bf16.msra.mxu0 %v18878_v53  ;;  %3552 = vmatpush1.bf16.msra.mxu1 %v18974_v28  ;;  %v18938_v28 = vld [vmem:[#allocation6 + $0x180] ss:$8 sps:$4 sm:$0xff]  }
 0x2ea   :  { %3060 = vmatprep.subr.bf16.mxu0 %v18883_v54  ;;  %3553 = vmatprep.subr.bf16.mxu1 %v18979_v29  ;;  %v18943_v29 = vld [vmem:[#allocation6 + $0x194] ss:$8 sps:$4 sm:$0xff]  }
 0x2ed   :  { %3061 = vmatpush1.bf16.msra.mxu0 %v18881_v55  ;;  %3554 = vmatpush1.bf16.msra.mxu1 %v18977_v30  ;;  %v18941_v30 = vld [vmem:[#allocation6 + $0x190] ss:$8 sps:$4 sm:$0xff]  }
 0x2ee   :  { %3062 = vmatprep.subr.bf16.mxu0 %v18886_v56  ;;  %3555 = vmatprep.subr.bf16.mxu1 %v18982_v32  ;;  %v18946_v32 = vld [vmem:[#allocation6 + $0x1a4] ss:$8 sps:$4 sm:$0xff]  }
 0x2f1   :  { %3063 = vmatpush1.bf16.msra.mxu0 %v18884_v57  ;;  %3556 = vmatpush1.bf16.msra.mxu1 %v18980_v33  ;;  %v18944_v33 = vld [vmem:[#allocation6 + $0x1a0] ss:$8 sps:$4 sm:$0xff]  }
 0x2f2   :  { %3064 = vmatprep.subr.bf16.mxu0 %v18889_v58  ;;  %3557 = vmatprep.subr.bf16.mxu1 %v18985_v34  ;;  %v18949_v34 = vld [vmem:[#allocation6 + $0x1b4] ss:$8 sps:$4 sm:$0xff]  }
 0x2f5   :  { %3065 = vmatpush1.bf16.msra.mxu0 %v18887_v59  ;;  %3558 = vmatpush1.bf16.msra.mxu1 %v18983_v35  ;;  %v18947_v35 = vld [vmem:[#allocation6 + $0x1b0] ss:$8 sps:$4 sm:$0xff]  }
 0x2f6   :  { %3066 = vmatprep.subr.bf16.mxu0 %v18892_v60  ;;  %3559 = vmatprep.subr.bf16.mxu1 %v18988_v36  ;;  %v18952_v36 = vld [vmem:[#allocation6 + $0x1c4] ss:$8 sps:$4 sm:$0xff]  }
 0x2f9   :  { %3067 = vmatpush1.bf16.msra.mxu0 %v18890_v61  ;;  %3560 = vmatpush1.bf16.msra.mxu1 %v18986_v37  ;;  %v18950_v37 = vld [vmem:[#allocation6 + $0x1c0] ss:$8 sps:$4 sm:$0xff]  }
 0x2fa   :  { %3068 = vmatprep.subr.bf16.mxu0 %v18895_v62  ;;  %3561 = vmatprep.subr.bf16.mxu1 %v18991_v38  ;;  %v18955_v38 = vld [vmem:[#allocation6 + $0x1d4] ss:$8 sps:$4 sm:$0xff]  }
 0x2fd   :  { %3069 = vmatpush1.bf16.msra.mxu0 %v18893_v63  ;;  %3562 = vmatpush1.bf16.msra.mxu1 %v18989_v39  ;;  %v18953_v39 = vld [vmem:[#allocation6 + $0x1d0] ss:$8 sps:$4 sm:$0xff]  }
 0x2fe   :  { %3070 = vmatprep.subr.bf16.mxu0 %v18898_v0  ;;  %3563 = vmatprep.subr.bf16.mxu1 %v18994_v40  ;;  %v18914_v0 = vld [vmem:[#allocation6 + $0x100] ss:$8 sps:$4 sm:$0xff]   ;;  %v18958_v40 = vld [vmem:[#allocation6 + $0x1e4] ss:$8 sps:$4 sm:$0xff]  }
 0x301   :  { %3071 = vmatpush1.bf16.msra.mxu0 %v18896_v1  ;;  %3564 = vmatpush1.bf16.msra.mxu1 %v18992_v41  ;;  %v18919_v1 = vld [vmem:[#allocation6 + $0x114] ss:$8 sps:$4 sm:$0xff]   ;;  %v18956_v41 = vld [vmem:[#allocation6 + $0x1e0] ss:$8 sps:$4 sm:$0xff]  }
 0x302   :  { %3072 = vmatprep.subr.bf16.mxu0 %v18901_v2  ;;  %3565 = vmatprep.subr.bf16.mxu1 %v18997_v42  ;;  %v18961_v42 = vld [vmem:[#allocation6 + $0x1f4] ss:$8 sps:$4 sm:$0xff]  }
 0x305   :  { %3073 = vmatpush1.bf16.msra.mxu0 %v18899_v3  ;;  %3566 = vmatpush1.bf16.msra.mxu1 %v18995_v43  ;;  %v18959_v43 = vld [vmem:[#allocation6 + $0x1f0] ss:$8 sps:$4 sm:$0xff]  }
 0x306   :  { %3074 = vmatprep.subr.bf16.mxu0 %v18904_v4  ;;  %3567 = vmatprep.subr.bf16.mxu1 %v19000_v44  ;;  %v1833_v4 = vrot.slane %v1820_v46, %v21616_v31  ;;  %v19009_v46 = vld [vmem:[#allocation7 + $0x1e4] ss:$16 sps:$4 sm:$0xff]  }
 0x309   :  { %3075 = vmatpush1.bf16.msra.mxu0 %v18902_v5  ;;  %3568 = vmatpush1.bf16.msra.mxu1 %v18998_v45  ;;  %v19006_v45 = vld [vmem:[#allocation7 + $0x1c4] ss:$16 sps:$4 sm:$0xff]  }
 0x30a   :  { %3076 = vmatprep.subr.bf16.mxu0 %v18907_v6  ;;  %3569 = vmatprep.subr.bf16.mxu1 %v19003_v15  ;;  %v18917_v6 = vld [vmem:[#allocation6 + $0x110] ss:$8 sps:$4 sm:$0xff]  }
 0x30b   :  { %v19004_v15 = vld [vmem:[#allocation7 + $0x1c0] ss:$16 sps:$4 sm:$0xff]  }
 0x30d   :  { %3077 = vmatpush1.bf16.msra.mxu0 %v18905_v7  ;;  %3570 = vmatpush1.bf16.msra.mxu1 %v19001_v47  ;;  %v18922_v7 = vld [vmem:[#allocation6 + $0x124] ss:$8 sps:$4 sm:$0xff]   ;;  %v19007_v47 = vld [vmem:[#allocation7 + $0x1e0] ss:$16 sps:$4 sm:$0xff]  }
 0x30e   :  { %3078 = vmatprep.subr.bf16.mxu0 %v18910_v8  ;;  %3571 = vmatprep.subr.bf16.mxu1 %v19006_v45  ;;  %v19033_v45 = vld [vmem:[#allocation7 + $0xec] ss:$16 sps:$4 sm:$0xff]  }
 0x311   :  { %3079 = vmatpush1.bf16.msra.mxu0 %v18908_v9  ;;  %v18920_v9 = vld [vmem:[#allocation6 + $0x120] ss:$8 sps:$4 sm:$0xff]   ;;  %3572 = vmatpush1.bf16.msra.mxu1 %v19004_v15 }
 0x312   :  { %3080 = vmatprep.subr.bf16.mxu0 %v18913_v10  ;;  %v18925_v10 = vld [vmem:[#allocation6 + $0x134] ss:$8 sps:$4 sm:$0xff]   ;;  %3573 = vmatprep.subr.bf16.mxu1 %v19009_v46  ;;  %v19031_v15 = vld [vmem:[#allocation7 + $0xe8] ss:$16 sps:$4 sm:$0xff]  }
 0x313   :  { %v19036_v46 = vld [vmem:[#allocation7 + $0x10c] ss:$16 sps:$4 sm:$0xff]  }
 0x315   :  { %3081 = vmatpush1.bf16.msra.mxu0 %v18911_v12  ;;  %3574 = vmatpush1.bf16.msra.mxu1 %v19007_v47  ;;  %v19034_v47 = vld [vmem:[#allocation7 + $0x108] ss:$16 sps:$4 sm:$0xff]  }
 0x316   :  { %3091 = vmatprep.subr.bf16.mxu0 %v18916_v18  ;;  %v18923_v18 = vld [vmem:[#allocation6 + $0x130] ss:$8 sps:$4 sm:$0xff]  }
 0x3ab   :  { %v2557_v50 = vpop.f32.mrb[4].mxu0  ;;  %v2639_v51 = vpop.f32.mrb[4].mxu1 }
 0x3ac   :  { %v18255_v52 = vadd.f32 %v2557_v50, %v1825_v48  ;;  %v2559_v53 = vpop.f32.mrb[5].mxu0  ;;  %v2641_v54 = vpop.f32.mrb[5].mxu1  ;;  %v18257_v8 = vadd.f32 %v2639_v51, %v1833_v4  ;;  %v19012_v48 = vld [vmem:[#allocation7 + $0xc] ss:$16 sps:$4 sm:$0xff]   ;;  %v19066_v50 = vld [vmem:[#allocation4 + $0x424] ss:$16 sps:$4 sm:$0xff]  }
 0x3ad   :  { %v18256_v55 = vadd.f32 %v2559_v53, %v1829_v22  ;;  %v18258_v56 = vadd.f32 %v2641_v54, %v1837_v49  ;;  %v2561_v57 = vpop.f32.mrb[6].mxu0  ;;  %v2643_v58 = vpop.f32.mrb[6].mxu1  ;;  %3584 = vmatprep.subr.bf16.mxu1 %v19012_v48  ;;  %v19058_v22 = vld [vmem:[#allocation4 + $0x400] ss:$16 sps:$4 sm:$0xff]   ;;  %v19060_v49 = vld [vmem:[#allocation4 + $0x404] ss:$16 sps:$4 sm:$0xff]  }
 0x3ae   :  { %v2646_v59 = vmax.f32 %v18255_v52, 0.0  ;;  %v2562_v60 = vpop.f32.mrb[7].mxu0  ;;  %v2644_v61 = vpop.f32.mrb[7].mxu1  ;;  %v2648_v12 = vmax.f32 %v18257_v8, 0.0  ;;  %v19064_v51 = vld [vmem:[#allocation4 + $0x420] ss:$16 sps:$4 sm:$0xff]  }
 0x3af   :  { %v2647_v62 = vmax.f32 %v18256_v55, 0.0  ;;  %v2649_v63 = vmax.f32 %v18258_v56, 0.0  ;;  %v19072_v52 = vld [vmem:[#allocation4 + $0x444] ss:$16 sps:$4 sm:$0xff]   ;;  %v19070_v53 = vld [vmem:[#allocation4 + $0x440] ss:$16 sps:$4 sm:$0xff]  }
 0x3b0   :  { %v2650_v3 = vpack.c.bf16 %v2646_v59, %v2646_v59  ;;  %v2652_v44 = vpack.c.bf16 %v2648_v12, %v2648_v12  ;;  %v19078_v54 = vld [vmem:[#allocation4 + $0x464] ss:$16 sps:$4 sm:$0xff]   ;;  %v19076_v55 = vld [vmem:[#allocation4 + $0x460] ss:$16 sps:$4 sm:$0xff]   ;;  %v19039_v48 = vld [vmem:[#allocation7 + $0x12c] ss:$16 sps:$4 sm:$0xff]  }
 0x3b1   :  { %v2651_v2 = vpack.c.bf16 %v2647_v62, %v2647_v62  ;;  %v2653_v5 = vpack.c.bf16 %v2649_v63, %v2649_v63  ;;  %v19084_v56 = vld [vmem:[#allocation4 + $0x484] ss:$16 sps:$4 sm:$0xff]   ;;  %v19082_v57 = vld [vmem:[#allocation4 + $0x480] ss:$16 sps:$4 sm:$0xff]  }
 0x3b2   :  { %v19090_v58 = vld [vmem:[#allocation4 + $0x4a4] ss:$16 sps:$4 sm:$0xff]   ;;  %v19088_v59 = vld [vmem:[#allocation4 + $0x4a0] ss:$16 sps:$4 sm:$0xff]  }
 0x3b3   :  { %3082 = vmatprep.mubr.bf16.mxu0 %v2651_v2  ;;  %v19096_v60 = vld [vmem:[#allocation4 + $0x4c4] ss:$16 sps:$4 sm:$0xff]   ;;  %v19094_v61 = vld [vmem:[#allocation4 + $0x4c0] ss:$16 sps:$4 sm:$0xff]  }
 0x3b4   :  { %3083 = vmatmul.mubr.bf16.vlgmr.msra.gmra.mrb[8].mxu0 %v2650_v3  ;;  %v19102_v62 = vld [vmem:[#allocation4 + $0x4e4] ss:$16 sps:$4 sm:$0xff]   ;;  %v19100_v63 = vld [vmem:[#allocation4 + $0x4e0] ss:$16 sps:$4 sm:$0xff]  }
 0x3b5   :  { %3092 = vmatpush1.bf16.msra.mxu0 %v18914_v0  ;;  %3123 = vmatprep.mubr.bf16.mxu0 %v2653_v5  ;;  %v19108_v0 = vld [vmem:[#allocation4 + $0x504] ss:$16 sps:$4 sm:$0xff]   ;;  %v19112_v3 = vld [vmem:[#allocation4 + $0x520] ss:$16 sps:$4 sm:$0xff]  }
 0x3b6   :  { %3093 = vmatprep.subr.bf16.mxu0 %v18919_v1  ;;  %v19106_v1 = vld [vmem:[#allocation4 + $0x500] ss:$16 sps:$4 sm:$0xff]   ;;  %v19114_v2 = vld [vmem:[#allocation4 + $0x524] ss:$16 sps:$4 sm:$0xff]  }
 0x3b7   :  { %v19120_v4 = vld [vmem:[#allocation4 + $0x544] ss:$16 sps:$4 sm:$0xff]   ;;  %v19118_v5 = vld [vmem:[#allocation4 + $0x540] ss:$16 sps:$4 sm:$0xff]  }
 0x3b8   :  { %v19132_v8 = vld [vmem:[#allocation4 + $0x584] ss:$16 sps:$4 sm:$0xff]  }
 0x3b9   :  { %3094 = vmatpush1.bf16.msra.mxu0 %v18917_v6  ;;  %v19126_v6 = vld [vmem:[#allocation4 + $0x564] ss:$16 sps:$4 sm:$0xff]  }
 0x3ba   :  { %3095 = vmatprep.subr.bf16.mxu0 %v18922_v7  ;;  %v19124_v7 = vld [vmem:[#allocation4 + $0x560] ss:$16 sps:$4 sm:$0xff]   ;;  %v19138_v12 = vld [vmem:[#allocation4 + $0x5a4] ss:$16 sps:$4 sm:$0xff]  }
 0x3bd   :  { %3096 = vmatpush1.bf16.msra.mxu0 %v18920_v9  ;;  %v19130_v9 = vld [vmem:[#allocation4 + $0x580] ss:$16 sps:$4 sm:$0xff]  }
 0x3be   :  { %3097 = vmatprep.subr.bf16.mxu0 %v18925_v10  ;;  %v2718_v10 = vld [vmem:[#allocation19] ss:$8 sm:$0x3] }
 0x3c1   :  { %3098 = vmatpush1.bf16.msra.mxu0 %v18923_v18  ;;  %v19136_v18 = vld [vmem:[#allocation4 + $0x5a0] ss:$16 sps:$4 sm:$0xff]  }
 0x3c2   :  { %3099 = vmatprep.subr.bf16.mxu0 %v18928_v19  ;;  %v2723_v19 = vrot.slane %v2718_v10, %v21597_v14 }
 0x3c5   :  { %3100 = vmatpush1.bf16.msra.mxu0 %v18926_v20  ;;  %v2727_v20 = vrot.slane %v2718_v10, %v21602_v16  ;;  %v19144_v10 = vld [vmem:[#allocation4 + $0x5c4] ss:$16 sps:$4 sm:$0xff]  }
 0x3c6   :  { %3101 = vmatprep.subr.bf16.mxu0 %v18931_v21 }
 0x3c9   :  { %3102 = vmatpush1.bf16.msra.mxu0 %v18929_v11 }
 0x3ca   :  { %3103 = vmatprep.subr.bf16.mxu0 %v18934_v23 }
 0x3cd   :  { %3104 = vmatpush1.bf16.msra.mxu0 %v18932_v24 }
 0x3ce   :  { %3105 = vmatprep.subr.bf16.mxu0 %v18937_v25 }
 0x3d1   :  { %3106 = vmatpush1.bf16.msra.mxu0 %v18935_v26 }
 0x3d2   :  { %3107 = vmatprep.subr.bf16.mxu0 %v18940_v27 }
 0x3d5   :  { %3108 = vmatpush1.bf16.msra.mxu0 %v18938_v28 }
 0x3d6   :  { %3109 = vmatprep.subr.bf16.mxu0 %v18943_v29 }
 0x3d9   :  { %3110 = vmatpush1.bf16.msra.mxu0 %v18941_v30  ;;  %v19010_v30 = vld [vmem:[#allocation7 + $0x8] ss:$16 sps:$4 sm:$0xff]  }
 0x3da   :  { %3111 = vmatprep.subr.bf16.mxu0 %v18946_v32 }
 0x3dd   :  { %3112 = vmatpush1.bf16.msra.mxu0 %v18944_v33  ;;  %v19015_v33 = vld [vmem:[#allocation7 + $0x2c] ss:$16 sps:$4 sm:$0xff]  }
 0x3de   :  { %3113 = vmatprep.subr.bf16.mxu0 %v18949_v34  ;;  %v19013_v34 = vld [vmem:[#allocation7 + $0x28] ss:$16 sps:$4 sm:$0xff]  }
 0x3e1   :  { %3114 = vmatpush1.bf16.msra.mxu0 %v18947_v35  ;;  %v19018_v35 = vld [vmem:[#allocation7 + $0x4c] ss:$16 sps:$4 sm:$0xff]  }
 0x3e2   :  { %3115 = vmatprep.subr.bf16.mxu0 %v18952_v36  ;;  %v19016_v36 = vld [vmem:[#allocation7 + $0x48] ss:$16 sps:$4 sm:$0xff]  }
 0x3e5   :  { %3116 = vmatpush1.bf16.msra.mxu0 %v18950_v37  ;;  %v19021_v37 = vld [vmem:[#allocation7 + $0x6c] ss:$16 sps:$4 sm:$0xff]  }
 0x3e6   :  { %3117 = vmatprep.subr.bf16.mxu0 %v18955_v38  ;;  %v19019_v38 = vld [vmem:[#allocation7 + $0x68] ss:$16 sps:$4 sm:$0xff]  }
 0x3e9   :  { %3118 = vmatpush1.bf16.msra.mxu0 %v18953_v39  ;;  %v19024_v39 = vld [vmem:[#allocation7 + $0x8c] ss:$16 sps:$4 sm:$0xff]  }
 0x3ea   :  { %3119 = vmatprep.subr.bf16.mxu0 %v18958_v40  ;;  %v19022_v40 = vld [vmem:[#allocation7 + $0x88] ss:$16 sps:$4 sm:$0xff]  }
 0x3ed   :  { %3120 = vmatpush1.bf16.msra.mxu0 %v18956_v41  ;;  %v19027_v41 = vld [vmem:[#allocation7 + $0xac] ss:$16 sps:$4 sm:$0xff]  }
 0x3ee   :  { %3121 = vmatprep.subr.bf16.mxu0 %v18961_v42  ;;  %v19025_v42 = vld [vmem:[#allocation7 + $0xa8] ss:$16 sps:$4 sm:$0xff]  }
 0x3f1   :  { %3122 = vmatpush1.bf16.msra.mxu0 %v18959_v43  ;;  %v19030_v43 = vld [vmem:[#allocation7 + $0xcc] ss:$16 sps:$4 sm:$0xff]  }
 0x3f2   :  { %4425 = vmatprep.subr.bf16.mxu0 %v19060_v49  ;;  %v19042_v49 = vld [vmem:[#allocation7 + $0x14c] ss:$16 sps:$4 sm:$0xff]  }
 0x3f4   :  { %3124 = vmatmul.mubr.bf16.vlgmr.msra.gmra.mrb[8].mxu0 %v2652_v44  ;;  %v19028_v44 = vld [vmem:[#allocation7 + $0xc8] ss:$16 sps:$4 sm:$0xff]  }
 0x3f5   :  { %4426 = vmatpush1.bf16.msra.mxu0 %v19058_v22  ;;  %v19037_v22 = vld [vmem:[#allocation7 + $0x128] ss:$16 sps:$4 sm:$0xff]  }
 0x3f6   :  { %4427 = vmatprep.subr.bf16.mxu0 %v19066_v50  ;;  %v19040_v50 = vld [vmem:[#allocation7 + $0x148] ss:$16 sps:$4 sm:$0xff]  }
 0x3f9   :  { %4428 = vmatpush1.bf16.msra.mxu0 %v19064_v51  ;;  %v19045_v51 = vld [vmem:[#allocation7 + $0x16c] ss:$16 sps:$4 sm:$0xff]  }
 0x3fa   :  { %4429 = vmatprep.subr.bf16.mxu0 %v19072_v52  ;;  %v19043_v52 = vld [vmem:[#allocation7 + $0x168] ss:$16 sps:$4 sm:$0xff]  }
 0x3fd   :  { %4430 = vmatpush1.bf16.msra.mxu0 %v19070_v53  ;;  %v19048_v53 = vld [vmem:[#allocation7 + $0x18c] ss:$16 sps:$4 sm:$0xff]  }
 0x3fe   :  { %4431 = vmatprep.subr.bf16.mxu0 %v19078_v54  ;;  %v19046_v54 = vld [vmem:[#allocation7 + $0x188] ss:$16 sps:$4 sm:$0xff]  }
 0x401   :  { %4432 = vmatpush1.bf16.msra.mxu0 %v19076_v55  ;;  %v19051_v55 = vld [vmem:[#allocation7 + $0x1ac] ss:$16 sps:$4 sm:$0xff]  }
 0x402   :  { %4433 = vmatprep.subr.bf16.mxu0 %v19084_v56  ;;  %v19049_v56 = vld [vmem:[#allocation7 + $0x1a8] ss:$16 sps:$4 sm:$0xff]  }
 0x405   :  { %4434 = vmatpush1.bf16.msra.mxu0 %v19082_v57  ;;  %v19054_v57 = vld [vmem:[#allocation7 + $0x1cc] ss:$16 sps:$4 sm:$0xff]  }
 0x406   :  { %4435 = vmatprep.subr.bf16.mxu0 %v19090_v58  ;;  %v19052_v58 = vld [vmem:[#allocation7 + $0x1c8] ss:$16 sps:$4 sm:$0xff]  }
 0x409   :  { %4436 = vmatpush1.bf16.msra.mxu0 %v19088_v59  ;;  %v19057_v59 = vld [vmem:[#allocation7 + $0x1ec] ss:$16 sps:$4 sm:$0xff]  }
 0x40a   :  { %4437 = vmatprep.subr.bf16.mxu0 %v19096_v60  ;;  %v19055_v60 = vld [vmem:[#allocation7 + $0x1e8] ss:$16 sps:$4 sm:$0xff]  }
 0x40d   :  { %4438 = vmatpush1.bf16.msra.mxu0 %v19094_v61  ;;  %v19063_v61 = vld [vmem:[#allocation4 + $0x40c] ss:$16 sps:$4 sm:$0xff]  }
 0x40e   :  { %4439 = vmatprep.subr.bf16.mxu0 %v19102_v62  ;;  %v19061_v62 = vld [vmem:[#allocation4 + $0x408] ss:$16 sps:$4 sm:$0xff]  }
 0x411   :  { %4440 = vmatpush1.bf16.msra.mxu0 %v19100_v63  ;;  %v19069_v63 = vld [vmem:[#allocation4 + $0x42c] ss:$16 sps:$4 sm:$0xff]  }
 0x412   :  { %4441 = vmatprep.subr.bf16.mxu0 %v19108_v0  ;;  %v19067_v0 = vld [vmem:[#allocation4 + $0x428] ss:$16 sps:$4 sm:$0xff]  }
 0x415   :  { %4442 = vmatpush1.bf16.msra.mxu0 %v19106_v1  ;;  %v19075_v1 = vld [vmem:[#allocation4 + $0x44c] ss:$16 sps:$4 sm:$0xff]  }
 0x416   :  { %4443 = vmatprep.subr.bf16.mxu0 %v19114_v2  ;;  %v19073_v2 = vld [vmem:[#allocation4 + $0x448] ss:$16 sps:$4 sm:$0xff]  }
 0x419   :  { %4444 = vmatpush1.bf16.msra.mxu0 %v19112_v3  ;;  %v19081_v3 = vld [vmem:[#allocation4 + $0x46c] ss:$16 sps:$4 sm:$0xff]  }
 0x41a   :  { %4445 = vmatprep.subr.bf16.mxu0 %v19120_v4  ;;  %v19079_v4 = vld [vmem:[#allocation4 + $0x468] ss:$16 sps:$4 sm:$0xff]  }
 0x41d   :  { %4446 = vmatpush1.bf16.msra.mxu0 %v19118_v5  ;;  %v19087_v5 = vld [vmem:[#allocation4 + $0x48c] ss:$16 sps:$4 sm:$0xff]  }
 0x41e   :  { %4447 = vmatprep.subr.bf16.mxu0 %v19126_v6  ;;  %v19085_v6 = vld [vmem:[#allocation4 + $0x488] ss:$16 sps:$4 sm:$0xff]  }
 0x421   :  { %4448 = vmatpush1.bf16.msra.mxu0 %v19124_v7  ;;  %v19093_v7 = vld [vmem:[#allocation4 + $0x4ac] ss:$16 sps:$4 sm:$0xff]  }
 0x422   :  { %4449 = vmatprep.subr.bf16.mxu0 %v19132_v8  ;;  %v19091_v8 = vld [vmem:[#allocation4 + $0x4a8] ss:$16 sps:$4 sm:$0xff]  }
 0x425   :  { %4450 = vmatpush1.bf16.msra.mxu0 %v19130_v9  ;;  %v19099_v9 = vld [vmem:[#allocation4 + $0x4cc] ss:$16 sps:$4 sm:$0xff]  }
 0x426   :  { %4451 = vmatprep.subr.bf16.mxu0 %v19138_v12  ;;  %v19142_v12 = vld [vmem:[#allocation4 + $0x5c0] ss:$16 sps:$4 sm:$0xff]  }
 0x429   :  { %4452 = vmatpush1.bf16.msra.mxu0 %v19136_v18  ;;  %v19097_v18 = vld [vmem:[#allocation4 + $0x4c8] ss:$16 sps:$4 sm:$0xff]  }
 0x42a   :  { %4453 = vmatprep.subr.bf16.mxu0 %v19144_v10  ;;  %v19187_v10 = vld [vmem:[#allocation4 + $0x6a8] ss:$16 sps:$4 sm:$0xff]  }
 0x42d   :  { %4454 = vmatpush1.bf16.msra.mxu0 %v19142_v12  ;;  %v19192_v12 = vld [vmem:[#allocation4 + $0x6c4] ss:$16 sps:$4 sm:$0xff]  }
 0x4c7   :  { %v3125_v21 = vpop.f32.mrb[8].mxu0 }
 0x4c8   :  { %v18259_v11 = vadd.f32 %v3125_v21, %v2723_v19  ;;  %v3127_v23 = vpop.f32.mrb[9].mxu0  ;;  %v19105_v19 = vld [vmem:[#allocation4 + $0x4ec] ss:$16 sps:$4 sm:$0xff]   ;;  %v19148_v21 = vld [vmem:[#allocation4 + $0x5e0] ss:$16 sps:$4 sm:$0xff]  }
 0x4c9   :  { %v18260_v24 = vadd.f32 %v3127_v23, %v2727_v20  ;;  %v3129_v25 = vpop.f32.mrb[10].mxu0  ;;  %v19150_v20 = vld [vmem:[#allocation4 + $0x5e4] ss:$16 sps:$4 sm:$0xff]   ;;  %v19111_v23 = vld [vmem:[#allocation4 + $0x50c] ss:$16 sps:$4 sm:$0xff]  }
 0x4ca   :  { %v3132_v26 = vmax.f32 %v18259_v11, 0.0  ;;  %v3130_v27 = vpop.f32.mrb[11].mxu0  ;;  %4455 = vmatprep.subr.bf16.mxu0 %v19150_v20  ;;  %v19103_v11 = vld [vmem:[#allocation4 + $0x4e8] ss:$16 sps:$4 sm:$0xff]  }
 0x4cb   :  { %v3133_v28 = vmax.f32 %v18260_v24, 0.0  ;;  %4456 = vmatpush1.bf16.msra.mxu0 %v19148_v21  ;;  %v19156_v24 = vld [vmem:[#allocation4 + $0x604] ss:$16 sps:$4 sm:$0xff]   ;;  %v19109_v25 = vld [vmem:[#allocation4 + $0x508] ss:$16 sps:$4 sm:$0xff]  }
 0x4cc   :  { %v21627_v32 = vpack.c.bf16 %v3132_v26, %v3132_v26  ;;  %4466 = vmatprep.subr.bf16.mxu0 %v19156_v24  ;;  %v19117_v26 = vld [vmem:[#allocation4 + $0x52c] ss:$16 sps:$4 sm:$0xff]   ;;  %v19115_v27 = vld [vmem:[#allocation4 + $0x528] ss:$16 sps:$4 sm:$0xff]   ;;  %v19198_v21 = vld [vmem:[#allocation4 + $0x6e4] ss:$16 sps:$4 sm:$0xff]  }
 0x4cd   :  { %v3135_v29 = vpack.c.bf16 %v3133_v28, %v3133_v28  ;;  %v19123_v28 = vld [vmem:[#allocation4 + $0x54c] ss:$16 sps:$4 sm:$0xff]   ;;  %v19193_v20 = vld [vmem:[#allocation4 + $0x6c8] ss:$16 sps:$4 sm:$0xff]  }
 0x4ce   :  { %v19199_v24 = vld [vmem:[#allocation4 + $0x6e8] ss:$16 sps:$4 sm:$0xff]  }
 0x4cf   :  { %3575 = vmatprep.mubr.bf16.mxu1 %v3135_v29 }
 0x4d0   :  { %3576 = vmatmul.mubr.bf16.vlgmr.msra.gmra.mrb[8].mxu1 %v21627_v32 }
 0x4d1   :  { %3585 = vmatpush1.bf16.msra.mxu1 %v19010_v30  ;;  %3616 = vmatprep.mubr.bf16.mxu1 %v3135_v29  ;;  %v19121_v29 = vld [vmem:[#allocation4 + $0x548] ss:$16 sps:$4 sm:$0xff]   ;;  %v19129_v30 = vld [vmem:[#allocation4 + $0x56c] ss:$16 sps:$4 sm:$0xff]  }
 0x4d2   :  { %3586 = vmatprep.subr.bf16.mxu1 %v19015_v33  ;;  %v19135_v33 = vld [vmem:[#allocation4 + $0x58c] ss:$16 sps:$4 sm:$0xff]  }
 0x4d5   :  { %3587 = vmatpush1.bf16.msra.mxu1 %v19013_v34  ;;  %v19133_v34 = vld [vmem:[#allocation4 + $0x588] ss:$16 sps:$4 sm:$0xff]  }
 0x4d6   :  { %3588 = vmatprep.subr.bf16.mxu1 %v19018_v35  ;;  %v19141_v35 = vld [vmem:[#allocation4 + $0x5ac] ss:$16 sps:$4 sm:$0xff]  }
 0x4d9   :  { %3589 = vmatpush1.bf16.msra.mxu1 %v19016_v36  ;;  %v19139_v36 = vld [vmem:[#allocation4 + $0x5a8] ss:$16 sps:$4 sm:$0xff]  }
 0x4da   :  { %3590 = vmatprep.subr.bf16.mxu1 %v19021_v37  ;;  %v19147_v37 = vld [vmem:[#allocation4 + $0x5cc] ss:$16 sps:$4 sm:$0xff]  }
 0x4dd   :  { %3591 = vmatpush1.bf16.msra.mxu1 %v19019_v38  ;;  %v19145_v38 = vld [vmem:[#allocation4 + $0x5c8] ss:$16 sps:$4 sm:$0xff]  }
 0x4de   :  { %3592 = vmatprep.subr.bf16.mxu1 %v19024_v39  ;;  %v19153_v39 = vld [vmem:[#allocation4 + $0x5ec] ss:$16 sps:$4 sm:$0xff]  }
 0x4e1   :  { %3593 = vmatpush1.bf16.msra.mxu1 %v19022_v40  ;;  %v19151_v40 = vld [vmem:[#allocation4 + $0x5e8] ss:$16 sps:$4 sm:$0xff]  }
 0x4e2   :  { %3594 = vmatprep.subr.bf16.mxu1 %v19027_v41  ;;  %v19159_v41 = vld [vmem:[#allocation4 + $0x60c] ss:$16 sps:$4 sm:$0xff]  }
 0x4e5   :  { %3595 = vmatpush1.bf16.msra.mxu1 %v19025_v42  ;;  %v21631_v42 = vld [vmem:[#allocation18 + $0x2] ss:$8 sm:$0xf] }
 0x4e6   :  { %3596 = vmatprep.subr.bf16.mxu1 %v19030_v43  ;;  %v3206_v43 = vrot.slane %v21631_v42, %v21597_v14 }
 0x4e9   :  { %3597 = vmatpush1.bf16.msra.mxu1 %v19028_v44  ;;  %v3210_v44 = vrot.slane %v21631_v42, %v21602_v16 }
 0x4ea   :  { %3598 = vmatprep.subr.bf16.mxu1 %v19033_v45 }
 0x4ed   :  { %3599 = vmatpush1.bf16.msra.mxu1 %v19031_v15 }
 0x4ee   :  { %3600 = vmatprep.subr.bf16.mxu1 %v19036_v46 }
 0x4f1   :  { %3601 = vmatpush1.bf16.msra.mxu1 %v19034_v47 }
 0x4f2   :  { %3602 = vmatprep.subr.bf16.mxu1 %v19039_v48 }
 0x4f5   :  { %3603 = vmatpush1.bf16.msra.mxu1 %v19037_v22 }
 0x4f6   :  { %3604 = vmatprep.subr.bf16.mxu1 %v19042_v49 }
 0x4f9   :  { %3605 = vmatpush1.bf16.msra.mxu1 %v19040_v50 }
 0x4fa   :  { %3606 = vmatprep.subr.bf16.mxu1 %v19045_v51 }
 0x4fd   :  { %3607 = vmatpush1.bf16.msra.mxu1 %v19043_v52  ;;  %v19154_v52 = vld [vmem:[#allocation4 + $0x600] ss:$16 sps:$4 sm:$0xff]  }
 0x4fe   :  { %3608 = vmatprep.subr.bf16.mxu1 %v19048_v53  ;;  %v19157_v53 = vld [vmem:[#allocation4 + $0x608] ss:$16 sps:$4 sm:$0xff]  }
 0x501   :  { %3609 = vmatpush1.bf16.msra.mxu1 %v19046_v54 }
 0x502   :  { %3610 = vmatprep.subr.bf16.mxu1 %v19051_v55  ;;  %v19162_v55 = vld [vmem:[#allocation4 + $0x624] ss:$16 sps:$4 sm:$0xff]  }
 0x505   :  { %3611 = vmatpush1.bf16.msra.mxu1 %v19049_v56  ;;  %v19165_v56 = vld [vmem:[#allocation4 + $0x62c] ss:$16 sps:$4 sm:$0xff]  }
 0x506   :  { %3612 = vmatprep.subr.bf16.mxu1 %v19054_v57  ;;  %v19160_v57 = vld [vmem:[#allocation4 + $0x620] ss:$16 sps:$4 sm:$0xff]  }
 0x509   :  { %3613 = vmatpush1.bf16.msra.mxu1 %v19052_v58  ;;  %v19163_v58 = vld [vmem:[#allocation4 + $0x628] ss:$16 sps:$4 sm:$0xff]  }
 0x50a   :  { %3614 = vmatprep.subr.bf16.mxu1 %v19057_v59  ;;  %v19168_v59 = vld [vmem:[#allocation4 + $0x644] ss:$16 sps:$4 sm:$0xff]  }
 0x50d   :  { %3615 = vmatpush1.bf16.msra.mxu1 %v19055_v60  ;;  %v19171_v60 = vld [vmem:[#allocation4 + $0x64c] ss:$16 sps:$4 sm:$0xff]  }
 0x50e   :  { %4507 = vmatprep.subr.bf16.mxu1 %v19063_v61  ;;  %v19166_v61 = vld [vmem:[#allocation4 + $0x640] ss:$16 sps:$4 sm:$0xff]  }
 0x510   :  { %3617 = vmatmul.mubr.bf16.vlgmr.msra.gmra.mrb[12].mxu1 %v21627_v32  ;;  %v19127_v32 = vld [vmem:[#allocation4 + $0x568] ss:$16 sps:$4 sm:$0xff]  }
 0x511   :  { %4508 = vmatpush1.bf16.msra.mxu1 %v19061_v62  ;;  %v19169_v62 = vld [vmem:[#allocation4 + $0x648] ss:$16 sps:$4 sm:$0xff]  }
 0x512   :  { %4509 = vmatprep.subr.bf16.mxu1 %v19069_v63  ;;  %v19174_v63 = vld [vmem:[#allocation4 + $0x664] ss:$16 sps:$4 sm:$0xff]  }
 0x515   :  { %4510 = vmatpush1.bf16.msra.mxu1 %v19067_v0  ;;  %v19177_v0 = vld [vmem:[#allocation4 + $0x66c] ss:$16 sps:$4 sm:$0xff]  }
 0x516   :  { %4511 = vmatprep.subr.bf16.mxu1 %v19075_v1  ;;  %v19172_v1 = vld [vmem:[#allocation4 + $0x660] ss:$16 sps:$4 sm:$0xff]  }
 0x519   :  { %4512 = vmatpush1.bf16.msra.mxu1 %v19073_v2  ;;  %v19175_v2 = vld [vmem:[#allocation4 + $0x668] ss:$16 sps:$4 sm:$0xff]  }
 0x51a   :  { %4513 = vmatprep.subr.bf16.mxu1 %v19081_v3  ;;  %v19180_v3 = vld [vmem:[#allocation4 + $0x684] ss:$16 sps:$4 sm:$0xff]  }
 0x51d   :  { %4514 = vmatpush1.bf16.msra.mxu1 %v19079_v4  ;;  %v19183_v4 = vld [vmem:[#allocation4 + $0x68c] ss:$16 sps:$4 sm:$0xff]  }
 0x51e   :  { %4515 = vmatprep.subr.bf16.mxu1 %v19087_v5  ;;  %v19178_v5 = vld [vmem:[#allocation4 + $0x680] ss:$16 sps:$4 sm:$0xff]  }
 0x521   :  { %4516 = vmatpush1.bf16.msra.mxu1 %v19085_v6  ;;  %v19181_v6 = vld [vmem:[#allocation4 + $0x688] ss:$16 sps:$4 sm:$0xff]  }
 0x522   :  { %4517 = vmatprep.subr.bf16.mxu1 %v19093_v7  ;;  %v19186_v7 = vld [vmem:[#allocation4 + $0x6a4] ss:$16 sps:$4 sm:$0xff]  }
 0x525   :  { %4518 = vmatpush1.bf16.msra.mxu1 %v19091_v8  ;;  %v19189_v8 = vld [vmem:[#allocation4 + $0x6ac] ss:$16 sps:$4 sm:$0xff]  }
 0x526   :  { %4519 = vmatprep.subr.bf16.mxu1 %v19099_v9  ;;  %v19184_v9 = vld [vmem:[#allocation4 + $0x6a0] ss:$16 sps:$4 sm:$0xff]  }
 0x529   :  { %4520 = vmatpush1.bf16.msra.mxu1 %v19097_v18  ;;  %v19195_v18 = vld [vmem:[#allocation4 + $0x6cc] ss:$16 sps:$4 sm:$0xff]  }
 0x52a   :  { %4521 = vmatprep.subr.bf16.mxu1 %v19105_v19  ;;  %v19190_v19 = vld [vmem:[#allocation4 + $0x6c0] ss:$16 sps:$4 sm:$0xff]  }
 0x52d   :  { %4522 = vmatpush1.bf16.msra.mxu1 %v19103_v11  ;;  %v19201_v11 = vld [vmem:[#allocation4 + $0x6ec] ss:$16 sps:$4 sm:$0xff]  }
 0x52e   :  { %4523 = vmatprep.subr.bf16.mxu1 %v19111_v23  ;;  %v19196_v23 = vld [vmem:[#allocation4 + $0x6e0] ss:$16 sps:$4 sm:$0xff]  }
 0x531   :  { %4524 = vmatpush1.bf16.msra.mxu1 %v19109_v25  ;;  %v19204_v25 = vld [vmem:[#allocation4 + $0x704] ss:$16 sps:$4 sm:$0xff]  }
 0x532   :  { %4525 = vmatprep.subr.bf16.mxu1 %v19117_v26  ;;  %v19207_v26 = vld [vmem:[#allocation4 + $0x70c] ss:$16 sps:$4 sm:$0xff]  }
 0x535   :  { %4526 = vmatpush1.bf16.msra.mxu1 %v19115_v27  ;;  %v19202_v27 = vld [vmem:[#allocation4 + $0x700] ss:$16 sps:$4 sm:$0xff]  }
 0x536   :  { %4527 = vmatprep.subr.bf16.mxu1 %v19123_v28  ;;  %v19205_v28 = vld [vmem:[#allocation4 + $0x708] ss:$16 sps:$4 sm:$0xff]  }
 0x539   :  { %4528 = vmatpush1.bf16.msra.mxu1 %v19121_v29  ;;  %v19210_v29 = vld [vmem:[#allocation4 + $0x724] ss:$16 sps:$4 sm:$0xff]  }
 0x53a   :  { %4529 = vmatprep.subr.bf16.mxu1 %v19129_v30  ;;  %v19213_v30 = vld [vmem:[#allocation4 + $0x72c] ss:$16 sps:$4 sm:$0xff]  }
 0x53d   :  { %4530 = vmatpush1.bf16.msra.mxu1 %v19127_v32  ;;  %v19208_v32 = vld [vmem:[#allocation4 + $0x720] ss:$16 sps:$4 sm:$0xff]  }
 0x53e   :  { %4531 = vmatprep.subr.bf16.mxu1 %v19135_v33  ;;  %v19211_v33 = vld [vmem:[#allocation4 + $0x728] ss:$16 sps:$4 sm:$0xff]  }
 0x541   :  { %4532 = vmatpush1.bf16.msra.mxu1 %v19133_v34  ;;  %v19216_v34 = vld [vmem:[#allocation4 + $0x744] ss:$16 sps:$4 sm:$0xff]  }
 0x542   :  { %4533 = vmatprep.subr.bf16.mxu1 %v19141_v35  ;;  %v19219_v35 = vld [vmem:[#allocation4 + $0x74c] ss:$16 sps:$4 sm:$0xff]  }
 0x545   :  { %4534 = vmatpush1.bf16.msra.mxu1 %v19139_v36  ;;  %v19214_v36 = vld [vmem:[#allocation4 + $0x740] ss:$16 sps:$4 sm:$0xff]  }
 0x546   :  { %4535 = vmatprep.subr.bf16.mxu1 %v19147_v37  ;;  %v19217_v37 = vld [vmem:[#allocation4 + $0x748] ss:$16 sps:$4 sm:$0xff]  }
 0x549   :  { %4536 = vmatpush1.bf16.msra.mxu1 %v19145_v38  ;;  %v19222_v38 = vld [vmem:[#allocation4 + $0x764] ss:$16 sps:$4 sm:$0xff]  }
 0x54a   :  { %4537 = vmatprep.subr.bf16.mxu1 %v19153_v39  ;;  %v19225_v39 = vld [vmem:[#allocation4 + $0x76c] ss:$16 sps:$4 sm:$0xff]  }
 0x54d   :  { %4538 = vmatpush1.bf16.msra.mxu1 %v19151_v40  ;;  %v19220_v40 = vld [vmem:[#allocation4 + $0x760] ss:$16 sps:$4 sm:$0xff]  }
 0x54e   :  { %4548 = vmatprep.subr.bf16.mxu1 %v19159_v41  ;;  %v19223_v41 = vld [vmem:[#allocation4 + $0x768] ss:$16 sps:$4 sm:$0xff]  }
 0x5a3   :  { %v3577_v45 = vpop.f32.mrb[8].mxu1 }
 0x5a4   :  { %v3578_v15 = vadd.f32 %v3577_v45, %v3206_v43  ;;  %v3579_v46 = vpop.f32.mrb[9].mxu1  ;;  %v19228_v43 = vld [vmem:[#allocation4 + $0x784] ss:$16 sps:$4 sm:$0xff]   ;;  %v19226_v45 = vld [vmem:[#allocation4 + $0x780] ss:$16 sps:$4 sm:$0xff]  }
 0x5a5   :  { %v3580_v47 = vadd.f32 %v3579_v46, %v3210_v44  ;;  %v3581_v48 = vpop.f32.mrb[10].mxu1  ;;  %v19231_v44 = vld [vmem:[#allocation4 + $0x78c] ss:$16 sps:$4 sm:$0xff]   ;;  %v19234_v46 = vld [vmem:[#allocation4 + $0x7a4] ss:$16 sps:$4 sm:$0xff]  }
 0x5a6   :  { %v3625_v22 = vmax.f32 %v3578_v15, 0.0  ;;  %v3582_v49 = vpop.f32.mrb[11].mxu1  ;;  %v19229_v15 = vld [vmem:[#allocation4 + $0x788] ss:$16 sps:$4 sm:$0xff]   ;;  %v19232_v48 = vld [vmem:[#allocation4 + $0x7a0] ss:$16 sps:$4 sm:$0xff]  }
 0x5a7   :  { %v3626_v50 = vmax.f32 %v3580_v47, 0.0  ;;  %v19237_v47 = vld [vmem:[#allocation4 + $0x7ac] ss:$16 sps:$4 sm:$0xff]   ;;  %v19240_v49 = vld [vmem:[#allocation4 + $0x7c4] ss:$16 sps:$4 sm:$0xff]  }
 0x5a8   :  { %v3629_v54 = vpack.c.bf16 %v3625_v22, %v3625_v22  ;;  %v19235_v22 = vld [vmem:[#allocation4 + $0x7a8] ss:$16 sps:$4 sm:$0xff]  }
 0x5a9   :  { %v3630_v51 = vpack.c.bf16 %v3626_v50, %v3626_v50  ;;  %v19243_v50 = vld [vmem:[#allocation4 + $0x7cc] ss:$16 sps:$4 sm:$0xff]  }
 0x5ab   :  { %4457 = vmatprep.mubr.bf16.mxu0 %v3630_v51  ;;  %4539 = vmatprep.mubr.bf16.mxu1 %v3630_v51  ;;  %v3214_v51 = vrot.slane %v21631_v42, %v21616_v31 }
 0x5ac   :  { %4458 = vmatmul.mubr.bf16.vlgmr.msra.gmra.mrb[12].mxu0 %v3629_v54  ;;  %4540 = vmatmul.mubr.bf16.vlgmr.msra.gmra.mrb[16].mxu1 %v3629_v54  ;;  %v19241_v54 = vld [vmem:[#allocation4 + $0x7c8] ss:$16 sps:$4 sm:$0xff]  }
 0x5ad   :  { %4467 = vmatpush1.bf16.msra.mxu0 %v19154_v52  ;;  %4549 = vmatpush1.bf16.msra.mxu1 %v19157_v53  ;;  %v3218_v52 = vrot.slane %v21631_v42, %v21605_v17  ;;  %v19238_v53 = vld [vmem:[#allocation4 + $0x7c0] ss:$16 sps:$4 sm:$0xff]   ;;  %v19252_v42 = vld [vmem:[#allocation6 + $0x204] ss:$8 sps:$4 sm:$0xff]  }
 0x5ae   :  { %4468 = vmatprep.subr.bf16.mxu0 %v19162_v55  ;;  %4550 = vmatprep.subr.bf16.mxu1 %v19165_v56  ;;  %v19246_v55 = vld [vmem:[#allocation4 + $0x7e4] ss:$16 sps:$4 sm:$0xff]   ;;  %v19249_v56 = vld [vmem:[#allocation4 + $0x7ec] ss:$16 sps:$4 sm:$0xff]  }
 0x5b1   :  { %4469 = vmatpush1.bf16.msra.mxu0 %v19160_v57  ;;  %4551 = vmatpush1.bf16.msra.mxu1 %v19163_v58 }
 0x5b2   :  { %4470 = vmatprep.subr.bf16.mxu0 %v19168_v59  ;;  %4552 = vmatprep.subr.bf16.mxu1 %v19171_v60 }
 0x5b5   :  { %4471 = vmatpush1.bf16.msra.mxu0 %v19166_v61  ;;  %4553 = vmatpush1.bf16.msra.mxu1 %v19169_v62  ;;  %v19244_v62 = vld [vmem:[#allocation4 + $0x7e0] ss:$16 sps:$4 sm:$0xff]  }
 0x5b6   :  { %4472 = vmatprep.subr.bf16.mxu0 %v19174_v63  ;;  %4554 = vmatprep.subr.bf16.mxu1 %v19177_v0  ;;  %v19247_v63 = vld [vmem:[#allocation4 + $0x7e8] ss:$16 sps:$4 sm:$0xff]  }
 0x5b9   :  { %4473 = vmatpush1.bf16.msra.mxu0 %v19172_v1  ;;  %4555 = vmatpush1.bf16.msra.mxu1 %v19175_v2 }
 0x5ba   :  { %4474 = vmatprep.subr.bf16.mxu0 %v19180_v3  ;;  %4556 = vmatprep.subr.bf16.mxu1 %v19183_v4  ;;  %v19250_v4 = vld [vmem:[#allocation6 + $0x200] ss:$8 sps:$4 sm:$0xff]  }
 0x5bd   :  { %4475 = vmatpush1.bf16.msra.mxu0 %v19178_v5  ;;  %4557 = vmatpush1.bf16.msra.mxu1 %v19181_v6  ;;  %v19255_v6 = vld [vmem:[#allocation6 + $0x214] ss:$8 sps:$4 sm:$0xff]  }
 0x5be   :  { %4476 = vmatprep.subr.bf16.mxu0 %v19186_v7  ;;  %4558 = vmatprep.subr.bf16.mxu1 %v19189_v8  ;;  %v19253_v7 = vld [vmem:[#allocation6 + $0x210] ss:$8 sps:$4 sm:$0xff]   ;;  %v19258_v8 = vld [vmem:[#allocation6 + $0x224] ss:$8 sps:$4 sm:$0xff]  }
 0x5c1   :  { %4477 = vmatpush1.bf16.msra.mxu0 %v19184_v9  ;;  %4559 = vmatpush1.bf16.msra.mxu1 %v19187_v10  ;;  %v19256_v9 = vld [vmem:[#allocation6 + $0x220] ss:$8 sps:$4 sm:$0xff]   ;;  %v19261_v10 = vld [vmem:[#allocation6 + $0x234] ss:$8 sps:$4 sm:$0xff]  }
 0x5c2   :  { %4478 = vmatprep.subr.bf16.mxu0 %v19192_v12  ;;  %4560 = vmatprep.subr.bf16.mxu1 %v19195_v18  ;;  %v19259_v12 = vld [vmem:[#allocation6 + $0x230] ss:$8 sps:$4 sm:$0xff]   ;;  %v19264_v18 = vld [vmem:[#allocation6 + $0x244] ss:$8 sps:$4 sm:$0xff]  }
 0x5c5   :  { %4479 = vmatpush1.bf16.msra.mxu0 %v19190_v19  ;;  %4561 = vmatpush1.bf16.msra.mxu1 %v19193_v20  ;;  %v19262_v19 = vld [vmem:[#allocation6 + $0x240] ss:$8 sps:$4 sm:$0xff]   ;;  %v19267_v20 = vld [vmem:[#allocation6 + $0x254] ss:$8 sps:$4 sm:$0xff]  }
 0x5c6   :  { %4480 = vmatprep.subr.bf16.mxu0 %v19198_v21  ;;  %4562 = vmatprep.subr.bf16.mxu1 %v19201_v11  ;;  %v19265_v21 = vld [vmem:[#allocation6 + $0x250] ss:$8 sps:$4 sm:$0xff]   ;;  %v19270_v11 = vld [vmem:[#allocation6 + $0x264] ss:$8 sps:$4 sm:$0xff]  }
 0x5c9   :  { %4481 = vmatpush1.bf16.msra.mxu0 %v19196_v23  ;;  %4563 = vmatpush1.bf16.msra.mxu1 %v19199_v24  ;;  %v19268_v23 = vld [vmem:[#allocation6 + $0x260] ss:$8 sps:$4 sm:$0xff]   ;;  %v19273_v24 = vld [vmem:[#allocation6 + $0x274] ss:$8 sps:$4 sm:$0xff]  }
 0x5ca   :  { %4482 = vmatprep.subr.bf16.mxu0 %v19204_v25  ;;  %4564 = vmatprep.subr.bf16.mxu1 %v19207_v26  ;;  %v19271_v25 = vld [vmem:[#allocation6 + $0x270] ss:$8 sps:$4 sm:$0xff]   ;;  %v19276_v26 = vld [vmem:[#allocation6 + $0x284] ss:$8 sps:$4 sm:$0xff]  }
 0x5cd   :  { %4483 = vmatpush1.bf16.msra.mxu0 %v19202_v27  ;;  %4565 = vmatpush1.bf16.msra.mxu1 %v19205_v28  ;;  %v19274_v27 = vld [vmem:[#allocation6 + $0x280] ss:$8 sps:$4 sm:$0xff]   ;;  %v19279_v28 = vld [vmem:[#allocation6 + $0x294] ss:$8 sps:$4 sm:$0xff]  }
 0x5ce   :  { %4484 = vmatprep.subr.bf16.mxu0 %v19210_v29  ;;  %4566 = vmatprep.subr.bf16.mxu1 %v19213_v30  ;;  %v19277_v29 = vld [vmem:[#allocation6 + $0x290] ss:$8 sps:$4 sm:$0xff]   ;;  %v19282_v30 = vld [vmem:[#allocation6 + $0x2a4] ss:$8 sps:$4 sm:$0xff]  }
 0x5d1   :  { %4485 = vmatpush1.bf16.msra.mxu0 %v19208_v32  ;;  %4567 = vmatpush1.bf16.msra.mxu1 %v19211_v33  ;;  %v19280_v32 = vld [vmem:[#allocation6 + $0x2a0] ss:$8 sps:$4 sm:$0xff]   ;;  %v19285_v33 = vld [vmem:[#allocation6 + $0x2b4] ss:$8 sps:$4 sm:$0xff]  }
 0x5d2   :  { %4486 = vmatprep.subr.bf16.mxu0 %v19216_v34  ;;  %4568 = vmatprep.subr.bf16.mxu1 %v19219_v35  ;;  %v19283_v34 = vld [vmem:[#allocation6 + $0x2b0] ss:$8 sps:$4 sm:$0xff]   ;;  %v19288_v35 = vld [vmem:[#allocation6 + $0x2c4] ss:$8 sps:$4 sm:$0xff]  }
 0x5d5   :  { %4487 = vmatpush1.bf16.msra.mxu0 %v19214_v36  ;;  %4569 = vmatpush1.bf16.msra.mxu1 %v19217_v37  ;;  %v19286_v36 = vld [vmem:[#allocation6 + $0x2c0] ss:$8 sps:$4 sm:$0xff]   ;;  %v19291_v37 = vld [vmem:[#allocation6 + $0x2d4] ss:$8 sps:$4 sm:$0xff]  }
 0x5d6   :  { %4488 = vmatprep.subr.bf16.mxu0 %v19222_v38  ;;  %4570 = vmatprep.subr.bf16.mxu1 %v19225_v39  ;;  %v19289_v38 = vld [vmem:[#allocation6 + $0x2d0] ss:$8 sps:$4 sm:$0xff]   ;;  %v19294_v39 = vld [vmem:[#allocation6 + $0x2e4] ss:$8 sps:$4 sm:$0xff]  }
 0x5d9   :  { %4489 = vmatpush1.bf16.msra.mxu0 %v19220_v40  ;;  %4571 = vmatpush1.bf16.msra.mxu1 %v19223_v41  ;;  %v19292_v40 = vld [vmem:[#allocation6 + $0x2e0] ss:$8 sps:$4 sm:$0xff]   ;;  %v19297_v41 = vld [vmem:[#allocation6 + $0x2f4] ss:$8 sps:$4 sm:$0xff]  }
 0x5da   :  { %4490 = vmatprep.subr.bf16.mxu0 %v19228_v43  ;;  %4572 = vmatprep.subr.bf16.mxu1 %v19231_v44  ;;  %v19295_v43 = vld [vmem:[#allocation6 + $0x2f0] ss:$8 sps:$4 sm:$0xff]   ;;  %v19300_v44 = vld [vmem:[#allocation6 + $0x304] ss:$8 sps:$4 sm:$0xff]  }
 0x5dd   :  { %4491 = vmatpush1.bf16.msra.mxu0 %v19226_v45  ;;  %4573 = vmatpush1.bf16.msra.mxu1 %v19229_v15  ;;  %v19346_v45 = vld [vmem:[#allocation7 + $0x200] ss:$16 sps:$4 sm:$0xff]   ;;  %v19348_v15 = vld [vmem:[#allocation7 + $0x204] ss:$16 sps:$4 sm:$0xff]  }
 0x5de   :  { %4492 = vmatprep.subr.bf16.mxu0 %v19234_v46  ;;  %4574 = vmatprep.subr.bf16.mxu1 %v19237_v47  ;;  %v19351_v46 = vld [vmem:[#allocation7 + $0x224] ss:$16 sps:$4 sm:$0xff]   ;;  %v19349_v47 = vld [vmem:[#allocation7 + $0x220] ss:$16 sps:$4 sm:$0xff]  }
 0x5e1   :  { %4493 = vmatpush1.bf16.msra.mxu0 %v19232_v48  ;;  %4575 = vmatpush1.bf16.msra.mxu1 %v19235_v22  ;;  %v19354_v48 = vld [vmem:[#allocation7 + $0x244] ss:$16 sps:$4 sm:$0xff]   ;;  %v19352_v22 = vld [vmem:[#allocation7 + $0x240] ss:$16 sps:$4 sm:$0xff]  }
 0x5e2   :  { %4494 = vmatprep.subr.bf16.mxu0 %v19240_v49  ;;  %4576 = vmatprep.subr.bf16.mxu1 %v19243_v50  ;;  %v19357_v49 = vld [vmem:[#allocation7 + $0x264] ss:$16 sps:$4 sm:$0xff]   ;;  %v19355_v50 = vld [vmem:[#allocation7 + $0x260] ss:$16 sps:$4 sm:$0xff]  }
 0x5e3   :  { %v3618_v57 = vpop.f32.mrb[12].mxu1 }
 0x5e4   :  { %v3619_v58 = vadd.f32 %v3618_v57, %v3214_v51  ;;  %v3620_v59 = vpop.f32.mrb[13].mxu1  ;;  %v19360_v51 = vld [vmem:[#allocation7 + $0x284] ss:$16 sps:$4 sm:$0xff]  }
 0x5e5   :  { %v3621_v60 = vadd.f32 %v3620_v59, %v3218_v52  ;;  %v3622_v61 = vpop.f32.mrb[14].mxu1  ;;  %4495 = vmatpush1.bf16.msra.mxu0 %v19238_v53  ;;  %4577 = vmatpush1.bf16.msra.mxu1 %v19241_v54  ;;  %v19358_v52 = vld [vmem:[#allocation7 + $0x280] ss:$16 sps:$4 sm:$0xff]   ;;  %v19363_v53 = vld [vmem:[#allocation7 + $0x2a4] ss:$16 sps:$4 sm:$0xff]  }
 0x5e6   :  { %v3627_v0 = vmax.f32 %v3619_v58, 0.0  ;;  %v3623_v1 = vpop.f32.mrb[15].mxu1  ;;  %4496 = vmatprep.subr.bf16.mxu0 %v19246_v55  ;;  %4578 = vmatprep.subr.bf16.mxu1 %v19249_v56  ;;  %v19361_v54 = vld [vmem:[#allocation7 + $0x2a0] ss:$16 sps:$4 sm:$0xff]   ;;  %v19366_v55 = vld [vmem:[#allocation7 + $0x2c4] ss:$16 sps:$4 sm:$0xff]  }
 0x5e7   :  { %v3628_v2 = vmax.f32 %v3621_v60, 0.0  ;;  %v19364_v56 = vld [vmem:[#allocation7 + $0x2c0] ss:$16 sps:$4 sm:$0xff]   ;;  %v19369_v57 = vld [vmem:[#allocation7 + $0x2e4] ss:$16 sps:$4 sm:$0xff]  }
 0x5e8   :  { %v3631_v5 = vpack.c.bf16 %v3627_v0, %v3627_v0  ;;  %v19367_v58 = vld [vmem:[#allocation7 + $0x2e0] ss:$16 sps:$4 sm:$0xff]   ;;  %v19372_v59 = vld [vmem:[#allocation7 + $0x304] ss:$16 sps:$4 sm:$0xff]  }
 0x5e9   :  { %v3632_v3 = vpack.c.bf16 %v3628_v2, %v3628_v2  ;;  %4497 = vmatpush1.bf16.msra.mxu0 %v19244_v62  ;;  %4579 = vmatpush1.bf16.msra.mxu1 %v19247_v63  ;;  %v19370_v60 = vld [vmem:[#allocation7 + $0x300] ss:$16 sps:$4 sm:$0xff]   ;;  %v19375_v61 = vld [vmem:[#allocation7 + $0x324] ss:$16 sps:$4 sm:$0xff]  }
 0x5ea   :  { %4995 = vmatprep.subr.bf16.mxu0 %v19252_v42  ;;  %5489 = vmatprep.subr.bf16.mxu1 %v19348_v15  ;;  %v19373_v62 = vld [vmem:[#allocation7 + $0x320] ss:$16 sps:$4 sm:$0xff]   ;;  %v19378_v63 = vld [vmem:[#allocation7 + $0x344] ss:$16 sps:$4 sm:$0xff]  }
 0x5eb   :  { %4498 = vmatprep.mubr.bf16.mxu0 %v3632_v3  ;;  %4580 = vmatprep.mubr.bf16.mxu1 %v3632_v3  ;;  %v19376_v0 = vld [vmem:[#allocation7 + $0x340] ss:$16 sps:$4 sm:$0xff]   ;;  %v19381_v1 = vld [vmem:[#allocation7 + $0x364] ss:$16 sps:$4 sm:$0xff]  }
 0x5ec   :  { %4499 = vmatmul.mubr.bf16.vlgmr.msra.gmra.mrb[12].mxu0 %v3631_v5  ;;  %4581 = vmatmul.mubr.bf16.vlgmr.msra.gmra.mrb[16].mxu1 %v3631_v5  ;;  %v19379_v42 = vld [vmem:[#allocation7 + $0x360] ss:$16 sps:$4 sm:$0xff]   ;;  %v19384_v2 = vld [vmem:[#allocation7 + $0x384] ss:$16 sps:$4 sm:$0xff]  }
 0x5ed   :  { %4996 = vmatpush1.bf16.msra.mxu0 %v19250_v4  ;;  %5490 = vmatpush1.bf16.msra.mxu1 %v19346_v45  ;;  %v19382_v3 = vld [vmem:[#allocation7 + $0x380] ss:$16 sps:$4 sm:$0xff]   ;;  %v19387_v4 = vld [vmem:[#allocation7 + $0x3a4] ss:$16 sps:$4 sm:$0xff]  }
 0x5ee   :  { %4997 = vmatprep.subr.bf16.mxu0 %v19255_v6  ;;  %5491 = vmatprep.subr.bf16.mxu1 %v19351_v46  ;;  %v21641_v5 = vld [vmem:[#allocation18 + $0x3] ss:$8 sm:$0xf]  ;;  %v19318_v15 = vld [vmem:[#allocation6 + $0x364] ss:$8 sps:$4 sm:$0xff]  }
 0x5ef   :  { %v19385_v6 = vld [vmem:[#allocation7 + $0x3a0] ss:$16 sps:$4 sm:$0xff]  }
 0x5f0   :  { %v19313_v45 = vld [vmem:[#allocation6 + $0x350] ss:$8 sps:$4 sm:$0xff]   ;;  %v19316_v46 = vld [vmem:[#allocation6 + $0x360] ss:$8 sps:$4 sm:$0xff]  }
 0x5f1   :  { %4998 = vmatpush1.bf16.msra.mxu0 %v19253_v7  ;;  %5492 = vmatpush1.bf16.msra.mxu1 %v19349_v47  ;;  %v3768_v7 = vrot.slane %v21641_v5, %v21597_v14  ;;  %v19321_v47 = vld [vmem:[#allocation6 + $0x374] ss:$8 sps:$4 sm:$0xff]  }
 0x5f2   :  { %4999 = vmatprep.subr.bf16.mxu0 %v19258_v8  ;;  %5493 = vmatprep.subr.bf16.mxu1 %v19354_v48  ;;  %v3772_v8 = vrot.slane %v21641_v5, %v21602_v16  ;;  %v19319_v48 = vld [vmem:[#allocation6 + $0x370] ss:$8 sps:$4 sm:$0xff]  }
 0x5f5   :  { %5000 = vmatpush1.bf16.msra.mxu0 %v19256_v9  ;;  %5494 = vmatpush1.bf16.msra.mxu1 %v19352_v22  ;;  %v3780_v9 = vrot.slane %v21641_v5, %v21605_v17  ;;  %v19324_v22 = vld [vmem:[#allocation6 + $0x384] ss:$8 sps:$4 sm:$0xff]  }
 0x5f6   :  { %5001 = vmatprep.subr.bf16.mxu0 %v19261_v10  ;;  %5495 = vmatprep.subr.bf16.mxu1 %v19357_v49  ;;  %v19322_v49 = vld [vmem:[#allocation6 + $0x380] ss:$8 sps:$4 sm:$0xff]  }
 0x5f9   :  { %5002 = vmatpush1.bf16.msra.mxu0 %v19259_v12  ;;  %5496 = vmatpush1.bf16.msra.mxu1 %v19355_v50  ;;  %v19327_v50 = vld [vmem:[#allocation6 + $0x394] ss:$8 sps:$4 sm:$0xff]  }
 0x5fa   :  { %5003 = vmatprep.subr.bf16.mxu0 %v19264_v18  ;;  %5497 = vmatprep.subr.bf16.mxu1 %v19360_v51  ;;  %v19325_v51 = vld [vmem:[#allocation6 + $0x390] ss:$8 sps:$4 sm:$0xff]  }
 0x5fd   :  { %5004 = vmatpush1.bf16.msra.mxu0 %v19262_v19  ;;  %5498 = vmatpush1.bf16.msra.mxu1 %v19358_v52  ;;  %v19330_v52 = vld [vmem:[#allocation6 + $0x3a4] ss:$8 sps:$4 sm:$0xff]  }
 0x5fe   :  { %5005 = vmatprep.subr.bf16.mxu0 %v19267_v20  ;;  %5499 = vmatprep.subr.bf16.mxu1 %v19363_v53  ;;  %v19328_v53 = vld [vmem:[#allocation6 + $0x3a0] ss:$8 sps:$4 sm:$0xff]  }
 0x601   :  { %5006 = vmatpush1.bf16.msra.mxu0 %v19265_v21  ;;  %5500 = vmatpush1.bf16.msra.mxu1 %v19361_v54  ;;  %v19333_v54 = vld [vmem:[#allocation6 + $0x3b4] ss:$8 sps:$4 sm:$0xff]  }
 0x602   :  { %5007 = vmatprep.subr.bf16.mxu0 %v19270_v11  ;;  %5501 = vmatprep.subr.bf16.mxu1 %v19366_v55  ;;  %v19331_v55 = vld [vmem:[#allocation6 + $0x3b0] ss:$8 sps:$4 sm:$0xff]  }
 0x605   :  { %5008 = vmatpush1.bf16.msra.mxu0 %v19268_v23  ;;  %5502 = vmatpush1.bf16.msra.mxu1 %v19364_v56  ;;  %v19336_v56 = vld [vmem:[#allocation6 + $0x3c4] ss:$8 sps:$4 sm:$0xff]  }
 0x606   :  { %5009 = vmatprep.subr.bf16.mxu0 %v19273_v24  ;;  %5503 = vmatprep.subr.bf16.mxu1 %v19369_v57  ;;  %v19334_v57 = vld [vmem:[#allocation6 + $0x3c0] ss:$8 sps:$4 sm:$0xff]  }
 0x609   :  { %5010 = vmatpush1.bf16.msra.mxu0 %v19271_v25  ;;  %5504 = vmatpush1.bf16.msra.mxu1 %v19367_v58  ;;  %v19339_v58 = vld [vmem:[#allocation6 + $0x3d4] ss:$8 sps:$4 sm:$0xff]  }
 0x60a   :  { %5011 = vmatprep.subr.bf16.mxu0 %v19276_v26  ;;  %5505 = vmatprep.subr.bf16.mxu1 %v19372_v59  ;;  %v19337_v59 = vld [vmem:[#allocation6 + $0x3d0] ss:$8 sps:$4 sm:$0xff]  }
 0x60d   :  { %5012 = vmatpush1.bf16.msra.mxu0 %v19274_v27  ;;  %5506 = vmatpush1.bf16.msra.mxu1 %v19370_v60  ;;  %v3776_v60 = vrot.slane %v21641_v5, %v21616_v31  ;;  %v19393_v5 = vld [vmem:[#allocation7 + $0x3e4] ss:$16 sps:$4 sm:$0xff]  }
 0x60e   :  { %5013 = vmatprep.subr.bf16.mxu0 %v19279_v28  ;;  %5507 = vmatprep.subr.bf16.mxu1 %v19375_v61  ;;  %v19342_v61 = vld [vmem:[#allocation6 + $0x3e4] ss:$8 sps:$4 sm:$0xff]  }
 0x611   :  { %5014 = vmatpush1.bf16.msra.mxu0 %v19277_v29  ;;  %5508 = vmatpush1.bf16.msra.mxu1 %v19373_v62  ;;  %v19340_v62 = vld [vmem:[#allocation6 + $0x3e0] ss:$8 sps:$4 sm:$0xff]  }
 0x612   :  { %5015 = vmatprep.subr.bf16.mxu0 %v19282_v30  ;;  %5509 = vmatprep.subr.bf16.mxu1 %v19378_v63 }
 0x615   :  { %5016 = vmatpush1.bf16.msra.mxu0 %v19280_v32  ;;  %5510 = vmatpush1.bf16.msra.mxu1 %v19376_v0  ;;  %v19298_v32 = vld [vmem:[#allocation6 + $0x300] ss:$8 sps:$4 sm:$0xff]   ;;  %v19345_v0 = vld [vmem:[#allocation6 + $0x3f4] ss:$8 sps:$4 sm:$0xff]  }
 0x616   :  { %5017 = vmatprep.subr.bf16.mxu0 %v19285_v33  ;;  %5511 = vmatprep.subr.bf16.mxu1 %v19381_v1  ;;  %v19343_v1 = vld [vmem:[#allocation6 + $0x3f0] ss:$8 sps:$4 sm:$0xff]  }
 0x619   :  { %5018 = vmatpush1.bf16.msra.mxu0 %v19283_v34  ;;  %5512 = vmatpush1.bf16.msra.mxu1 %v19379_v42  ;;  %v19303_v34 = vld [vmem:[#allocation6 + $0x314] ss:$8 sps:$4 sm:$0xff]  }
 0x61a   :  { %5019 = vmatprep.subr.bf16.mxu0 %v19288_v35  ;;  %5513 = vmatprep.subr.bf16.mxu1 %v19384_v2 }
 0x61d   :  { %5020 = vmatpush1.bf16.msra.mxu0 %v19286_v36  ;;  %5514 = vmatpush1.bf16.msra.mxu1 %v19382_v3  ;;  %v19301_v36 = vld [vmem:[#allocation6 + $0x310] ss:$8 sps:$4 sm:$0xff]   ;;  %v19390_v3 = vld [vmem:[#allocation7 + $0x3c4] ss:$16 sps:$4 sm:$0xff]  }
 0x61e   :  { %5021 = vmatprep.subr.bf16.mxu0 %v19291_v37  ;;  %5515 = vmatprep.subr.bf16.mxu1 %v19387_v4  ;;  %v19306_v37 = vld [vmem:[#allocation6 + $0x324] ss:$8 sps:$4 sm:$0xff]   ;;  %v19388_v4 = vld [vmem:[#allocation7 + $0x3c0] ss:$16 sps:$4 sm:$0xff]  }
 0x621   :  { %5022 = vmatpush1.bf16.msra.mxu0 %v19289_v38  ;;  %5516 = vmatpush1.bf16.msra.mxu1 %v19385_v6  ;;  %v19304_v38 = vld [vmem:[#allocation6 + $0x320] ss:$8 sps:$4 sm:$0xff]  }
 0x622   :  { %5023 = vmatprep.subr.bf16.mxu0 %v19294_v39  ;;  %v19309_v39 = vld [vmem:[#allocation6 + $0x334] ss:$8 sps:$4 sm:$0xff]   ;;  %5517 = vmatprep.subr.bf16.mxu1 %v19390_v3  ;;  %v19391_v6 = vld [vmem:[#allocation7 + $0x3e0] ss:$16 sps:$4 sm:$0xff]  }
 0x623   :  { %v19417_v3 = vld [vmem:[#allocation7 + $0x2ec] ss:$16 sps:$4 sm:$0xff]  }
 0x625   :  { %5024 = vmatpush1.bf16.msra.mxu0 %v19292_v40  ;;  %v19307_v40 = vld [vmem:[#allocation6 + $0x330] ss:$8 sps:$4 sm:$0xff]   ;;  %5518 = vmatpush1.bf16.msra.mxu1 %v19388_v4 }
 0x626   :  { %5025 = vmatprep.subr.bf16.mxu0 %v19297_v41  ;;  %v19312_v41 = vld [vmem:[#allocation6 + $0x344] ss:$8 sps:$4 sm:$0xff]   ;;  %5519 = vmatprep.subr.bf16.mxu1 %v19393_v5  ;;  %v19415_v4 = vld [vmem:[#allocation7 + $0x2e8] ss:$16 sps:$4 sm:$0xff]  }
 0x627   :  { %v19420_v5 = vld [vmem:[#allocation7 + $0x30c] ss:$16 sps:$4 sm:$0xff]  }
 0x629   :  { %5026 = vmatpush1.bf16.msra.mxu0 %v19295_v43  ;;  %v19310_v43 = vld [vmem:[#allocation6 + $0x340] ss:$8 sps:$4 sm:$0xff]   ;;  %5520 = vmatpush1.bf16.msra.mxu1 %v19391_v6 }
 0x62a   :  { %5036 = vmatprep.subr.bf16.mxu0 %v19300_v44  ;;  %v19315_v44 = vld [vmem:[#allocation6 + $0x354] ss:$8 sps:$4 sm:$0xff]   ;;  %v19418_v6 = vld [vmem:[#allocation7 + $0x308] ss:$16 sps:$4 sm:$0xff]  }
 0x6bf   :  { %v4500_v10 = vpop.f32.mrb[12].mxu0  ;;  %v21649_v12 = vpop.f32.mrb[16].mxu1 }
 0x6c0   :  { %v18261_v18 = vadd.f32 %v4500_v10, %v3768_v7  ;;  %v4502_v19 = vpop.f32.mrb[13].mxu0  ;;  %v4584_v20 = vpop.f32.mrb[17].mxu1  ;;  %v18263_v63 = vadd.f32 %v21649_v12, %v3776_v60  ;;  %v19396_v7 = vld [vmem:[#allocation7 + $0x20c] ss:$16 sps:$4 sm:$0xff]   ;;  %v19450_v10 = vld [vmem:[#allocation4 + $0x824] ss:$16 sps:$4 sm:$0xff]  }
 0x6c1   :  { %v18262_v21 = vadd.f32 %v4502_v19, %v3772_v8  ;;  %v18264_v11 = vadd.f32 %v4584_v20, %v3780_v9  ;;  %v4504_v23 = vpop.f32.mrb[14].mxu0  ;;  %v4586_v24 = vpop.f32.mrb[18].mxu1  ;;  %5530 = vmatprep.subr.bf16.mxu1 %v19396_v7  ;;  %v19442_v8 = vld [vmem:[#allocation4 + $0x800] ss:$16 sps:$4 sm:$0xff]   ;;  %v19444_v9 = vld [vmem:[#allocation4 + $0x804] ss:$16 sps:$4 sm:$0xff]  }
 0x6c2   :  { %v4589_v25 = vmax.f32 %v18261_v18, 0.0  ;;  %v4505_v26 = vpop.f32.mrb[15].mxu0  ;;  %v4587_v27 = vpop.f32.mrb[19].mxu1  ;;  %v4591_v42 = vmax.f32 %v18263_v63, 0.0  ;;  %v19448_v12 = vld [vmem:[#allocation4 + $0x820] ss:$16 sps:$4 sm:$0xff]  }
 0x6c3   :  { %v4590_v28 = vmax.f32 %v18262_v21, 0.0  ;;  %v4592_v29 = vmax.f32 %v18264_v11, 0.0  ;;  %v19456_v18 = vld [vmem:[#allocation4 + $0x844] ss:$16 sps:$4 sm:$0xff]   ;;  %v19454_v19 = vld [vmem:[#allocation4 + $0x840] ss:$16 sps:$4 sm:$0xff]  }
 0x6c4   :  { %v4593_v33 = vpack.c.bf16 %v4589_v25, %v4589_v25  ;;  %v4595_v2 = vpack.c.bf16 %v4591_v42, %v4591_v42  ;;  %v19462_v20 = vld [vmem:[#allocation4 + $0x864] ss:$16 sps:$4 sm:$0xff]   ;;  %v19460_v21 = vld [vmem:[#allocation4 + $0x860] ss:$16 sps:$4 sm:$0xff]   ;;  %v19405_v60 = vld [vmem:[#allocation7 + $0x26c] ss:$16 sps:$4 sm:$0xff]  }
 0x6c5   :  { %v4594_v30 = vpack.c.bf16 %v4590_v28, %v4590_v28  ;;  %v4596_v35 = vpack.c.bf16 %v4592_v29, %v4592_v29  ;;  %v19468_v11 = vld [vmem:[#allocation4 + $0x884] ss:$16 sps:$4 sm:$0xff]   ;;  %v19466_v23 = vld [vmem:[#allocation4 + $0x880] ss:$16 sps:$4 sm:$0xff]   ;;  %v19406_v63 = vld [vmem:[#allocation7 + $0x288] ss:$16 sps:$4 sm:$0xff]  }
 0x6c6   :  { %v19474_v24 = vld [vmem:[#allocation4 + $0x8a4] ss:$16 sps:$4 sm:$0xff]   ;;  %v19472_v25 = vld [vmem:[#allocation4 + $0x8a0] ss:$16 sps:$4 sm:$0xff]   ;;  %v19414_v42 = vld [vmem:[#allocation7 + $0x2cc] ss:$16 sps:$4 sm:$0xff]  }
 0x6c7   :  { %5027 = vmatprep.mubr.bf16.mxu0 %v4594_v30  ;;  %v19480_v26 = vld [vmem:[#allocation4 + $0x8c4] ss:$16 sps:$4 sm:$0xff]   ;;  %v19478_v27 = vld [vmem:[#allocation4 + $0x8c0] ss:$16 sps:$4 sm:$0xff]   ;;  %v19423_v7 = vld [vmem:[#allocation7 + $0x32c] ss:$16 sps:$4 sm:$0xff]  }
 0x6c8   :  { %5028 = vmatmul.mubr.bf16.vlgmr.msra.gmra.mrb[16].mxu0 %v4593_v33  ;;  %v19486_v28 = vld [vmem:[#allocation4 + $0x8e4] ss:$16 sps:$4 sm:$0xff]   ;;  %v19484_v29 = vld [vmem:[#allocation4 + $0x8e0] ss:$16 sps:$4 sm:$0xff]  }
 0x6c9   :  { %5037 = vmatpush1.bf16.msra.mxu0 %v19298_v32  ;;  %5068 = vmatprep.mubr.bf16.mxu0 %v4596_v35  ;;  %v19492_v30 = vld [vmem:[#allocation4 + $0x904] ss:$16 sps:$4 sm:$0xff]   ;;  %v19490_v32 = vld [vmem:[#allocation4 + $0x900] ss:$16 sps:$4 sm:$0xff]  }
 0x6ca   :  { %5038 = vmatprep.subr.bf16.mxu0 %v19303_v34  ;;  %v19498_v33 = vld [vmem:[#allocation4 + $0x924] ss:$16 sps:$4 sm:$0xff]   ;;  %v19496_v34 = vld [vmem:[#allocation4 + $0x920] ss:$16 sps:$4 sm:$0xff]  }
 0x6cb   :  { %v19504_v35 = vld [vmem:[#allocation4 + $0x944] ss:$16 sps:$4 sm:$0xff]  }
 0x6cd   :  { %5039 = vmatpush1.bf16.msra.mxu0 %v19301_v36  ;;  %v19502_v36 = vld [vmem:[#allocation4 + $0x940] ss:$16 sps:$4 sm:$0xff]  }
 0x6ce   :  { %5040 = vmatprep.subr.bf16.mxu0 %v19306_v37  ;;  %v19510_v37 = vld [vmem:[#allocation4 + $0x964] ss:$16 sps:$4 sm:$0xff]  }
 0x6d1   :  { %5041 = vmatpush1.bf16.msra.mxu0 %v19304_v38  ;;  %v19508_v38 = vld [vmem:[#allocation4 + $0x960] ss:$16 sps:$4 sm:$0xff]  }
 0x6d2   :  { %5042 = vmatprep.subr.bf16.mxu0 %v19309_v39  ;;  %v19516_v39 = vld [vmem:[#allocation4 + $0x984] ss:$16 sps:$4 sm:$0xff]  }
 0x6d5   :  { %5043 = vmatpush1.bf16.msra.mxu0 %v19307_v40  ;;  %v19514_v40 = vld [vmem:[#allocation4 + $0x980] ss:$16 sps:$4 sm:$0xff]  }
 0x6d6   :  { %5044 = vmatprep.subr.bf16.mxu0 %v19312_v41  ;;  %v4663_v41 = vld [vmem:[#allocation19 + $0x1] ss:$8 sm:$0x3] }
 0x6d9   :  { %5045 = vmatpush1.bf16.msra.mxu0 %v19310_v43  ;;  %v19522_v43 = vld [vmem:[#allocation4 + $0x9a4] ss:$16 sps:$4 sm:$0xff]  }
 0x6da   :  { %5046 = vmatprep.subr.bf16.mxu0 %v19315_v44  ;;  %v19520_v44 = vld [vmem:[#allocation4 + $0x9a0] ss:$16 sps:$4 sm:$0xff]  }
 0x6dd   :  { %5047 = vmatpush1.bf16.msra.mxu0 %v19313_v45  ;;  %v4668_v45 = vrot.slane %v4663_v41, %v21597_v14 }
 0x6de   :  { %5048 = vmatprep.subr.bf16.mxu0 %v19318_v15  ;;  %v4672_v15 = vrot.slane %v4663_v41, %v21602_v16  ;;  %v19528_v41 = vld [vmem:[#allocation4 + $0x9c4] ss:$16 sps:$4 sm:$0xff]  }
 0x6e1   :  { %5049 = vmatpush1.bf16.msra.mxu0 %v19316_v46 }
 0x6e2   :  { %5050 = vmatprep.subr.bf16.mxu0 %v19321_v47 }
 0x6e5   :  { %5051 = vmatpush1.bf16.msra.mxu0 %v19319_v48 }
 0x6e6   :  { %5052 = vmatprep.subr.bf16.mxu0 %v19324_v22 }
 0x6e9   :  { %5053 = vmatpush1.bf16.msra.mxu0 %v19322_v49 }
 0x6ea   :  { %5054 = vmatprep.subr.bf16.mxu0 %v19327_v50 }
 0x6ed   :  { %5055 = vmatpush1.bf16.msra.mxu0 %v19325_v51 }
 0x6ee   :  { %5056 = vmatprep.subr.bf16.mxu0 %v19330_v52 }
 0x6f1   :  { %5057 = vmatpush1.bf16.msra.mxu0 %v19328_v53 }
 0x6f2   :  { %5058 = vmatprep.subr.bf16.mxu0 %v19333_v54  ;;  %v19394_v54 = vld [vmem:[#allocation7 + $0x208] ss:$16 sps:$4 sm:$0xff]  }
 0x6f5   :  { %5059 = vmatpush1.bf16.msra.mxu0 %v19331_v55 }
 0x6f6   :  { %5060 = vmatprep.subr.bf16.mxu0 %v19336_v56  ;;  %v19399_v56 = vld [vmem:[#allocation7 + $0x22c] ss:$16 sps:$4 sm:$0xff]  }
 0x6f9   :  { %5061 = vmatpush1.bf16.msra.mxu0 %v19334_v57  ;;  %v19397_v57 = vld [vmem:[#allocation7 + $0x228] ss:$16 sps:$4 sm:$0xff]  }
 0x6fa   :  { %5062 = vmatprep.subr.bf16.mxu0 %v19339_v58  ;;  %v19402_v58 = vld [vmem:[#allocation7 + $0x24c] ss:$16 sps:$4 sm:$0xff]  }
 0x6fd   :  { %5063 = vmatpush1.bf16.msra.mxu0 %v19337_v59  ;;  %v19400_v59 = vld [vmem:[#allocation7 + $0x248] ss:$16 sps:$4 sm:$0xff]  }
 0x6fe   :  { %5064 = vmatprep.subr.bf16.mxu0 %v19342_v61  ;;  %v19403_v61 = vld [vmem:[#allocation7 + $0x268] ss:$16 sps:$4 sm:$0xff]  }
 0x701   :  { %5065 = vmatpush1.bf16.msra.mxu0 %v19340_v62  ;;  %v19408_v62 = vld [vmem:[#allocation7 + $0x28c] ss:$16 sps:$4 sm:$0xff]  }
 0x702   :  { %5066 = vmatprep.subr.bf16.mxu0 %v19345_v0  ;;  %v19411_v0 = vld [vmem:[#allocation7 + $0x2ac] ss:$16 sps:$4 sm:$0xff]  }
 0x705   :  { %5067 = vmatpush1.bf16.msra.mxu0 %v19343_v1  ;;  %v19409_v1 = vld [vmem:[#allocation7 + $0x2a8] ss:$16 sps:$4 sm:$0xff]  }
 0x706   :  { %6371 = vmatprep.subr.bf16.mxu0 %v19444_v9  ;;  %v19426_v9 = vld [vmem:[#allocation7 + $0x34c] ss:$16 sps:$4 sm:$0xff]  }
 0x708   :  { %5069 = vmatmul.mubr.bf16.vlgmr.msra.gmra.mrb[16].mxu0 %v4595_v2  ;;  %v19412_v2 = vld [vmem:[#allocation7 + $0x2c8] ss:$16 sps:$4 sm:$0xff]  }
 0x709   :  { %6372 = vmatpush1.bf16.msra.mxu0 %v19442_v8  ;;  %v19421_v8 = vld [vmem:[#allocation7 + $0x328] ss:$16 sps:$4 sm:$0xff]  }
 0x70a   :  { %6373 = vmatprep.subr.bf16.mxu0 %v19450_v10  ;;  %v19424_v10 = vld [vmem:[#allocation7 + $0x348] ss:$16 sps:$4 sm:$0xff]  }
 0x70d   :  { %6374 = vmatpush1.bf16.msra.mxu0 %v19448_v12  ;;  %v19429_v12 = vld [vmem:[#allocation7 + $0x36c] ss:$16 sps:$4 sm:$0xff]  }
 0x70e   :  { %6375 = vmatprep.subr.bf16.mxu0 %v19456_v18  ;;  %v19427_v18 = vld [vmem:[#allocation7 + $0x368] ss:$16 sps:$4 sm:$0xff]  }
 0x711   :  { %6376 = vmatpush1.bf16.msra.mxu0 %v19454_v19  ;;  %v19432_v19 = vld [vmem:[#allocation7 + $0x38c] ss:$16 sps:$4 sm:$0xff]  }
 0x712   :  { %6377 = vmatprep.subr.bf16.mxu0 %v19462_v20  ;;  %v19430_v20 = vld [vmem:[#allocation7 + $0x388] ss:$16 sps:$4 sm:$0xff]  }
 0x715   :  { %6378 = vmatpush1.bf16.msra.mxu0 %v19460_v21  ;;  %v19435_v21 = vld [vmem:[#allocation7 + $0x3ac] ss:$16 sps:$4 sm:$0xff]  }
 0x716   :  { %6379 = vmatprep.subr.bf16.mxu0 %v19468_v11  ;;  %v19433_v11 = vld [vmem:[#allocation7 + $0x3a8] ss:$16 sps:$4 sm:$0xff]  }
 0x719   :  { %6380 = vmatpush1.bf16.msra.mxu0 %v19466_v23  ;;  %v19438_v23 = vld [vmem:[#allocation7 + $0x3cc] ss:$16 sps:$4 sm:$0xff]  }
 0x71a   :  { %6381 = vmatprep.subr.bf16.mxu0 %v19474_v24  ;;  %v19436_v24 = vld [vmem:[#allocation7 + $0x3c8] ss:$16 sps:$4 sm:$0xff]  }
 0x71d   :  { %6382 = vmatpush1.bf16.msra.mxu0 %v19472_v25  ;;  %v19441_v25 = vld [vmem:[#allocation7 + $0x3ec] ss:$16 sps:$4 sm:$0xff]  }
 0x71e   :  { %6383 = vmatprep.subr.bf16.mxu0 %v19480_v26  ;;  %v19439_v26 = vld [vmem:[#allocation7 + $0x3e8] ss:$16 sps:$4 sm:$0xff]  }
 0x721   :  { %6384 = vmatpush1.bf16.msra.mxu0 %v19478_v27  ;;  %v19447_v27 = vld [vmem:[#allocation4 + $0x80c] ss:$16 sps:$4 sm:$0xff]  }
 0x722   :  { %6385 = vmatprep.subr.bf16.mxu0 %v19486_v28  ;;  %v19445_v28 = vld [vmem:[#allocation4 + $0x808] ss:$16 sps:$4 sm:$0xff]  }
 0x725   :  { %6386 = vmatpush1.bf16.msra.mxu0 %v19484_v29  ;;  %v19453_v29 = vld [vmem:[#allocation4 + $0x82c] ss:$16 sps:$4 sm:$0xff]  }
 0x726   :  { %6387 = vmatprep.subr.bf16.mxu0 %v19492_v30  ;;  %v19451_v30 = vld [vmem:[#allocation4 + $0x828] ss:$16 sps:$4 sm:$0xff]  }
 0x729   :  { %6388 = vmatpush1.bf16.msra.mxu0 %v19490_v32  ;;  %v19459_v32 = vld [vmem:[#allocation4 + $0x84c] ss:$16 sps:$4 sm:$0xff]  }
 0x72a   :  { %6389 = vmatprep.subr.bf16.mxu0 %v19498_v33  ;;  %v19457_v33 = vld [vmem:[#allocation4 + $0x848] ss:$16 sps:$4 sm:$0xff]  }
 0x72d   :  { %6390 = vmatpush1.bf16.msra.mxu0 %v19496_v34  ;;  %v19465_v34 = vld [vmem:[#allocation4 + $0x86c] ss:$16 sps:$4 sm:$0xff]  }
 0x72e   :  { %6391 = vmatprep.subr.bf16.mxu0 %v19504_v35  ;;  %v19463_v35 = vld [vmem:[#allocation4 + $0x868] ss:$16 sps:$4 sm:$0xff]  }
 0x731   :  { %6392 = vmatpush1.bf16.msra.mxu0 %v19502_v36  ;;  %v19471_v36 = vld [vmem:[#allocation4 + $0x88c] ss:$16 sps:$4 sm:$0xff]  }
 0x732   :  { %6393 = vmatprep.subr.bf16.mxu0 %v19510_v37  ;;  %v19469_v37 = vld [vmem:[#allocation4 + $0x888] ss:$16 sps:$4 sm:$0xff]  }
 0x735   :  { %6394 = vmatpush1.bf16.msra.mxu0 %v19508_v38  ;;  %v19477_v38 = vld [vmem:[#allocation4 + $0x8ac] ss:$16 sps:$4 sm:$0xff]  }
 0x736   :  { %6395 = vmatprep.subr.bf16.mxu0 %v19516_v39  ;;  %v19475_v39 = vld [vmem:[#allocation4 + $0x8a8] ss:$16 sps:$4 sm:$0xff]  }
 0x739   :  { %6396 = vmatpush1.bf16.msra.mxu0 %v19514_v40  ;;  %v19483_v40 = vld [vmem:[#allocation4 + $0x8cc] ss:$16 sps:$4 sm:$0xff]  }
 0x73a   :  { %6397 = vmatprep.subr.bf16.mxu0 %v19522_v43  ;;  %v19526_v43 = vld [vmem:[#allocation4 + $0x9c0] ss:$16 sps:$4 sm:$0xff]  }
 0x73d   :  { %6398 = vmatpush1.bf16.msra.mxu0 %v19520_v44  ;;  %v19481_v44 = vld [vmem:[#allocation4 + $0x8c8] ss:$16 sps:$4 sm:$0xff]  }
 0x73e   :  { %6399 = vmatprep.subr.bf16.mxu0 %v19528_v41  ;;  %v19571_v41 = vld [vmem:[#allocation4 + $0xaa8] ss:$16 sps:$4 sm:$0xff]  }
 0x741   :  { %6400 = vmatpush1.bf16.msra.mxu0 %v19526_v43  ;;  %v19576_v43 = vld [vmem:[#allocation4 + $0xac4] ss:$16 sps:$4 sm:$0xff]  }
 0x7db   :  { %v5070_v46 = vpop.f32.mrb[16].mxu0 }
 0x7dc   :  { %v18265_v47 = vadd.f32 %v5070_v46, %v4668_v45  ;;  %v5072_v48 = vpop.f32.mrb[17].mxu0  ;;  %v19489_v45 = vld [vmem:[#allocation4 + $0x8ec] ss:$16 sps:$4 sm:$0xff]   ;;  %v19532_v46 = vld [vmem:[#allocation4 + $0x9e0] ss:$16 sps:$4 sm:$0xff]  }
 0x7dd   :  { %v18266_v22 = vadd.f32 %v5072_v48, %v4672_v15  ;;  %v5074_v49 = vpop.f32.mrb[18].mxu0  ;;  %v19534_v15 = vld [vmem:[#allocation4 + $0x9e4] ss:$16 sps:$4 sm:$0xff]   ;;  %v19495_v48 = vld [vmem:[#allocation4 + $0x90c] ss:$16 sps:$4 sm:$0xff]  }
 0x7de   :  { %v5077_v50 = vmax.f32 %v18265_v47, 0.0  ;;  %v5075_v51 = vpop.f32.mrb[19].mxu0  ;;  %6401 = vmatprep.subr.bf16.mxu0 %v19534_v15  ;;  %v19487_v47 = vld [vmem:[#allocation4 + $0x8e8] ss:$16 sps:$4 sm:$0xff]  }
 0x7df   :  { %v5078_v52 = vmax.f32 %v18266_v22, 0.0  ;;  %6402 = vmatpush1.bf16.msra.mxu0 %v19532_v46  ;;  %v19540_v22 = vld [vmem:[#allocation4 + $0xa04] ss:$16 sps:$4 sm:$0xff]   ;;  %v19493_v49 = vld [vmem:[#allocation4 + $0x908] ss:$16 sps:$4 sm:$0xff]  }
 0x7e0   :  { %v21656_v55 = vpack.c.bf16 %v5077_v50, %v5077_v50  ;;  %6412 = vmatprep.subr.bf16.mxu0 %v19540_v22  ;;  %v19501_v50 = vld [vmem:[#allocation4 + $0x92c] ss:$16 sps:$4 sm:$0xff]   ;;  %v19499_v51 = vld [vmem:[#allocation4 + $0x928] ss:$16 sps:$4 sm:$0xff]   ;;  %v19582_v46 = vld [vmem:[#allocation4 + $0xae4] ss:$16 sps:$4 sm:$0xff]  }
 0x7e1   :  { %v5080_v53 = vpack.c.bf16 %v5078_v52, %v5078_v52  ;;  %v19507_v52 = vld [vmem:[#allocation4 + $0x94c] ss:$16 sps:$4 sm:$0xff]   ;;  %v19577_v15 = vld [vmem:[#allocation4 + $0xac8] ss:$16 sps:$4 sm:$0xff]  }
 0x7e2   :  { %v19583_v22 = vld [vmem:[#allocation4 + $0xae8] ss:$16 sps:$4 sm:$0xff]  }
 0x7e3   :  { %5521 = vmatprep.mubr.bf16.mxu1 %v5080_v53 }
 0x7e4   :  { %5522 = vmatmul.mubr.bf16.vlgmr.msra.gmra.mrb[20].mxu1 %v21656_v55 }
 0x7e5   :  { %5531 = vmatpush1.bf16.msra.mxu1 %v19394_v54  ;;  %5562 = vmatprep.mubr.bf16.mxu1 %v5080_v53  ;;  %v19505_v53 = vld [vmem:[#allocation4 + $0x948] ss:$16 sps:$4 sm:$0xff]   ;;  %v19513_v54 = vld [vmem:[#allocation4 + $0x96c] ss:$16 sps:$4 sm:$0xff]  }
 0x7e6   :  { %5532 = vmatprep.subr.bf16.mxu1 %v19399_v56  ;;  %v19519_v56 = vld [vmem:[#allocation4 + $0x98c] ss:$16 sps:$4 sm:$0xff]  }
 0x7e9   :  { %5533 = vmatpush1.bf16.msra.mxu1 %v19397_v57  ;;  %v19517_v57 = vld [vmem:[#allocation4 + $0x988] ss:$16 sps:$4 sm:$0xff]  }
 0x7ea   :  { %5534 = vmatprep.subr.bf16.mxu1 %v19402_v58  ;;  %v19525_v58 = vld [vmem:[#allocation4 + $0x9ac] ss:$16 sps:$4 sm:$0xff]  }
 0x7ed   :  { %5535 = vmatpush1.bf16.msra.mxu1 %v19400_v59  ;;  %v19523_v59 = vld [vmem:[#allocation4 + $0x9a8] ss:$16 sps:$4 sm:$0xff]  }
 0x7ee   :  { %5536 = vmatprep.subr.bf16.mxu1 %v19405_v60  ;;  %v19531_v60 = vld [vmem:[#allocation4 + $0x9cc] ss:$16 sps:$4 sm:$0xff]  }
 0x7f1   :  { %5537 = vmatpush1.bf16.msra.mxu1 %v19403_v61  ;;  %v19529_v61 = vld [vmem:[#allocation4 + $0x9c8] ss:$16 sps:$4 sm:$0xff]  }
 0x7f2   :  { %5538 = vmatprep.subr.bf16.mxu1 %v19408_v62  ;;  %v19537_v62 = vld [vmem:[#allocation4 + $0x9ec] ss:$16 sps:$4 sm:$0xff]  }
 0x7f5   :  { %5539 = vmatpush1.bf16.msra.mxu1 %v19406_v63  ;;  %v19535_v63 = vld [vmem:[#allocation4 + $0x9e8] ss:$16 sps:$4 sm:$0xff]  }
 0x7f6   :  { %5540 = vmatprep.subr.bf16.mxu1 %v19411_v0  ;;  %v19543_v0 = vld [vmem:[#allocation4 + $0xa0c] ss:$16 sps:$4 sm:$0xff]  }
 0x7f9   :  { %5541 = vmatpush1.bf16.msra.mxu1 %v19409_v1  ;;  %v21660_v1 = vld [vmem:[#allocation18 + $0x4] ss:$8 sm:$0xf] }
 0x7fa   :  { %5542 = vmatprep.subr.bf16.mxu1 %v19414_v42  ;;  %v5152_v42 = vrot.slane %v21660_v1, %v21597_v14 }
 0x7fd   :  { %5543 = vmatpush1.bf16.msra.mxu1 %v19412_v2  ;;  %v5156_v2 = vrot.slane %v21660_v1, %v21602_v16 }
 0x7fe   :  { %5544 = vmatprep.subr.bf16.mxu1 %v19417_v3 }
 0x801   :  { %5545 = vmatpush1.bf16.msra.mxu1 %v19415_v4 }
 0x802   :  { %5546 = vmatprep.subr.bf16.mxu1 %v19420_v5 }
 0x805   :  { %5547 = vmatpush1.bf16.msra.mxu1 %v19418_v6 }
 0x806   :  { %5548 = vmatprep.subr.bf16.mxu1 %v19423_v7 }
 0x809   :  { %5549 = vmatpush1.bf16.msra.mxu1 %v19421_v8 }
 0x80a   :  { %5550 = vmatprep.subr.bf16.mxu1 %v19426_v9 }
 0x80d   :  { %5551 = vmatpush1.bf16.msra.mxu1 %v19424_v10 }
 0x80e   :  { %5552 = vmatprep.subr.bf16.mxu1 %v19429_v12 }
 0x811   :  { %5553 = vmatpush1.bf16.msra.mxu1 %v19427_v18  ;;  %v19538_v18 = vld [vmem:[#allocation4 + $0xa00] ss:$16 sps:$4 sm:$0xff]  }
 0x812   :  { %5554 = vmatprep.subr.bf16.mxu1 %v19432_v19  ;;  %v19541_v19 = vld [vmem:[#allocation4 + $0xa08] ss:$16 sps:$4 sm:$0xff]  }
 0x815   :  { %5555 = vmatpush1.bf16.msra.mxu1 %v19430_v20 }
 0x816   :  { %5556 = vmatprep.subr.bf16.mxu1 %v19435_v21  ;;  %v19546_v21 = vld [vmem:[#allocation4 + $0xa24] ss:$16 sps:$4 sm:$0xff]  }
 0x819   :  { %5557 = vmatpush1.bf16.msra.mxu1 %v19433_v11  ;;  %v19549_v11 = vld [vmem:[#allocation4 + $0xa2c] ss:$16 sps:$4 sm:$0xff]  }
 0x81a   :  { %5558 = vmatprep.subr.bf16.mxu1 %v19438_v23  ;;  %v19544_v23 = vld [vmem:[#allocation4 + $0xa20] ss:$16 sps:$4 sm:$0xff]  }
 0x81d   :  { %5559 = vmatpush1.bf16.msra.mxu1 %v19436_v24  ;;  %v19547_v24 = vld [vmem:[#allocation4 + $0xa28] ss:$16 sps:$4 sm:$0xff]  }
 0x81e   :  { %5560 = vmatprep.subr.bf16.mxu1 %v19441_v25  ;;  %v19552_v25 = vld [vmem:[#allocation4 + $0xa44] ss:$16 sps:$4 sm:$0xff]  }
 0x821   :  { %5561 = vmatpush1.bf16.msra.mxu1 %v19439_v26  ;;  %v19555_v26 = vld [vmem:[#allocation4 + $0xa4c] ss:$16 sps:$4 sm:$0xff]  }
 0x822   :  { %6453 = vmatprep.subr.bf16.mxu1 %v19447_v27  ;;  %v19550_v27 = vld [vmem:[#allocation4 + $0xa40] ss:$16 sps:$4 sm:$0xff]  }
 0x824   :  { %5563 = vmatmul.mubr.bf16.vlgmr.msra.gmra.mrb[24].mxu1 %v21656_v55  ;;  %v19511_v55 = vld [vmem:[#allocation4 + $0x968] ss:$16 sps:$4 sm:$0xff]  }
 0x825   :  { %6454 = vmatpush1.bf16.msra.mxu1 %v19445_v28  ;;  %v19553_v28 = vld [vmem:[#allocation4 + $0xa48] ss:$16 sps:$4 sm:$0xff]  }
 0x826   :  { %6455 = vmatprep.subr.bf16.mxu1 %v19453_v29  ;;  %v19558_v29 = vld [vmem:[#allocation4 + $0xa64] ss:$16 sps:$4 sm:$0xff]  }
 0x829   :  { %6456 = vmatpush1.bf16.msra.mxu1 %v19451_v30  ;;  %v19561_v30 = vld [vmem:[#allocation4 + $0xa6c] ss:$16 sps:$4 sm:$0xff]  }
 0x82a   :  { %6457 = vmatprep.subr.bf16.mxu1 %v19459_v32  ;;  %v19556_v32 = vld [vmem:[#allocation4 + $0xa60] ss:$16 sps:$4 sm:$0xff]  }
 0x82d   :  { %6458 = vmatpush1.bf16.msra.mxu1 %v19457_v33  ;;  %v19559_v33 = vld [vmem:[#allocation4 + $0xa68] ss:$16 sps:$4 sm:$0xff]  }
 0x82e   :  { %6459 = vmatprep.subr.bf16.mxu1 %v19465_v34  ;;  %v19564_v34 = vld [vmem:[#allocation4 + $0xa84] ss:$16 sps:$4 sm:$0xff]  }
 0x831   :  { %6460 = vmatpush1.bf16.msra.mxu1 %v19463_v35  ;;  %v19567_v35 = vld [vmem:[#allocation4 + $0xa8c] ss:$16 sps:$4 sm:$0xff]  }
 0x832   :  { %6461 = vmatprep.subr.bf16.mxu1 %v19471_v36  ;;  %v19562_v36 = vld [vmem:[#allocation4 + $0xa80] ss:$16 sps:$4 sm:$0xff]  }
 0x835   :  { %6462 = vmatpush1.bf16.msra.mxu1 %v19469_v37  ;;  %v19565_v37 = vld [vmem:[#allocation4 + $0xa88] ss:$16 sps:$4 sm:$0xff]  }
 0x836   :  { %6463 = vmatprep.subr.bf16.mxu1 %v19477_v38  ;;  %v19570_v38 = vld [vmem:[#allocation4 + $0xaa4] ss:$16 sps:$4 sm:$0xff]  }
 0x839   :  { %6464 = vmatpush1.bf16.msra.mxu1 %v19475_v39  ;;  %v19573_v39 = vld [vmem:[#allocation4 + $0xaac] ss:$16 sps:$4 sm:$0xff]  }
 0x83a   :  { %6465 = vmatprep.subr.bf16.mxu1 %v19483_v40  ;;  %v19568_v40 = vld [vmem:[#allocation4 + $0xaa0] ss:$16 sps:$4 sm:$0xff]  }
 0x83d   :  { %6466 = vmatpush1.bf16.msra.mxu1 %v19481_v44  ;;  %v19579_v44 = vld [vmem:[#allocation4 + $0xacc] ss:$16 sps:$4 sm:$0xff]  }
 0x83e   :  { %6467 = vmatprep.subr.bf16.mxu1 %v19489_v45  ;;  %v19574_v45 = vld [vmem:[#allocation4 + $0xac0] ss:$16 sps:$4 sm:$0xff]  }
 0x841   :  { %6468 = vmatpush1.bf16.msra.mxu1 %v19487_v47  ;;  %v19585_v47 = vld [vmem:[#allocation4 + $0xaec] ss:$16 sps:$4 sm:$0xff]  }
 0x842   :  { %6469 = vmatprep.subr.bf16.mxu1 %v19495_v48  ;;  %v19580_v48 = vld [vmem:[#allocation4 + $0xae0] ss:$16 sps:$4 sm:$0xff]  }
 0x845   :  { %6470 = vmatpush1.bf16.msra.mxu1 %v19493_v49  ;;  %v19588_v49 = vld [vmem:[#allocation4 + $0xb04] ss:$16 sps:$4 sm:$0xff]  }
 0x846   :  { %6471 = vmatprep.subr.bf16.mxu1 %v19501_v50  ;;  %v19591_v50 = vld [vmem:[#allocation4 + $0xb0c] ss:$16 sps:$4 sm:$0xff]  }
 0x849   :  { %6472 = vmatpush1.bf16.msra.mxu1 %v19499_v51  ;;  %v19586_v51 = vld [vmem:[#allocation4 + $0xb00] ss:$16 sps:$4 sm:$0xff]  }
 0x84a   :  { %6473 = vmatprep.subr.bf16.mxu1 %v19507_v52  ;;  %v19589_v52 = vld [vmem:[#allocation4 + $0xb08] ss:$16 sps:$4 sm:$0xff]  }
 0x84d   :  { %6474 = vmatpush1.bf16.msra.mxu1 %v19505_v53  ;;  %v19594_v53 = vld [vmem:[#allocation4 + $0xb24] ss:$16 sps:$4 sm:$0xff]  }
 0x84e   :  { %6475 = vmatprep.subr.bf16.mxu1 %v19513_v54  ;;  %v19597_v54 = vld [vmem:[#allocation4 + $0xb2c] ss:$16 sps:$4 sm:$0xff]  }
 0x851   :  { %6476 = vmatpush1.bf16.msra.mxu1 %v19511_v55  ;;  %v19592_v55 = vld [vmem:[#allocation4 + $0xb20] ss:$16 sps:$4 sm:$0xff]  }
 0x852   :  { %6477 = vmatprep.subr.bf16.mxu1 %v19519_v56  ;;  %v19595_v56 = vld [vmem:[#allocation4 + $0xb28] ss:$16 sps:$4 sm:$0xff]  }
 0x855   :  { %6478 = vmatpush1.bf16.msra.mxu1 %v19517_v57  ;;  %v19600_v57 = vld [vmem:[#allocation4 + $0xb44] ss:$16 sps:$4 sm:$0xff]  }
 0x856   :  { %6479 = vmatprep.subr.bf16.mxu1 %v19525_v58  ;;  %v19603_v58 = vld [vmem:[#allocation4 + $0xb4c] ss:$16 sps:$4 sm:$0xff]  }
 0x859   :  { %6480 = vmatpush1.bf16.msra.mxu1 %v19523_v59  ;;  %v19598_v59 = vld [vmem:[#allocation4 + $0xb40] ss:$16 sps:$4 sm:$0xff]  }
 0x85a   :  { %6481 = vmatprep.subr.bf16.mxu1 %v19531_v60  ;;  %v19601_v60 = vld [vmem:[#allocation4 + $0xb48] ss:$16 sps:$4 sm:$0xff]  }
 0x85d   :  { %6482 = vmatpush1.bf16.msra.mxu1 %v19529_v61  ;;  %v19606_v61 = vld [vmem:[#allocation4 + $0xb64] ss:$16 sps:$4 sm:$0xff]  }
 0x85e   :  { %6483 = vmatprep.subr.bf16.mxu1 %v19537_v62  ;;  %v19609_v62 = vld [vmem:[#allocation4 + $0xb6c] ss:$16 sps:$4 sm:$0xff]  }
 0x861   :  { %6484 = vmatpush1.bf16.msra.mxu1 %v19535_v63  ;;  %v19604_v63 = vld [vmem:[#allocation4 + $0xb60] ss:$16 sps:$4 sm:$0xff]  }
 0x862   :  { %6494 = vmatprep.subr.bf16.mxu1 %v19543_v0  ;;  %v19607_v0 = vld [vmem:[#allocation4 + $0xb68] ss:$16 sps:$4 sm:$0xff]  }
 0x8b7   :  { %v5523_v3 = vpop.f32.mrb[20].mxu1 }
 0x8b8   :  { %v5524_v4 = vadd.f32 %v5523_v3, %v5152_v42  ;;  %v5525_v5 = vpop.f32.mrb[21].mxu1  ;;  %v19612_v42 = vld [vmem:[#allocation4 + $0xb84] ss:$16 sps:$4 sm:$0xff]   ;;  %v19610_v3 = vld [vmem:[#allocation4 + $0xb80] ss:$16 sps:$4 sm:$0xff]  }
 0x8b9   :  { %v5526_v6 = vadd.f32 %v5525_v5, %v5156_v2  ;;  %v5527_v7 = vpop.f32.mrb[22].mxu1  ;;  %v19615_v2 = vld [vmem:[#allocation4 + $0xb8c] ss:$16 sps:$4 sm:$0xff]   ;;  %v19618_v5 = vld [vmem:[#allocation4 + $0xba4] ss:$16 sps:$4 sm:$0xff]  }
 0x8ba   :  { %v5571_v8 = vmax.f32 %v5524_v4, 0.0  ;;  %v5528_v9 = vpop.f32.mrb[23].mxu1  ;;  %v19613_v4 = vld [vmem:[#allocation4 + $0xb88] ss:$16 sps:$4 sm:$0xff]   ;;  %v19616_v7 = vld [vmem:[#allocation4 + $0xba0] ss:$16 sps:$4 sm:$0xff]  }
 0x8bb   :  { %v5572_v10 = vmax.f32 %v5526_v6, 0.0  ;;  %v19621_v6 = vld [vmem:[#allocation4 + $0xbac] ss:$16 sps:$4 sm:$0xff]   ;;  %v19624_v9 = vld [vmem:[#allocation4 + $0xbc4] ss:$16 sps:$4 sm:$0xff]  }
 0x8bc   :  { %v5575_v20 = vpack.c.bf16 %v5571_v8, %v5571_v8  ;;  %v19619_v8 = vld [vmem:[#allocation4 + $0xba8] ss:$16 sps:$4 sm:$0xff]  }
 0x8bd   :  { %v5576_v12 = vpack.c.bf16 %v5572_v10, %v5572_v10  ;;  %v19627_v10 = vld [vmem:[#allocation4 + $0xbcc] ss:$16 sps:$4 sm:$0xff]  }
 0x8bf   :  { %6403 = vmatprep.mubr.bf16.mxu0 %v5576_v12  ;;  %6485 = vmatprep.mubr.bf16.mxu1 %v5576_v12  ;;  %v5160_v12 = vrot.slane %v21660_v1, %v21616_v31 }
 0x8c0   :  { %6404 = vmatmul.mubr.bf16.vlgmr.msra.gmra.mrb[20].mxu0 %v5575_v20  ;;  %6486 = vmatmul.mubr.bf16.vlgmr.msra.gmra.mrb[28].mxu1 %v5575_v20  ;;  %v19625_v20 = vld [vmem:[#allocation4 + $0xbc8] ss:$16 sps:$4 sm:$0xff]  }
 0x8c1   :  { %6413 = vmatpush1.bf16.msra.mxu0 %v19538_v18  ;;  %6495 = vmatpush1.bf16.msra.mxu1 %v19541_v19  ;;  %v5164_v18 = vrot.slane %v21660_v1, %v21605_v17  ;;  %v19622_v19 = vld [vmem:[#allocation4 + $0xbc0] ss:$16 sps:$4 sm:$0xff]   ;;  %v19636_v1 = vld [vmem:[#allocation6 + $0x404] ss:$8 sps:$4 sm:$0xff]  }
 0x8c2   :  { %6414 = vmatprep.subr.bf16.mxu0 %v19546_v21  ;;  %6496 = vmatprep.subr.bf16.mxu1 %v19549_v11  ;;  %v19630_v21 = vld [vmem:[#allocation4 + $0xbe4] ss:$16 sps:$4 sm:$0xff]   ;;  %v19633_v11 = vld [vmem:[#allocation4 + $0xbec] ss:$16 sps:$4 sm:$0xff]  }
 0x8c5   :  { %6415 = vmatpush1.bf16.msra.mxu0 %v19544_v23  ;;  %6497 = vmatpush1.bf16.msra.mxu1 %v19547_v24 }
 0x8c6   :  { %6416 = vmatprep.subr.bf16.mxu0 %v19552_v25  ;;  %6498 = vmatprep.subr.bf16.mxu1 %v19555_v26 }
 0x8c9   :  { %6417 = vmatpush1.bf16.msra.mxu0 %v19550_v27  ;;  %6499 = vmatpush1.bf16.msra.mxu1 %v19553_v28  ;;  %v19628_v28 = vld [vmem:[#allocation4 + $0xbe0] ss:$16 sps:$4 sm:$0xff]  }
 0x8ca   :  { %6418 = vmatprep.subr.bf16.mxu0 %v19558_v29  ;;  %6500 = vmatprep.subr.bf16.mxu1 %v19561_v30  ;;  %v19631_v29 = vld [vmem:[#allocation4 + $0xbe8] ss:$16 sps:$4 sm:$0xff]  }
 0x8cd   :  { %6419 = vmatpush1.bf16.msra.mxu0 %v19556_v32  ;;  %6501 = vmatpush1.bf16.msra.mxu1 %v19559_v33 }
 0x8ce   :  { %6420 = vmatprep.subr.bf16.mxu0 %v19564_v34  ;;  %6502 = vmatprep.subr.bf16.mxu1 %v19567_v35  ;;  %v19634_v35 = vld [vmem:[#allocation6 + $0x400] ss:$8 sps:$4 sm:$0xff]  }
 0x8d1   :  { %6421 = vmatpush1.bf16.msra.mxu0 %v19562_v36  ;;  %6503 = vmatpush1.bf16.msra.mxu1 %v19565_v37  ;;  %v19639_v37 = vld [vmem:[#allocation6 + $0x414] ss:$8 sps:$4 sm:$0xff]  }
 0x8d2   :  { %6422 = vmatprep.subr.bf16.mxu0 %v19570_v38  ;;  %6504 = vmatprep.subr.bf16.mxu1 %v19573_v39  ;;  %v19637_v38 = vld [vmem:[#allocation6 + $0x410] ss:$8 sps:$4 sm:$0xff]   ;;  %v19642_v39 = vld [vmem:[#allocation6 + $0x424] ss:$8 sps:$4 sm:$0xff]  }
 0x8d5   :  { %6423 = vmatpush1.bf16.msra.mxu0 %v19568_v40  ;;  %6505 = vmatpush1.bf16.msra.mxu1 %v19571_v41  ;;  %v19640_v40 = vld [vmem:[#allocation6 + $0x420] ss:$8 sps:$4 sm:$0xff]   ;;  %v19645_v41 = vld [vmem:[#allocation6 + $0x434] ss:$8 sps:$4 sm:$0xff]  }
 0x8d6   :  { %6424 = vmatprep.subr.bf16.mxu0 %v19576_v43  ;;  %6506 = vmatprep.subr.bf16.mxu1 %v19579_v44  ;;  %v19643_v43 = vld [vmem:[#allocation6 + $0x430] ss:$8 sps:$4 sm:$0xff]   ;;  %v19648_v44 = vld [vmem:[#allocation6 + $0x444] ss:$8 sps:$4 sm:$0xff]  }
 0x8d9   :  { %6425 = vmatpush1.bf16.msra.mxu0 %v19574_v45  ;;  %6507 = vmatpush1.bf16.msra.mxu1 %v19577_v15  ;;  %v19646_v45 = vld [vmem:[#allocation6 + $0x440] ss:$8 sps:$4 sm:$0xff]   ;;  %v19651_v15 = vld [vmem:[#allocation6 + $0x454] ss:$8 sps:$4 sm:$0xff]  }
 0x8da   :  { %6426 = vmatprep.subr.bf16.mxu0 %v19582_v46  ;;  %6508 = vmatprep.subr.bf16.mxu1 %v19585_v47  ;;  %v19649_v46 = vld [vmem:[#allocation6 + $0x450] ss:$8 sps:$4 sm:$0xff]   ;;  %v19654_v47 = vld [vmem:[#allocation6 + $0x464] ss:$8 sps:$4 sm:$0xff]  }
 0x8dd   :  { %6427 = vmatpush1.bf16.msra.mxu0 %v19580_v48  ;;  %6509 = vmatpush1.bf16.msra.mxu1 %v19583_v22  ;;  %v19652_v48 = vld [vmem:[#allocation6 + $0x460] ss:$8 sps:$4 sm:$0xff]   ;;  %v19657_v22 = vld [vmem:[#allocation6 + $0x474] ss:$8 sps:$4 sm:$0xff]  }
 0x8de   :  { %6428 = vmatprep.subr.bf16.mxu0 %v19588_v49  ;;  %6510 = vmatprep.subr.bf16.mxu1 %v19591_v50  ;;  %v19655_v49 = vld [vmem:[#allocation6 + $0x470] ss:$8 sps:$4 sm:$0xff]   ;;  %v19660_v50 = vld [vmem:[#allocation6 + $0x484] ss:$8 sps:$4 sm:$0xff]  }
 0x8e1   :  { %6429 = vmatpush1.bf16.msra.mxu0 %v19586_v51  ;;  %6511 = vmatpush1.bf16.msra.mxu1 %v19589_v52  ;;  %v19658_v51 = vld [vmem:[#allocation6 + $0x480] ss:$8 sps:$4 sm:$0xff]   ;;  %v19663_v52 = vld [vmem:[#allocation6 + $0x494] ss:$8 sps:$4 sm:$0xff]  }
 0x8e2   :  { %6430 = vmatprep.subr.bf16.mxu0 %v19594_v53  ;;  %6512 = vmatprep.subr.bf16.mxu1 %v19597_v54  ;;  %v19661_v53 = vld [vmem:[#allocation6 + $0x490] ss:$8 sps:$4 sm:$0xff]   ;;  %v19666_v54 = vld [vmem:[#allocation6 + $0x4a4] ss:$8 sps:$4 sm:$0xff]  }
 0x8e5   :  { %6431 = vmatpush1.bf16.msra.mxu0 %v19592_v55  ;;  %6513 = vmatpush1.bf16.msra.mxu1 %v19595_v56  ;;  %v19664_v55 = vld [vmem:[#allocation6 + $0x4a0] ss:$8 sps:$4 sm:$0xff]   ;;  %v19669_v56 = vld [vmem:[#allocation6 + $0x4b4] ss:$8 sps:$4 sm:$0xff]  }
 0x8e6   :  { %6432 = vmatprep.subr.bf16.mxu0 %v19600_v57  ;;  %6514 = vmatprep.subr.bf16.mxu1 %v19603_v58  ;;  %v19667_v57 = vld [vmem:[#allocation6 + $0x4b0] ss:$8 sps:$4 sm:$0xff]   ;;  %v19672_v58 = vld [vmem:[#allocation6 + $0x4c4] ss:$8 sps:$4 sm:$0xff]  }
 0x8e9   :  { %6433 = vmatpush1.bf16.msra.mxu0 %v19598_v59  ;;  %6515 = vmatpush1.bf16.msra.mxu1 %v19601_v60  ;;  %v19670_v59 = vld [vmem:[#allocation6 + $0x4c0] ss:$8 sps:$4 sm:$0xff]   ;;  %v19675_v60 = vld [vmem:[#allocation6 + $0x4d4] ss:$8 sps:$4 sm:$0xff]  }
 0x8ea   :  { %6434 = vmatprep.subr.bf16.mxu0 %v19606_v61  ;;  %6516 = vmatprep.subr.bf16.mxu1 %v19609_v62  ;;  %v19673_v61 = vld [vmem:[#allocation6 + $0x4d0] ss:$8 sps:$4 sm:$0xff]   ;;  %v19678_v62 = vld [vmem:[#allocation6 + $0x4e4] ss:$8 sps:$4 sm:$0xff]  }
 0x8ed   :  { %6435 = vmatpush1.bf16.msra.mxu0 %v19604_v63  ;;  %6517 = vmatpush1.bf16.msra.mxu1 %v19607_v0  ;;  %v19676_v63 = vld [vmem:[#allocation6 + $0x4e0] ss:$8 sps:$4 sm:$0xff]   ;;  %v19681_v0 = vld [vmem:[#allocation6 + $0x4f4] ss:$8 sps:$4 sm:$0xff]  }
 0x8ee   :  { %6436 = vmatprep.subr.bf16.mxu0 %v19612_v42  ;;  %6518 = vmatprep.subr.bf16.mxu1 %v19615_v2  ;;  %v19679_v42 = vld [vmem:[#allocation6 + $0x4f0] ss:$8 sps:$4 sm:$0xff]   ;;  %v19684_v2 = vld [vmem:[#allocation6 + $0x504] ss:$8 sps:$4 sm:$0xff]  }
 0x8f1   :  { %6437 = vmatpush1.bf16.msra.mxu0 %v19610_v3  ;;  %6519 = vmatpush1.bf16.msra.mxu1 %v19613_v4  ;;  %v19730_v3 = vld [vmem:[#allocation7 + $0x400] ss:$16 sps:$4 sm:$0xff]   ;;  %v19732_v4 = vld [vmem:[#allocation7 + $0x404] ss:$16 sps:$4 sm:$0xff]  }
 0x8f2   :  { %6438 = vmatprep.subr.bf16.mxu0 %v19618_v5  ;;  %6520 = vmatprep.subr.bf16.mxu1 %v19621_v6  ;;  %v19735_v5 = vld [vmem:[#allocation7 + $0x424] ss:$16 sps:$4 sm:$0xff]   ;;  %v19733_v6 = vld [vmem:[#allocation7 + $0x420] ss:$16 sps:$4 sm:$0xff]  }
 0x8f5   :  { %6439 = vmatpush1.bf16.msra.mxu0 %v19616_v7  ;;  %6521 = vmatpush1.bf16.msra.mxu1 %v19619_v8  ;;  %v19738_v7 = vld [vmem:[#allocation7 + $0x444] ss:$16 sps:$4 sm:$0xff]   ;;  %v19736_v8 = vld [vmem:[#allocation7 + $0x440] ss:$16 sps:$4 sm:$0xff]  }
 0x8f6   :  { %6440 = vmatprep.subr.bf16.mxu0 %v19624_v9  ;;  %6522 = vmatprep.subr.bf16.mxu1 %v19627_v10  ;;  %v19741_v9 = vld [vmem:[#allocation7 + $0x464] ss:$16 sps:$4 sm:$0xff]   ;;  %v19739_v10 = vld [vmem:[#allocation7 + $0x460] ss:$16 sps:$4 sm:$0xff]  }
 0x8f7   :  { %v5564_v23 = vpop.f32.mrb[24].mxu1 }
 0x8f8   :  { %v5565_v24 = vadd.f32 %v5564_v23, %v5160_v12  ;;  %v5566_v25 = vpop.f32.mrb[25].mxu1  ;;  %v19744_v12 = vld [vmem:[#allocation7 + $0x484] ss:$16 sps:$4 sm:$0xff]  }
 0x8f9   :  { %v5567_v26 = vadd.f32 %v5566_v25, %v5164_v18  ;;  %v5568_v27 = vpop.f32.mrb[26].mxu1  ;;  %6441 = vmatpush1.bf16.msra.mxu0 %v19622_v19  ;;  %6523 = vmatpush1.bf16.msra.mxu1 %v19625_v20  ;;  %v19742_v18 = vld [vmem:[#allocation7 + $0x480] ss:$16 sps:$4 sm:$0xff]   ;;  %v19747_v19 = vld [vmem:[#allocation7 + $0x4a4] ss:$16 sps:$4 sm:$0xff]  }
 0x8fa   :  { %v5573_v30 = vmax.f32 %v5565_v24, 0.0  ;;  %v5569_v32 = vpop.f32.mrb[27].mxu1  ;;  %6442 = vmatprep.subr.bf16.mxu0 %v19630_v21  ;;  %6524 = vmatprep.subr.bf16.mxu1 %v19633_v11  ;;  %v19745_v20 = vld [vmem:[#allocation7 + $0x4a0] ss:$16 sps:$4 sm:$0xff]   ;;  %v19750_v21 = vld [vmem:[#allocation7 + $0x4c4] ss:$16 sps:$4 sm:$0xff]  }
 0x8fb   :  { %v5574_v33 = vmax.f32 %v5567_v26, 0.0  ;;  %v19748_v11 = vld [vmem:[#allocation7 + $0x4c0] ss:$16 sps:$4 sm:$0xff]   ;;  %v19753_v23 = vld [vmem:[#allocation7 + $0x4e4] ss:$16 sps:$4 sm:$0xff]  }
 0x8fc   :  { %v5577_v36 = vpack.c.bf16 %v5573_v30, %v5573_v30  ;;  %v19751_v24 = vld [vmem:[#allocation7 + $0x4e0] ss:$16 sps:$4 sm:$0xff]   ;;  %v19756_v25 = vld [vmem:[#allocation7 + $0x504] ss:$16 sps:$4 sm:$0xff]  }
 0x8fd   :  { %v5578_v34 = vpack.c.bf16 %v5574_v33, %v5574_v33  ;;  %6443 = vmatpush1.bf16.msra.mxu0 %v19628_v28  ;;  %6525 = vmatpush1.bf16.msra.mxu1 %v19631_v29  ;;  %v19754_v26 = vld [vmem:[#allocation7 + $0x500] ss:$16 sps:$4 sm:$0xff]   ;;  %v19759_v27 = vld [vmem:[#allocation7 + $0x524] ss:$16 sps:$4 sm:$0xff]  }
 0x8fe   :  { %6941 = vmatprep.subr.bf16.mxu0 %v19636_v1  ;;  %7435 = vmatprep.subr.bf16.mxu1 %v19732_v4  ;;  %v19757_v28 = vld [vmem:[#allocation7 + $0x520] ss:$16 sps:$4 sm:$0xff]   ;;  %v19762_v29 = vld [vmem:[#allocation7 + $0x544] ss:$16 sps:$4 sm:$0xff]  }
 0x8ff   :  { %6444 = vmatprep.mubr.bf16.mxu0 %v5578_v34  ;;  %6526 = vmatprep.mubr.bf16.mxu1 %v5578_v34  ;;  %v19760_v30 = vld [vmem:[#allocation7 + $0x540] ss:$16 sps:$4 sm:$0xff]   ;;  %v19765_v32 = vld [vmem:[#allocation7 + $0x564] ss:$16 sps:$4 sm:$0xff]  }
 0x900   :  { %6445 = vmatmul.mubr.bf16.vlgmr.msra.gmra.mrb[20].mxu0 %v5577_v36  ;;  %6527 = vmatmul.mubr.bf16.vlgmr.msra.gmra.mrb[28].mxu1 %v5577_v36  ;;  %v19763_v1 = vld [vmem:[#allocation7 + $0x560] ss:$16 sps:$4 sm:$0xff]   ;;  %v19768_v33 = vld [vmem:[#allocation7 + $0x584] ss:$16 sps:$4 sm:$0xff]  }
 0x901   :  { %6942 = vmatpush1.bf16.msra.mxu0 %v19634_v35  ;;  %7436 = vmatpush1.bf16.msra.mxu1 %v19730_v3  ;;  %v19766_v34 = vld [vmem:[#allocation7 + $0x580] ss:$16 sps:$4 sm:$0xff]   ;;  %v19771_v35 = vld [vmem:[#allocation7 + $0x5a4] ss:$16 sps:$4 sm:$0xff]  }
 0x902   :  { %6943 = vmatprep.subr.bf16.mxu0 %v19639_v37  ;;  %7437 = vmatprep.subr.bf16.mxu1 %v19735_v5  ;;  %v21670_v36 = vld [vmem:[#allocation18 + $0x5] ss:$8 sm:$0xf]  ;;  %v19769_v37 = vld [vmem:[#allocation7 + $0x5a0] ss:$16 sps:$4 sm:$0xff]  }
 0x903   :  { %v19697_v3 = vld [vmem:[#allocation6 + $0x550] ss:$8 sps:$4 sm:$0xff]   ;;  %v19702_v4 = vld [vmem:[#allocation6 + $0x564] ss:$8 sps:$4 sm:$0xff]   ;;  %v19700_v5 = vld [vmem:[#allocation6 + $0x560] ss:$8 sps:$4 sm:$0xff]  }
 0x905   :  { %6944 = vmatpush1.bf16.msra.mxu0 %v19637_v38  ;;  %7438 = vmatpush1.bf16.msra.mxu1 %v19733_v6  ;;  %v5714_v38 = vrot.slane %v21670_v36, %v21597_v14  ;;  %v19705_v6 = vld [vmem:[#allocation6 + $0x574] ss:$8 sps:$4 sm:$0xff]  }
 0x906   :  { %6945 = vmatprep.subr.bf16.mxu0 %v19642_v39  ;;  %7439 = vmatprep.subr.bf16.mxu1 %v19738_v7  ;;  %v5718_v39 = vrot.slane %v21670_v36, %v21602_v16  ;;  %v19703_v7 = vld [vmem:[#allocation6 + $0x570] ss:$8 sps:$4 sm:$0xff]  }
 0x909   :  { %6946 = vmatpush1.bf16.msra.mxu0 %v19640_v40  ;;  %7440 = vmatpush1.bf16.msra.mxu1 %v19736_v8  ;;  %v5726_v40 = vrot.slane %v21670_v36, %v21605_v17  ;;  %v19708_v8 = vld [vmem:[#allocation6 + $0x584] ss:$8 sps:$4 sm:$0xff]  }
 0x90a   :  { %6947 = vmatprep.subr.bf16.mxu0 %v19645_v41  ;;  %7441 = vmatprep.subr.bf16.mxu1 %v19741_v9  ;;  %v19706_v9 = vld [vmem:[#allocation6 + $0x580] ss:$8 sps:$4 sm:$0xff]  }
 0x90d   :  { %6948 = vmatpush1.bf16.msra.mxu0 %v19643_v43  ;;  %7442 = vmatpush1.bf16.msra.mxu1 %v19739_v10  ;;  %v19711_v10 = vld [vmem:[#allocation6 + $0x594] ss:$8 sps:$4 sm:$0xff]  }
 0x90e   :  { %6949 = vmatprep.subr.bf16.mxu0 %v19648_v44  ;;  %7443 = vmatprep.subr.bf16.mxu1 %v19744_v12  ;;  %v19709_v12 = vld [vmem:[#allocation6 + $0x590] ss:$8 sps:$4 sm:$0xff]  }
 0x911   :  { %6950 = vmatpush1.bf16.msra.mxu0 %v19646_v45  ;;  %7444 = vmatpush1.bf16.msra.mxu1 %v19742_v18  ;;  %v19714_v18 = vld [vmem:[#allocation6 + $0x5a4] ss:$8 sps:$4 sm:$0xff]  }
 0x912   :  { %6951 = vmatprep.subr.bf16.mxu0 %v19651_v15  ;;  %7445 = vmatprep.subr.bf16.mxu1 %v19747_v19  ;;  %v19712_v19 = vld [vmem:[#allocation6 + $0x5a0] ss:$8 sps:$4 sm:$0xff]  }
 0x915   :  { %6952 = vmatpush1.bf16.msra.mxu0 %v19649_v46  ;;  %7446 = vmatpush1.bf16.msra.mxu1 %v19745_v20  ;;  %v19717_v20 = vld [vmem:[#allocation6 + $0x5b4] ss:$8 sps:$4 sm:$0xff]  }
 0x916   :  { %6953 = vmatprep.subr.bf16.mxu0 %v19654_v47  ;;  %7447 = vmatprep.subr.bf16.mxu1 %v19750_v21  ;;  %v19715_v21 = vld [vmem:[#allocation6 + $0x5b0] ss:$8 sps:$4 sm:$0xff]  }
 0x919   :  { %6954 = vmatpush1.bf16.msra.mxu0 %v19652_v48  ;;  %7448 = vmatpush1.bf16.msra.mxu1 %v19748_v11  ;;  %v19720_v11 = vld [vmem:[#allocation6 + $0x5c4] ss:$8 sps:$4 sm:$0xff]  }
 0x91a   :  { %6955 = vmatprep.subr.bf16.mxu0 %v19657_v22  ;;  %7449 = vmatprep.subr.bf16.mxu1 %v19753_v23  ;;  %v19718_v23 = vld [vmem:[#allocation6 + $0x5c0] ss:$8 sps:$4 sm:$0xff]  }
 0x91d   :  { %6956 = vmatpush1.bf16.msra.mxu0 %v19655_v49  ;;  %7450 = vmatpush1.bf16.msra.mxu1 %v19751_v24  ;;  %v19723_v24 = vld [vmem:[#allocation6 + $0x5d4] ss:$8 sps:$4 sm:$0xff]  }
 0x91e   :  { %6957 = vmatprep.subr.bf16.mxu0 %v19660_v50  ;;  %7451 = vmatprep.subr.bf16.mxu1 %v19756_v25  ;;  %v19721_v25 = vld [vmem:[#allocation6 + $0x5d0] ss:$8 sps:$4 sm:$0xff]  }
 0x921   :  { %6958 = vmatpush1.bf16.msra.mxu0 %v19658_v51  ;;  %7452 = vmatpush1.bf16.msra.mxu1 %v19754_v26  ;;  %v5722_v26 = vrot.slane %v21670_v36, %v21616_v31  ;;  %v19777_v36 = vld [vmem:[#allocation7 + $0x5e4] ss:$16 sps:$4 sm:$0xff]  }
 0x922   :  { %6959 = vmatprep.subr.bf16.mxu0 %v19663_v52  ;;  %7453 = vmatprep.subr.bf16.mxu1 %v19759_v27  ;;  %v19726_v27 = vld [vmem:[#allocation6 + $0x5e4] ss:$8 sps:$4 sm:$0xff]  }
 0x925   :  { %6960 = vmatpush1.bf16.msra.mxu0 %v19661_v53  ;;  %7454 = vmatpush1.bf16.msra.mxu1 %v19757_v28  ;;  %v19724_v28 = vld [vmem:[#allocation6 + $0x5e0] ss:$8 sps:$4 sm:$0xff]  }
 0x926   :  { %6961 = vmatprep.subr.bf16.mxu0 %v19666_v54  ;;  %7455 = vmatprep.subr.bf16.mxu1 %v19762_v29 }
 0x929   :  { %6962 = vmatpush1.bf16.msra.mxu0 %v19664_v55  ;;  %7456 = vmatpush1.bf16.msra.mxu1 %v19760_v30  ;;  %v19682_v55 = vld [vmem:[#allocation6 + $0x500] ss:$8 sps:$4 sm:$0xff]   ;;  %v19729_v30 = vld [vmem:[#allocation6 + $0x5f4] ss:$8 sps:$4 sm:$0xff]  }
 0x92a   :  { %6963 = vmatprep.subr.bf16.mxu0 %v19669_v56  ;;  %7457 = vmatprep.subr.bf16.mxu1 %v19765_v32  ;;  %v19727_v32 = vld [vmem:[#allocation6 + $0x5f0] ss:$8 sps:$4 sm:$0xff]  }
 0x92d   :  { %6964 = vmatpush1.bf16.msra.mxu0 %v19667_v57  ;;  %7458 = vmatpush1.bf16.msra.mxu1 %v19763_v1  ;;  %v19687_v57 = vld [vmem:[#allocation6 + $0x514] ss:$8 sps:$4 sm:$0xff]  }
 0x92e   :  { %6965 = vmatprep.subr.bf16.mxu0 %v19672_v58  ;;  %7459 = vmatprep.subr.bf16.mxu1 %v19768_v33 }
 0x931   :  { %6966 = vmatpush1.bf16.msra.mxu0 %v19670_v59  ;;  %7460 = vmatpush1.bf16.msra.mxu1 %v19766_v34  ;;  %v19685_v59 = vld [vmem:[#allocation6 + $0x510] ss:$8 sps:$4 sm:$0xff]   ;;  %v19774_v34 = vld [vmem:[#allocation7 + $0x5c4] ss:$16 sps:$4 sm:$0xff]  }
 0x932   :  { %6967 = vmatprep.subr.bf16.mxu0 %v19675_v60  ;;  %7461 = vmatprep.subr.bf16.mxu1 %v19771_v35  ;;  %v19690_v60 = vld [vmem:[#allocation6 + $0x524] ss:$8 sps:$4 sm:$0xff]   ;;  %v19772_v35 = vld [vmem:[#allocation7 + $0x5c0] ss:$16 sps:$4 sm:$0xff]  }
 0x935   :  { %6968 = vmatpush1.bf16.msra.mxu0 %v19673_v61  ;;  %7462 = vmatpush1.bf16.msra.mxu1 %v19769_v37  ;;  %v19688_v61 = vld [vmem:[#allocation6 + $0x520] ss:$8 sps:$4 sm:$0xff]  }
 0x936   :  { %6969 = vmatprep.subr.bf16.mxu0 %v19678_v62  ;;  %v19693_v62 = vld [vmem:[#allocation6 + $0x534] ss:$8 sps:$4 sm:$0xff]   ;;  %7463 = vmatprep.subr.bf16.mxu1 %v19774_v34  ;;  %v19775_v37 = vld [vmem:[#allocation7 + $0x5e0] ss:$16 sps:$4 sm:$0xff]  }
 0x937   :  { %v19801_v34 = vld [vmem:[#allocation7 + $0x4ec] ss:$16 sps:$4 sm:$0xff]  }
 0x939   :  { %6970 = vmatpush1.bf16.msra.mxu0 %v19676_v63  ;;  %v19691_v63 = vld [vmem:[#allocation6 + $0x530] ss:$8 sps:$4 sm:$0xff]   ;;  %7464 = vmatpush1.bf16.msra.mxu1 %v19772_v35 }
 0x93a   :  { %6971 = vmatprep.subr.bf16.mxu0 %v19681_v0  ;;  %v19696_v0 = vld [vmem:[#allocation6 + $0x544] ss:$8 sps:$4 sm:$0xff]   ;;  %7465 = vmatprep.subr.bf16.mxu1 %v19777_v36  ;;  %v19799_v35 = vld [vmem:[#allocation7 + $0x4e8] ss:$16 sps:$4 sm:$0xff]  }
 0x93b   :  { %v19804_v36 = vld [vmem:[#allocation7 + $0x50c] ss:$16 sps:$4 sm:$0xff]  }
 0x93d   :  { %6972 = vmatpush1.bf16.msra.mxu0 %v19679_v42  ;;  %v19694_v42 = vld [vmem:[#allocation6 + $0x540] ss:$8 sps:$4 sm:$0xff]   ;;  %7466 = vmatpush1.bf16.msra.mxu1 %v19775_v37 }
 0x93e   :  { %6982 = vmatprep.subr.bf16.mxu0 %v19684_v2  ;;  %v19699_v2 = vld [vmem:[#allocation6 + $0x554] ss:$8 sps:$4 sm:$0xff]   ;;  %v19802_v37 = vld [vmem:[#allocation7 + $0x508] ss:$16 sps:$4 sm:$0xff]  }
 0x9d3   :  { %v6446_v41 = vpop.f32.mrb[20].mxu0  ;;  %v21678_v43 = vpop.f32.mrb[28].mxu1 }
 0x9d4   :  { %v18267_v44 = vadd.f32 %v6446_v41, %v5714_v38  ;;  %v6448_v45 = vpop.f32.mrb[21].mxu0  ;;  %v6530_v15 = vpop.f32.mrb[29].mxu1  ;;  %v18269_v29 = vadd.f32 %v21678_v43, %v5722_v26  ;;  %v19780_v38 = vld [vmem:[#allocation7 + $0x40c] ss:$16 sps:$4 sm:$0xff]   ;;  %v19834_v41 = vld [vmem:[#allocation4 + $0xc24] ss:$16 sps:$4 sm:$0xff]  }
 0x9d5   :  { %v18268_v46 = vadd.f32 %v6448_v45, %v5718_v39  ;;  %v18270_v47 = vadd.f32 %v6530_v15, %v5726_v40  ;;  %v6450_v48 = vpop.f32.mrb[22].mxu0  ;;  %v6532_v22 = vpop.f32.mrb[30].mxu1  ;;  %7476 = vmatprep.subr.bf16.mxu1 %v19780_v38  ;;  %v19826_v39 = vld [vmem:[#allocation4 + $0xc00] ss:$16 sps:$4 sm:$0xff]   ;;  %v19828_v40 = vld [vmem:[#allocation4 + $0xc04] ss:$16 sps:$4 sm:$0xff]  }
 0x9d6   :  { %v6535_v49 = vmax.f32 %v18267_v44, 0.0  ;;  %v6451_v50 = vpop.f32.mrb[23].mxu0  ;;  %v6533_v51 = vpop.f32.mrb[31].mxu1  ;;  %v6537_v1 = vmax.f32 %v18269_v29, 0.0  ;;  %v19832_v43 = vld [vmem:[#allocation4 + $0xc20] ss:$16 sps:$4 sm:$0xff]  }
 0x9d7   :  { %v6536_v52 = vmax.f32 %v18268_v46, 0.0  ;;  %v6538_v53 = vmax.f32 %v18270_v47, 0.0  ;;  %v19840_v44 = vld [vmem:[#allocation4 + $0xc44] ss:$16 sps:$4 sm:$0xff]   ;;  %v19838_v45 = vld [vmem:[#allocation4 + $0xc40] ss:$16 sps:$4 sm:$0xff]  }
 0x9d8   :  { %v6539_v56 = vpack.c.bf16 %v6535_v49, %v6535_v49  ;;  %v6541_v33 = vpack.c.bf16 %v6537_v1, %v6537_v1  ;;  %v19846_v15 = vld [vmem:[#allocation4 + $0xc64] ss:$16 sps:$4 sm:$0xff]   ;;  %v19844_v46 = vld [vmem:[#allocation4 + $0xc60] ss:$16 sps:$4 sm:$0xff]   ;;  %v19789_v26 = vld [vmem:[#allocation7 + $0x46c] ss:$16 sps:$4 sm:$0xff]  }
 0x9d9   :  { %v6540_v54 = vpack.c.bf16 %v6536_v52, %v6536_v52  ;;  %v6542_v58 = vpack.c.bf16 %v6538_v53, %v6538_v53  ;;  %v19852_v47 = vld [vmem:[#allocation4 + $0xc84] ss:$16 sps:$4 sm:$0xff]   ;;  %v19850_v48 = vld [vmem:[#allocation4 + $0xc80] ss:$16 sps:$4 sm:$0xff]   ;;  %v19790_v29 = vld [vmem:[#allocation7 + $0x488] ss:$16 sps:$4 sm:$0xff]  }
 0x9da   :  { %v19858_v22 = vld [vmem:[#allocation4 + $0xca4] ss:$16 sps:$4 sm:$0xff]   ;;  %v19856_v49 = vld [vmem:[#allocation4 + $0xca0] ss:$16 sps:$4 sm:$0xff]   ;;  %v19798_v1 = vld [vmem:[#allocation7 + $0x4cc] ss:$16 sps:$4 sm:$0xff]  }
 0x9db   :  { %6973 = vmatprep.mubr.bf16.mxu0 %v6540_v54  ;;  %v19864_v50 = vld [vmem:[#allocation4 + $0xcc4] ss:$16 sps:$4 sm:$0xff]   ;;  %v19862_v51 = vld [vmem:[#allocation4 + $0xcc0] ss:$16 sps:$4 sm:$0xff]   ;;  %v19807_v38 = vld [vmem:[#allocation7 + $0x52c] ss:$16 sps:$4 sm:$0xff]  }
 0x9dc   :  { %6974 = vmatmul.mubr.bf16.vlgmr.msra.gmra.mrb[24].mxu0 %v6539_v56  ;;  %v19870_v52 = vld [vmem:[#allocation4 + $0xce4] ss:$16 sps:$4 sm:$0xff]   ;;  %v19868_v53 = vld [vmem:[#allocation4 + $0xce0] ss:$16 sps:$4 sm:$0xff]  }
 0x9dd   :  { %6983 = vmatpush1.bf16.msra.mxu0 %v19682_v55  ;;  %7014 = vmatprep.mubr.bf16.mxu0 %v6542_v58  ;;  %v19876_v54 = vld [vmem:[#allocation4 + $0xd04] ss:$16 sps:$4 sm:$0xff]   ;;  %v19874_v55 = vld [vmem:[#allocation4 + $0xd00] ss:$16 sps:$4 sm:$0xff]  }
 0x9de   :  { %6984 = vmatprep.subr.bf16.mxu0 %v19687_v57  ;;  %v19882_v56 = vld [vmem:[#allocation4 + $0xd24] ss:$16 sps:$4 sm:$0xff]   ;;  %v19880_v57 = vld [vmem:[#allocation4 + $0xd20] ss:$16 sps:$4 sm:$0xff]  }
 0x9df   :  { %v19888_v58 = vld [vmem:[#allocation4 + $0xd44] ss:$16 sps:$4 sm:$0xff]  }
 0x9e1   :  { %6985 = vmatpush1.bf16.msra.mxu0 %v19685_v59  ;;  %v19886_v59 = vld [vmem:[#allocation4 + $0xd40] ss:$16 sps:$4 sm:$0xff]  }
 0x9e2   :  { %6986 = vmatprep.subr.bf16.mxu0 %v19690_v60  ;;  %v19894_v60 = vld [vmem:[#allocation4 + $0xd64] ss:$16 sps:$4 sm:$0xff]  }
 0x9e5   :  { %6987 = vmatpush1.bf16.msra.mxu0 %v19688_v61  ;;  %v19892_v61 = vld [vmem:[#allocation4 + $0xd60] ss:$16 sps:$4 sm:$0xff]  }
 0x9e6   :  { %6988 = vmatprep.subr.bf16.mxu0 %v19693_v62  ;;  %v19900_v62 = vld [vmem:[#allocation4 + $0xd84] ss:$16 sps:$4 sm:$0xff]  }
 0x9e9   :  { %6989 = vmatpush1.bf16.msra.mxu0 %v19691_v63  ;;  %v19898_v63 = vld [vmem:[#allocation4 + $0xd80] ss:$16 sps:$4 sm:$0xff]  }
 0x9ea   :  { %6990 = vmatprep.subr.bf16.mxu0 %v19696_v0  ;;  %v6609_v0 = vld [vmem:[#allocation19 + $0x2] ss:$8 sm:$0x3] }
 0x9ed   :  { %6991 = vmatpush1.bf16.msra.mxu0 %v19694_v42  ;;  %v19906_v42 = vld [vmem:[#allocation4 + $0xda4] ss:$16 sps:$4 sm:$0xff]  }
 0x9ee   :  { %6992 = vmatprep.subr.bf16.mxu0 %v19699_v2  ;;  %v19904_v2 = vld [vmem:[#allocation4 + $0xda0] ss:$16 sps:$4 sm:$0xff]  }
 0x9f1   :  { %6993 = vmatpush1.bf16.msra.mxu0 %v19697_v3  ;;  %v6614_v3 = vrot.slane %v6609_v0, %v21597_v14 }
 0x9f2   :  { %6994 = vmatprep.subr.bf16.mxu0 %v19702_v4  ;;  %v6618_v4 = vrot.slane %v6609_v0, %v21602_v16  ;;  %v19912_v0 = vld [vmem:[#allocation4 + $0xdc4] ss:$16 sps:$4 sm:$0xff]  }
 0x9f5   :  { %6995 = vmatpush1.bf16.msra.mxu0 %v19700_v5 }
 0x9f6   :  { %6996 = vmatprep.subr.bf16.mxu0 %v19705_v6 }
 0x9f9   :  { %6997 = vmatpush1.bf16.msra.mxu0 %v19703_v7 }
 0x9fa   :  { %6998 = vmatprep.subr.bf16.mxu0 %v19708_v8 }
 0x9fd   :  { %6999 = vmatpush1.bf16.msra.mxu0 %v19706_v9 }
 0x9fe   :  { %7000 = vmatprep.subr.bf16.mxu0 %v19711_v10 }
 0xa01   :  { %7001 = vmatpush1.bf16.msra.mxu0 %v19709_v12 }
 0xa02   :  { %7002 = vmatprep.subr.bf16.mxu0 %v19714_v18 }
 0xa05   :  { %7003 = vmatpush1.bf16.msra.mxu0 %v19712_v19 }
 0xa06   :  { %7004 = vmatprep.subr.bf16.mxu0 %v19717_v20  ;;  %v19778_v20 = vld [vmem:[#allocation7 + $0x408] ss:$16 sps:$4 sm:$0xff]  }
 0xa09   :  { %7005 = vmatpush1.bf16.msra.mxu0 %v19715_v21 }
 0xa0a   :  { %7006 = vmatprep.subr.bf16.mxu0 %v19720_v11  ;;  %v19783_v11 = vld [vmem:[#allocation7 + $0x42c] ss:$16 sps:$4 sm:$0xff]  }
 0xa0d   :  { %7007 = vmatpush1.bf16.msra.mxu0 %v19718_v23  ;;  %v19781_v23 = vld [vmem:[#allocation7 + $0x428] ss:$16 sps:$4 sm:$0xff]  }
 0xa0e   :  { %7008 = vmatprep.subr.bf16.mxu0 %v19723_v24  ;;  %v19786_v24 = vld [vmem:[#allocation7 + $0x44c] ss:$16 sps:$4 sm:$0xff]  }
 0xa11   :  { %7009 = vmatpush1.bf16.msra.mxu0 %v19721_v25  ;;  %v19784_v25 = vld [vmem:[#allocation7 + $0x448] ss:$16 sps:$4 sm:$0xff]  }
 0xa12   :  { %7010 = vmatprep.subr.bf16.mxu0 %v19726_v27  ;;  %v19787_v27 = vld [vmem:[#allocation7 + $0x468] ss:$16 sps:$4 sm:$0xff]  }
 0xa15   :  { %7011 = vmatpush1.bf16.msra.mxu0 %v19724_v28  ;;  %v19792_v28 = vld [vmem:[#allocation7 + $0x48c] ss:$16 sps:$4 sm:$0xff]  }
 0xa16   :  { %7012 = vmatprep.subr.bf16.mxu0 %v19729_v30  ;;  %v19795_v30 = vld [vmem:[#allocation7 + $0x4ac] ss:$16 sps:$4 sm:$0xff]  }
 0xa19   :  { %7013 = vmatpush1.bf16.msra.mxu0 %v19727_v32  ;;  %v19793_v32 = vld [vmem:[#allocation7 + $0x4a8] ss:$16 sps:$4 sm:$0xff]  }
 0xa1a   :  { %8317 = vmatprep.subr.bf16.mxu0 %v19828_v40  ;;  %v19810_v40 = vld [vmem:[#allocation7 + $0x54c] ss:$16 sps:$4 sm:$0xff]  }
 0xa1c   :  { %7015 = vmatmul.mubr.bf16.vlgmr.msra.gmra.mrb[24].mxu0 %v6541_v33  ;;  %v19796_v33 = vld [vmem:[#allocation7 + $0x4c8] ss:$16 sps:$4 sm:$0xff]  }
 0xa1d   :  { %8318 = vmatpush1.bf16.msra.mxu0 %v19826_v39  ;;  %v19805_v39 = vld [vmem:[#allocation7 + $0x528] ss:$16 sps:$4 sm:$0xff]  }
 0xa1e   :  { %8319 = vmatprep.subr.bf16.mxu0 %v19834_v41  ;;  %v19808_v41 = vld [vmem:[#allocation7 + $0x548] ss:$16 sps:$4 sm:$0xff]  }
 0xa21   :  { %8320 = vmatpush1.bf16.msra.mxu0 %v19832_v43  ;;  %v19813_v43 = vld [vmem:[#allocation7 + $0x56c] ss:$16 sps:$4 sm:$0xff]  }
 0xa22   :  { %8321 = vmatprep.subr.bf16.mxu0 %v19840_v44  ;;  %v19811_v44 = vld [vmem:[#allocation7 + $0x568] ss:$16 sps:$4 sm:$0xff]  }
 0xa25   :  { %8322 = vmatpush1.bf16.msra.mxu0 %v19838_v45  ;;  %v19816_v45 = vld [vmem:[#allocation7 + $0x58c] ss:$16 sps:$4 sm:$0xff]  }
 0xa26   :  { %8323 = vmatprep.subr.bf16.mxu0 %v19846_v15  ;;  %v19814_v15 = vld [vmem:[#allocation7 + $0x588] ss:$16 sps:$4 sm:$0xff]  }
 0xa29   :  { %8324 = vmatpush1.bf16.msra.mxu0 %v19844_v46  ;;  %v19819_v46 = vld [vmem:[#allocation7 + $0x5ac] ss:$16 sps:$4 sm:$0xff]  }
 0xa2a   :  { %8325 = vmatprep.subr.bf16.mxu0 %v19852_v47  ;;  %v19817_v47 = vld [vmem:[#allocation7 + $0x5a8] ss:$16 sps:$4 sm:$0xff]  }
 0xa2d   :  { %8326 = vmatpush1.bf16.msra.mxu0 %v19850_v48  ;;  %v19822_v48 = vld [vmem:[#allocation7 + $0x5cc] ss:$16 sps:$4 sm:$0xff]  }
 0xa2e   :  { %8327 = vmatprep.subr.bf16.mxu0 %v19858_v22  ;;  %v19820_v22 = vld [vmem:[#allocation7 + $0x5c8] ss:$16 sps:$4 sm:$0xff]  }
 0xa31   :  { %8328 = vmatpush1.bf16.msra.mxu0 %v19856_v49  ;;  %v19825_v49 = vld [vmem:[#allocation7 + $0x5ec] ss:$16 sps:$4 sm:$0xff]  }
 0xa32   :  { %8329 = vmatprep.subr.bf16.mxu0 %v19864_v50  ;;  %v19823_v50 = vld [vmem:[#allocation7 + $0x5e8] ss:$16 sps:$4 sm:$0xff]  }
 0xa35   :  { %8330 = vmatpush1.bf16.msra.mxu0 %v19862_v51  ;;  %v19831_v51 = vld [vmem:[#allocation4 + $0xc0c] ss:$16 sps:$4 sm:$0xff]  }
 0xa36   :  { %8331 = vmatprep.subr.bf16.mxu0 %v19870_v52  ;;  %v19829_v52 = vld [vmem:[#allocation4 + $0xc08] ss:$16 sps:$4 sm:$0xff]  }
 0xa39   :  { %8332 = vmatpush1.bf16.msra.mxu0 %v19868_v53  ;;  %v19837_v53 = vld [vmem:[#allocation4 + $0xc2c] ss:$16 sps:$4 sm:$0xff]  }
 0xa3a   :  { %8333 = vmatprep.subr.bf16.mxu0 %v19876_v54  ;;  %v19835_v54 = vld [vmem:[#allocation4 + $0xc28] ss:$16 sps:$4 sm:$0xff]  }
 0xa3d   :  { %8334 = vmatpush1.bf16.msra.mxu0 %v19874_v55  ;;  %v19843_v55 = vld [vmem:[#allocation4 + $0xc4c] ss:$16 sps:$4 sm:$0xff]  }
 0xa3e   :  { %8335 = vmatprep.subr.bf16.mxu0 %v19882_v56  ;;  %v19841_v56 = vld [vmem:[#allocation4 + $0xc48] ss:$16 sps:$4 sm:$0xff]  }
 0xa41   :  { %8336 = vmatpush1.bf16.msra.mxu0 %v19880_v57  ;;  %v19849_v57 = vld [vmem:[#allocation4 + $0xc6c] ss:$16 sps:$4 sm:$0xff]  }
 0xa42   :  { %8337 = vmatprep.subr.bf16.mxu0 %v19888_v58  ;;  %v19847_v58 = vld [vmem:[#allocation4 + $0xc68] ss:$16 sps:$4 sm:$0xff]  }
 0xa45   :  { %8338 = vmatpush1.bf16.msra.mxu0 %v19886_v59  ;;  %v19855_v59 = vld [vmem:[#allocation4 + $0xc8c] ss:$16 sps:$4 sm:$0xff]  }
 0xa46   :  { %8339 = vmatprep.subr.bf16.mxu0 %v19894_v60  ;;  %v19853_v60 = vld [vmem:[#allocation4 + $0xc88] ss:$16 sps:$4 sm:$0xff]  }
 0xa49   :  { %8340 = vmatpush1.bf16.msra.mxu0 %v19892_v61  ;;  %v19861_v61 = vld [vmem:[#allocation4 + $0xcac] ss:$16 sps:$4 sm:$0xff]  }
 0xa4a   :  { %8341 = vmatprep.subr.bf16.mxu0 %v19900_v62  ;;  %v19859_v62 = vld [vmem:[#allocation4 + $0xca8] ss:$16 sps:$4 sm:$0xff]  }
 0xa4d   :  { %8342 = vmatpush1.bf16.msra.mxu0 %v19898_v63  ;;  %v19867_v63 = vld [vmem:[#allocation4 + $0xccc] ss:$16 sps:$4 sm:$0xff]  }
 0xa4e   :  { %8343 = vmatprep.subr.bf16.mxu0 %v19906_v42  ;;  %v19910_v42 = vld [vmem:[#allocation4 + $0xdc0] ss:$16 sps:$4 sm:$0xff]  }
 0xa51   :  { %8344 = vmatpush1.bf16.msra.mxu0 %v19904_v2  ;;  %v19865_v2 = vld [vmem:[#allocation4 + $0xcc8] ss:$16 sps:$4 sm:$0xff]  }
 0xa52   :  { %8345 = vmatprep.subr.bf16.mxu0 %v19912_v0  ;;  %v19955_v0 = vld [vmem:[#allocation4 + $0xea8] ss:$16 sps:$4 sm:$0xff]  }
 0xa55   :  { %8346 = vmatpush1.bf16.msra.mxu0 %v19910_v42  ;;  %v19960_v42 = vld [vmem:[#allocation4 + $0xec4] ss:$16 sps:$4 sm:$0xff]  }
 0xaef   :  { %v7016_v5 = vpop.f32.mrb[24].mxu0 }
 0xaf0   :  { %v18271_v6 = vadd.f32 %v7016_v5, %v6614_v3  ;;  %v7018_v7 = vpop.f32.mrb[25].mxu0  ;;  %v19873_v3 = vld [vmem:[#allocation4 + $0xcec] ss:$16 sps:$4 sm:$0xff]   ;;  %v19916_v5 = vld [vmem:[#allocation4 + $0xde0] ss:$16 sps:$4 sm:$0xff]  }
 0xaf1   :  { %v18272_v8 = vadd.f32 %v7018_v7, %v6618_v4  ;;  %v7020_v9 = vpop.f32.mrb[26].mxu0  ;;  %v19918_v4 = vld [vmem:[#allocation4 + $0xde4] ss:$16 sps:$4 sm:$0xff]   ;;  %v19879_v7 = vld [vmem:[#allocation4 + $0xd0c] ss:$16 sps:$4 sm:$0xff]  }
 0xaf2   :  { %v7023_v10 = vmax.f32 %v18271_v6, 0.0  ;;  %v7021_v12 = vpop.f32.mrb[27].mxu0  ;;  %8347 = vmatprep.subr.bf16.mxu0 %v19918_v4  ;;  %v19871_v6 = vld [vmem:[#allocation4 + $0xce8] ss:$16 sps:$4 sm:$0xff]  }
 0xaf3   :  { %v7024_v18 = vmax.f32 %v18272_v8, 0.0  ;;  %8348 = vmatpush1.bf16.msra.mxu0 %v19916_v5  ;;  %v19924_v8 = vld [vmem:[#allocation4 + $0xe04] ss:$16 sps:$4 sm:$0xff]   ;;  %v19877_v9 = vld [vmem:[#allocation4 + $0xd08] ss:$16 sps:$4 sm:$0xff]  }
 0xaf4   :  { %v21685_v21 = vpack.c.bf16 %v7023_v10, %v7023_v10  ;;  %8358 = vmatprep.subr.bf16.mxu0 %v19924_v8  ;;  %v19885_v10 = vld [vmem:[#allocation4 + $0xd2c] ss:$16 sps:$4 sm:$0xff]   ;;  %v19883_v12 = vld [vmem:[#allocation4 + $0xd28] ss:$16 sps:$4 sm:$0xff]   ;;  %v19966_v5 = vld [vmem:[#allocation4 + $0xee4] ss:$16 sps:$4 sm:$0xff]  }
 0xaf5   :  { %v7026_v19 = vpack.c.bf16 %v7024_v18, %v7024_v18  ;;  %v19891_v18 = vld [vmem:[#allocation4 + $0xd4c] ss:$16 sps:$4 sm:$0xff]   ;;  %v19961_v4 = vld [vmem:[#allocation4 + $0xec8] ss:$16 sps:$4 sm:$0xff]  }
 0xaf6   :  { %v19967_v8 = vld [vmem:[#allocation4 + $0xee8] ss:$16 sps:$4 sm:$0xff]  }
 0xaf7   :  { %7467 = vmatprep.mubr.bf16.mxu1 %v7026_v19 }
 0xaf8   :  { %7468 = vmatmul.mubr.bf16.vlgmr.msra.gmra.mrb[32].mxu1 %v21685_v21 }
 0xaf9   :  { %7477 = vmatpush1.bf16.msra.mxu1 %v19778_v20  ;;  %7508 = vmatprep.mubr.bf16.mxu1 %v7026_v19  ;;  %v19889_v19 = vld [vmem:[#allocation4 + $0xd48] ss:$16 sps:$4 sm:$0xff]   ;;  %v19897_v20 = vld [vmem:[#allocation4 + $0xd6c] ss:$16 sps:$4 sm:$0xff]  }
 0xafa   :  { %7478 = vmatprep.subr.bf16.mxu1 %v19783_v11  ;;  %v19903_v11 = vld [vmem:[#allocation4 + $0xd8c] ss:$16 sps:$4 sm:$0xff]  }
 0xafd   :  { %7479 = vmatpush1.bf16.msra.mxu1 %v19781_v23  ;;  %v19901_v23 = vld [vmem:[#allocation4 + $0xd88] ss:$16 sps:$4 sm:$0xff]  }
 0xafe   :  { %7480 = vmatprep.subr.bf16.mxu1 %v19786_v24  ;;  %v19909_v24 = vld [vmem:[#allocation4 + $0xdac] ss:$16 sps:$4 sm:$0xff]  }
 0xb01   :  { %7481 = vmatpush1.bf16.msra.mxu1 %v19784_v25  ;;  %v19907_v25 = vld [vmem:[#allocation4 + $0xda8] ss:$16 sps:$4 sm:$0xff]  }
 0xb02   :  { %7482 = vmatprep.subr.bf16.mxu1 %v19789_v26  ;;  %v19915_v26 = vld [vmem:[#allocation4 + $0xdcc] ss:$16 sps:$4 sm:$0xff]  }
 0xb05   :  { %7483 = vmatpush1.bf16.msra.mxu1 %v19787_v27  ;;  %v19913_v27 = vld [vmem:[#allocation4 + $0xdc8] ss:$16 sps:$4 sm:$0xff]  }
 0xb06   :  { %7484 = vmatprep.subr.bf16.mxu1 %v19792_v28  ;;  %v19921_v28 = vld [vmem:[#allocation4 + $0xdec] ss:$16 sps:$4 sm:$0xff]  }
 0xb09   :  { %7485 = vmatpush1.bf16.msra.mxu1 %v19790_v29  ;;  %v19919_v29 = vld [vmem:[#allocation4 + $0xde8] ss:$16 sps:$4 sm:$0xff]  }
 0xb0a   :  { %7486 = vmatprep.subr.bf16.mxu1 %v19795_v30  ;;  %v19927_v30 = vld [vmem:[#allocation4 + $0xe0c] ss:$16 sps:$4 sm:$0xff]  }
 0xb0d   :  { %7487 = vmatpush1.bf16.msra.mxu1 %v19793_v32  ;;  %v21689_v32 = vld [vmem:[#allocation18 + $0x6] ss:$8 sm:$0xf] }
 0xb0e   :  { %7488 = vmatprep.subr.bf16.mxu1 %v19798_v1  ;;  %v7098_v1 = vrot.slane %v21689_v32, %v21597_v14 }
 0xb11   :  { %7489 = vmatpush1.bf16.msra.mxu1 %v19796_v33  ;;  %v7102_v33 = vrot.slane %v21689_v32, %v21602_v16 }
 0xb12   :  { %7490 = vmatprep.subr.bf16.mxu1 %v19801_v34 }
 0xb15   :  { %7491 = vmatpush1.bf16.msra.mxu1 %v19799_v35 }
 0xb16   :  { %7492 = vmatprep.subr.bf16.mxu1 %v19804_v36 }
 0xb19   :  { %7493 = vmatpush1.bf16.msra.mxu1 %v19802_v37 }
 0xb1a   :  { %7494 = vmatprep.subr.bf16.mxu1 %v19807_v38 }
 0xb1d   :  { %7495 = vmatpush1.bf16.msra.mxu1 %v19805_v39 }
 0xb1e   :  { %7496 = vmatprep.subr.bf16.mxu1 %v19810_v40 }
 0xb21   :  { %7497 = vmatpush1.bf16.msra.mxu1 %v19808_v41 }
 0xb22   :  { %7498 = vmatprep.subr.bf16.mxu1 %v19813_v43 }
 0xb25   :  { %7499 = vmatpush1.bf16.msra.mxu1 %v19811_v44  ;;  %v19922_v44 = vld [vmem:[#allocation4 + $0xe00] ss:$16 sps:$4 sm:$0xff]  }
 0xb26   :  { %7500 = vmatprep.subr.bf16.mxu1 %v19816_v45  ;;  %v19925_v45 = vld [vmem:[#allocation4 + $0xe08] ss:$16 sps:$4 sm:$0xff]  }
 0xb29   :  { %7501 = vmatpush1.bf16.msra.mxu1 %v19814_v15 }
 0xb2a   :  { %7502 = vmatprep.subr.bf16.mxu1 %v19819_v46  ;;  %v19930_v46 = vld [vmem:[#allocation4 + $0xe24] ss:$16 sps:$4 sm:$0xff]  }
 0xb2d   :  { %7503 = vmatpush1.bf16.msra.mxu1 %v19817_v47  ;;  %v19933_v47 = vld [vmem:[#allocation4 + $0xe2c] ss:$16 sps:$4 sm:$0xff]  }
 0xb2e   :  { %7504 = vmatprep.subr.bf16.mxu1 %v19822_v48  ;;  %v19928_v48 = vld [vmem:[#allocation4 + $0xe20] ss:$16 sps:$4 sm:$0xff]  }
 0xb31   :  { %7505 = vmatpush1.bf16.msra.mxu1 %v19820_v22  ;;  %v19931_v22 = vld [vmem:[#allocation4 + $0xe28] ss:$16 sps:$4 sm:$0xff]  }
 0xb32   :  { %7506 = vmatprep.subr.bf16.mxu1 %v19825_v49  ;;  %v19936_v49 = vld [vmem:[#allocation4 + $0xe44] ss:$16 sps:$4 sm:$0xff]  }
 0xb35   :  { %7507 = vmatpush1.bf16.msra.mxu1 %v19823_v50  ;;  %v19939_v50 = vld [vmem:[#allocation4 + $0xe4c] ss:$16 sps:$4 sm:$0xff]  }
 0xb36   :  { %8399 = vmatprep.subr.bf16.mxu1 %v19831_v51  ;;  %v19934_v51 = vld [vmem:[#allocation4 + $0xe40] ss:$16 sps:$4 sm:$0xff]  }
 0xb38   :  { %7509 = vmatmul.mubr.bf16.vlgmr.msra.gmra.mrb[36].mxu1 %v21685_v21  ;;  %v19895_v21 = vld [vmem:[#allocation4 + $0xd68] ss:$16 sps:$4 sm:$0xff]  }
 0xb39   :  { %8400 = vmatpush1.bf16.msra.mxu1 %v19829_v52  ;;  %v19937_v52 = vld [vmem:[#allocation4 + $0xe48] ss:$16 sps:$4 sm:$0xff]  }
 0xb3a   :  { %8401 = vmatprep.subr.bf16.mxu1 %v19837_v53  ;;  %v19942_v53 = vld [vmem:[#allocation4 + $0xe64] ss:$16 sps:$4 sm:$0xff]  }
 0xb3d   :  { %8402 = vmatpush1.bf16.msra.mxu1 %v19835_v54  ;;  %v19945_v54 = vld [vmem:[#allocation4 + $0xe6c] ss:$16 sps:$4 sm:$0xff]  }
 0xb3e   :  { %8403 = vmatprep.subr.bf16.mxu1 %v19843_v55  ;;  %v19940_v55 = vld [vmem:[#allocation4 + $0xe60] ss:$16 sps:$4 sm:$0xff]  }
 0xb41   :  { %8404 = vmatpush1.bf16.msra.mxu1 %v19841_v56  ;;  %v19943_v56 = vld [vmem:[#allocation4 + $0xe68] ss:$16 sps:$4 sm:$0xff]  }
 0xb42   :  { %8405 = vmatprep.subr.bf16.mxu1 %v19849_v57  ;;  %v19948_v57 = vld [vmem:[#allocation4 + $0xe84] ss:$16 sps:$4 sm:$0xff]  }
 0xb45   :  { %8406 = vmatpush1.bf16.msra.mxu1 %v19847_v58  ;;  %v19951_v58 = vld [vmem:[#allocation4 + $0xe8c] ss:$16 sps:$4 sm:$0xff]  }
 0xb46   :  { %8407 = vmatprep.subr.bf16.mxu1 %v19855_v59  ;;  %v19946_v59 = vld [vmem:[#allocation4 + $0xe80] ss:$16 sps:$4 sm:$0xff]  }
 0xb49   :  { %8408 = vmatpush1.bf16.msra.mxu1 %v19853_v60  ;;  %v19949_v60 = vld [vmem:[#allocation4 + $0xe88] ss:$16 sps:$4 sm:$0xff]  }
 0xb4a   :  { %8409 = vmatprep.subr.bf16.mxu1 %v19861_v61  ;;  %v19954_v61 = vld [vmem:[#allocation4 + $0xea4] ss:$16 sps:$4 sm:$0xff]  }
 0xb4d   :  { %8410 = vmatpush1.bf16.msra.mxu1 %v19859_v62  ;;  %v19957_v62 = vld [vmem:[#allocation4 + $0xeac] ss:$16 sps:$4 sm:$0xff]  }
 0xb4e   :  { %8411 = vmatprep.subr.bf16.mxu1 %v19867_v63  ;;  %v19952_v63 = vld [vmem:[#allocation4 + $0xea0] ss:$16 sps:$4 sm:$0xff]  }
 0xb51   :  { %8412 = vmatpush1.bf16.msra.mxu1 %v19865_v2  ;;  %v19963_v2 = vld [vmem:[#allocation4 + $0xecc] ss:$16 sps:$4 sm:$0xff]  }
 0xb52   :  { %8413 = vmatprep.subr.bf16.mxu1 %v19873_v3  ;;  %v19958_v3 = vld [vmem:[#allocation4 + $0xec0] ss:$16 sps:$4 sm:$0xff]  }
 0xb55   :  { %8414 = vmatpush1.bf16.msra.mxu1 %v19871_v6  ;;  %v19969_v6 = vld [vmem:[#allocation4 + $0xeec] ss:$16 sps:$4 sm:$0xff]  }
 0xb56   :  { %8415 = vmatprep.subr.bf16.mxu1 %v19879_v7  ;;  %v19964_v7 = vld [vmem:[#allocation4 + $0xee0] ss:$16 sps:$4 sm:$0xff]  }
 0xb59   :  { %8416 = vmatpush1.bf16.msra.mxu1 %v19877_v9  ;;  %v19972_v9 = vld [vmem:[#allocation4 + $0xf04] ss:$16 sps:$4 sm:$0xff]  }
 0xb5a   :  { %8417 = vmatprep.subr.bf16.mxu1 %v19885_v10  ;;  %v19975_v10 = vld [vmem:[#allocation4 + $0xf0c] ss:$16 sps:$4 sm:$0xff]  }
 0xb5d   :  { %8418 = vmatpush1.bf16.msra.mxu1 %v19883_v12  ;;  %v19970_v12 = vld [vmem:[#allocation4 + $0xf00] ss:$16 sps:$4 sm:$0xff]  }
 0xb5e   :  { %8419 = vmatprep.subr.bf16.mxu1 %v19891_v18  ;;  %v19973_v18 = vld [vmem:[#allocation4 + $0xf08] ss:$16 sps:$4 sm:$0xff]  }
 0xb61   :  { %8420 = vmatpush1.bf16.msra.mxu1 %v19889_v19  ;;  %v19978_v19 = vld [vmem:[#allocation4 + $0xf24] ss:$16 sps:$4 sm:$0xff]  }
 0xb62   :  { %8421 = vmatprep.subr.bf16.mxu1 %v19897_v20  ;;  %v19981_v20 = vld [vmem:[#allocation4 + $0xf2c] ss:$16 sps:$4 sm:$0xff]  }
 0xb65   :  { %8422 = vmatpush1.bf16.msra.mxu1 %v19895_v21  ;;  %v19976_v21 = vld [vmem:[#allocation4 + $0xf20] ss:$16 sps:$4 sm:$0xff]  }
 0xb66   :  { %8423 = vmatprep.subr.bf16.mxu1 %v19903_v11  ;;  %v19979_v11 = vld [vmem:[#allocation4 + $0xf28] ss:$16 sps:$4 sm:$0xff]  }
 0xb69   :  { %8424 = vmatpush1.bf16.msra.mxu1 %v19901_v23  ;;  %v19984_v23 = vld [vmem:[#allocation4 + $0xf44] ss:$16 sps:$4 sm:$0xff]  }
 0xb6a   :  { %8425 = vmatprep.subr.bf16.mxu1 %v19909_v24  ;;  %v19987_v24 = vld [vmem:[#allocation4 + $0xf4c] ss:$16 sps:$4 sm:$0xff]  }
 0xb6d   :  { %8426 = vmatpush1.bf16.msra.mxu1 %v19907_v25  ;;  %v19982_v25 = vld [vmem:[#allocation4 + $0xf40] ss:$16 sps:$4 sm:$0xff]  }
 0xb6e   :  { %8427 = vmatprep.subr.bf16.mxu1 %v19915_v26  ;;  %v19985_v26 = vld [vmem:[#allocation4 + $0xf48] ss:$16 sps:$4 sm:$0xff]  }
 0xb71   :  { %8428 = vmatpush1.bf16.msra.mxu1 %v19913_v27  ;;  %v19990_v27 = vld [vmem:[#allocation4 + $0xf64] ss:$16 sps:$4 sm:$0xff]  }
 0xb72   :  { %8429 = vmatprep.subr.bf16.mxu1 %v19921_v28  ;;  %v19993_v28 = vld [vmem:[#allocation4 + $0xf6c] ss:$16 sps:$4 sm:$0xff]  }
 0xb75   :  { %8430 = vmatpush1.bf16.msra.mxu1 %v19919_v29  ;;  %v19988_v29 = vld [vmem:[#allocation4 + $0xf60] ss:$16 sps:$4 sm:$0xff]  }
 0xb76   :  { %8440 = vmatprep.subr.bf16.mxu1 %v19927_v30  ;;  %v19991_v30 = vld [vmem:[#allocation4 + $0xf68] ss:$16 sps:$4 sm:$0xff]  }
 0xbcb   :  { %v7469_v34 = vpop.f32.mrb[32].mxu1 }
 0xbcc   :  { %v7470_v35 = vadd.f32 %v7469_v34, %v7098_v1  ;;  %v7471_v36 = vpop.f32.mrb[33].mxu1  ;;  %v19996_v1 = vld [vmem:[#allocation4 + $0xf84] ss:$16 sps:$4 sm:$0xff]   ;;  %v19994_v34 = vld [vmem:[#allocation4 + $0xf80] ss:$16 sps:$4 sm:$0xff]  }
 0xbcd   :  { %v7472_v37 = vadd.f32 %v7471_v36, %v7102_v33  ;;  %v7473_v38 = vpop.f32.mrb[34].mxu1  ;;  %v19999_v33 = vld [vmem:[#allocation4 + $0xf8c] ss:$16 sps:$4 sm:$0xff]   ;;  %v20002_v36 = vld [vmem:[#allocation4 + $0xfa4] ss:$16 sps:$4 sm:$0xff]  }
 0xbce   :  { %v7517_v39 = vmax.f32 %v7470_v35, 0.0  ;;  %v7474_v40 = vpop.f32.mrb[35].mxu1  ;;  %v19997_v35 = vld [vmem:[#allocation4 + $0xf88] ss:$16 sps:$4 sm:$0xff]   ;;  %v20000_v38 = vld [vmem:[#allocation4 + $0xfa0] ss:$16 sps:$4 sm:$0xff]  }
 0xbcf   :  { %v7518_v41 = vmax.f32 %v7472_v37, 0.0  ;;  %v20005_v37 = vld [vmem:[#allocation4 + $0xfac] ss:$16 sps:$4 sm:$0xff]   ;;  %v20008_v40 = vld [vmem:[#allocation4 + $0xfc4] ss:$16 sps:$4 sm:$0xff]  }
 0xbd0   :  { %v7521_v15 = vpack.c.bf16 %v7517_v39, %v7517_v39  ;;  %v20003_v39 = vld [vmem:[#allocation4 + $0xfa8] ss:$16 sps:$4 sm:$0xff]  }
 0xbd1   :  { %v7522_v43 = vpack.c.bf16 %v7518_v41, %v7518_v41  ;;  %v20011_v41 = vld [vmem:[#allocation4 + $0xfcc] ss:$16 sps:$4 sm:$0xff]  }
 0xbd3   :  { %8349 = vmatprep.mubr.bf16.mxu0 %v7522_v43  ;;  %8431 = vmatprep.mubr.bf16.mxu1 %v7522_v43  ;;  %v7106_v43 = vrot.slane %v21689_v32, %v21616_v31 }
 0xbd4   :  { %8350 = vmatmul.mubr.bf16.vlgmr.msra.gmra.mrb[28].mxu0 %v7521_v15  ;;  %8432 = vmatmul.mubr.bf16.vlgmr.msra.gmra.mrb[40].mxu1 %v7521_v15  ;;  %v20009_v15 = vld [vmem:[#allocation4 + $0xfc8] ss:$16 sps:$4 sm:$0xff]  }
 0xbd5   :  { %8359 = vmatpush1.bf16.msra.mxu0 %v19922_v44  ;;  %8441 = vmatpush1.bf16.msra.mxu1 %v19925_v45  ;;  %v7110_v44 = vrot.slane %v21689_v32, %v21605_v17  ;;  %v20006_v45 = vld [vmem:[#allocation4 + $0xfc0] ss:$16 sps:$4 sm:$0xff]   ;;  %v20020_v32 = vld [vmem:[#allocation6 + $0x604] ss:$8 sps:$4 sm:$0xff]  }
 0xbd6   :  { %8360 = vmatprep.subr.bf16.mxu0 %v19930_v46  ;;  %8442 = vmatprep.subr.bf16.mxu1 %v19933_v47  ;;  %v20014_v46 = vld [vmem:[#allocation4 + $0xfe4] ss:$16 sps:$4 sm:$0xff]   ;;  %v20017_v47 = vld [vmem:[#allocation4 + $0xfec] ss:$16 sps:$4 sm:$0xff]  }
 0xbd9   :  { %8361 = vmatpush1.bf16.msra.mxu0 %v19928_v48  ;;  %8443 = vmatpush1.bf16.msra.mxu1 %v19931_v22 }
 0xbda   :  { %8362 = vmatprep.subr.bf16.mxu0 %v19936_v49  ;;  %8444 = vmatprep.subr.bf16.mxu1 %v19939_v50 }
 0xbdd   :  { %8363 = vmatpush1.bf16.msra.mxu0 %v19934_v51  ;;  %8445 = vmatpush1.bf16.msra.mxu1 %v19937_v52  ;;  %v20012_v52 = vld [vmem:[#allocation4 + $0xfe0] ss:$16 sps:$4 sm:$0xff]  }
 0xbde   :  { %8364 = vmatprep.subr.bf16.mxu0 %v19942_v53  ;;  %8446 = vmatprep.subr.bf16.mxu1 %v19945_v54  ;;  %v20015_v53 = vld [vmem:[#allocation4 + $0xfe8] ss:$16 sps:$4 sm:$0xff]  }
 0xbe1   :  { %8365 = vmatpush1.bf16.msra.mxu0 %v19940_v55  ;;  %8447 = vmatpush1.bf16.msra.mxu1 %v19943_v56 }
 0xbe2   :  { %8366 = vmatprep.subr.bf16.mxu0 %v19948_v57  ;;  %8448 = vmatprep.subr.bf16.mxu1 %v19951_v58  ;;  %v20018_v58 = vld [vmem:[#allocation6 + $0x600] ss:$8 sps:$4 sm:$0xff]  }
 0xbe5   :  { %8367 = vmatpush1.bf16.msra.mxu0 %v19946_v59  ;;  %8449 = vmatpush1.bf16.msra.mxu1 %v19949_v60  ;;  %v20023_v60 = vld [vmem:[#allocation6 + $0x614] ss:$8 sps:$4 sm:$0xff]  }
 0xbe6   :  { %8368 = vmatprep.subr.bf16.mxu0 %v19954_v61  ;;  %8450 = vmatprep.subr.bf16.mxu1 %v19957_v62  ;;  %v20021_v61 = vld [vmem:[#allocation6 + $0x610] ss:$8 sps:$4 sm:$0xff]   ;;  %v20026_v62 = vld [vmem:[#allocation6 + $0x624] ss:$8 sps:$4 sm:$0xff]  }
 0xbe9   :  { %8369 = vmatpush1.bf16.msra.mxu0 %v19952_v63  ;;  %8451 = vmatpush1.bf16.msra.mxu1 %v19955_v0  ;;  %v20024_v63 = vld [vmem:[#allocation6 + $0x620] ss:$8 sps:$4 sm:$0xff]   ;;  %v20029_v0 = vld [vmem:[#allocation6 + $0x634] ss:$8 sps:$4 sm:$0xff]  }
 0xbea   :  { %8370 = vmatprep.subr.bf16.mxu0 %v19960_v42  ;;  %8452 = vmatprep.subr.bf16.mxu1 %v19963_v2  ;;  %v20027_v42 = vld [vmem:[#allocation6 + $0x630] ss:$8 sps:$4 sm:$0xff]   ;;  %v20032_v2 = vld [vmem:[#allocation6 + $0x644] ss:$8 sps:$4 sm:$0xff]  }
 0xbed   :  { %8371 = vmatpush1.bf16.msra.mxu0 %v19958_v3  ;;  %8453 = vmatpush1.bf16.msra.mxu1 %v19961_v4  ;;  %v20030_v3 = vld [vmem:[#allocation6 + $0x640] ss:$8 sps:$4 sm:$0xff]   ;;  %v20035_v4 = vld [vmem:[#allocation6 + $0x654] ss:$8 sps:$4 sm:$0xff]  }
 0xbee   :  { %8372 = vmatprep.subr.bf16.mxu0 %v19966_v5  ;;  %8454 = vmatprep.subr.bf16.mxu1 %v19969_v6  ;;  %v20033_v5 = vld [vmem:[#allocation6 + $0x650] ss:$8 sps:$4 sm:$0xff]   ;;  %v20038_v6 = vld [vmem:[#allocation6 + $0x664] ss:$8 sps:$4 sm:$0xff]  }
 0xbf1   :  { %8373 = vmatpush1.bf16.msra.mxu0 %v19964_v7  ;;  %8455 = vmatpush1.bf16.msra.mxu1 %v19967_v8  ;;  %v20036_v7 = vld [vmem:[#allocation6 + $0x660] ss:$8 sps:$4 sm:$0xff]   ;;  %v20041_v8 = vld [vmem:[#allocation6 + $0x674] ss:$8 sps:$4 sm:$0xff]  }
 0xbf2   :  { %8374 = vmatprep.subr.bf16.mxu0 %v19972_v9  ;;  %8456 = vmatprep.subr.bf16.mxu1 %v19975_v10  ;;  %v20039_v9 = vld [vmem:[#allocation6 + $0x670] ss:$8 sps:$4 sm:$0xff]   ;;  %v20044_v10 = vld [vmem:[#allocation6 + $0x684] ss:$8 sps:$4 sm:$0xff]  }
 0xbf5   :  { %8375 = vmatpush1.bf16.msra.mxu0 %v19970_v12  ;;  %8457 = vmatpush1.bf16.msra.mxu1 %v19973_v18  ;;  %v20042_v12 = vld [vmem:[#allocation6 + $0x680] ss:$8 sps:$4 sm:$0xff]   ;;  %v20047_v18 = vld [vmem:[#allocation6 + $0x694] ss:$8 sps:$4 sm:$0xff]  }
 0xbf6   :  { %8376 = vmatprep.subr.bf16.mxu0 %v19978_v19  ;;  %8458 = vmatprep.subr.bf16.mxu1 %v19981_v20  ;;  %v20045_v19 = vld [vmem:[#allocation6 + $0x690] ss:$8 sps:$4 sm:$0xff]   ;;  %v20050_v20 = vld [vmem:[#allocation6 + $0x6a4] ss:$8 sps:$4 sm:$0xff]  }
 0xbf9   :  { %8377 = vmatpush1.bf16.msra.mxu0 %v19976_v21  ;;  %8459 = vmatpush1.bf16.msra.mxu1 %v19979_v11  ;;  %v20048_v21 = vld [vmem:[#allocation6 + $0x6a0] ss:$8 sps:$4 sm:$0xff]   ;;  %v20053_v11 = vld [vmem:[#allocation6 + $0x6b4] ss:$8 sps:$4 sm:$0xff]  }
 0xbfa   :  { %8378 = vmatprep.subr.bf16.mxu0 %v19984_v23  ;;  %8460 = vmatprep.subr.bf16.mxu1 %v19987_v24  ;;  %v20051_v23 = vld [vmem:[#allocation6 + $0x6b0] ss:$8 sps:$4 sm:$0xff]   ;;  %v20056_v24 = vld [vmem:[#allocation6 + $0x6c4] ss:$8 sps:$4 sm:$0xff]  }
 0xbfd   :  { %8379 = vmatpush1.bf16.msra.mxu0 %v19982_v25  ;;  %8461 = vmatpush1.bf16.msra.mxu1 %v19985_v26  ;;  %v20054_v25 = vld [vmem:[#allocation6 + $0x6c0] ss:$8 sps:$4 sm:$0xff]   ;;  %v20059_v26 = vld [vmem:[#allocation6 + $0x6d4] ss:$8 sps:$4 sm:$0xff]  }
 0xbfe   :  { %8380 = vmatprep.subr.bf16.mxu0 %v19990_v27  ;;  %8462 = vmatprep.subr.bf16.mxu1 %v19993_v28  ;;  %v20057_v27 = vld [vmem:[#allocation6 + $0x6d0] ss:$8 sps:$4 sm:$0xff]   ;;  %v20062_v28 = vld [vmem:[#allocation6 + $0x6e4] ss:$8 sps:$4 sm:$0xff]  }
 0xc01   :  { %8381 = vmatpush1.bf16.msra.mxu0 %v19988_v29  ;;  %8463 = vmatpush1.bf16.msra.mxu1 %v19991_v30  ;;  %v20060_v29 = vld [vmem:[#allocation6 + $0x6e0] ss:$8 sps:$4 sm:$0xff]   ;;  %v20065_v30 = vld [vmem:[#allocation6 + $0x6f4] ss:$8 sps:$4 sm:$0xff]  }
 0xc02   :  { %8382 = vmatprep.subr.bf16.mxu0 %v19996_v1  ;;  %8464 = vmatprep.subr.bf16.mxu1 %v19999_v33  ;;  %v20063_v1 = vld [vmem:[#allocation6 + $0x6f0] ss:$8 sps:$4 sm:$0xff]   ;;  %v20068_v33 = vld [vmem:[#allocation6 + $0x704] ss:$8 sps:$4 sm:$0xff]  }
 0xc05   :  { %8383 = vmatpush1.bf16.msra.mxu0 %v19994_v34  ;;  %8465 = vmatpush1.bf16.msra.mxu1 %v19997_v35  ;;  %v20114_v34 = vld [vmem:[#allocation7 + $0x600] ss:$16 sps:$4 sm:$0xff]   ;;  %v20116_v35 = vld [vmem:[#allocation7 + $0x604] ss:$16 sps:$4 sm:$0xff]  }
 0xc06   :  { %8384 = vmatprep.subr.bf16.mxu0 %v20002_v36  ;;  %8466 = vmatprep.subr.bf16.mxu1 %v20005_v37  ;;  %v20119_v36 = vld [vmem:[#allocation7 + $0x624] ss:$16 sps:$4 sm:$0xff]   ;;  %v20117_v37 = vld [vmem:[#allocation7 + $0x620] ss:$16 sps:$4 sm:$0xff]  }
 0xc09   :  { %8385 = vmatpush1.bf16.msra.mxu0 %v20000_v38  ;;  %8467 = vmatpush1.bf16.msra.mxu1 %v20003_v39  ;;  %v20122_v38 = vld [vmem:[#allocation7 + $0x644] ss:$16 sps:$4 sm:$0xff]   ;;  %v20120_v39 = vld [vmem:[#allocation7 + $0x640] ss:$16 sps:$4 sm:$0xff]  }
 0xc0a   :  { %8386 = vmatprep.subr.bf16.mxu0 %v20008_v40  ;;  %8468 = vmatprep.subr.bf16.mxu1 %v20011_v41  ;;  %v20125_v40 = vld [vmem:[#allocation7 + $0x664] ss:$16 sps:$4 sm:$0xff]   ;;  %v20123_v41 = vld [vmem:[#allocation7 + $0x660] ss:$16 sps:$4 sm:$0xff]  }
 0xc0b   :  { %v7510_v48 = vpop.f32.mrb[36].mxu1 }
 0xc0c   :  { %v7511_v22 = vadd.f32 %v7510_v48, %v7106_v43  ;;  %v7512_v49 = vpop.f32.mrb[37].mxu1  ;;  %v20128_v43 = vld [vmem:[#allocation7 + $0x684] ss:$16 sps:$4 sm:$0xff]  }
 0xc0d   :  { %v7513_v50 = vadd.f32 %v7512_v49, %v7110_v44  ;;  %v7514_v51 = vpop.f32.mrb[38].mxu1  ;;  %8387 = vmatpush1.bf16.msra.mxu0 %v20006_v45  ;;  %8469 = vmatpush1.bf16.msra.mxu1 %v20009_v15  ;;  %v20126_v44 = vld [vmem:[#allocation7 + $0x680] ss:$16 sps:$4 sm:$0xff]   ;;  %v20131_v45 = vld [vmem:[#allocation7 + $0x6a4] ss:$16 sps:$4 sm:$0xff]  }
 0xc0e   :  { %v7519_v54 = vmax.f32 %v7511_v22, 0.0  ;;  %v7515_v55 = vpop.f32.mrb[39].mxu1  ;;  %8388 = vmatprep.subr.bf16.mxu0 %v20014_v46  ;;  %8470 = vmatprep.subr.bf16.mxu1 %v20017_v47  ;;  %v20129_v15 = vld [vmem:[#allocation7 + $0x6a0] ss:$16 sps:$4 sm:$0xff]   ;;  %v20134_v46 = vld [vmem:[#allocation7 + $0x6c4] ss:$16 sps:$4 sm:$0xff]  }
 0xc0f   :  { %v7520_v56 = vmax.f32 %v7513_v50, 0.0  ;;  %v20132_v47 = vld [vmem:[#allocation7 + $0x6c0] ss:$16 sps:$4 sm:$0xff]   ;;  %v20137_v48 = vld [vmem:[#allocation7 + $0x6e4] ss:$16 sps:$4 sm:$0xff]  }
 0xc10   :  { %v7523_v59 = vpack.c.bf16 %v7519_v54, %v7519_v54  ;;  %v20135_v22 = vld [vmem:[#allocation7 + $0x6e0] ss:$16 sps:$4 sm:$0xff]   ;;  %v20140_v49 = vld [vmem:[#allocation7 + $0x704] ss:$16 sps:$4 sm:$0xff]  }
 0xc11   :  { %v7524_v57 = vpack.c.bf16 %v7520_v56, %v7520_v56  ;;  %8389 = vmatpush1.bf16.msra.mxu0 %v20012_v52  ;;  %8471 = vmatpush1.bf16.msra.mxu1 %v20015_v53  ;;  %v20138_v50 = vld [vmem:[#allocation7 + $0x700] ss:$16 sps:$4 sm:$0xff]   ;;  %v20143_v51 = vld [vmem:[#allocation7 + $0x724] ss:$16 sps:$4 sm:$0xff]  }
 0xc12   :  { %8887 = vmatprep.subr.bf16.mxu0 %v20020_v32  ;;  %9381 = vmatprep.subr.bf16.mxu1 %v20116_v35  ;;  %v20141_v52 = vld [vmem:[#allocation7 + $0x720] ss:$16 sps:$4 sm:$0xff]   ;;  %v20146_v53 = vld [vmem:[#allocation7 + $0x744] ss:$16 sps:$4 sm:$0xff]  }
 0xc13   :  { %8390 = vmatprep.mubr.bf16.mxu0 %v7524_v57  ;;  %8472 = vmatprep.mubr.bf16.mxu1 %v7524_v57  ;;  %v20144_v54 = vld [vmem:[#allocation7 + $0x740] ss:$16 sps:$4 sm:$0xff]   ;;  %v20149_v55 = vld [vmem:[#allocation7 + $0x764] ss:$16 sps:$4 sm:$0xff]  }
 0xc14   :  { %8391 = vmatmul.mubr.bf16.vlgmr.msra.gmra.mrb[28].mxu0 %v7523_v59  ;;  %8473 = vmatmul.mubr.bf16.vlgmr.msra.gmra.mrb[40].mxu1 %v7523_v59  ;;  %v20147_v32 = vld [vmem:[#allocation7 + $0x760] ss:$16 sps:$4 sm:$0xff]   ;;  %v20152_v56 = vld [vmem:[#allocation7 + $0x784] ss:$16 sps:$4 sm:$0xff]  }
 0xc15   :  { %8888 = vmatpush1.bf16.msra.mxu0 %v20018_v58  ;;  %9382 = vmatpush1.bf16.msra.mxu1 %v20114_v34  ;;  %v20150_v57 = vld [vmem:[#allocation7 + $0x780] ss:$16 sps:$4 sm:$0xff]   ;;  %v20155_v58 = vld [vmem:[#allocation7 + $0x7a4] ss:$16 sps:$4 sm:$0xff]  }
 0xc16   :  { %8889 = vmatprep.subr.bf16.mxu0 %v20023_v60  ;;  %9383 = vmatprep.subr.bf16.mxu1 %v20119_v36  ;;  %v21699_v59 = vld [vmem:[#allocation18 + $0x7] ss:$8 sm:$0xf]  ;;  %v20153_v60 = vld [vmem:[#allocation7 + $0x7a0] ss:$16 sps:$4 sm:$0xff]  }
 0xc17   :  { %v20081_v34 = vld [vmem:[#allocation6 + $0x750] ss:$8 sps:$4 sm:$0xff]   ;;  %v20086_v35 = vld [vmem:[#allocation6 + $0x764] ss:$8 sps:$4 sm:$0xff]   ;;  %v20084_v36 = vld [vmem:[#allocation6 + $0x760] ss:$8 sps:$4 sm:$0xff]  }
 0xc19   :  { %8890 = vmatpush1.bf16.msra.mxu0 %v20021_v61  ;;  %9384 = vmatpush1.bf16.msra.mxu1 %v20117_v37  ;;  %v7660_v61 = vrot.slane %v21699_v59, %v21597_v14  ;;  %v20089_v37 = vld [vmem:[#allocation6 + $0x774] ss:$8 sps:$4 sm:$0xff]  }
 0xc1a   :  { %8891 = vmatprep.subr.bf16.mxu0 %v20026_v62  ;;  %9385 = vmatprep.subr.bf16.mxu1 %v20122_v38  ;;  %v7664_v62 = vrot.slane %v21699_v59, %v21602_v16  ;;  %v20087_v38 = vld [vmem:[#allocation6 + $0x770] ss:$8 sps:$4 sm:$0xff]  }
 0xc1d   :  { %8892 = vmatpush1.bf16.msra.mxu0 %v20024_v63  ;;  %9386 = vmatpush1.bf16.msra.mxu1 %v20120_v39  ;;  %v7672_v63 = vrot.slane %v21699_v59, %v21605_v17  ;;  %v20092_v39 = vld [vmem:[#allocation6 + $0x784] ss:$8 sps:$4 sm:$0xff]  }
 0xc1e   :  { %8893 = vmatprep.subr.bf16.mxu0 %v20029_v0  ;;  %9387 = vmatprep.subr.bf16.mxu1 %v20125_v40  ;;  %v20090_v40 = vld [vmem:[#allocation6 + $0x780] ss:$8 sps:$4 sm:$0xff]  }
 0xc21   :  { %8894 = vmatpush1.bf16.msra.mxu0 %v20027_v42  ;;  %9388 = vmatpush1.bf16.msra.mxu1 %v20123_v41  ;;  %v20095_v41 = vld [vmem:[#allocation6 + $0x794] ss:$8 sps:$4 sm:$0xff]  }
 0xc22   :  { %8895 = vmatprep.subr.bf16.mxu0 %v20032_v2  ;;  %9389 = vmatprep.subr.bf16.mxu1 %v20128_v43  ;;  %v20093_v43 = vld [vmem:[#allocation6 + $0x790] ss:$8 sps:$4 sm:$0xff]  }
 0xc25   :  { %8896 = vmatpush1.bf16.msra.mxu0 %v20030_v3  ;;  %9390 = vmatpush1.bf16.msra.mxu1 %v20126_v44  ;;  %v20098_v44 = vld [vmem:[#allocation6 + $0x7a4] ss:$8 sps:$4 sm:$0xff]  }
 0xc26   :  { %8897 = vmatprep.subr.bf16.mxu0 %v20035_v4  ;;  %9391 = vmatprep.subr.bf16.mxu1 %v20131_v45  ;;  %v20096_v45 = vld [vmem:[#allocation6 + $0x7a0] ss:$8 sps:$4 sm:$0xff]  }
 0xc29   :  { %8898 = vmatpush1.bf16.msra.mxu0 %v20033_v5  ;;  %9392 = vmatpush1.bf16.msra.mxu1 %v20129_v15  ;;  %v20101_v15 = vld [vmem:[#allocation6 + $0x7b4] ss:$8 sps:$4 sm:$0xff]  }
 0xc2a   :  { %8899 = vmatprep.subr.bf16.mxu0 %v20038_v6  ;;  %9393 = vmatprep.subr.bf16.mxu1 %v20134_v46  ;;  %v20099_v46 = vld [vmem:[#allocation6 + $0x7b0] ss:$8 sps:$4 sm:$0xff]  }
 0xc2d   :  { %8900 = vmatpush1.bf16.msra.mxu0 %v20036_v7  ;;  %9394 = vmatpush1.bf16.msra.mxu1 %v20132_v47  ;;  %v20104_v47 = vld [vmem:[#allocation6 + $0x7c4] ss:$8 sps:$4 sm:$0xff]  }
 0xc2e   :  { %8901 = vmatprep.subr.bf16.mxu0 %v20041_v8  ;;  %9395 = vmatprep.subr.bf16.mxu1 %v20137_v48  ;;  %v20102_v48 = vld [vmem:[#allocation6 + $0x7c0] ss:$8 sps:$4 sm:$0xff]  }
 0xc31   :  { %8902 = vmatpush1.bf16.msra.mxu0 %v20039_v9  ;;  %9396 = vmatpush1.bf16.msra.mxu1 %v20135_v22  ;;  %v20107_v22 = vld [vmem:[#allocation6 + $0x7d4] ss:$8 sps:$4 sm:$0xff]  }
 0xc32   :  { %8903 = vmatprep.subr.bf16.mxu0 %v20044_v10  ;;  %9397 = vmatprep.subr.bf16.mxu1 %v20140_v49  ;;  %v20105_v49 = vld [vmem:[#allocation6 + $0x7d0] ss:$8 sps:$4 sm:$0xff]  }
 0xc35   :  { %8904 = vmatpush1.bf16.msra.mxu0 %v20042_v12  ;;  %9398 = vmatpush1.bf16.msra.mxu1 %v20138_v50  ;;  %v7668_v50 = vrot.slane %v21699_v59, %v21616_v31  ;;  %v20161_v59 = vld [vmem:[#allocation7 + $0x7e4] ss:$16 sps:$4 sm:$0xff]  }
 0xc36   :  { %8905 = vmatprep.subr.bf16.mxu0 %v20047_v18  ;;  %9399 = vmatprep.subr.bf16.mxu1 %v20143_v51  ;;  %v20110_v51 = vld [vmem:[#allocation6 + $0x7e4] ss:$8 sps:$4 sm:$0xff]  }
 0xc39   :  { %8906 = vmatpush1.bf16.msra.mxu0 %v20045_v19  ;;  %9400 = vmatpush1.bf16.msra.mxu1 %v20141_v52  ;;  %v20108_v52 = vld [vmem:[#allocation6 + $0x7e0] ss:$8 sps:$4 sm:$0xff]  }
 0xc3a   :  { %8907 = vmatprep.subr.bf16.mxu0 %v20050_v20  ;;  %9401 = vmatprep.subr.bf16.mxu1 %v20146_v53 }
 0xc3d   :  { %8908 = vmatpush1.bf16.msra.mxu0 %v20048_v21  ;;  %9402 = vmatpush1.bf16.msra.mxu1 %v20144_v54  ;;  %v20066_v21 = vld [vmem:[#allocation6 + $0x700] ss:$8 sps:$4 sm:$0xff]   ;;  %v20113_v54 = vld [vmem:[#allocation6 + $0x7f4] ss:$8 sps:$4 sm:$0xff]  }
 0xc3e   :  { %8909 = vmatprep.subr.bf16.mxu0 %v20053_v11  ;;  %9403 = vmatprep.subr.bf16.mxu1 %v20149_v55  ;;  %v20111_v55 = vld [vmem:[#allocation6 + $0x7f0] ss:$8 sps:$4 sm:$0xff]  }
 0xc41   :  { %8910 = vmatpush1.bf16.msra.mxu0 %v20051_v23  ;;  %9404 = vmatpush1.bf16.msra.mxu1 %v20147_v32  ;;  %v20071_v23 = vld [vmem:[#allocation6 + $0x714] ss:$8 sps:$4 sm:$0xff]  }
 0xc42   :  { %8911 = vmatprep.subr.bf16.mxu0 %v20056_v24  ;;  %9405 = vmatprep.subr.bf16.mxu1 %v20152_v56 }
 0xc45   :  { %8912 = vmatpush1.bf16.msra.mxu0 %v20054_v25  ;;  %9406 = vmatpush1.bf16.msra.mxu1 %v20150_v57  ;;  %v20069_v25 = vld [vmem:[#allocation6 + $0x710] ss:$8 sps:$4 sm:$0xff]   ;;  %v20158_v57 = vld [vmem:[#allocation7 + $0x7c4] ss:$16 sps:$4 sm:$0xff]  }
 0xc46   :  { %8913 = vmatprep.subr.bf16.mxu0 %v20059_v26  ;;  %9407 = vmatprep.subr.bf16.mxu1 %v20155_v58  ;;  %v20074_v26 = vld [vmem:[#allocation6 + $0x724] ss:$8 sps:$4 sm:$0xff]   ;;  %v20156_v58 = vld [vmem:[#allocation7 + $0x7c0] ss:$16 sps:$4 sm:$0xff]  }
 0xc49   :  { %8914 = vmatpush1.bf16.msra.mxu0 %v20057_v27  ;;  %9408 = vmatpush1.bf16.msra.mxu1 %v20153_v60  ;;  %v20072_v27 = vld [vmem:[#allocation6 + $0x720] ss:$8 sps:$4 sm:$0xff]  }
 0xc4a   :  { %8915 = vmatprep.subr.bf16.mxu0 %v20062_v28  ;;  %v20077_v28 = vld [vmem:[#allocation6 + $0x734] ss:$8 sps:$4 sm:$0xff]   ;;  %9409 = vmatprep.subr.bf16.mxu1 %v20158_v57  ;;  %v20159_v60 = vld [vmem:[#allocation7 + $0x7e0] ss:$16 sps:$4 sm:$0xff]  }
 0xc4b   :  { %v20185_v57 = vld [vmem:[#allocation7 + $0x6ec] ss:$16 sps:$4 sm:$0xff]  }
 0xc4d   :  { %8916 = vmatpush1.bf16.msra.mxu0 %v20060_v29  ;;  %v20075_v29 = vld [vmem:[#allocation6 + $0x730] ss:$8 sps:$4 sm:$0xff]   ;;  %9410 = vmatpush1.bf16.msra.mxu1 %v20156_v58 }
 0xc4e   :  { %8917 = vmatprep.subr.bf16.mxu0 %v20065_v30  ;;  %v20080_v30 = vld [vmem:[#allocation6 + $0x744] ss:$8 sps:$4 sm:$0xff]   ;;  %9411 = vmatprep.subr.bf16.mxu1 %v20161_v59  ;;  %v20183_v58 = vld [vmem:[#allocation7 + $0x6e8] ss:$16 sps:$4 sm:$0xff]  }
 0xc4f   :  { %v20188_v59 = vld [vmem:[#allocation7 + $0x70c] ss:$16 sps:$4 sm:$0xff]  }
 0xc51   :  { %8918 = vmatpush1.bf16.msra.mxu0 %v20063_v1  ;;  %v20078_v1 = vld [vmem:[#allocation6 + $0x740] ss:$8 sps:$4 sm:$0xff]   ;;  %9412 = vmatpush1.bf16.msra.mxu1 %v20159_v60 }
 0xc52   :  { %8928 = vmatprep.subr.bf16.mxu0 %v20068_v33  ;;  %v20083_v33 = vld [vmem:[#allocation6 + $0x754] ss:$8 sps:$4 sm:$0xff]   ;;  %v20186_v60 = vld [vmem:[#allocation7 + $0x708] ss:$16 sps:$4 sm:$0xff]  }
 0xce7   :  { %v8392_v0 = vpop.f32.mrb[28].mxu0  ;;  %v21707_v42 = vpop.f32.mrb[40].mxu1 }
 0xce8   :  { %v18273_v2 = vadd.f32 %v8392_v0, %v7660_v61  ;;  %v8394_v3 = vpop.f32.mrb[29].mxu0  ;;  %v8476_v4 = vpop.f32.mrb[41].mxu1  ;;  %v18275_v53 = vadd.f32 %v21707_v42, %v7668_v50  ;;  %v20164_v61 = vld [vmem:[#allocation7 + $0x60c] ss:$16 sps:$4 sm:$0xff]   ;;  %v20218_v0 = vld [vmem:[#allocation4 + $0x1024] ss:$16 sps:$4 sm:$0xff]  }
 0xce9   :  { %v18274_v5 = vadd.f32 %v8394_v3, %v7664_v62  ;;  %v18276_v6 = vadd.f32 %v8476_v4, %v7672_v63  ;;  %v8396_v7 = vpop.f32.mrb[30].mxu0  ;;  %v8478_v8 = vpop.f32.mrb[42].mxu1  ;;  %9422 = vmatprep.subr.bf16.mxu1 %v20164_v61  ;;  %v20210_v62 = vld [vmem:[#allocation4 + $0x1000] ss:$16 sps:$4 sm:$0xff]   ;;  %v20212_v63 = vld [vmem:[#allocation4 + $0x1004] ss:$16 sps:$4 sm:$0xff]  }
 0xcea   :  { %v8481_v9 = vmax.f32 %v18273_v2, 0.0  ;;  %v8397_v10 = vpop.f32.mrb[31].mxu0  ;;  %v8479_v12 = vpop.f32.mrb[43].mxu1  ;;  %v8483_v32 = vmax.f32 %v18275_v53, 0.0  ;;  %v20216_v42 = vld [vmem:[#allocation4 + $0x1020] ss:$16 sps:$4 sm:$0xff]  }
 0xceb   :  { %v8482_v18 = vmax.f32 %v18274_v5, 0.0  ;;  %v8484_v19 = vmax.f32 %v18276_v6, 0.0  ;;  %v20224_v2 = vld [vmem:[#allocation4 + $0x1044] ss:$16 sps:$4 sm:$0xff]   ;;  %v20222_v3 = vld [vmem:[#allocation4 + $0x1040] ss:$16 sps:$4 sm:$0xff]  }
 0xcec   :  { %v8485_v11 = vpack.c.bf16 %v8481_v9, %v8481_v9  ;;  %v8487_v56 = vpack.c.bf16 %v8483_v32, %v8483_v32  ;;  %v20230_v4 = vld [vmem:[#allocation4 + $0x1064] ss:$16 sps:$4 sm:$0xff]   ;;  %v20228_v5 = vld [vmem:[#allocation4 + $0x1060] ss:$16 sps:$4 sm:$0xff]   ;;  %v20173_v50 = vld [vmem:[#allocation7 + $0x66c] ss:$16 sps:$4 sm:$0xff]  }
 0xced   :  { %v8486_v20 = vpack.c.bf16 %v8482_v18, %v8482_v18  ;;  %v8488_v24 = vpack.c.bf16 %v8484_v19, %v8484_v19  ;;  %v20236_v6 = vld [vmem:[#allocation4 + $0x1084] ss:$16 sps:$4 sm:$0xff]   ;;  %v20234_v7 = vld [vmem:[#allocation4 + $0x1080] ss:$16 sps:$4 sm:$0xff]   ;;  %v20174_v53 = vld [vmem:[#allocation7 + $0x688] ss:$16 sps:$4 sm:$0xff]  }
 0xcee   :  { %v20242_v8 = vld [vmem:[#allocation4 + $0x10a4] ss:$16 sps:$4 sm:$0xff]   ;;  %v20240_v9 = vld [vmem:[#allocation4 + $0x10a0] ss:$16 sps:$4 sm:$0xff]   ;;  %v20182_v32 = vld [vmem:[#allocation7 + $0x6cc] ss:$16 sps:$4 sm:$0xff]  }
 0xcef   :  { %8919 = vmatprep.mubr.bf16.mxu0 %v8486_v20  ;;  %v20248_v10 = vld [vmem:[#allocation4 + $0x10c4] ss:$16 sps:$4 sm:$0xff]   ;;  %v20246_v12 = vld [vmem:[#allocation4 + $0x10c0] ss:$16 sps:$4 sm:$0xff]   ;;  %v20191_v61 = vld [vmem:[#allocation7 + $0x72c] ss:$16 sps:$4 sm:$0xff]  }
 0xcf0   :  { %8920 = vmatmul.mubr.bf16.vlgmr.msra.gmra.mrb[32].mxu0 %v8485_v11  ;;  %v20254_v18 = vld [vmem:[#allocation4 + $0x10e4] ss:$16 sps:$4 sm:$0xff]   ;;  %v20252_v19 = vld [vmem:[#allocation4 + $0x10e0] ss:$16 sps:$4 sm:$0xff]  }
 0xcf1   :  { %8929 = vmatpush1.bf16.msra.mxu0 %v20066_v21  ;;  %8960 = vmatprep.mubr.bf16.mxu0 %v8488_v24  ;;  %v20260_v20 = vld [vmem:[#allocation4 + $0x1104] ss:$16 sps:$4 sm:$0xff]   ;;  %v20258_v21 = vld [vmem:[#allocation4 + $0x1100] ss:$16 sps:$4 sm:$0xff]  }
 0xcf2   :  { %8930 = vmatprep.subr.bf16.mxu0 %v20071_v23  ;;  %v20266_v11 = vld [vmem:[#allocation4 + $0x1124] ss:$16 sps:$4 sm:$0xff]   ;;  %v20264_v23 = vld [vmem:[#allocation4 + $0x1120] ss:$16 sps:$4 sm:$0xff]  }
 0xcf3   :  { %v20272_v24 = vld [vmem:[#allocation4 + $0x1144] ss:$16 sps:$4 sm:$0xff]  }
 0xcf5   :  { %8931 = vmatpush1.bf16.msra.mxu0 %v20069_v25  ;;  %v20270_v25 = vld [vmem:[#allocation4 + $0x1140] ss:$16 sps:$4 sm:$0xff]  }
 0xcf6   :  { %8932 = vmatprep.subr.bf16.mxu0 %v20074_v26  ;;  %v20278_v26 = vld [vmem:[#allocation4 + $0x1164] ss:$16 sps:$4 sm:$0xff]  }
 0xcf9   :  { %8933 = vmatpush1.bf16.msra.mxu0 %v20072_v27  ;;  %v20276_v27 = vld [vmem:[#allocation4 + $0x1160] ss:$16 sps:$4 sm:$0xff]  }
 0xcfa   :  { %8934 = vmatprep.subr.bf16.mxu0 %v20077_v28  ;;  %v20284_v28 = vld [vmem:[#allocation4 + $0x1184] ss:$16 sps:$4 sm:$0xff]  }
 0xcfd   :  { %8935 = vmatpush1.bf16.msra.mxu0 %v20075_v29  ;;  %v20282_v29 = vld [vmem:[#allocation4 + $0x1180] ss:$16 sps:$4 sm:$0xff]  }
 0xcfe   :  { %8936 = vmatprep.subr.bf16.mxu0 %v20080_v30  ;;  %v8555_v30 = vld [vmem:[#allocation19 + $0x3] ss:$8 sm:$0x3] }
 0xd01   :  { %8937 = vmatpush1.bf16.msra.mxu0 %v20078_v1  ;;  %v20290_v1 = vld [vmem:[#allocation4 + $0x11a4] ss:$16 sps:$4 sm:$0xff]  }
 0xd02   :  { %8938 = vmatprep.subr.bf16.mxu0 %v20083_v33  ;;  %v20288_v33 = vld [vmem:[#allocation4 + $0x11a0] ss:$16 sps:$4 sm:$0xff]  }
 0xd05   :  { %8939 = vmatpush1.bf16.msra.mxu0 %v20081_v34  ;;  %v8560_v34 = vrot.slane %v8555_v30, %v21597_v14 }
 0xd06   :  { %8940 = vmatprep.subr.bf16.mxu0 %v20086_v35  ;;  %v8564_v35 = vrot.slane %v8555_v30, %v21602_v16  ;;  %v20296_v30 = vld [vmem:[#allocation4 + $0x11c4] ss:$16 sps:$4 sm:$0xff]  }
 0xd09   :  { %8941 = vmatpush1.bf16.msra.mxu0 %v20084_v36 }
 0xd0a   :  { %8942 = vmatprep.subr.bf16.mxu0 %v20089_v37 }
 0xd0d   :  { %8943 = vmatpush1.bf16.msra.mxu0 %v20087_v38 }
 0xd0e   :  { %8944 = vmatprep.subr.bf16.mxu0 %v20092_v39 }
 0xd11   :  { %8945 = vmatpush1.bf16.msra.mxu0 %v20090_v40 }
 0xd12   :  { %8946 = vmatprep.subr.bf16.mxu0 %v20095_v41 }
 0xd15   :  { %8947 = vmatpush1.bf16.msra.mxu0 %v20093_v43 }
 0xd16   :  { %8948 = vmatprep.subr.bf16.mxu0 %v20098_v44 }
 0xd19   :  { %8949 = vmatpush1.bf16.msra.mxu0 %v20096_v45 }
 0xd1a   :  { %8950 = vmatprep.subr.bf16.mxu0 %v20101_v15  ;;  %v20162_v15 = vld [vmem:[#allocation7 + $0x608] ss:$16 sps:$4 sm:$0xff]  }
 0xd1d   :  { %8951 = vmatpush1.bf16.msra.mxu0 %v20099_v46 }
 0xd1e   :  { %8952 = vmatprep.subr.bf16.mxu0 %v20104_v47  ;;  %v20167_v47 = vld [vmem:[#allocation7 + $0x62c] ss:$16 sps:$4 sm:$0xff]  }
 0xd21   :  { %8953 = vmatpush1.bf16.msra.mxu0 %v20102_v48  ;;  %v20165_v48 = vld [vmem:[#allocation7 + $0x628] ss:$16 sps:$4 sm:$0xff]  }
 0xd22   :  { %8954 = vmatprep.subr.bf16.mxu0 %v20107_v22  ;;  %v20170_v22 = vld [vmem:[#allocation7 + $0x64c] ss:$16 sps:$4 sm:$0xff]  }
 0xd25   :  { %8955 = vmatpush1.bf16.msra.mxu0 %v20105_v49  ;;  %v20168_v49 = vld [vmem:[#allocation7 + $0x648] ss:$16 sps:$4 sm:$0xff]  }
 0xd26   :  { %8956 = vmatprep.subr.bf16.mxu0 %v20110_v51  ;;  %v20171_v51 = vld [vmem:[#allocation7 + $0x668] ss:$16 sps:$4 sm:$0xff]  }
 0xd29   :  { %8957 = vmatpush1.bf16.msra.mxu0 %v20108_v52  ;;  %v20176_v52 = vld [vmem:[#allocation7 + $0x68c] ss:$16 sps:$4 sm:$0xff]  }
 0xd2a   :  { %8958 = vmatprep.subr.bf16.mxu0 %v20113_v54  ;;  %v20179_v54 = vld [vmem:[#allocation7 + $0x6ac] ss:$16 sps:$4 sm:$0xff]  }
 0xd2d   :  { %8959 = vmatpush1.bf16.msra.mxu0 %v20111_v55  ;;  %v20177_v55 = vld [vmem:[#allocation7 + $0x6a8] ss:$16 sps:$4 sm:$0xff]  }
 0xd2e   :  { %10263 = vmatprep.subr.bf16.mxu0 %v20212_v63  ;;  %v20194_v63 = vld [vmem:[#allocation7 + $0x74c] ss:$16 sps:$4 sm:$0xff]  }
 0xd30   :  { %8961 = vmatmul.mubr.bf16.vlgmr.msra.gmra.mrb[32].mxu0 %v8487_v56  ;;  %v20180_v56 = vld [vmem:[#allocation7 + $0x6c8] ss:$16 sps:$4 sm:$0xff]  }
 0xd31   :  { %10264 = vmatpush1.bf16.msra.mxu0 %v20210_v62  ;;  %v20189_v62 = vld [vmem:[#allocation7 + $0x728] ss:$16 sps:$4 sm:$0xff]  }
 0xd32   :  { %10265 = vmatprep.subr.bf16.mxu0 %v20218_v0  ;;  %v20192_v0 = vld [vmem:[#allocation7 + $0x748] ss:$16 sps:$4 sm:$0xff]  }
 0xd35   :  { %10266 = vmatpush1.bf16.msra.mxu0 %v20216_v42  ;;  %v20197_v42 = vld [vmem:[#allocation7 + $0x76c] ss:$16 sps:$4 sm:$0xff]  }
 0xd36   :  { %10267 = vmatprep.subr.bf16.mxu0 %v20224_v2  ;;  %v20195_v2 = vld [vmem:[#allocation7 + $0x768] ss:$16 sps:$4 sm:$0xff]  }
 0xd39   :  { %10268 = vmatpush1.bf16.msra.mxu0 %v20222_v3  ;;  %v20200_v3 = vld [vmem:[#allocation7 + $0x78c] ss:$16 sps:$4 sm:$0xff]  }
 0xd3a   :  { %10269 = vmatprep.subr.bf16.mxu0 %v20230_v4  ;;  %v20198_v4 = vld [vmem:[#allocation7 + $0x788] ss:$16 sps:$4 sm:$0xff]  }
 0xd3d   :  { %10270 = vmatpush1.bf16.msra.mxu0 %v20228_v5  ;;  %v20203_v5 = vld [vmem:[#allocation7 + $0x7ac] ss:$16 sps:$4 sm:$0xff]  }
 0xd3e   :  { %10271 = vmatprep.subr.bf16.mxu0 %v20236_v6  ;;  %v20201_v6 = vld [vmem:[#allocation7 + $0x7a8] ss:$16 sps:$4 sm:$0xff]  }
 0xd41   :  { %10272 = vmatpush1.bf16.msra.mxu0 %v20234_v7  ;;  %v20206_v7 = vld [vmem:[#allocation7 + $0x7cc] ss:$16 sps:$4 sm:$0xff]  }
 0xd42   :  { %10273 = vmatprep.subr.bf16.mxu0 %v20242_v8  ;;  %v20204_v8 = vld [vmem:[#allocation7 + $0x7c8] ss:$16 sps:$4 sm:$0xff]  }
 0xd45   :  { %10274 = vmatpush1.bf16.msra.mxu0 %v20240_v9  ;;  %v20209_v9 = vld [vmem:[#allocation7 + $0x7ec] ss:$16 sps:$4 sm:$0xff]  }
 0xd46   :  { %10275 = vmatprep.subr.bf16.mxu0 %v20248_v10  ;;  %v20207_v10 = vld [vmem:[#allocation7 + $0x7e8] ss:$16 sps:$4 sm:$0xff]  }
 0xd49   :  { %10276 = vmatpush1.bf16.msra.mxu0 %v20246_v12  ;;  %v20215_v12 = vld [vmem:[#allocation4 + $0x100c] ss:$16 sps:$4 sm:$0xff]  }
 0xd4a   :  { %10277 = vmatprep.subr.bf16.mxu0 %v20254_v18  ;;  %v20213_v18 = vld [vmem:[#allocation4 + $0x1008] ss:$16 sps:$4 sm:$0xff]  }
 0xd4d   :  { %10278 = vmatpush1.bf16.msra.mxu0 %v20252_v19  ;;  %v20221_v19 = vld [vmem:[#allocation4 + $0x102c] ss:$16 sps:$4 sm:$0xff]  }
 0xd4e   :  { %10279 = vmatprep.subr.bf16.mxu0 %v20260_v20  ;;  %v20219_v20 = vld [vmem:[#allocation4 + $0x1028] ss:$16 sps:$4 sm:$0xff]  }
 0xd51   :  { %10280 = vmatpush1.bf16.msra.mxu0 %v20258_v21  ;;  %v20227_v21 = vld [vmem:[#allocation4 + $0x104c] ss:$16 sps:$4 sm:$0xff]  }
 0xd52   :  { %10281 = vmatprep.subr.bf16.mxu0 %v20266_v11  ;;  %v20225_v11 = vld [vmem:[#allocation4 + $0x1048] ss:$16 sps:$4 sm:$0xff]  }
 0xd55   :  { %10282 = vmatpush1.bf16.msra.mxu0 %v20264_v23  ;;  %v20233_v23 = vld [vmem:[#allocation4 + $0x106c] ss:$16 sps:$4 sm:$0xff]  }
 0xd56   :  { %10283 = vmatprep.subr.bf16.mxu0 %v20272_v24  ;;  %v20231_v24 = vld [vmem:[#allocation4 + $0x1068] ss:$16 sps:$4 sm:$0xff]  }
 0xd59   :  { %10284 = vmatpush1.bf16.msra.mxu0 %v20270_v25  ;;  %v20239_v25 = vld [vmem:[#allocation4 + $0x108c] ss:$16 sps:$4 sm:$0xff]  }
 0xd5a   :  { %10285 = vmatprep.subr.bf16.mxu0 %v20278_v26  ;;  %v20237_v26 = vld [vmem:[#allocation4 + $0x1088] ss:$16 sps:$4 sm:$0xff]  }
 0xd5d   :  { %10286 = vmatpush1.bf16.msra.mxu0 %v20276_v27  ;;  %v20245_v27 = vld [vmem:[#allocation4 + $0x10ac] ss:$16 sps:$4 sm:$0xff]  }
 0xd5e   :  { %10287 = vmatprep.subr.bf16.mxu0 %v20284_v28  ;;  %v20243_v28 = vld [vmem:[#allocation4 + $0x10a8] ss:$16 sps:$4 sm:$0xff]  }
 0xd61   :  { %10288 = vmatpush1.bf16.msra.mxu0 %v20282_v29  ;;  %v20251_v29 = vld [vmem:[#allocation4 + $0x10cc] ss:$16 sps:$4 sm:$0xff]  }
 0xd62   :  { %10289 = vmatprep.subr.bf16.mxu0 %v20290_v1  ;;  %v20294_v1 = vld [vmem:[#allocation4 + $0x11c0] ss:$16 sps:$4 sm:$0xff]  }
 0xd65   :  { %10290 = vmatpush1.bf16.msra.mxu0 %v20288_v33  ;;  %v20249_v33 = vld [vmem:[#allocation4 + $0x10c8] ss:$16 sps:$4 sm:$0xff]  }
 0xd66   :  { %10291 = vmatprep.subr.bf16.mxu0 %v20296_v30  ;;  %v20339_v30 = vld [vmem:[#allocation4 + $0x12a8] ss:$16 sps:$4 sm:$0xff]  }
 0xd69   :  { %10292 = vmatpush1.bf16.msra.mxu0 %v20294_v1  ;;  %v20344_v1 = vld [vmem:[#allocation4 + $0x12c4] ss:$16 sps:$4 sm:$0xff]  }
 0xe03   :  { %v8962_v36 = vpop.f32.mrb[32].mxu0 }
 0xe04   :  { %v18277_v37 = vadd.f32 %v8962_v36, %v8560_v34  ;;  %v8964_v38 = vpop.f32.mrb[33].mxu0  ;;  %v20257_v34 = vld [vmem:[#allocation4 + $0x10ec] ss:$16 sps:$4 sm:$0xff]   ;;  %v20300_v36 = vld [vmem:[#allocation4 + $0x11e0] ss:$16 sps:$4 sm:$0xff]  }
 0xe05   :  { %v18278_v39 = vadd.f32 %v8964_v38, %v8564_v35  ;;  %v8966_v40 = vpop.f32.mrb[34].mxu0  ;;  %v20302_v35 = vld [vmem:[#allocation4 + $0x11e4] ss:$16 sps:$4 sm:$0xff]   ;;  %v20263_v38 = vld [vmem:[#allocation4 + $0x110c] ss:$16 sps:$4 sm:$0xff]  }
 0xe06   :  { %v8969_v41 = vmax.f32 %v18277_v37, 0.0  ;;  %v8967_v43 = vpop.f32.mrb[35].mxu0  ;;  %10293 = vmatprep.subr.bf16.mxu0 %v20302_v35  ;;  %v20255_v37 = vld [vmem:[#allocation4 + $0x10e8] ss:$16 sps:$4 sm:$0xff]  }
 0xe07   :  { %v8970_v44 = vmax.f32 %v18278_v39, 0.0  ;;  %10294 = vmatpush1.bf16.msra.mxu0 %v20300_v36  ;;  %v20308_v39 = vld [vmem:[#allocation4 + $0x1204] ss:$16 sps:$4 sm:$0xff]   ;;  %v20261_v40 = vld [vmem:[#allocation4 + $0x1108] ss:$16 sps:$4 sm:$0xff]  }
 0xe08   :  { %v21714_v46 = vpack.c.bf16 %v8969_v41, %v8969_v41  ;;  %10304 = vmatprep.subr.bf16.mxu0 %v20308_v39  ;;  %v20269_v41 = vld [vmem:[#allocation4 + $0x112c] ss:$16 sps:$4 sm:$0xff]   ;;  %v20267_v43 = vld [vmem:[#allocation4 + $0x1128] ss:$16 sps:$4 sm:$0xff]   ;;  %v20350_v36 = vld [vmem:[#allocation4 + $0x12e4] ss:$16 sps:$4 sm:$0xff]  }
 0xe09   :  { %v8972_v45 = vpack.c.bf16 %v8970_v44, %v8970_v44  ;;  %v20275_v44 = vld [vmem:[#allocation4 + $0x114c] ss:$16 sps:$4 sm:$0xff]   ;;  %v20345_v35 = vld [vmem:[#allocation4 + $0x12c8] ss:$16 sps:$4 sm:$0xff]  }
 0xe0a   :  { %v20351_v39 = vld [vmem:[#allocation4 + $0x12e8] ss:$16 sps:$4 sm:$0xff]  }
 0xe0b   :  { %9413 = vmatprep.mubr.bf16.mxu1 %v8972_v45 }
 0xe0c   :  { %9414 = vmatmul.mubr.bf16.vlgmr.msra.gmra.mrb[44].mxu1 %v21714_v46 }
 0xe0d   :  { %9423 = vmatpush1.bf16.msra.mxu1 %v20162_v15  ;;  %9454 = vmatprep.mubr.bf16.mxu1 %v8972_v45  ;;  %v20273_v45 = vld [vmem:[#allocation4 + $0x1148] ss:$16 sps:$4 sm:$0xff]   ;;  %v20281_v15 = vld [vmem:[#allocation4 + $0x116c] ss:$16 sps:$4 sm:$0xff]  }
 0xe0e   :  { %9424 = vmatprep.subr.bf16.mxu1 %v20167_v47  ;;  %v20287_v47 = vld [vmem:[#allocation4 + $0x118c] ss:$16 sps:$4 sm:$0xff]  }
 0xe11   :  { %9425 = vmatpush1.bf16.msra.mxu1 %v20165_v48  ;;  %v20285_v48 = vld [vmem:[#allocation4 + $0x1188] ss:$16 sps:$4 sm:$0xff]  }
 0xe12   :  { %9426 = vmatprep.subr.bf16.mxu1 %v20170_v22  ;;  %v20293_v22 = vld [vmem:[#allocation4 + $0x11ac] ss:$16 sps:$4 sm:$0xff]  }
 0xe15   :  { %9427 = vmatpush1.bf16.msra.mxu1 %v20168_v49  ;;  %v20291_v49 = vld [vmem:[#allocation4 + $0x11a8] ss:$16 sps:$4 sm:$0xff]  }
 0xe16   :  { %9428 = vmatprep.subr.bf16.mxu1 %v20173_v50  ;;  %v20299_v50 = vld [vmem:[#allocation4 + $0x11cc] ss:$16 sps:$4 sm:$0xff]  }
 0xe19   :  { %9429 = vmatpush1.bf16.msra.mxu1 %v20171_v51  ;;  %v20297_v51 = vld [vmem:[#allocation4 + $0x11c8] ss:$16 sps:$4 sm:$0xff]  }
 0xe1a   :  { %9430 = vmatprep.subr.bf16.mxu1 %v20176_v52  ;;  %v20305_v52 = vld [vmem:[#allocation4 + $0x11ec] ss:$16 sps:$4 sm:$0xff]  }
 0xe1d   :  { %9431 = vmatpush1.bf16.msra.mxu1 %v20174_v53  ;;  %v20303_v53 = vld [vmem:[#allocation4 + $0x11e8] ss:$16 sps:$4 sm:$0xff]  }
 0xe1e   :  { %9432 = vmatprep.subr.bf16.mxu1 %v20179_v54  ;;  %v20311_v54 = vld [vmem:[#allocation4 + $0x120c] ss:$16 sps:$4 sm:$0xff]  }
 0xe21   :  { %9433 = vmatpush1.bf16.msra.mxu1 %v20177_v55  ;;  %v21718_v55 = vld [vmem:[#allocation18 + $0x20] ss:$8 sm:$0xf] }
 0xe22   :  { %9434 = vmatprep.subr.bf16.mxu1 %v20182_v32  ;;  %v9044_v32 = vrot.slane %v21718_v55, %v21597_v14 }
 0xe25   :  { %9435 = vmatpush1.bf16.msra.mxu1 %v20180_v56  ;;  %v9048_v56 = vrot.slane %v21718_v55, %v21602_v16 }
 0xe26   :  { %9436 = vmatprep.subr.bf16.mxu1 %v20185_v57 }
 0xe29   :  { %9437 = vmatpush1.bf16.msra.mxu1 %v20183_v58 }
 0xe2a   :  { %9438 = vmatprep.subr.bf16.mxu1 %v20188_v59 }
 0xe2d   :  { %9439 = vmatpush1.bf16.msra.mxu1 %v20186_v60 }
 0xe2e   :  { %9440 = vmatprep.subr.bf16.mxu1 %v20191_v61 }
 0xe31   :  { %9441 = vmatpush1.bf16.msra.mxu1 %v20189_v62 }
 0xe32   :  { %9442 = vmatprep.subr.bf16.mxu1 %v20194_v63 }
 0xe35   :  { %9443 = vmatpush1.bf16.msra.mxu1 %v20192_v0 }
 0xe36   :  { %9444 = vmatprep.subr.bf16.mxu1 %v20197_v42 }
 0xe39   :  { %9445 = vmatpush1.bf16.msra.mxu1 %v20195_v2  ;;  %v20306_v2 = vld [vmem:[#allocation4 + $0x1200] ss:$16 sps:$4 sm:$0xff]  }
 0xe3a   :  { %9446 = vmatprep.subr.bf16.mxu1 %v20200_v3  ;;  %v20309_v3 = vld [vmem:[#allocation4 + $0x1208] ss:$16 sps:$4 sm:$0xff]  }
 0xe3d   :  { %9447 = vmatpush1.bf16.msra.mxu1 %v20198_v4 }
 0xe3e   :  { %9448 = vmatprep.subr.bf16.mxu1 %v20203_v5  ;;  %v20314_v5 = vld [vmem:[#allocation4 + $0x1224] ss:$16 sps:$4 sm:$0xff]  }
 0xe41   :  { %9449 = vmatpush1.bf16.msra.mxu1 %v20201_v6  ;;  %v20317_v6 = vld [vmem:[#allocation4 + $0x122c] ss:$16 sps:$4 sm:$0xff]  }
 0xe42   :  { %9450 = vmatprep.subr.bf16.mxu1 %v20206_v7  ;;  %v20312_v7 = vld [vmem:[#allocation4 + $0x1220] ss:$16 sps:$4 sm:$0xff]  }
 0xe45   :  { %9451 = vmatpush1.bf16.msra.mxu1 %v20204_v8  ;;  %v20315_v8 = vld [vmem:[#allocation4 + $0x1228] ss:$16 sps:$4 sm:$0xff]  }
 0xe46   :  { %9452 = vmatprep.subr.bf16.mxu1 %v20209_v9  ;;  %v20320_v9 = vld [vmem:[#allocation4 + $0x1244] ss:$16 sps:$4 sm:$0xff]  }
 0xe49   :  { %9453 = vmatpush1.bf16.msra.mxu1 %v20207_v10  ;;  %v20323_v10 = vld [vmem:[#allocation4 + $0x124c] ss:$16 sps:$4 sm:$0xff]  }
 0xe4a   :  { %10345 = vmatprep.subr.bf16.mxu1 %v20215_v12  ;;  %v20318_v12 = vld [vmem:[#allocation4 + $0x1240] ss:$16 sps:$4 sm:$0xff]  }
 0xe4c   :  { %9455 = vmatmul.mubr.bf16.vlgmr.msra.gmra.mrb[48].mxu1 %v21714_v46  ;;  %v20279_v46 = vld [vmem:[#allocation4 + $0x1168] ss:$16 sps:$4 sm:$0xff]  }
 0xe4d   :  { %10346 = vmatpush1.bf16.msra.mxu1 %v20213_v18  ;;  %v20321_v18 = vld [vmem:[#allocation4 + $0x1248] ss:$16 sps:$4 sm:$0xff]  }
 0xe4e   :  { %10347 = vmatprep.subr.bf16.mxu1 %v20221_v19  ;;  %v20326_v19 = vld [vmem:[#allocation4 + $0x1264] ss:$16 sps:$4 sm:$0xff]  }
 0xe51   :  { %10348 = vmatpush1.bf16.msra.mxu1 %v20219_v20  ;;  %v20329_v20 = vld [vmem:[#allocation4 + $0x126c] ss:$16 sps:$4 sm:$0xff]  }
 0xe52   :  { %10349 = vmatprep.subr.bf16.mxu1 %v20227_v21  ;;  %v20324_v21 = vld [vmem:[#allocation4 + $0x1260] ss:$16 sps:$4 sm:$0xff]  }
 0xe55   :  { %10350 = vmatpush1.bf16.msra.mxu1 %v20225_v11  ;;  %v20327_v11 = vld [vmem:[#allocation4 + $0x1268] ss:$16 sps:$4 sm:$0xff]  }
 0xe56   :  { %10351 = vmatprep.subr.bf16.mxu1 %v20233_v23  ;;  %v20332_v23 = vld [vmem:[#allocation4 + $0x1284] ss:$16 sps:$4 sm:$0xff]  }
 0xe59   :  { %10352 = vmatpush1.bf16.msra.mxu1 %v20231_v24  ;;  %v20335_v24 = vld [vmem:[#allocation4 + $0x128c] ss:$16 sps:$4 sm:$0xff]  }
 0xe5a   :  { %10353 = vmatprep.subr.bf16.mxu1 %v20239_v25  ;;  %v20330_v25 = vld [vmem:[#allocation4 + $0x1280] ss:$16 sps:$4 sm:$0xff]  }
 0xe5d   :  { %10354 = vmatpush1.bf16.msra.mxu1 %v20237_v26  ;;  %v20333_v26 = vld [vmem:[#allocation4 + $0x1288] ss:$16 sps:$4 sm:$0xff]  }
 0xe5e   :  { %10355 = vmatprep.subr.bf16.mxu1 %v20245_v27  ;;  %v20338_v27 = vld [vmem:[#allocation4 + $0x12a4] ss:$16 sps:$4 sm:$0xff]  }
 0xe61   :  { %10356 = vmatpush1.bf16.msra.mxu1 %v20243_v28  ;;  %v20341_v28 = vld [vmem:[#allocation4 + $0x12ac] ss:$16 sps:$4 sm:$0xff]  }
 0xe62   :  { %10357 = vmatprep.subr.bf16.mxu1 %v20251_v29  ;;  %v20336_v29 = vld [vmem:[#allocation4 + $0x12a0] ss:$16 sps:$4 sm:$0xff]  }
 0xe65   :  { %10358 = vmatpush1.bf16.msra.mxu1 %v20249_v33  ;;  %v20347_v33 = vld [vmem:[#allocation4 + $0x12cc] ss:$16 sps:$4 sm:$0xff]  }
 0xe66   :  { %10359 = vmatprep.subr.bf16.mxu1 %v20257_v34  ;;  %v20342_v34 = vld [vmem:[#allocation4 + $0x12c0] ss:$16 sps:$4 sm:$0xff]  }
 0xe69   :  { %10360 = vmatpush1.bf16.msra.mxu1 %v20255_v37  ;;  %v20353_v37 = vld [vmem:[#allocation4 + $0x12ec] ss:$16 sps:$4 sm:$0xff]  }
 0xe6a   :  { %10361 = vmatprep.subr.bf16.mxu1 %v20263_v38  ;;  %v20348_v38 = vld [vmem:[#allocation4 + $0x12e0] ss:$16 sps:$4 sm:$0xff]  }
 0xe6d   :  { %10362 = vmatpush1.bf16.msra.mxu1 %v20261_v40  ;;  %v20356_v40 = vld [vmem:[#allocation4 + $0x1304] ss:$16 sps:$4 sm:$0xff]  }
 0xe6e   :  { %10363 = vmatprep.subr.bf16.mxu1 %v20269_v41  ;;  %v20359_v41 = vld [vmem:[#allocation4 + $0x130c] ss:$16 sps:$4 sm:$0xff]  }
 0xe71   :  { %10364 = vmatpush1.bf16.msra.mxu1 %v20267_v43  ;;  %v20354_v43 = vld [vmem:[#allocation4 + $0x1300] ss:$16 sps:$4 sm:$0xff]  }
 0xe72   :  { %10365 = vmatprep.subr.bf16.mxu1 %v20275_v44  ;;  %v20357_v44 = vld [vmem:[#allocation4 + $0x1308] ss:$16 sps:$4 sm:$0xff]  }
 0xe75   :  { %10366 = vmatpush1.bf16.msra.mxu1 %v20273_v45  ;;  %v20362_v45 = vld [vmem:[#allocation4 + $0x1324] ss:$16 sps:$4 sm:$0xff]  }
 0xe76   :  { %10367 = vmatprep.subr.bf16.mxu1 %v20281_v15  ;;  %v20365_v15 = vld [vmem:[#allocation4 + $0x132c] ss:$16 sps:$4 sm:$0xff]  }
 0xe79   :  { %10368 = vmatpush1.bf16.msra.mxu1 %v20279_v46  ;;  %v20360_v46 = vld [vmem:[#allocation4 + $0x1320] ss:$16 sps:$4 sm:$0xff]  }
 0xe7a   :  { %10369 = vmatprep.subr.bf16.mxu1 %v20287_v47  ;;  %v20363_v47 = vld [vmem:[#allocation4 + $0x1328] ss:$16 sps:$4 sm:$0xff]  }
 0xe7d   :  { %10370 = vmatpush1.bf16.msra.mxu1 %v20285_v48  ;;  %v20368_v48 = vld [vmem:[#allocation4 + $0x1344] ss:$16 sps:$4 sm:$0xff]  }
 0xe7e   :  { %10371 = vmatprep.subr.bf16.mxu1 %v20293_v22  ;;  %v20371_v22 = vld [vmem:[#allocation4 + $0x134c] ss:$16 sps:$4 sm:$0xff]  }
 0xe81   :  { %10372 = vmatpush1.bf16.msra.mxu1 %v20291_v49  ;;  %v20366_v49 = vld [vmem:[#allocation4 + $0x1340] ss:$16 sps:$4 sm:$0xff]  }
 0xe82   :  { %10373 = vmatprep.subr.bf16.mxu1 %v20299_v50  ;;  %v20369_v50 = vld [vmem:[#allocation4 + $0x1348] ss:$16 sps:$4 sm:$0xff]  }
 0xe85   :  { %10374 = vmatpush1.bf16.msra.mxu1 %v20297_v51  ;;  %v20374_v51 = vld [vmem:[#allocation4 + $0x1364] ss:$16 sps:$4 sm:$0xff]  }
 0xe86   :  { %10375 = vmatprep.subr.bf16.mxu1 %v20305_v52  ;;  %v20377_v52 = vld [vmem:[#allocation4 + $0x136c] ss:$16 sps:$4 sm:$0xff]  }
 0xe89   :  { %10376 = vmatpush1.bf16.msra.mxu1 %v20303_v53  ;;  %v20372_v53 = vld [vmem:[#allocation4 + $0x1360] ss:$16 sps:$4 sm:$0xff]  }
 0xe8a   :  { %10386 = vmatprep.subr.bf16.mxu1 %v20311_v54  ;;  %v20375_v54 = vld [vmem:[#allocation4 + $0x1368] ss:$16 sps:$4 sm:$0xff]  }
 0xedf   :  { %v9415_v57 = vpop.f32.mrb[44].mxu1 }
 0xee0   :  { %v9416_v58 = vadd.f32 %v9415_v57, %v9044_v32  ;;  %v9417_v59 = vpop.f32.mrb[45].mxu1  ;;  %v20380_v32 = vld [vmem:[#allocation4 + $0x1384] ss:$16 sps:$4 sm:$0xff]   ;;  %v20378_v57 = vld [vmem:[#allocation4 + $0x1380] ss:$16 sps:$4 sm:$0xff]  }
 0xee1   :  { %v9418_v60 = vadd.f32 %v9417_v59, %v9048_v56  ;;  %v9419_v61 = vpop.f32.mrb[46].mxu1  ;;  %v20383_v56 = vld [vmem:[#allocation4 + $0x138c] ss:$16 sps:$4 sm:$0xff]   ;;  %v20386_v59 = vld [vmem:[#allocation4 + $0x13a4] ss:$16 sps:$4 sm:$0xff]  }
 0xee2   :  { %v9463_v62 = vmax.f32 %v9416_v58, 0.0  ;;  %v9420_v63 = vpop.f32.mrb[47].mxu1  ;;  %v20381_v58 = vld [vmem:[#allocation4 + $0x1388] ss:$16 sps:$4 sm:$0xff]   ;;  %v20384_v61 = vld [vmem:[#allocation4 + $0x13a0] ss:$16 sps:$4 sm:$0xff]  }
 0xee3   :  { %v9464_v0 = vmax.f32 %v9418_v60, 0.0  ;;  %v20389_v60 = vld [vmem:[#allocation4 + $0x13ac] ss:$16 sps:$4 sm:$0xff]   ;;  %v20392_v63 = vld [vmem:[#allocation4 + $0x13c4] ss:$16 sps:$4 sm:$0xff]  }
 0xee4   :  { %v9467_v4 = vpack.c.bf16 %v9463_v62, %v9463_v62  ;;  %v20387_v62 = vld [vmem:[#allocation4 + $0x13a8] ss:$16 sps:$4 sm:$0xff]  }
 0xee5   :  { %v9468_v42 = vpack.c.bf16 %v9464_v0, %v9464_v0  ;;  %v20395_v0 = vld [vmem:[#allocation4 + $0x13cc] ss:$16 sps:$4 sm:$0xff]  }
 0xee7   :  { %10295 = vmatprep.mubr.bf16.mxu0 %v9468_v42  ;;  %10377 = vmatprep.mubr.bf16.mxu1 %v9468_v42  ;;  %v9052_v42 = vrot.slane %v21718_v55, %v21616_v31 }
 0xee8   :  { %10296 = vmatmul.mubr.bf16.vlgmr.msra.gmra.mrb[36].mxu0 %v9467_v4  ;;  %10378 = vmatmul.mubr.bf16.vlgmr.msra.gmra.mrb[52].mxu1 %v9467_v4  ;;  %v20393_v4 = vld [vmem:[#allocation4 + $0x13c8] ss:$16 sps:$4 sm:$0xff]  }
 0xee9   :  { %10305 = vmatpush1.bf16.msra.mxu0 %v20306_v2  ;;  %10387 = vmatpush1.bf16.msra.mxu1 %v20309_v3  ;;  %v9056_v2 = vrot.slane %v21718_v55, %v21605_v17  ;;  %v20390_v3 = vld [vmem:[#allocation4 + $0x13c0] ss:$16 sps:$4 sm:$0xff]  }
 0xeea   :  { %10306 = vmatprep.subr.bf16.mxu0 %v20314_v5  ;;  %10388 = vmatprep.subr.bf16.mxu1 %v20317_v6  ;;  %v20398_v5 = vld [vmem:[#allocation4 + $0x13e4] ss:$16 sps:$4 sm:$0xff]   ;;  %v20401_v6 = vld [vmem:[#allocation4 + $0x13ec] ss:$16 sps:$4 sm:$0xff]  }
 0xeeb   :  { %v20402_v55 = vld [vmem:[#allocation9 + $0x40] sm:$0xff]  }
 0xeed   :  { %10307 = vmatpush1.bf16.msra.mxu0 %v20312_v7  ;;  %10389 = vmatpush1.bf16.msra.mxu1 %v20315_v8 }
 0xeee   :  { %10308 = vmatprep.subr.bf16.mxu0 %v20320_v9  ;;  %10390 = vmatprep.subr.bf16.mxu1 %v20323_v10 }
 0xef1   :  { %10309 = vmatpush1.bf16.msra.mxu0 %v20318_v12  ;;  %10391 = vmatpush1.bf16.msra.mxu1 %v20321_v18  ;;  %v20396_v18 = vld [vmem:[#allocation4 + $0x13e0] ss:$16 sps:$4 sm:$0xff]  }
 0xef2   :  { %10310 = vmatprep.subr.bf16.mxu0 %v20326_v19  ;;  %10392 = vmatprep.subr.bf16.mxu1 %v20329_v20  ;;  %v20399_v19 = vld [vmem:[#allocation4 + $0x13e8] ss:$16 sps:$4 sm:$0xff]  }
 0xef5   :  { %10311 = vmatpush1.bf16.msra.mxu0 %v20324_v21  ;;  %10393 = vmatpush1.bf16.msra.mxu1 %v20327_v11  ;;  %v20403_v11 = vld [vmem:[#allocation9 + $0xc0] sm:$0xff]  }
 0xef6   :  { %10312 = vmatprep.subr.bf16.mxu0 %v20332_v23  ;;  %10394 = vmatprep.subr.bf16.mxu1 %v20335_v24 }
 0xef9   :  { %10313 = vmatpush1.bf16.msra.mxu0 %v20330_v25  ;;  %10395 = vmatpush1.bf16.msra.mxu1 %v20333_v26  ;;  %v20404_v25 = vld [vmem:[#allocation9] sm:$0xff]  }
 0xefa   :  { %10314 = vmatprep.subr.bf16.mxu0 %v20338_v27  ;;  %10396 = vmatprep.subr.bf16.mxu1 %v20341_v28  ;;  %v20405_v26 = vld [vmem:[#allocation9 + $0x80] sm:$0xff]   ;;  %v20406_v28 = vld [vmem:[#allocation9 + $0x48] sm:$0xff]  }
 0xefd   :  { %10315 = vmatpush1.bf16.msra.mxu0 %v20336_v29  ;;  %10397 = vmatpush1.bf16.msra.mxu1 %v20339_v30  ;;  %v20407_v29 = vld [vmem:[#allocation9 + $0xc8] sm:$0xff]  }
 0xefe   :  { %10316 = vmatprep.subr.bf16.mxu0 %v20344_v1  ;;  %10398 = vmatprep.subr.bf16.mxu1 %v20347_v33  ;;  %v20408_v30 = vld [vmem:[#allocation9 + $0x8] sm:$0xff]   ;;  %v20410_v33 = vld [vmem:[#allocation9 + $0x50] sm:$0xff]  }
 0xeff   :  { %v20409_v1 = vld [vmem:[#allocation9 + $0x88] sm:$0xff]  }
 0xf01   :  { %10317 = vmatpush1.bf16.msra.mxu0 %v20342_v34  ;;  %10399 = vmatpush1.bf16.msra.mxu1 %v20345_v35  ;;  %v20411_v34 = vld [vmem:[#allocation9 + $0xd0] sm:$0xff]  }
 0xf02   :  { %10318 = vmatprep.subr.bf16.mxu0 %v20350_v36  ;;  %10400 = vmatprep.subr.bf16.mxu1 %v20353_v37  ;;  %v20412_v35 = vld [vmem:[#allocation9 + $0x10] sm:$0xff]   ;;  %v20414_v37 = vld [vmem:[#allocation9 + $0x58] sm:$0xff]  }
 0xf03   :  { %v20413_v36 = vld [vmem:[#allocation9 + $0x90] sm:$0xff]  }
 0xf05   :  { %10319 = vmatpush1.bf16.msra.mxu0 %v20348_v38  ;;  %10401 = vmatpush1.bf16.msra.mxu1 %v20351_v39  ;;  %v20415_v38 = vld [vmem:[#allocation9 + $0xd8] sm:$0xff]  }
 0xf06   :  { %10320 = vmatprep.subr.bf16.mxu0 %v20356_v40  ;;  %10402 = vmatprep.subr.bf16.mxu1 %v20359_v41  ;;  %v20416_v39 = vld [vmem:[#allocation9 + $0x18] sm:$0xff]   ;;  %v20418_v41 = vld [vmem:[#allocation9 + $0x60] sm:$0xff]  }
 0xf07   :  { %v20417_v40 = vld [vmem:[#allocation9 + $0x98] sm:$0xff]  }
 0xf09   :  { %10321 = vmatpush1.bf16.msra.mxu0 %v20354_v43  ;;  %10403 = vmatpush1.bf16.msra.mxu1 %v20357_v44  ;;  %v20419_v43 = vld [vmem:[#allocation9 + $0xe0] sm:$0xff]  }
 0xf0a   :  { %10322 = vmatprep.subr.bf16.mxu0 %v20362_v45  ;;  %10404 = vmatprep.subr.bf16.mxu1 %v20365_v15  ;;  %v20420_v44 = vld [vmem:[#allocation9 + $0x20] sm:$0xff]   ;;  %v20422_v15 = vld [vmem:[#allocation9 + $0x68] sm:$0xff]  }
 0xf0b   :  { %v20421_v45 = vld [vmem:[#allocation9 + $0xa0] sm:$0xff]  }
 0xf0d   :  { %10323 = vmatpush1.bf16.msra.mxu0 %v20360_v46  ;;  %10405 = vmatpush1.bf16.msra.mxu1 %v20363_v47  ;;  %v20423_v46 = vld [vmem:[#allocation9 + $0xe8] sm:$0xff]  }
 0xf0e   :  { %10324 = vmatprep.subr.bf16.mxu0 %v20368_v48  ;;  %10406 = vmatprep.subr.bf16.mxu1 %v20371_v22  ;;  %v20424_v47 = vld [vmem:[#allocation9 + $0x28] sm:$0xff]   ;;  %v20426_v22 = vld [vmem:[#allocation9 + $0x70] sm:$0xff]  }
 0xf0f   :  { %v20425_v48 = vld [vmem:[#allocation9 + $0xa8] sm:$0xff]  }
 0xf11   :  { %10325 = vmatpush1.bf16.msra.mxu0 %v20366_v49  ;;  %10407 = vmatpush1.bf16.msra.mxu1 %v20369_v50  ;;  %v20427_v49 = vld [vmem:[#allocation9 + $0xf0] sm:$0xff]  }
 0xf12   :  { %10326 = vmatprep.subr.bf16.mxu0 %v20374_v51  ;;  %10408 = vmatprep.subr.bf16.mxu1 %v20377_v52  ;;  %v20428_v50 = vld [vmem:[#allocation9 + $0x30] sm:$0xff]   ;;  %v20430_v52 = vld [vmem:[#allocation9 + $0x78] sm:$0xff]  }
 0xf13   :  { %v20429_v51 = vld [vmem:[#allocation9 + $0xb0] sm:$0xff]  }
 0xf15   :  { %10327 = vmatpush1.bf16.msra.mxu0 %v20372_v53  ;;  %10409 = vmatpush1.bf16.msra.mxu1 %v20375_v54  ;;  %v20431_v53 = vld [vmem:[#allocation9 + $0xf8] sm:$0xff]  }
 0xf16   :  { %10328 = vmatprep.subr.bf16.mxu0 %v20380_v32  ;;  %10410 = vmatprep.subr.bf16.mxu1 %v20383_v56  ;;  %v20432_v54 = vld [vmem:[#allocation9 + $0x38] sm:$0xff]   ;;  %v20436_v56 = vld [vmem:[#allocation10 + $0x4] ss:$8 sps:$4 sm:$0xff]  }
 0xf17   :  { %v20433_v32 = vld [vmem:[#allocation9 + $0xb8] sm:$0xff]  }
 0xf19   :  { %10329 = vmatpush1.bf16.msra.mxu0 %v20378_v57  ;;  %10411 = vmatpush1.bf16.msra.mxu1 %v20381_v58  ;;  %v9601_v57 = vld [vmem:[#allocation18 + $0x21] ss:$8 sm:$0xf] }
 0xf1a   :  { %10330 = vmatprep.subr.bf16.mxu0 %v20386_v59  ;;  %10412 = vmatprep.subr.bf16.mxu1 %v20389_v60  ;;  %v9606_v58 = vrot.slane %v9601_v57, %v21597_v14  ;;  %v9614_v59 = vrot.slane %v9601_v57, %v21616_v31  ;;  %v9610_v60 = vrot.slane %v9601_v57, %v21602_v16 }
 0xf1d   :  { %10331 = vmatpush1.bf16.msra.mxu0 %v20384_v61  ;;  %10413 = vmatpush1.bf16.msra.mxu1 %v20387_v62  ;;  %v9618_v61 = vrot.slane %v9601_v57, %v21605_v17  ;;  %v20487_v57 = vld [vmem:[#allocation12 + $0x94] ss:$8 sps:$4 sm:$0xff]  }
 0xf1e   :  { %10332 = vmatprep.subr.bf16.mxu0 %v20392_v63  ;;  %10414 = vmatprep.subr.bf16.mxu1 %v20395_v0 }
 0xf1f   :  { %v9456_v7 = vpop.f32.mrb[48].mxu1 }
 0xf20   :  { %v9457_v8 = vadd.f32 %v9456_v7, %v9052_v42  ;;  %v9458_v9 = vpop.f32.mrb[49].mxu1 }
 0xf21   :  { %v9459_v10 = vadd.f32 %v9458_v9, %v9056_v2  ;;  %v9460_v12 = vpop.f32.mrb[50].mxu1  ;;  %10333 = vmatpush1.bf16.msra.mxu0 %v20390_v3  ;;  %10415 = vmatpush1.bf16.msra.mxu1 %v20393_v4 }
 0xf22   :  { %v9465_v20 = vmax.f32 %v9457_v8, 0.0  ;;  %v9461_v21 = vpop.f32.mrb[51].mxu1  ;;  %10334 = vmatprep.subr.bf16.mxu0 %v20398_v5  ;;  %10416 = vmatprep.subr.bf16.mxu1 %v20401_v6 }
 0xf23   :  { %v9466_v23 = vmax.f32 %v9459_v10, 0.0 }
 0xf24   :  { %v9469_v27 = vpack.c.bf16 %v9465_v20, %v9465_v20 }
 0xf25   :  { %v9470_v24 = vpack.c.bf16 %v9466_v23, %v9466_v23  ;;  %10335 = vmatpush1.bf16.msra.mxu0 %v20396_v18  ;;  %10417 = vmatpush1.bf16.msra.mxu1 %v20399_v19 }
 0xf26   :  { %17597 = vmatprep.subr.bf16.mxu0 %v20402_v55  ;;  %17619 = vmatprep.subr.bf16.mxu1 %v20403_v11  ;;  %v20434_v55 = vld [vmem:[#allocation10] ss:$8 sps:$4 sm:$0xff]  }
 0xf27   :  { %10336 = vmatprep.mubr.bf16.mxu0 %v9470_v24  ;;  %10418 = vmatprep.mubr.bf16.mxu1 %v9470_v24  ;;  %v20439_v24 = vld [vmem:[#allocation10 + $0x14] ss:$8 sps:$4 sm:$0xff]  }
 0xf28   :  { %10337 = vmatmul.mubr.bf16.vlgmr.msra.gmra.mrb[36].mxu0 %v9469_v27  ;;  %10419 = vmatmul.mubr.bf16.vlgmr.msra.gmra.mrb[52].mxu1 %v9469_v27  ;;  %v20440_v27 = vld [vmem:[#allocation10 + $0x20] ss:$8 sps:$4 sm:$0xff]  }
 0xf29   :  { %17598 = vmatpush3.bf16.msra.mxu0 %v20404_v25  ;;  %17620 = vmatpush3.bf16.msra.mxu1 %v20405_v26  ;;  %v20437_v25 = vld [vmem:[#allocation10 + $0x10] ss:$8 sps:$4 sm:$0xff]   ;;  %v20442_v26 = vld [vmem:[#allocation10 + $0x24] ss:$8 sps:$4 sm:$0xff]  }
 0xf2a   :  { %17599 = vmatprep.subr.bf16.mxu0 %v20406_v28  ;;  %17621 = vmatprep.subr.bf16.mxu1 %v20407_v29  ;;  %v20445_v28 = vld [vmem:[#allocation10 + $0x34] ss:$8 sps:$4 sm:$0xff]   ;;  %v20443_v29 = vld [vmem:[#allocation10 + $0x30] ss:$8 sps:$4 sm:$0xff]  }
 0xf2d   :  { %17600 = vmatpush3.bf16.msra.mxu0 %v20408_v30  ;;  %17622 = vmatpush3.bf16.msra.mxu1 %v20409_v1  ;;  %v20448_v30 = vld [vmem:[#allocation10 + $0x44] ss:$8 sps:$4 sm:$0xff]   ;;  %v20446_v1 = vld [vmem:[#allocation10 + $0x40] ss:$8 sps:$4 sm:$0xff]  }
 0xf2e   :  { %17601 = vmatprep.subr.bf16.mxu0 %v20410_v33  ;;  %17623 = vmatprep.subr.bf16.mxu1 %v20411_v34  ;;  %v20451_v33 = vld [vmem:[#allocation10 + $0x54] ss:$8 sps:$4 sm:$0xff]   ;;  %v20449_v34 = vld [vmem:[#allocation10 + $0x50] ss:$8 sps:$4 sm:$0xff]  }
 0xf31   :  { %17602 = vmatpush3.bf16.msra.mxu0 %v20412_v35  ;;  %17624 = vmatpush3.bf16.msra.mxu1 %v20413_v36  ;;  %v20454_v35 = vld [vmem:[#allocation10 + $0x64] ss:$8 sps:$4 sm:$0xff]   ;;  %v20452_v36 = vld [vmem:[#allocation10 + $0x60] ss:$8 sps:$4 sm:$0xff]  }
 0xf32   :  { %17603 = vmatprep.subr.bf16.mxu0 %v20414_v37  ;;  %17625 = vmatprep.subr.bf16.mxu1 %v20415_v38  ;;  %v20457_v37 = vld [vmem:[#allocation10 + $0x74] ss:$8 sps:$4 sm:$0xff]   ;;  %v20455_v38 = vld [vmem:[#allocation10 + $0x70] ss:$8 sps:$4 sm:$0xff]  }
 0xf35   :  { %17604 = vmatpush3.bf16.msra.mxu0 %v20416_v39  ;;  %17626 = vmatpush3.bf16.msra.mxu1 %v20417_v40  ;;  %v21276_v39 = vmov 0   ;;  %v20458_v40 = vld [vmem:[#allocation12] ss:$8 sps:$4 sm:$0xff]  }
 0xf36   :  { %17605 = vmatprep.subr.bf16.mxu0 %v20418_v41  ;;  %17627 = vmatprep.subr.bf16.mxu1 %v20419_v43  ;;  %v20460_v41 = vld [vmem:[#allocation12 + $0x4] ss:$8 sps:$4 sm:$0xff]   ;;  %v20463_v43 = vld [vmem:[#allocation12 + $0x14] ss:$8 sps:$4 sm:$0xff]  }
 0xf39   :  { %17606 = vmatpush3.bf16.msra.mxu0 %v20420_v44  ;;  %17628 = vmatpush3.bf16.msra.mxu1 %v20421_v45  ;;  %v20461_v44 = vld [vmem:[#allocation12 + $0x10] ss:$8 sps:$4 sm:$0xff]   ;;  %v20466_v45 = vld [vmem:[#allocation12 + $0x24] ss:$8 sps:$4 sm:$0xff]  }
 0xf3a   :  { %17607 = vmatprep.subr.bf16.mxu0 %v20422_v15  ;;  %17629 = vmatprep.subr.bf16.mxu1 %v20423_v46  ;;  %v20464_v15 = vld [vmem:[#allocation12 + $0x20] ss:$8 sps:$4 sm:$0xff]   ;;  %v20469_v46 = vld [vmem:[#allocation12 + $0x34] ss:$8 sps:$4 sm:$0xff]  }
 0xf3d   :  { %17608 = vmatpush3.bf16.msra.mxu0 %v20424_v47  ;;  %17630 = vmatpush3.bf16.msra.mxu1 %v20425_v48  ;;  %v20467_v47 = vld [vmem:[#allocation12 + $0x30] ss:$8 sps:$4 sm:$0xff]   ;;  %v20472_v48 = vld [vmem:[#allocation12 + $0x44] ss:$8 sps:$4 sm:$0xff]  }
 0xf3e   :  { %17609 = vmatprep.subr.bf16.mxu0 %v20426_v22  ;;  %17631 = vmatprep.subr.bf16.mxu1 %v20427_v49  ;;  %v20470_v22 = vld [vmem:[#allocation12 + $0x40] ss:$8 sps:$4 sm:$0xff]   ;;  %v20475_v49 = vld [vmem:[#allocation12 + $0x54] ss:$8 sps:$4 sm:$0xff]  }
 0xf41   :  { %17610 = vmatpush3.bf16.msra.mxu0 %v20428_v50  ;;  %17632 = vmatpush3.bf16.msra.mxu1 %v20429_v51  ;;  %v20473_v50 = vld [vmem:[#allocation12 + $0x50] ss:$8 sps:$4 sm:$0xff]   ;;  %v20478_v51 = vld [vmem:[#allocation12 + $0x64] ss:$8 sps:$4 sm:$0xff]  }
 0xf42   :  { %17611 = vmatprep.subr.bf16.mxu0 %v20430_v52  ;;  %17633 = vmatprep.subr.bf16.mxu1 %v20431_v53  ;;  %v20476_v52 = vld [vmem:[#allocation12 + $0x60] ss:$8 sps:$4 sm:$0xff]   ;;  %v20481_v53 = vld [vmem:[#allocation12 + $0x74] ss:$8 sps:$4 sm:$0xff]  }
 0xf45   :  { %17612 = vmatpush3.bf16.msra.mxu0 %v20432_v54  ;;  %17634 = vmatpush3.bf16.msra.mxu1 %v20433_v32  ;;  %v20479_v54 = vld [vmem:[#allocation12 + $0x70] ss:$8 sps:$4 sm:$0xff]   ;;  %v20484_v32 = vld [vmem:[#allocation12 + $0x84] ss:$8 sps:$4 sm:$0xff]  }
 0xf46   :  { %10887 = vmatprep.subr.bf16.mxu0 %v20436_v56  ;;  %11137 = vmatprep.subr.bf16.mxu1 %v20460_v41  ;;  %v20482_v56 = vld [vmem:[#allocation12 + $0x80] ss:$8 sps:$4 sm:$0xff]   ;;  %v10795_v41 = vld [vmem:[#allocation19 + $0x4] ss:$8 sm:$0x3] }
 0xffb   :  { %v10338_v62 = vpop.f32.mrb[36].mxu0  ;;  %v10420_v63 = vpop.f32.mrb[52].mxu1 }
 0xffc   :  { %v18279_v0 = vadd.f32 %v10338_v62, %v9606_v58  ;;  %v18281_v42 = vadd.f32 %v10420_v63, %v9614_v59  ;;  %v10340_v2 = vpop.f32.mrb[37].mxu0  ;;  %v10422_v3 = vpop.f32.mrb[53].mxu1  ;;  %v20485_v58 = vld [vmem:[#allocation12 + $0x90] ss:$8 sps:$4 sm:$0xff]   ;;  %v20490_v59 = vld [vmem:[#allocation12 + $0xa4] ss:$8 sps:$4 sm:$0xff]  }
 0xffd   :  { %v18280_v4 = vadd.f32 %v10340_v2, %v9610_v60  ;;  %v18282_v5 = vadd.f32 %v10422_v3, %v9618_v61  ;;  %v10342_v6 = vpop.f32.mrb[38].mxu0  ;;  %v10424_v7 = vpop.f32.mrb[54].mxu1  ;;  %v20488_v60 = vld [vmem:[#allocation12 + $0xa0] ss:$8 sps:$4 sm:$0xff]   ;;  %v20493_v61 = vld [vmem:[#allocation12 + $0xb4] ss:$8 sps:$4 sm:$0xff]  }
 0xffe   :  { %v10427_v8 = vmax.f32 %v18279_v0, 0.0  ;;  %v10429_v9 = vmax.f32 %v18281_v42, 0.0  ;;  %v10343_v10 = vpop.f32.mrb[39].mxu0  ;;  %v10425_v12 = vpop.f32.mrb[55].mxu1  ;;  %v20491_v62 = vld [vmem:[#allocation12 + $0xb0] ss:$8 sps:$4 sm:$0xff]  }
 0xfff   :  { %v10428_v18 = vmax.f32 %v18280_v4, 0.0  ;;  %v10430_v19 = vmax.f32 %v18282_v5, 0.0  ;;  %v20496_v63 = vld [vmem:[#allocation12 + $0xc4] ss:$8 sps:$4 sm:$0xff]   ;;  %v20494_v0 = vld [vmem:[#allocation12 + $0xc0] ss:$8 sps:$4 sm:$0xff]  }
0x1000   :  { %v10431_v11 = vpack.c.bf16 %v10427_v8, %v10427_v8  ;;  %v10433_v23 = vpack.c.bf16 %v10429_v9, %v10429_v9  ;;  %v20499_v42 = vld [vmem:[#allocation12 + $0xd4] ss:$8 sps:$4 sm:$0xff]   ;;  %v20497_v2 = vld [vmem:[#allocation12 + $0xd0] ss:$8 sps:$4 sm:$0xff]   ;;  %v17078_v5 = vld [vmem:[#allocation21] ss:$0 sm:$0xff] }
0x1001   :  { %v10432_v20 = vpack.c.bf16 %v10428_v18, %v10428_v18  ;;  %v10434_v21 = vpack.c.bf16 %v10430_v19, %v10430_v19 }
0x1003   :  { %10728 = vmatprep.mubr.bf16.mxu0 %v10432_v20  ;;  %10768 = vmatprep.mubr.bf16.mxu1 %v10434_v21 }
0x1004   :  { %10729 = vmatmul.mubr.bf16.vlgmr.msra.gmra.mrb[40].mxu0 %v10431_v11  ;;  %10769 = vmatmul.mubr.bf16.vlgmr.msra.gmra.mrb[56].mxu1 %v10433_v23  ;;  %v20502_v23 = vld [vmem:[#allocation12 + $0xe4] ss:$8 sps:$4 sm:$0xff]  }
0x1005   :  { %10888 = vmatpush1.bf16.msra.mxu0 %v20434_v55  ;;  %10919 = vmatprep.mubr.bf16.mxu0 %v21276_v39 }
0x1006   :  { %10889 = vmatprep.subr.bf16.mxu0 %v20439_v24  ;;  %11138 = vmatpush1.bf16.msra.mxu1 %v20458_v40  ;;  %v20500_v24 = vld [vmem:[#allocation12 + $0xe0] ss:$8 sps:$4 sm:$0xff]  }
0x1007   :  { %11139 = vmatprep.subr.bf16.mxu1 %v20463_v43  ;;  %v20517_v40 = vld [vmem:[#allocation13 + $0x28] sm:$0xff]   ;;  %v10800_v43 = vrot.slane %v10795_v41, %v21597_v14 }
0x1009   :  { %10890 = vmatpush1.bf16.msra.mxu0 %v20437_v25  ;;  %v20505_v25 = vld [vmem:[#allocation12 + $0xf4] ss:$8 sps:$4 sm:$0xff]  }
0x100a   :  { %10891 = vmatprep.subr.bf16.mxu0 %v20442_v26  ;;  %11140 = vmatpush1.bf16.msra.mxu1 %v20461_v44  ;;  %v20503_v26 = vld [vmem:[#allocation12 + $0xf0] ss:$8 sps:$4 sm:$0xff]   ;;  %v10804_v44 = vrot.slane %v10795_v41, %v21602_v16  ;;  %v20566_v41 = vld [vmem:[#allocation12 + $0x164] ss:$8 sps:$4 sm:$0xff]  }
0x100b   :  { %11141 = vmatprep.subr.bf16.mxu1 %v20466_v45 }
0x100d   :  { %10892 = vmatpush1.bf16.msra.mxu0 %v20440_v27  ;;  %v20506_v27 = vld [vmem:[#allocation13 + $0x40] sm:$0xff]  }
0x100e   :  { %10893 = vmatprep.subr.bf16.mxu0 %v20445_v28  ;;  %11142 = vmatpush1.bf16.msra.mxu1 %v20464_v15  ;;  %v20507_v28 = vld [vmem:[#allocation13] sm:$0xff]  }
0x100f   :  { %11143 = vmatprep.subr.bf16.mxu1 %v20469_v46 }
0x1011   :  { %10894 = vmatpush1.bf16.msra.mxu0 %v20443_v29  ;;  %v20508_v29 = vld [vmem:[#allocation13 + $0x48] sm:$0xff]  }
0x1012   :  { %10895 = vmatprep.subr.bf16.mxu0 %v20448_v30  ;;  %11144 = vmatpush1.bf16.msra.mxu1 %v20467_v47  ;;  %v20509_v30 = vld [vmem:[#allocation13 + $0x8] sm:$0xff]  }
0x1013   :  { %11145 = vmatprep.subr.bf16.mxu1 %v20472_v48 }
0x1015   :  { %10896 = vmatpush1.bf16.msra.mxu0 %v20446_v1  ;;  %v20510_v1 = vld [vmem:[#allocation13 + $0x50] sm:$0xff]  }
0x1016   :  { %10897 = vmatprep.subr.bf16.mxu0 %v20451_v33  ;;  %11146 = vmatpush1.bf16.msra.mxu1 %v20470_v22  ;;  %v20511_v33 = vld [vmem:[#allocation13 + $0x10] sm:$0xff]  }
0x1017   :  { %11147 = vmatprep.subr.bf16.mxu1 %v20475_v49 }
0x1019   :  { %10898 = vmatpush1.bf16.msra.mxu0 %v20449_v34  ;;  %v20512_v34 = vld [vmem:[#allocation13 + $0x58] sm:$0xff]  }
0x101a   :  { %10899 = vmatprep.subr.bf16.mxu0 %v20454_v35  ;;  %11148 = vmatpush1.bf16.msra.mxu1 %v20473_v50  ;;  %v20513_v35 = vld [vmem:[#allocation13 + $0x18] sm:$0xff]  }
0x101b   :  { %11149 = vmatprep.subr.bf16.mxu1 %v20478_v51 }
0x101d   :  { %10900 = vmatpush1.bf16.msra.mxu0 %v20452_v36  ;;  %v20514_v36 = vld [vmem:[#allocation13 + $0x60] sm:$0xff]  }
0x101e   :  { %10901 = vmatprep.subr.bf16.mxu0 %v20457_v37  ;;  %11150 = vmatpush1.bf16.msra.mxu1 %v20476_v52  ;;  %v20515_v37 = vld [vmem:[#allocation13 + $0x20] sm:$0xff]  }
0x101f   :  { %11151 = vmatprep.subr.bf16.mxu1 %v20481_v53  ;;  %v20518_v53 = vld [vmem:[#allocation13 + $0x70] sm:$0xff]  }
0x1021   :  { %10902 = vmatpush1.bf16.msra.mxu0 %v20455_v38  ;;  %v20516_v38 = vld [vmem:[#allocation13 + $0x68] sm:$0xff]  }
0x1022   :  { %11152 = vmatpush1.bf16.msra.mxu1 %v20479_v54  ;;  %17641 = vmatprep.subr.bf16.mxu0 %v20506_v27  ;;  %v20519_v54 = vld [vmem:[#allocation13 + $0x30] sm:$0xff]   ;;  %v20546_v27 = vld [vmem:[#allocation12 + $0x100] ss:$8 sps:$4 sm:$0xff]  }
0x1023   :  { %11153 = vmatprep.subr.bf16.mxu1 %v20484_v32  ;;  %v20520_v32 = vld [vmem:[#allocation13 + $0x78] sm:$0xff]  }
0x1026   :  { %11154 = vmatpush1.bf16.msra.mxu1 %v20482_v56  ;;  %v20521_v56 = vld [vmem:[#allocation13 + $0x38] sm:$0xff]  }
0x1027   :  { %11155 = vmatprep.subr.bf16.mxu1 %v20487_v57  ;;  %v20524_v57 = vld [vmem:[#allocation10 + $0x84] ss:$8 sps:$4 sm:$0xff]  }
0x102a   :  { %11156 = vmatpush1.bf16.msra.mxu1 %v20485_v58  ;;  %v10965_v58 = vld [vmem:[#allocation19 + $0x5] ss:$8 sm:$0x3] }
0x102b   :  { %11157 = vmatprep.subr.bf16.mxu1 %v20490_v59  ;;  %v10970_v59 = vrot.slane %v10965_v58, %v21597_v14 }
0x102e   :  { %11158 = vmatpush1.bf16.msra.mxu1 %v20488_v60  ;;  %v10974_v60 = vrot.slane %v10965_v58, %v21602_v16 }
0x102f   :  { %11159 = vmatprep.subr.bf16.mxu1 %v20493_v61 }
0x1032   :  { %11160 = vmatpush1.bf16.msra.mxu1 %v20491_v62 }
0x1033   :  { %11161 = vmatprep.subr.bf16.mxu1 %v20496_v63 }
0x1036   :  { %11162 = vmatpush1.bf16.msra.mxu1 %v20494_v0 }
0x1037   :  { %11163 = vmatprep.subr.bf16.mxu1 %v20499_v42 }
0x103a   :  { %11164 = vmatpush1.bf16.msra.mxu1 %v20497_v2 }
0x103b   :  { %11165 = vmatprep.subr.bf16.mxu1 %v20502_v23  ;;  %v20542_v23 = vld [vmem:[#allocation10 + $0xe4] ss:$8 sps:$4 sm:$0xff]  }
0x103e   :  { %11166 = vmatpush1.bf16.msra.mxu1 %v20500_v24  ;;  %v20540_v24 = vld [vmem:[#allocation10 + $0xe0] ss:$8 sps:$4 sm:$0xff]  }
0x103f   :  { %11167 = vmatprep.subr.bf16.mxu1 %v20505_v25  ;;  %v20545_v25 = vld [vmem:[#allocation10 + $0xf4] ss:$8 sps:$4 sm:$0xff]  }
0x1042   :  { %11168 = vmatpush1.bf16.msra.mxu1 %v20503_v26  ;;  %v20543_v26 = vld [vmem:[#allocation10 + $0xf0] ss:$8 sps:$4 sm:$0xff]  }
0x10d7   :  { %v17613_v3 = vpop.f32.mrb[40].mxu0  ;;  %v17635_v4 = vpop.f32.mrb[56].mxu1 }
0x10d8   :  { %v17614_v6 = vpop.f32.mrb[41].mxu0  ;;  %v17636_v7 = vpop.f32.mrb[57].mxu1 }
0x10d9   :  { %v17615_v8 = vadd.f32 %v17614_v6, %v17613_v3  ;;  %v17637_v9 = vadd.f32 %v17636_v7, %v17635_v4  ;;  %v17616_v10 = vpop.f32.mrb[42].mxu0  ;;  %v17638_v12 = vpop.f32.mrb[58].mxu1  ;;  %v20522_v6 = vld [vmem:[#allocation10 + $0x80] ss:$8 sps:$4 sm:$0xff]  }
0x10da   :  { %v17617_v18 = vpop.f32.mrb[43].mxu0  ;;  %v17639_v19 = vpop.f32.mrb[59].mxu1  ;;  %v20530_v10 = vld [vmem:[#allocation10 + $0xa4] ss:$8 sps:$4 sm:$0xff]   ;;  %v20528_v12 = vld [vmem:[#allocation10 + $0xa0] ss:$8 sps:$4 sm:$0xff]  }
0x10db   :  { %v10731_v20 = vadd.f32 %v17615_v8, %v17078_v5  ;;  %v20527_v8 = vld [vmem:[#allocation10 + $0x94] ss:$8 sps:$4 sm:$0xff]   ;;  %v20531_v19 = vld [vmem:[#allocation10 + $0xb0] ss:$8 sps:$4 sm:$0xff]  }
0x10dc   :  { %v20533_v18 = vld [vmem:[#allocation10 + $0xb4] ss:$8 sps:$4 sm:$0xff]  }
0x10dd   :  { %v10771_v21 = vadd.f32 %v17637_v9, %v10731_v20  ;;  %v20525_v9 = vld [vmem:[#allocation10 + $0x90] ss:$8 sps:$4 sm:$0xff]   ;;  %v20536_v20 = vld [vmem:[#allocation10 + $0xc4] ss:$8 sps:$4 sm:$0xff]  }
0x10df   :  { %v10776_v55 = vmax.f32 %v10771_v21, 0.0  ;;  %v20534_v21 = vld [vmem:[#allocation10 + $0xc0] ss:$8 sps:$4 sm:$0xff]  }
0x10e1   :  { %v10777_v11 = vpack.c.bf16 %v10776_v55, %v10776_v55  ;;  %v20539_v55 = vld [vmem:[#allocation10 + $0xd4] ss:$8 sps:$4 sm:$0xff]  }
0x10e3   :  { %10920 = vmatmul.mubr.bf16.vlgmr.msra.gmra.mrb[44].mxu0 %v10777_v11  ;;  %v20537_v11 = vld [vmem:[#allocation10 + $0xd0] ss:$8 sps:$4 sm:$0xff]  }
0x10e4   :  { %17642 = vmatpush3.bf16.msra.mxu0 %v20507_v28  ;;  %v20548_v28 = vld [vmem:[#allocation12 + $0x104] ss:$8 sps:$4 sm:$0xff]  }
0x10e5   :  { %17643 = vmatprep.subr.bf16.mxu0 %v20508_v29  ;;  %v20551_v29 = vld [vmem:[#allocation12 + $0x114] ss:$8 sps:$4 sm:$0xff]   ;;  %11718 = vmatprep.subr.bf16.mxu1 %v20548_v28 }
0x10e8   :  { %17644 = vmatpush3.bf16.msra.mxu0 %v20509_v30  ;;  %v20549_v30 = vld [vmem:[#allocation12 + $0x110] ss:$8 sps:$4 sm:$0xff]  }
0x10e9   :  { %17645 = vmatprep.subr.bf16.mxu0 %v20510_v1  ;;  %v20554_v1 = vld [vmem:[#allocation12 + $0x124] ss:$8 sps:$4 sm:$0xff]  }
0x10ec   :  { %17646 = vmatpush3.bf16.msra.mxu0 %v20511_v33  ;;  %v20552_v33 = vld [vmem:[#allocation12 + $0x120] ss:$8 sps:$4 sm:$0xff]  }
0x10ed   :  { %17647 = vmatprep.subr.bf16.mxu0 %v20512_v34  ;;  %v20557_v34 = vld [vmem:[#allocation12 + $0x134] ss:$8 sps:$4 sm:$0xff]  }
0x10f0   :  { %17648 = vmatpush3.bf16.msra.mxu0 %v20513_v35  ;;  %v20555_v35 = vld [vmem:[#allocation12 + $0x130] ss:$8 sps:$4 sm:$0xff]  }
0x10f1   :  { %17649 = vmatprep.subr.bf16.mxu0 %v20514_v36  ;;  %v20560_v36 = vld [vmem:[#allocation12 + $0x144] ss:$8 sps:$4 sm:$0xff]  }
0x10f4   :  { %17650 = vmatpush3.bf16.msra.mxu0 %v20515_v37  ;;  %v20558_v37 = vld [vmem:[#allocation12 + $0x140] ss:$8 sps:$4 sm:$0xff]  }
0x10f5   :  { %17651 = vmatprep.subr.bf16.mxu0 %v20516_v38  ;;  %v20563_v38 = vld [vmem:[#allocation12 + $0x154] ss:$8 sps:$4 sm:$0xff]  }
0x10f8   :  { %17652 = vmatpush3.bf16.msra.mxu0 %v20517_v40  ;;  %v20561_v40 = vld [vmem:[#allocation12 + $0x150] ss:$8 sps:$4 sm:$0xff]  }
0x10f9   :  { %17653 = vmatprep.subr.bf16.mxu0 %v20518_v53  ;;  %v20582_v53 = vld [vmem:[#allocation12 + $0x1c0] ss:$8 sps:$4 sm:$0xff]  }
0x10fc   :  { %17654 = vmatpush3.bf16.msra.mxu0 %v20519_v54  ;;  %v20587_v54 = vld [vmem:[#allocation12 + $0x1d4] ss:$8 sps:$4 sm:$0xff]  }
0x10fd   :  { %17655 = vmatprep.subr.bf16.mxu0 %v20520_v32  ;;  %v20585_v32 = vld [vmem:[#allocation12 + $0x1d0] ss:$8 sps:$4 sm:$0xff]  }
0x1100   :  { %17656 = vmatpush3.bf16.msra.mxu0 %v20521_v56 }
0x1101   :  { %11467 = vmatprep.subr.bf16.mxu0 %v20524_v57  ;;  %v17159_v57 = vld [vmem:[#allocation21 + $0x1] ss:$0 sm:$0xff] }
0x11b6   :  { %v10921_v45 = vpop.f32.mrb[44].mxu0 }
0x11b7   :  { %v10922_v15 = vadd.f32 %v10921_v45, %v10800_v43  ;;  %v10923_v46 = vpop.f32.mrb[45].mxu0  ;;  %v20564_v43 = vld [vmem:[#allocation12 + $0x160] ss:$8 sps:$4 sm:$0xff]   ;;  %v20567_v45 = vld [vmem:[#allocation12 + $0x170] ss:$8 sps:$4 sm:$0xff]  }
0x11b8   :  { %v10924_v47 = vadd.f32 %v10923_v46, %v10804_v44  ;;  %v10925_v48 = vpop.f32.mrb[46].mxu0  ;;  %v20569_v44 = vld [vmem:[#allocation12 + $0x174] ss:$8 sps:$4 sm:$0xff]   ;;  %v20570_v46 = vld [vmem:[#allocation12 + $0x180] ss:$8 sps:$4 sm:$0xff]  }
0x11b9   :  { %v10928_v22 = vmax.f32 %v10922_v15, 0.0  ;;  %v10926_v49 = vpop.f32.mrb[47].mxu0  ;;  %v20572_v15 = vld [vmem:[#allocation12 + $0x184] ss:$8 sps:$4 sm:$0xff]   ;;  %v20573_v48 = vld [vmem:[#allocation12 + $0x190] ss:$8 sps:$4 sm:$0xff]  }
0x11ba   :  { %v10929_v50 = vmax.f32 %v10924_v47, 0.0  ;;  %v20575_v47 = vld [vmem:[#allocation12 + $0x194] ss:$8 sps:$4 sm:$0xff]   ;;  %v20576_v49 = vld [vmem:[#allocation12 + $0x1a0] ss:$8 sps:$4 sm:$0xff]  }
0x11bb   :  { %v10930_v52 = vpack.c.bf16 %v10928_v22, %v10928_v22  ;;  %v20578_v22 = vld [vmem:[#allocation12 + $0x1a4] ss:$8 sps:$4 sm:$0xff]  }
0x11bc   :  { %v10931_v51 = vpack.c.bf16 %v10929_v50, %v10929_v50  ;;  %v20581_v50 = vld [vmem:[#allocation12 + $0x1b4] ss:$8 sps:$4 sm:$0xff]  }
0x11be   :  { %11169 = vmatprep.mubr.bf16.mxu1 %v10931_v51  ;;  %v20579_v51 = vld [vmem:[#allocation12 + $0x1b0] ss:$8 sps:$4 sm:$0xff]  }
0x11bf   :  { %11170 = vmatmul.mubr.bf16.vlgmr.msra.gmra.mrb[60].mxu1 %v10930_v52  ;;  %v20584_v52 = vld [vmem:[#allocation12 + $0x1c4] ss:$8 sps:$4 sm:$0xff]  }
0x11c0   :  { %11719 = vmatpush1.bf16.msra.mxu1 %v20546_v27 }
0x11c1   :  { %11720 = vmatprep.subr.bf16.mxu1 %v20551_v29 }
0x11c4   :  { %11721 = vmatpush1.bf16.msra.mxu1 %v20549_v30 }
0x11c5   :  { %11722 = vmatprep.subr.bf16.mxu1 %v20554_v1 }
0x11c8   :  { %11723 = vmatpush1.bf16.msra.mxu1 %v20552_v33 }
0x11c9   :  { %11724 = vmatprep.subr.bf16.mxu1 %v20557_v34 }
0x11cc   :  { %11725 = vmatpush1.bf16.msra.mxu1 %v20555_v35 }
0x11cd   :  { %11726 = vmatprep.subr.bf16.mxu1 %v20560_v36  ;;  %v20606_v36 = vld [vmem:[#allocation13 + $0xf0] sm:$0xff]  }
0x11d0   :  { %11727 = vmatpush1.bf16.msra.mxu1 %v20558_v37  ;;  %v20607_v37 = vld [vmem:[#allocation13 + $0xb0] sm:$0xff]  }
0x11d1   :  { %11728 = vmatprep.subr.bf16.mxu1 %v20563_v38  ;;  %v20608_v38 = vld [vmem:[#allocation13 + $0xf8] sm:$0xff]  }
0x11d4   :  { %11729 = vmatpush1.bf16.msra.mxu1 %v20561_v40  ;;  %v20609_v40 = vld [vmem:[#allocation13 + $0xb8] sm:$0xff]  }
0x11d5   :  { %11730 = vmatprep.subr.bf16.mxu1 %v20566_v41  ;;  %v20612_v41 = vld [vmem:[#allocation10 + $0x104] ss:$8 sps:$4 sm:$0xff]  }
0x11d8   :  { %11731 = vmatpush1.bf16.msra.mxu1 %v20564_v43  ;;  %v11546_v43 = vld [vmem:[#allocation19 + $0x7] ss:$8 sm:$0x3] }
0x11d9   :  { %11732 = vmatprep.subr.bf16.mxu1 %v20569_v44  ;;  %v11551_v44 = vrot.slane %v11546_v43, %v21597_v14 }
0x11dc   :  { %11733 = vmatpush1.bf16.msra.mxu1 %v20567_v45  ;;  %v11555_v45 = vrot.slane %v11546_v43, %v21602_v16 }
0x11dd   :  { %11734 = vmatprep.subr.bf16.mxu1 %v20572_v15 }
0x11e0   :  { %11735 = vmatpush1.bf16.msra.mxu1 %v20570_v46 }
0x11e1   :  { %11736 = vmatprep.subr.bf16.mxu1 %v20575_v47 }
0x11e4   :  { %11737 = vmatpush1.bf16.msra.mxu1 %v20573_v48 }
0x11e5   :  { %11738 = vmatprep.subr.bf16.mxu1 %v20578_v22 }
0x11e8   :  { %11739 = vmatpush1.bf16.msra.mxu1 %v20576_v49 }
0x11e9   :  { %11740 = vmatprep.subr.bf16.mxu1 %v20581_v50 }
0x11ec   :  { %11741 = vmatpush1.bf16.msra.mxu1 %v20579_v51 }
0x11ed   :  { %11742 = vmatprep.subr.bf16.mxu1 %v20584_v52 }
0x11f0   :  { %11743 = vmatpush1.bf16.msra.mxu1 %v20582_v53  ;;  %v20610_v53 = vld [vmem:[#allocation10 + $0x100] ss:$8 sps:$4 sm:$0xff]  }
0x11f1   :  { %11744 = vmatprep.subr.bf16.mxu1 %v20587_v54 }
0x11f4   :  { %11745 = vmatpush1.bf16.msra.mxu1 %v20585_v32  ;;  %v20615_v32 = vld [vmem:[#allocation10 + $0x114] ss:$8 sps:$4 sm:$0xff]  }
0x1292   :  { %v11171_v61 = vpop.f32.mrb[60].mxu1 }
0x1293   :  { %v11172_v62 = vadd.f32 %v11171_v61, %v10970_v59  ;;  %v11173_v63 = vpop.f32.mrb[61].mxu1 }
0x1294   :  { %v11174_v0 = vadd.f32 %v11173_v63, %v10974_v60  ;;  %v11175_v42 = vpop.f32.mrb[62].mxu1 }
0x1295   :  { %v11178_v2 = vmax.f32 %v11172_v62, 0.0  ;;  %v11176_v3 = vpop.f32.mrb[63].mxu1  ;;  %v20590_v42 = vld [vmem:[#allocation12 + $0x1e4] ss:$8 sps:$4 sm:$0xff]  }
0x1296   :  { %v11179_v4 = vmax.f32 %v11174_v0, 0.0  ;;  %11746 = vmatprep.subr.bf16.mxu1 %v20590_v42  ;;  %v20593_v3 = vld [vmem:[#allocation12 + $0x1f4] ss:$8 sps:$4 sm:$0xff]   ;;  %v20630_v42 = vld [vmem:[#allocation10 + $0x164] ss:$8 sps:$4 sm:$0xff]  }
0x1297   :  { %v11180_v7 = vpack.c.bf16 %v11178_v2, %v11178_v2  ;;  %v20588_v2 = vld [vmem:[#allocation12 + $0x1e0] ss:$8 sps:$4 sm:$0xff]  }
0x1298   :  { %v11181_v5 = vpack.c.bf16 %v11179_v4, %v11179_v4  ;;  %11747 = vmatpush1.bf16.msra.mxu1 %v20588_v2  ;;  %v20591_v4 = vld [vmem:[#allocation12 + $0x1f0] ss:$8 sps:$4 sm:$0xff]   ;;  %v20628_v2 = vld [vmem:[#allocation10 + $0x160] ss:$8 sps:$4 sm:$0xff]  }
0x1299   :  { %11748 = vmatprep.subr.bf16.mxu1 %v20593_v3  ;;  %v20633_v3 = vld [vmem:[#allocation10 + $0x174] ss:$8 sps:$4 sm:$0xff]  }
0x129a   :  { %11347 = vmatprep.mubr.bf16.mxu0 %v11181_v5  ;;  %v20594_v5 = vld [vmem:[#allocation13 + $0xc0] sm:$0xff]  }
0x129b   :  { %11348 = vmatmul.mubr.bf16.vlgmr.msra.gmra.mrb[48].mxu0 %v11180_v7  ;;  %v20596_v7 = vld [vmem:[#allocation13 + $0xc8] sm:$0xff]  }
0x129c   :  { %11468 = vmatpush1.bf16.msra.mxu0 %v20522_v6  ;;  %11499 = vmatprep.mubr.bf16.mxu0 %v21276_v39  ;;  %v20595_v6 = vld [vmem:[#allocation13 + $0x80] sm:$0xff]  }
0x129d   :  { %11469 = vmatprep.subr.bf16.mxu0 %v20527_v8  ;;  %11749 = vmatpush1.bf16.msra.mxu1 %v20591_v4  ;;  %v20597_v8 = vld [vmem:[#allocation13 + $0x88] sm:$0xff]   ;;  %v20631_v4 = vld [vmem:[#allocation10 + $0x170] ss:$8 sps:$4 sm:$0xff]  }
0x12a0   :  { %11470 = vmatpush1.bf16.msra.mxu0 %v20525_v9  ;;  %v20598_v9 = vld [vmem:[#allocation13 + $0xd0] sm:$0xff]  }
0x12a1   :  { %11471 = vmatprep.subr.bf16.mxu0 %v20530_v10  ;;  %v20599_v10 = vld [vmem:[#allocation13 + $0x90] sm:$0xff]  }
0x12a4   :  { %11472 = vmatpush1.bf16.msra.mxu0 %v20528_v12  ;;  %v20600_v12 = vld [vmem:[#allocation13 + $0xd8] sm:$0xff]  }
0x12a5   :  { %11473 = vmatprep.subr.bf16.mxu0 %v20533_v18  ;;  %v20601_v18 = vld [vmem:[#allocation13 + $0x98] sm:$0xff]  }
0x12a8   :  { %11474 = vmatpush1.bf16.msra.mxu0 %v20531_v19  ;;  %v20602_v19 = vld [vmem:[#allocation13 + $0xe0] sm:$0xff]  }
0x12a9   :  { %11475 = vmatprep.subr.bf16.mxu0 %v20536_v20  ;;  %v20603_v20 = vld [vmem:[#allocation13 + $0xa0] sm:$0xff]  }
0x12ac   :  { %11476 = vmatpush1.bf16.msra.mxu0 %v20534_v21  ;;  %v20604_v21 = vld [vmem:[#allocation13 + $0xe8] sm:$0xff]  }
0x12ad   :  { %11477 = vmatprep.subr.bf16.mxu0 %v20539_v55  ;;  %v20605_v55 = vld [vmem:[#allocation13 + $0xa8] sm:$0xff]  }
0x12b0   :  { %11478 = vmatpush1.bf16.msra.mxu0 %v20537_v11  ;;  %v11375_v11 = vld [vmem:[#allocation19 + $0x6] ss:$8 sm:$0x3] }
0x12b1   :  { %11479 = vmatprep.subr.bf16.mxu0 %v20542_v23  ;;  %v11380_v23 = vrot.slane %v11375_v11, %v21597_v14 }
0x12b4   :  { %11480 = vmatpush1.bf16.msra.mxu0 %v20540_v24  ;;  %v11384_v24 = vrot.slane %v11375_v11, %v21602_v16  ;;  %v20654_v11 = vld [vmem:[#allocation12 + $0x264] ss:$8 sps:$4 sm:$0xff]  }
0x12b5   :  { %11481 = vmatprep.subr.bf16.mxu0 %v20545_v25 }
0x12b8   :  { %11482 = vmatpush1.bf16.msra.mxu0 %v20543_v26 }
0x12b9   :  { %17663 = vmatprep.subr.bf16.mxu0 %v20594_v5  ;;  %v20634_v5 = vld [vmem:[#allocation12 + $0x200] ss:$8 sps:$4 sm:$0xff]  }
0x136e   :  { %v17657_v56 = vpop.f32.mrb[48].mxu0 }
0x136f   :  { %v17658_v58 = vpop.f32.mrb[49].mxu0 }
0x1370   :  { %v17659_v59 = vadd.f32 %v17658_v58, %v17657_v56  ;;  %v17660_v60 = vpop.f32.mrb[50].mxu0  ;;  %v20613_v56 = vld [vmem:[#allocation10 + $0x110] ss:$8 sps:$4 sm:$0xff]   ;;  %v20616_v58 = vld [vmem:[#allocation10 + $0x120] ss:$8 sps:$4 sm:$0xff]  }
0x1371   :  { %v17661_v61 = vpop.f32.mrb[51].mxu0  ;;  %v20619_v60 = vld [vmem:[#allocation10 + $0x130] ss:$8 sps:$4 sm:$0xff]  }
0x1372   :  { %v11350_v62 = vadd.f32 %v17659_v59, %v17159_v57  ;;  %v20618_v57 = vld [vmem:[#allocation10 + $0x124] ss:$8 sps:$4 sm:$0xff]   ;;  %v20621_v59 = vld [vmem:[#allocation10 + $0x134] ss:$8 sps:$4 sm:$0xff]  }
0x1373   :  { %v20624_v61 = vld [vmem:[#allocation10 + $0x144] ss:$8 sps:$4 sm:$0xff]  }
0x1374   :  { %v11355_v63 = vmax.f32 %v11350_v62, 0.0  ;;  %v20622_v62 = vld [vmem:[#allocation10 + $0x140] ss:$8 sps:$4 sm:$0xff]  }
0x1376   :  { %v11356_v0 = vpack.c.bf16 %v11355_v63, %v11355_v63  ;;  %v20627_v63 = vld [vmem:[#allocation10 + $0x154] ss:$8 sps:$4 sm:$0xff]  }
0x1378   :  { %11500 = vmatmul.mubr.bf16.vlgmr.msra.gmra.mrb[52].mxu0 %v11356_v0  ;;  %v20625_v0 = vld [vmem:[#allocation10 + $0x150] ss:$8 sps:$4 sm:$0xff]  }
0x1379   :  { %17664 = vmatpush3.bf16.msra.mxu0 %v20595_v6  ;;  %v20636_v6 = vld [vmem:[#allocation12 + $0x204] ss:$8 sps:$4 sm:$0xff]  }
0x137a   :  { %17665 = vmatprep.subr.bf16.mxu0 %v20596_v7  ;;  %v20639_v7 = vld [vmem:[#allocation12 + $0x214] ss:$8 sps:$4 sm:$0xff]   ;;  %12300 = vmatprep.subr.bf16.mxu1 %v20636_v6 }
0x137d   :  { %17666 = vmatpush3.bf16.msra.mxu0 %v20597_v8  ;;  %v20637_v8 = vld [vmem:[#allocation12 + $0x210] ss:$8 sps:$4 sm:$0xff]  }
0x137e   :  { %17667 = vmatprep.subr.bf16.mxu0 %v20598_v9  ;;  %v20642_v9 = vld [vmem:[#allocation12 + $0x224] ss:$8 sps:$4 sm:$0xff]  }
0x1381   :  { %17668 = vmatpush3.bf16.msra.mxu0 %v20599_v10  ;;  %v20640_v10 = vld [vmem:[#allocation12 + $0x220] ss:$8 sps:$4 sm:$0xff]  }
0x1382   :  { %17669 = vmatprep.subr.bf16.mxu0 %v20600_v12  ;;  %v20645_v12 = vld [vmem:[#allocation12 + $0x234] ss:$8 sps:$4 sm:$0xff]  }
0x1385   :  { %17670 = vmatpush3.bf16.msra.mxu0 %v20601_v18  ;;  %v20643_v18 = vld [vmem:[#allocation12 + $0x230] ss:$8 sps:$4 sm:$0xff]  }
0x1386   :  { %17671 = vmatprep.subr.bf16.mxu0 %v20602_v19  ;;  %v20648_v19 = vld [vmem:[#allocation12 + $0x244] ss:$8 sps:$4 sm:$0xff]  }
0x1389   :  { %17672 = vmatpush3.bf16.msra.mxu0 %v20603_v20  ;;  %v20646_v20 = vld [vmem:[#allocation12 + $0x240] ss:$8 sps:$4 sm:$0xff]  }
0x138a   :  { %17673 = vmatprep.subr.bf16.mxu0 %v20604_v21  ;;  %v20651_v21 = vld [vmem:[#allocation12 + $0x254] ss:$8 sps:$4 sm:$0xff]  }
0x138d   :  { %17674 = vmatpush3.bf16.msra.mxu0 %v20605_v55  ;;  %v20649_v55 = vld [vmem:[#allocation12 + $0x250] ss:$8 sps:$4 sm:$0xff]  }
0x138e   :  { %17675 = vmatprep.subr.bf16.mxu0 %v20606_v36  ;;  %v20670_v36 = vld [vmem:[#allocation12 + $0x2c0] ss:$8 sps:$4 sm:$0xff]  }
0x1391   :  { %17676 = vmatpush3.bf16.msra.mxu0 %v20607_v37  ;;  %v20675_v37 = vld [vmem:[#allocation12 + $0x2d4] ss:$8 sps:$4 sm:$0xff]  }
0x1392   :  { %17677 = vmatprep.subr.bf16.mxu0 %v20608_v38  ;;  %v20673_v38 = vld [vmem:[#allocation12 + $0x2d0] ss:$8 sps:$4 sm:$0xff]  }
0x1395   :  { %17678 = vmatpush3.bf16.msra.mxu0 %v20609_v40 }
0x1396   :  { %12049 = vmatprep.subr.bf16.mxu0 %v20612_v41  ;;  %v17224_v41 = vld [vmem:[#allocation21 + $0x2] ss:$0 sm:$0xff] }
0x144b   :  { %v11501_v25 = vpop.f32.mrb[52].mxu0 }
0x144c   :  { %v11502_v26 = vadd.f32 %v11501_v25, %v11380_v23  ;;  %v11503_v27 = vpop.f32.mrb[53].mxu0  ;;  %v20652_v23 = vld [vmem:[#allocation12 + $0x260] ss:$8 sps:$4 sm:$0xff]   ;;  %v20655_v25 = vld [vmem:[#allocation12 + $0x270] ss:$8 sps:$4 sm:$0xff]  }
0x144d   :  { %v11504_v28 = vadd.f32 %v11503_v27, %v11384_v24  ;;  %v11505_v29 = vpop.f32.mrb[54].mxu0  ;;  %v20657_v24 = vld [vmem:[#allocation12 + $0x274] ss:$8 sps:$4 sm:$0xff]   ;;  %v20658_v27 = vld [vmem:[#allocation12 + $0x280] ss:$8 sps:$4 sm:$0xff]  }
0x144e   :  { %v11508_v30 = vmax.f32 %v11502_v26, 0.0  ;;  %v11506_v1 = vpop.f32.mrb[55].mxu0  ;;  %v20660_v26 = vld [vmem:[#allocation12 + $0x284] ss:$8 sps:$4 sm:$0xff]   ;;  %v20661_v29 = vld [vmem:[#allocation12 + $0x290] ss:$8 sps:$4 sm:$0xff]  }
0x144f   :  { %v11509_v33 = vmax.f32 %v11504_v28, 0.0  ;;  %v20663_v28 = vld [vmem:[#allocation12 + $0x294] ss:$8 sps:$4 sm:$0xff]   ;;  %v20664_v1 = vld [vmem:[#allocation12 + $0x2a0] ss:$8 sps:$4 sm:$0xff]  }
0x1450   :  { %v11510_v35 = vpack.c.bf16 %v11508_v30, %v11508_v30  ;;  %v20666_v30 = vld [vmem:[#allocation12 + $0x2a4] ss:$8 sps:$4 sm:$0xff]  }
0x1451   :  { %v11511_v34 = vpack.c.bf16 %v11509_v33, %v11509_v33  ;;  %v20669_v33 = vld [vmem:[#allocation12 + $0x2b4] ss:$8 sps:$4 sm:$0xff]  }
0x1453   :  { %11750 = vmatprep.mubr.bf16.mxu1 %v11511_v34  ;;  %v20667_v34 = vld [vmem:[#allocation12 + $0x2b0] ss:$8 sps:$4 sm:$0xff]  }
0x1454   :  { %11751 = vmatmul.mubr.bf16.vlgmr.msra.gmra.mrb[64].mxu1 %v11510_v35  ;;  %v20672_v35 = vld [vmem:[#allocation12 + $0x2c4] ss:$8 sps:$4 sm:$0xff]  }
0x1455   :  { %12301 = vmatpush1.bf16.msra.mxu1 %v20634_v5 }
0x1456   :  { %12302 = vmatprep.subr.bf16.mxu1 %v20639_v7 }
0x1459   :  { %12303 = vmatpush1.bf16.msra.mxu1 %v20637_v8 }
0x145a   :  { %12304 = vmatprep.subr.bf16.mxu1 %v20642_v9 }
0x145d   :  { %12305 = vmatpush1.bf16.msra.mxu1 %v20640_v10 }
0x145e   :  { %12306 = vmatprep.subr.bf16.mxu1 %v20645_v12 }
0x1461   :  { %12307 = vmatpush1.bf16.msra.mxu1 %v20643_v18 }
0x1462   :  { %12308 = vmatprep.subr.bf16.mxu1 %v20648_v19  ;;  %v20694_v19 = vld [vmem:[#allocation13 + $0x170] sm:$0xff]  }
0x1465   :  { %12309 = vmatpush1.bf16.msra.mxu1 %v20646_v20  ;;  %v20695_v20 = vld [vmem:[#allocation13 + $0x130] sm:$0xff]  }
0x1466   :  { %12310 = vmatprep.subr.bf16.mxu1 %v20651_v21  ;;  %v20696_v21 = vld [vmem:[#allocation13 + $0x178] sm:$0xff]  }
0x1469   :  { %12311 = vmatpush1.bf16.msra.mxu1 %v20649_v55  ;;  %v20697_v55 = vld [vmem:[#allocation13 + $0x138] sm:$0xff]  }
0x146a   :  { %12312 = vmatprep.subr.bf16.mxu1 %v20654_v11  ;;  %v20700_v11 = vld [vmem:[#allocation10 + $0x184] ss:$8 sps:$4 sm:$0xff]  }
0x146d   :  { %12313 = vmatpush1.bf16.msra.mxu1 %v20652_v23  ;;  %v12128_v23 = vld [vmem:[#allocation19 + $0x11] ss:$8 sm:$0x3] }
0x146e   :  { %12314 = vmatprep.subr.bf16.mxu1 %v20657_v24  ;;  %v12133_v24 = vrot.slane %v12128_v23, %v21597_v14 }
0x1471   :  { %12315 = vmatpush1.bf16.msra.mxu1 %v20655_v25  ;;  %v12137_v25 = vrot.slane %v12128_v23, %v21602_v16 }
0x1472   :  { %12316 = vmatprep.subr.bf16.mxu1 %v20660_v26 }
0x1475   :  { %12317 = vmatpush1.bf16.msra.mxu1 %v20658_v27 }
0x1476   :  { %12318 = vmatprep.subr.bf16.mxu1 %v20663_v28 }
0x1479   :  { %12319 = vmatpush1.bf16.msra.mxu1 %v20661_v29 }
0x147a   :  { %12320 = vmatprep.subr.bf16.mxu1 %v20666_v30 }
0x147d   :  { %12321 = vmatpush1.bf16.msra.mxu1 %v20664_v1 }
0x147e   :  { %12322 = vmatprep.subr.bf16.mxu1 %v20669_v33 }
0x1481   :  { %12323 = vmatpush1.bf16.msra.mxu1 %v20667_v34 }
0x1482   :  { %12324 = vmatprep.subr.bf16.mxu1 %v20672_v35 }
0x1485   :  { %12325 = vmatpush1.bf16.msra.mxu1 %v20670_v36  ;;  %v20698_v36 = vld [vmem:[#allocation10 + $0x180] ss:$8 sps:$4 sm:$0xff]  }
0x1486   :  { %12326 = vmatprep.subr.bf16.mxu1 %v20675_v37 }
0x1489   :  { %12327 = vmatpush1.bf16.msra.mxu1 %v20673_v38  ;;  %v20703_v38 = vld [vmem:[#allocation10 + $0x194] ss:$8 sps:$4 sm:$0xff]  }
0x1527   :  { %v11752_v15 = vpop.f32.mrb[64].mxu1 }
0x1528   :  { %v11753_v46 = vadd.f32 %v11752_v15, %v11551_v44  ;;  %v11754_v47 = vpop.f32.mrb[65].mxu1 }
0x1529   :  { %v11755_v48 = vadd.f32 %v11754_v47, %v11555_v45  ;;  %v11756_v22 = vpop.f32.mrb[66].mxu1 }
0x152a   :  { %v11759_v49 = vmax.f32 %v11753_v46, 0.0  ;;  %v11757_v50 = vpop.f32.mrb[67].mxu1  ;;  %v20678_v22 = vld [vmem:[#allocation12 + $0x2e4] ss:$8 sps:$4 sm:$0xff]  }
0x152b   :  { %v11760_v51 = vmax.f32 %v11755_v48, 0.0  ;;  %12328 = vmatprep.subr.bf16.mxu1 %v20678_v22  ;;  %v20681_v50 = vld [vmem:[#allocation12 + $0x2f4] ss:$8 sps:$4 sm:$0xff]   ;;  %v20718_v22 = vld [vmem:[#allocation10 + $0x1e4] ss:$8 sps:$4 sm:$0xff]  }
0x152c   :  { %v11761_v54 = vpack.c.bf16 %v11759_v49, %v11759_v49  ;;  %v20676_v49 = vld [vmem:[#allocation12 + $0x2e0] ss:$8 sps:$4 sm:$0xff]  }
0x152d   :  { %v11762_v52 = vpack.c.bf16 %v11760_v51, %v11760_v51  ;;  %12329 = vmatpush1.bf16.msra.mxu1 %v20676_v49  ;;  %v20679_v51 = vld [vmem:[#allocation12 + $0x2f0] ss:$8 sps:$4 sm:$0xff]   ;;  %v20716_v49 = vld [vmem:[#allocation10 + $0x1e0] ss:$8 sps:$4 sm:$0xff]  }
0x152e   :  { %12330 = vmatprep.subr.bf16.mxu1 %v20681_v50  ;;  %v20721_v50 = vld [vmem:[#allocation10 + $0x1f4] ss:$8 sps:$4 sm:$0xff]  }
0x152f   :  { %11929 = vmatprep.mubr.bf16.mxu0 %v11762_v52  ;;  %v20682_v52 = vld [vmem:[#allocation13 + $0x140] sm:$0xff]  }
0x1530   :  { %11930 = vmatmul.mubr.bf16.vlgmr.msra.gmra.mrb[56].mxu0 %v11761_v54  ;;  %v20684_v54 = vld [vmem:[#allocation13 + $0x148] sm:$0xff]  }
0x1531   :  { %12050 = vmatpush1.bf16.msra.mxu0 %v20610_v53  ;;  %12081 = vmatprep.mubr.bf16.mxu0 %v21276_v39  ;;  %v20683_v53 = vld [vmem:[#allocation13 + $0x100] sm:$0xff]  }
0x1532   :  { %12051 = vmatprep.subr.bf16.mxu0 %v20615_v32  ;;  %12331 = vmatpush1.bf16.msra.mxu1 %v20679_v51  ;;  %v20685_v32 = vld [vmem:[#allocation13 + $0x108] sm:$0xff]   ;;  %v20719_v51 = vld [vmem:[#allocation10 + $0x1f0] ss:$8 sps:$4 sm:$0xff]  }
0x1535   :  { %12052 = vmatpush1.bf16.msra.mxu0 %v20613_v56  ;;  %v20686_v56 = vld [vmem:[#allocation13 + $0x150] sm:$0xff]  }
0x1536   :  { %12053 = vmatprep.subr.bf16.mxu0 %v20618_v57  ;;  %v20687_v57 = vld [vmem:[#allocation13 + $0x110] sm:$0xff]  }
0x1539   :  { %12054 = vmatpush1.bf16.msra.mxu0 %v20616_v58  ;;  %v20688_v58 = vld [vmem:[#allocation13 + $0x158] sm:$0xff]  }
0x153a   :  { %12055 = vmatprep.subr.bf16.mxu0 %v20621_v59  ;;  %v20689_v59 = vld [vmem:[#allocation13 + $0x118] sm:$0xff]  }
0x153d   :  { %12056 = vmatpush1.bf16.msra.mxu0 %v20619_v60  ;;  %v20690_v60 = vld [vmem:[#allocation13 + $0x160] sm:$0xff]  }
0x153e   :  { %12057 = vmatprep.subr.bf16.mxu0 %v20624_v61  ;;  %v20691_v61 = vld [vmem:[#allocation13 + $0x120] sm:$0xff]  }
0x1541   :  { %12058 = vmatpush1.bf16.msra.mxu0 %v20622_v62  ;;  %v20692_v62 = vld [vmem:[#allocation13 + $0x168] sm:$0xff]  }
0x1542   :  { %12059 = vmatprep.subr.bf16.mxu0 %v20627_v63  ;;  %v20693_v63 = vld [vmem:[#allocation13 + $0x128] sm:$0xff]  }
0x1545   :  { %12060 = vmatpush1.bf16.msra.mxu0 %v20625_v0  ;;  %v11957_v0 = vld [vmem:[#allocation19 + $0x10] ss:$8 sm:$0x3] }
0x1546   :  { %12061 = vmatprep.subr.bf16.mxu0 %v20630_v42  ;;  %v11962_v42 = vrot.slane %v11957_v0, %v21597_v14 }
0x1549   :  { %12062 = vmatpush1.bf16.msra.mxu0 %v20628_v2  ;;  %v11966_v2 = vrot.slane %v11957_v0, %v21602_v16  ;;  %v20742_v0 = vld [vmem:[#allocation12 + $0x364] ss:$8 sps:$4 sm:$0xff]  }
0x154a   :  { %12063 = vmatprep.subr.bf16.mxu0 %v20633_v3 }
0x154d   :  { %12064 = vmatpush1.bf16.msra.mxu0 %v20631_v4 }
0x154e   :  { %17685 = vmatprep.subr.bf16.mxu0 %v20682_v52  ;;  %v20722_v52 = vld [vmem:[#allocation12 + $0x300] ss:$8 sps:$4 sm:$0xff]  }
0x1603   :  { %v17679_v40 = vpop.f32.mrb[56].mxu0 }
0x1604   :  { %v17680_v43 = vpop.f32.mrb[57].mxu0 }
0x1605   :  { %v17681_v44 = vadd.f32 %v17680_v43, %v17679_v40  ;;  %v17682_v45 = vpop.f32.mrb[58].mxu0  ;;  %v20701_v40 = vld [vmem:[#allocation10 + $0x190] ss:$8 sps:$4 sm:$0xff]   ;;  %v20704_v43 = vld [vmem:[#allocation10 + $0x1a0] ss:$8 sps:$4 sm:$0xff]  }
0x1606   :  { %v17683_v15 = vpop.f32.mrb[59].mxu0  ;;  %v20707_v45 = vld [vmem:[#allocation10 + $0x1b0] ss:$8 sps:$4 sm:$0xff]  }
0x1607   :  { %v11932_v46 = vadd.f32 %v17681_v44, %v17224_v41  ;;  %v20706_v41 = vld [vmem:[#allocation10 + $0x1a4] ss:$8 sps:$4 sm:$0xff]   ;;  %v20709_v44 = vld [vmem:[#allocation10 + $0x1b4] ss:$8 sps:$4 sm:$0xff]  }
0x1608   :  { %v20712_v15 = vld [vmem:[#allocation10 + $0x1c4] ss:$8 sps:$4 sm:$0xff]  }
0x1609   :  { %v11937_v47 = vmax.f32 %v11932_v46, 0.0  ;;  %v20710_v46 = vld [vmem:[#allocation10 + $0x1c0] ss:$8 sps:$4 sm:$0xff]  }
0x160b   :  { %v11938_v48 = vpack.c.bf16 %v11937_v47, %v11937_v47  ;;  %v20715_v47 = vld [vmem:[#allocation10 + $0x1d4] ss:$8 sps:$4 sm:$0xff]  }
0x160d   :  { %12082 = vmatmul.mubr.bf16.vlgmr.msra.gmra.mrb[60].mxu0 %v11938_v48  ;;  %v20713_v48 = vld [vmem:[#allocation10 + $0x1d0] ss:$8 sps:$4 sm:$0xff]  }
0x160e   :  { %17686 = vmatpush3.bf16.msra.mxu0 %v20683_v53  ;;  %v20724_v53 = vld [vmem:[#allocation12 + $0x304] ss:$8 sps:$4 sm:$0xff]  }
0x160f   :  { %17687 = vmatprep.subr.bf16.mxu0 %v20684_v54  ;;  %v20727_v54 = vld [vmem:[#allocation12 + $0x314] ss:$8 sps:$4 sm:$0xff]   ;;  %12882 = vmatprep.subr.bf16.mxu1 %v20724_v53 }
0x1612   :  { %17688 = vmatpush3.bf16.msra.mxu0 %v20685_v32  ;;  %v20725_v32 = vld [vmem:[#allocation12 + $0x310] ss:$8 sps:$4 sm:$0xff]  }
0x1613   :  { %17689 = vmatprep.subr.bf16.mxu0 %v20686_v56  ;;  %v20730_v56 = vld [vmem:[#allocation12 + $0x324] ss:$8 sps:$4 sm:$0xff]  }
0x1616   :  { %17690 = vmatpush3.bf16.msra.mxu0 %v20687_v57  ;;  %v20728_v57 = vld [vmem:[#allocation12 + $0x320] ss:$8 sps:$4 sm:$0xff]  }
0x1617   :  { %17691 = vmatprep.subr.bf16.mxu0 %v20688_v58  ;;  %v20733_v58 = vld [vmem:[#allocation12 + $0x334] ss:$8 sps:$4 sm:$0xff]  }
0x161a   :  { %17692 = vmatpush3.bf16.msra.mxu0 %v20689_v59  ;;  %v20731_v59 = vld [vmem:[#allocation12 + $0x330] ss:$8 sps:$4 sm:$0xff]  }
0x161b   :  { %17693 = vmatprep.subr.bf16.mxu0 %v20690_v60  ;;  %v20736_v60 = vld [vmem:[#allocation12 + $0x344] ss:$8 sps:$4 sm:$0xff]  }
0x161e   :  { %17694 = vmatpush3.bf16.msra.mxu0 %v20691_v61  ;;  %v20734_v61 = vld [vmem:[#allocation12 + $0x340] ss:$8 sps:$4 sm:$0xff]  }
0x161f   :  { %17695 = vmatprep.subr.bf16.mxu0 %v20692_v62  ;;  %v20739_v62 = vld [vmem:[#allocation12 + $0x354] ss:$8 sps:$4 sm:$0xff]  }
0x1622   :  { %17696 = vmatpush3.bf16.msra.mxu0 %v20693_v63  ;;  %v20737_v63 = vld [vmem:[#allocation12 + $0x350] ss:$8 sps:$4 sm:$0xff]  }
0x1623   :  { %17697 = vmatprep.subr.bf16.mxu0 %v20694_v19  ;;  %v20758_v19 = vld [vmem:[#allocation12 + $0x3c0] ss:$8 sps:$4 sm:$0xff]  }
0x1626   :  { %17698 = vmatpush3.bf16.msra.mxu0 %v20695_v20  ;;  %v20763_v20 = vld [vmem:[#allocation12 + $0x3d4] ss:$8 sps:$4 sm:$0xff]  }
0x1627   :  { %17699 = vmatprep.subr.bf16.mxu0 %v20696_v21  ;;  %v20761_v21 = vld [vmem:[#allocation12 + $0x3d0] ss:$8 sps:$4 sm:$0xff]  }
0x162a   :  { %17700 = vmatpush3.bf16.msra.mxu0 %v20697_v55 }
0x162b   :  { %12631 = vmatprep.subr.bf16.mxu0 %v20700_v11  ;;  %v17289_v11 = vld [vmem:[#allocation21 + $0x3] ss:$0 sm:$0xff] }
0x16e0   :  { %v12083_v3 = vpop.f32.mrb[60].mxu0 }
0x16e1   :  { %v12084_v4 = vadd.f32 %v12083_v3, %v11962_v42  ;;  %v12085_v5 = vpop.f32.mrb[61].mxu0  ;;  %v20740_v42 = vld [vmem:[#allocation12 + $0x360] ss:$8 sps:$4 sm:$0xff]   ;;  %v20743_v3 = vld [vmem:[#allocation12 + $0x370] ss:$8 sps:$4 sm:$0xff]  }
0x16e2   :  { %v12086_v6 = vadd.f32 %v12085_v5, %v11966_v2  ;;  %v12087_v7 = vpop.f32.mrb[62].mxu0  ;;  %v20745_v2 = vld [vmem:[#allocation12 + $0x374] ss:$8 sps:$4 sm:$0xff]   ;;  %v20746_v5 = vld [vmem:[#allocation12 + $0x380] ss:$8 sps:$4 sm:$0xff]  }
0x16e3   :  { %v12090_v8 = vmax.f32 %v12084_v4, 0.0  ;;  %v12088_v9 = vpop.f32.mrb[63].mxu0  ;;  %v20748_v4 = vld [vmem:[#allocation12 + $0x384] ss:$8 sps:$4 sm:$0xff]   ;;  %v20749_v7 = vld [vmem:[#allocation12 + $0x390] ss:$8 sps:$4 sm:$0xff]  }
0x16e4   :  { %v12091_v10 = vmax.f32 %v12086_v6, 0.0  ;;  %v20751_v6 = vld [vmem:[#allocation12 + $0x394] ss:$8 sps:$4 sm:$0xff]   ;;  %v20752_v9 = vld [vmem:[#allocation12 + $0x3a0] ss:$8 sps:$4 sm:$0xff]  }
0x16e5   :  { %v12092_v18 = vpack.c.bf16 %v12090_v8, %v12090_v8  ;;  %v20754_v8 = vld [vmem:[#allocation12 + $0x3a4] ss:$8 sps:$4 sm:$0xff]  }
0x16e6   :  { %v12093_v12 = vpack.c.bf16 %v12091_v10, %v12091_v10  ;;  %v20757_v10 = vld [vmem:[#allocation12 + $0x3b4] ss:$8 sps:$4 sm:$0xff]  }
0x16e8   :  { %12332 = vmatprep.mubr.bf16.mxu1 %v12093_v12  ;;  %v20755_v12 = vld [vmem:[#allocation12 + $0x3b0] ss:$8 sps:$4 sm:$0xff]  }
0x16e9   :  { %12333 = vmatmul.mubr.bf16.vlgmr.msra.gmra.mrb[68].mxu1 %v12092_v18  ;;  %v20760_v18 = vld [vmem:[#allocation12 + $0x3c4] ss:$8 sps:$4 sm:$0xff]  }
0x16ea   :  { %12883 = vmatpush1.bf16.msra.mxu1 %v20722_v52 }
0x16eb   :  { %12884 = vmatprep.subr.bf16.mxu1 %v20727_v54 }
0x16ee   :  { %12885 = vmatpush1.bf16.msra.mxu1 %v20725_v32 }
0x16ef   :  { %12886 = vmatprep.subr.bf16.mxu1 %v20730_v56 }
0x16f2   :  { %12887 = vmatpush1.bf16.msra.mxu1 %v20728_v57 }
0x16f3   :  { %12888 = vmatprep.subr.bf16.mxu1 %v20733_v58 }
0x16f6   :  { %12889 = vmatpush1.bf16.msra.mxu1 %v20731_v59 }
0x16f7   :  { %12890 = vmatprep.subr.bf16.mxu1 %v20736_v60  ;;  %v20782_v60 = vld [vmem:[#allocation13 + $0x1f0] sm:$0xff]  }
0x16fa   :  { %12891 = vmatpush1.bf16.msra.mxu1 %v20734_v61  ;;  %v20783_v61 = vld [vmem:[#allocation13 + $0x1b0] sm:$0xff]  }
0x16fb   :  { %12892 = vmatprep.subr.bf16.mxu1 %v20739_v62  ;;  %v20784_v62 = vld [vmem:[#allocation13 + $0x1f8] sm:$0xff]  }
0x16fe   :  { %12893 = vmatpush1.bf16.msra.mxu1 %v20737_v63  ;;  %v20785_v63 = vld [vmem:[#allocation13 + $0x1b8] sm:$0xff]  }
0x16ff   :  { %12894 = vmatprep.subr.bf16.mxu1 %v20742_v0  ;;  %v21277_v0 = vmov 0.0  }
0x1702   :  { %12895 = vmatpush1.bf16.msra.mxu1 %v20740_v42  ;;  %v12710_v42 = vld [vmem:[#allocation19 + $0x13] ss:$8 sm:$0x3] }
0x1703   :  { %12896 = vmatprep.subr.bf16.mxu1 %v20745_v2  ;;  %v12715_v2 = vrot.slane %v12710_v42, %v21597_v14 }
0x1706   :  { %12897 = vmatpush1.bf16.msra.mxu1 %v20743_v3  ;;  %v12719_v3 = vrot.slane %v12710_v42, %v21602_v16  ;;  %v20813_v42 = vld [vmem:[#allocation15 + $0xd8] sm:$0xff]  }
0x1707   :  { %12898 = vmatprep.subr.bf16.mxu1 %v20748_v4 }
0x170a   :  { %12899 = vmatpush1.bf16.msra.mxu1 %v20746_v5 }
0x170b   :  { %12900 = vmatprep.subr.bf16.mxu1 %v20751_v6 }
0x170e   :  { %12901 = vmatpush1.bf16.msra.mxu1 %v20749_v7 }
0x170f   :  { %12902 = vmatprep.subr.bf16.mxu1 %v20754_v8 }
0x1712   :  { %12903 = vmatpush1.bf16.msra.mxu1 %v20752_v9 }
0x1713   :  { %12904 = vmatprep.subr.bf16.mxu1 %v20757_v10 }
0x1716   :  { %12905 = vmatpush1.bf16.msra.mxu1 %v20755_v12 }
0x1717   :  { %12906 = vmatprep.subr.bf16.mxu1 %v20760_v18 }
0x171a   :  { %12907 = vmatpush1.bf16.msra.mxu1 %v20758_v19  ;;  %v20786_v19 = vld [vmem:[#allocation15] sm:$0xff]  }
0x171b   :  { %12908 = vmatprep.subr.bf16.mxu1 %v20763_v20 }
0x171e   :  { %12909 = vmatpush1.bf16.msra.mxu1 %v20761_v21  ;;  %v20787_v21 = vld [vmem:[#allocation15 + $0x8] sm:$0xff]  }
0x17bc   :  { %v12334_v26 = vpop.f32.mrb[68].mxu1 }
0x17bd   :  { %v12335_v27 = vadd.f32 %v12334_v26, %v12133_v24  ;;  %v12336_v28 = vpop.f32.mrb[69].mxu1 }
0x17be   :  { %v12337_v29 = vadd.f32 %v12336_v28, %v12137_v25  ;;  %v12338_v30 = vpop.f32.mrb[70].mxu1 }
0x17bf   :  { %v12341_v1 = vmax.f32 %v12335_v27, 0.0  ;;  %v12339_v33 = vpop.f32.mrb[71].mxu1  ;;  %v20766_v30 = vld [vmem:[#allocation12 + $0x3e4] ss:$8 sps:$4 sm:$0xff]  }
0x17c0   :  { %v12342_v34 = vmax.f32 %v12337_v29, 0.0  ;;  %12910 = vmatprep.subr.bf16.mxu1 %v20766_v30  ;;  %v20769_v33 = vld [vmem:[#allocation12 + $0x3f4] ss:$8 sps:$4 sm:$0xff]  }
0x17c1   :  { %v12343_v37 = vpack.c.bf16 %v12341_v1, %v12341_v1  ;;  %v20764_v1 = vld [vmem:[#allocation12 + $0x3e0] ss:$8 sps:$4 sm:$0xff]   ;;  %v20797_v30 = vld [vmem:[#allocation15 + $0x58] sm:$0xff]  }
0x17c2   :  { %v12344_v35 = vpack.c.bf16 %v12342_v34, %v12342_v34  ;;  %12911 = vmatpush1.bf16.msra.mxu1 %v20764_v1  ;;  %v20767_v34 = vld [vmem:[#allocation12 + $0x3f0] ss:$8 sps:$4 sm:$0xff]   ;;  %v20798_v1 = vld [vmem:[#allocation15 + $0x60] sm:$0xff]  }
0x17c3   :  { %12912 = vmatprep.subr.bf16.mxu1 %v20769_v33  ;;  %v20799_v33 = vld [vmem:[#allocation15 + $0x68] sm:$0xff]  }
0x17c4   :  { %12511 = vmatprep.mubr.bf16.mxu0 %v12344_v35  ;;  %v20770_v35 = vld [vmem:[#allocation13 + $0x1c0] sm:$0xff]  }
0x17c5   :  { %12512 = vmatmul.mubr.bf16.vlgmr.msra.gmra.mrb[64].mxu0 %v12343_v37  ;;  %v20772_v37 = vld [vmem:[#allocation13 + $0x1c8] sm:$0xff]  }
0x17c6   :  { %12632 = vmatpush1.bf16.msra.mxu0 %v20698_v36  ;;  %12663 = vmatprep.mubr.bf16.mxu0 %v21276_v39  ;;  %v20771_v36 = vld [vmem:[#allocation13 + $0x180] sm:$0xff]  }
0x17c7   :  { %12633 = vmatprep.subr.bf16.mxu0 %v20703_v38  ;;  %12913 = vmatpush1.bf16.msra.mxu1 %v20767_v34  ;;  %v20773_v38 = vld [vmem:[#allocation13 + $0x188] sm:$0xff]  }
0x17c8   :  { %17911 = vmatprep.subr.bf16.mxu1 %v21277_v0 }
0x17ca   :  { %12634 = vmatpush1.bf16.msra.mxu0 %v20701_v40  ;;  %v20774_v40 = vld [vmem:[#allocation13 + $0x1d0] sm:$0xff]  }
0x17cb   :  { %12635 = vmatprep.subr.bf16.mxu0 %v20706_v41  ;;  %v20775_v41 = vld [vmem:[#allocation13 + $0x190] sm:$0xff]  }
0x17ce   :  { %12636 = vmatpush1.bf16.msra.mxu0 %v20704_v43  ;;  %v20776_v43 = vld [vmem:[#allocation13 + $0x1d8] sm:$0xff]  }
0x17cf   :  { %12637 = vmatprep.subr.bf16.mxu0 %v20709_v44  ;;  %v20777_v44 = vld [vmem:[#allocation13 + $0x198] sm:$0xff]  }
0x17d2   :  { %12638 = vmatpush1.bf16.msra.mxu0 %v20707_v45  ;;  %v20778_v45 = vld [vmem:[#allocation13 + $0x1e0] sm:$0xff]  }
0x17d3   :  { %12639 = vmatprep.subr.bf16.mxu0 %v20712_v15  ;;  %v20779_v15 = vld [vmem:[#allocation13 + $0x1a0] sm:$0xff]  }
0x17d6   :  { %12640 = vmatpush1.bf16.msra.mxu0 %v20710_v46  ;;  %v20780_v46 = vld [vmem:[#allocation13 + $0x1e8] sm:$0xff]  }
0x17d7   :  { %12641 = vmatprep.subr.bf16.mxu0 %v20715_v47  ;;  %v20781_v47 = vld [vmem:[#allocation13 + $0x1a8] sm:$0xff]  }
0x17da   :  { %12642 = vmatpush1.bf16.msra.mxu0 %v20713_v48  ;;  %v12539_v48 = vld [vmem:[#allocation19 + $0x12] ss:$8 sm:$0x3] }
0x17db   :  { %12643 = vmatprep.subr.bf16.mxu0 %v20718_v22  ;;  %v12544_v22 = vrot.slane %v12539_v48, %v21597_v14 }
0x17de   :  { %12644 = vmatpush1.bf16.msra.mxu0 %v20716_v49  ;;  %v12548_v49 = vrot.slane %v12539_v48, %v21602_v16  ;;  %v20804_v48 = vld [vmem:[#allocation15 + $0x90] sm:$0xff]  }
0x17df   :  { %12645 = vmatprep.subr.bf16.mxu0 %v20721_v50 }
0x17e2   :  { %12646 = vmatpush1.bf16.msra.mxu0 %v20719_v51 }
0x17e3   :  { %17707 = vmatprep.subr.bf16.mxu0 %v20770_v35  ;;  %v17354_v35 = vld [vmem:[#allocation21 + $0x4] ss:$0 sm:$0xff] }
0x1898   :  { %v17701_v55 = vpop.f32.mrb[64].mxu0 }
0x1899   :  { %v17702_v23 = vpop.f32.mrb[65].mxu0 }
0x189a   :  { %v17703_v24 = vadd.f32 %v17702_v23, %v17701_v55  ;;  %v17704_v25 = vpop.f32.mrb[66].mxu0  ;;  %v20788_v55 = vld [vmem:[#allocation15 + $0x10] sm:$0xff]   ;;  %v20790_v23 = vld [vmem:[#allocation15 + $0x20] sm:$0xff]  }
0x189b   :  { %v17705_v26 = vpop.f32.mrb[67].mxu0  ;;  %v20792_v25 = vld [vmem:[#allocation15 + $0x30] sm:$0xff]  }
0x189c   :  { %v12514_v27 = vadd.f32 %v17703_v24, %v17289_v11  ;;  %v20789_v11 = vld [vmem:[#allocation15 + $0x18] sm:$0xff]   ;;  %v20791_v24 = vld [vmem:[#allocation15 + $0x28] sm:$0xff]  }
0x189d   :  { %v20793_v26 = vld [vmem:[#allocation15 + $0x38] sm:$0xff]  }
0x189e   :  { %v12519_v28 = vmax.f32 %v12514_v27, 0.0  ;;  %v20794_v27 = vld [vmem:[#allocation15 + $0x40] sm:$0xff]  }
0x18a0   :  { %v12520_v29 = vpack.c.bf16 %v12519_v28, %v12519_v28  ;;  %v20795_v28 = vld [vmem:[#allocation15 + $0x48] sm:$0xff]  }
0x18a2   :  { %12664 = vmatmul.mubr.bf16.vlgmr.msra.gmra.mrb[68].mxu0 %v12520_v29  ;;  %v20796_v29 = vld [vmem:[#allocation15 + $0x50] sm:$0xff]  }
0x18a3   :  { %17708 = vmatpush3.bf16.msra.mxu0 %v20771_v36 }
0x18a4   :  { %17709 = vmatprep.subr.bf16.mxu0 %v20772_v37 }
0x18a7   :  { %17710 = vmatpush3.bf16.msra.mxu0 %v20773_v38 }
0x18a8   :  { %17711 = vmatprep.subr.bf16.mxu0 %v20774_v40 }
0x18ab   :  { %17712 = vmatpush3.bf16.msra.mxu0 %v20775_v41 }
0x18ac   :  { %17713 = vmatprep.subr.bf16.mxu0 %v20776_v43 }
0x18af   :  { %17714 = vmatpush3.bf16.msra.mxu0 %v20777_v44 }
0x18b0   :  { %17715 = vmatprep.subr.bf16.mxu0 %v20778_v45  ;;  %v20800_v45 = vld [vmem:[#allocation15 + $0x70] sm:$0xff]  }
0x18b3   :  { %17716 = vmatpush3.bf16.msra.mxu0 %v20779_v15  ;;  %v20801_v15 = vld [vmem:[#allocation15 + $0x78] sm:$0xff]  }
0x18b4   :  { %17717 = vmatprep.subr.bf16.mxu0 %v20780_v46  ;;  %v20802_v46 = vld [vmem:[#allocation15 + $0x80] sm:$0xff]  }
0x18b7   :  { %17718 = vmatpush3.bf16.msra.mxu0 %v20781_v47  ;;  %v20803_v47 = vld [vmem:[#allocation15 + $0x88] sm:$0xff]  }
0x18b8   :  { %17719 = vmatprep.subr.bf16.mxu0 %v20782_v60  ;;  %v20809_v60 = vld [vmem:[#allocation15 + $0xb8] sm:$0xff]  }
0x18bb   :  { %17720 = vmatpush3.bf16.msra.mxu0 %v20783_v61  ;;  %v20810_v61 = vld [vmem:[#allocation15 + $0xc0] sm:$0xff]  }
0x18bc   :  { %17721 = vmatprep.subr.bf16.mxu0 %v20784_v62  ;;  %v20811_v62 = vld [vmem:[#allocation15 + $0xc8] sm:$0xff]  }
0x18bf   :  { %17722 = vmatpush3.bf16.msra.mxu0 %v20785_v63  ;;  %v20812_v63 = vld [vmem:[#allocation15 + $0xd0] sm:$0xff]  }
0x18c0   :  { %17891 = vmatprep.subr.bf16.mxu0 %v21277_v0 }
0x1975   :  { %v12665_v50 = vpop.f32.mrb[68].mxu0 }
0x1976   :  { %v12666_v51 = vadd.f32 %v12665_v50, %v12544_v22  ;;  %v12667_v52 = vpop.f32.mrb[69].mxu0  ;;  %v20805_v22 = vld [vmem:[#allocation15 + $0x98] sm:$0xff]   ;;  %v20807_v50 = vld [vmem:[#allocation15 + $0xa8] sm:$0xff]  }
0x1977   :  { %v12668_v53 = vadd.f32 %v12667_v52, %v12548_v49  ;;  %v12669_v54 = vpop.f32.mrb[70].mxu0  ;;  %v20806_v49 = vld [vmem:[#allocation15 + $0xa0] sm:$0xff]  }
0x1978   :  { %v12672_v32 = vmax.f32 %v12666_v51, 0.0  ;;  %v12670_v56 = vpop.f32.mrb[71].mxu0  ;;  %v17371_v51 = vld [vmem:[#allocation21 + $0x5] ss:$0 sm:$0xff] }
0x1979   :  { %v12673_v57 = vmax.f32 %v12668_v53, 0.0 }
0x197a   :  { %v12674_v59 = vpack.c.bf16 %v12672_v32, %v12672_v32 }
0x197b   :  { %v12675_v58 = vpack.c.bf16 %v12673_v57, %v12673_v57 }
0x197d   :  { %12914 = vmatprep.mubr.bf16.mxu1 %v12675_v58 }
0x197e   :  { %12915 = vmatmul.mubr.bf16.vlgmr.msra.gmra.mrb[72].mxu1 %v12674_v59  ;;  %v20808_v59 = vld [vmem:[#allocation15 + $0xb0] sm:$0xff]  }
0x197f   :  { %17927 = vmatprep.mubr.msk.bf16.mxu1 %vm21278_vm0, %v21277_v0  ;;  %17912 = vmatpush3.bf16.msra.mxu1 %v20794_v27 }
0x1980   :  { %17913 = vmatprep.subr.bf16.mxu1 %v21277_v0 }
0x1983   :  { %17914 = vmatpush3.bf16.msra.mxu1 %v20795_v28 }
0x1984   :  { %17915 = vmatprep.subr.bf16.mxu1 %v21277_v0 }
0x1987   :  { %17916 = vmatpush3.bf16.msra.mxu1 %v20796_v29 }
0x1988   :  { %17917 = vmatprep.subr.bf16.mxu1 %v21277_v0 }
0x198b   :  { %17918 = vmatpush3.bf16.msra.mxu1 %v20797_v30 }
0x198c   :  { %17919 = vmatprep.subr.bf16.mxu1 %v21277_v0 }
0x198f   :  { %17920 = vmatpush3.bf16.msra.mxu1 %v20798_v1 }
0x1990   :  { %17921 = vmatprep.subr.bf16.mxu1 %v21277_v0 }
0x1993   :  { %17922 = vmatpush3.bf16.msra.mxu1 %v20799_v33 }
0x1994   :  { %17923 = vmatprep.subr.bf16.mxu1 %v21277_v0 }
0x1997   :  { %17924 = vmatpush3.bf16.msra.mxu1 %v20800_v45 }
0x1998   :  { %17925 = vmatprep.subr.bf16.mxu1 %v21277_v0 }
0x199b   :  { %17926 = vmatpush3.bf16.msra.mxu1 %v20801_v15 }
0x199c   :  { %17951 = vmatprep.subr.bf16.mxu1 %v21277_v0 }
0x1a51   :  { %v12916_v4 = vpop.f32.mrb[72].mxu1 }
0x1a52   :  { %v12917_v5 = vadd.f32 %v12916_v4, %v12715_v2  ;;  %v12918_v6 = vpop.f32.mrb[73].mxu1  ;;  %v20814_v2 = vld [vmem:[#allocation15 + $0xe0] sm:$0xff]  }
0x1a53   :  { %v12919_v7 = vadd.f32 %v12918_v6, %v12719_v3  ;;  %v12920_v8 = vpop.f32.mrb[74].mxu1  ;;  %v20815_v3 = vld [vmem:[#allocation15 + $0xe8] sm:$0xff]   ;;  %v17380_v4 = vld [vmem:[#allocation21 + $0x6] ss:$0 sm:$0xff] }
0x1a54   :  { %v12923_v9 = vmax.f32 %v12917_v5, 0.0  ;;  %v12921_v10 = vpop.f32.mrb[75].mxu1 }
0x1a55   :  { %v12924_v12 = vmax.f32 %v12919_v7, 0.0 }
0x1a56   :  { %v12925_v20 = vpack.c.bf16 %v12923_v9, %v12923_v9 }
0x1a57   :  { %v12926_v18 = vpack.c.bf16 %v12924_v12, %v12924_v12 }
0x1a59   :  { %13093 = vmatprep.mubr.bf16.mxu0 %v12926_v18  ;;  %v20816_v18 = vld [vmem:[#allocation15 + $0xf0] sm:$0xff]  }
0x1a5a   :  { %13094 = vmatmul.mubr.bf16.vlgmr.msra.gmra.mrb[72].mxu0 %v12925_v20  ;;  %v20818_v20 = vld [vmem:[#allocation15 + $0x100] sm:$0xff]  }
0x1a5b   :  { %17892 = vmatpush3.bf16.msra.mxu0 %v20786_v19  ;;  %17907 = vmatprep.mubr.msk.bf16.mxu0 %vm21278_vm0, %v21277_v0  ;;  %v20817_v19 = vld [vmem:[#allocation15 + $0xf8] sm:$0xff]  }
0x1a5c   :  { %17893 = vmatprep.subr.bf16.mxu0 %v21277_v0 }
0x1a5f   :  { %17894 = vmatpush3.bf16.msra.mxu0 %v20787_v21  ;;  %v20819_v21 = vld [vmem:[#allocation15 + $0x108] sm:$0xff]  }
0x1a60   :  { %17895 = vmatprep.subr.bf16.mxu0 %v21277_v0 }
0x1a63   :  { %17896 = vmatpush3.bf16.msra.mxu0 %v20788_v55  ;;  %v20820_v55 = vld [vmem:[#allocation15 + $0x110] sm:$0xff]  }
0x1a64   :  { %17897 = vmatprep.subr.bf16.mxu0 %v21277_v0 }
0x1a67   :  { %17898 = vmatpush3.bf16.msra.mxu0 %v20789_v11  ;;  %v20821_v11 = vld [vmem:[#allocation15 + $0x118] sm:$0xff]  }
0x1a68   :  { %17899 = vmatprep.subr.bf16.mxu0 %v21277_v0 }
0x1a6b   :  { %17900 = vmatpush3.bf16.msra.mxu0 %v20790_v23  ;;  %v20822_v23 = vld [vmem:[#allocation15 + $0x120] sm:$0xff]  }
0x1a6c   :  { %17901 = vmatprep.subr.bf16.mxu0 %v21277_v0 }
0x1a6f   :  { %17902 = vmatpush3.bf16.msra.mxu0 %v20791_v24  ;;  %v20823_v24 = vld [vmem:[#allocation15 + $0x128] sm:$0xff]  }
0x1a70   :  { %17903 = vmatprep.subr.bf16.mxu0 %v21277_v0 }
0x1a73   :  { %17904 = vmatpush3.bf16.msra.mxu0 %v20792_v25  ;;  %v17389_v25 = vld [vmem:[#allocation21 + $0x7] ss:$0 sm:$0xff] }
0x1a74   :  { %17905 = vmatprep.subr.bf16.mxu0 %v21277_v0 }
0x1a77   :  { %17906 = vmatpush3.bf16.msra.mxu0 %v20793_v26 }
0x1a78   :  { %17931 = vmatprep.subr.bf16.mxu0 %v21277_v0 }
0x1b2d   :  { %v17723_v34 = vpop.f32.mrb[72].mxu0 }
0x1b2e   :  { %v17724_v36 = vpop.f32.mrb[73].mxu0 }
0x1b2f   :  { %v17725_v37 = vadd.f32 %v17724_v36, %v17723_v34  ;;  %v17726_v38 = vpop.f32.mrb[74].mxu0  ;;  %v20824_v34 = vld [vmem:[#allocation15 + $0x130] sm:$0xff]   ;;  %v20826_v36 = vld [vmem:[#allocation15 + $0x140] sm:$0xff]  }
0x1b30   :  { %v17727_v40 = vpop.f32.mrb[75].mxu0  ;;  %v20828_v38 = vld [vmem:[#allocation15 + $0x150] sm:$0xff]  }
0x1b31   :  { %v13096_v41 = vadd.f32 %v17725_v37, %v17354_v35  ;;  %v20825_v35 = vld [vmem:[#allocation15 + $0x138] sm:$0xff]   ;;  %v20827_v37 = vld [vmem:[#allocation15 + $0x148] sm:$0xff]  }
0x1b32   :  { %v20829_v40 = vld [vmem:[#allocation15 + $0x158] sm:$0xff]  }
0x1b33   :  { %v13101_v43 = vmax.f32 %v13096_v41, 0.0  ;;  %v20830_v41 = vld [vmem:[#allocation15 + $0x160] sm:$0xff]  }
0x1b35   :  { %v13102_v44 = vpack.c.bf16 %v13101_v43, %v13101_v43  ;;  %v20831_v43 = vld [vmem:[#allocation15 + $0x168] sm:$0xff]  }
0x1b37   :  { %17908 = vmatmul.mubr.bf16.vlgmr.msra.gmra.mrb[76].mxu0 %v13102_v44  ;;  %v17398_v44 = vld [vmem:[#allocation21 + $0x8] ss:$0 sm:$0xff] }
0x1b38   :  { %17947 = vmatprep.mubr.msk.bf16.mxu0 %vm21278_vm0, %v21277_v0  ;;  %17932 = vmatpush3.bf16.msra.mxu0 %v20802_v46 }
0x1b39   :  { %17933 = vmatprep.subr.bf16.mxu0 %v21277_v0 }
0x1b3c   :  { %17934 = vmatpush3.bf16.msra.mxu0 %v20803_v47 }
0x1b3d   :  { %17935 = vmatprep.subr.bf16.mxu0 %v21277_v0 }
0x1b40   :  { %17936 = vmatpush3.bf16.msra.mxu0 %v20804_v48 }
0x1b41   :  { %17937 = vmatprep.subr.bf16.mxu0 %v21277_v0 }
0x1b44   :  { %17938 = vmatpush3.bf16.msra.mxu0 %v20805_v22 }
0x1b45   :  { %17939 = vmatprep.subr.bf16.mxu0 %v21277_v0 }
0x1b48   :  { %17940 = vmatpush3.bf16.msra.mxu0 %v20806_v49 }
0x1b49   :  { %17941 = vmatprep.subr.bf16.mxu0 %v21277_v0 }
0x1b4c   :  { %17942 = vmatpush3.bf16.msra.mxu0 %v20807_v50  ;;  %v20832_v50 = vld [vmem:[#allocation15 + $0x170] sm:$0xff]  }
0x1b4d   :  { %17943 = vmatprep.subr.bf16.mxu0 %v21277_v0 }
0x1b50   :  { %17944 = vmatpush3.bf16.msra.mxu0 %v20808_v59 }
0x1b51   :  { %17945 = vmatprep.subr.bf16.mxu0 %v21277_v0 }
0x1b54   :  { %17946 = vmatpush3.bf16.msra.mxu0 %v20809_v60 }
0x1b55   :  { %17971 = vmatprep.subr.bf16.mxu0 %v21277_v0 }
0x1c0a   :  { %v13206_v52 = vpop.f32.mrb[76].mxu0 }
0x1c0b   :  { %v13207_v53 = vadd.f32 %v17371_v51, %v13206_v52  ;;  %v17909_v54 = vpop.f32.mrb[77].mxu0  ;;  %v20833_v51 = vld [vmem:[#allocation15 + $0x178] sm:$0xff]   ;;  %v20834_v52 = vld [vmem:[#allocation15 + $0x180] sm:$0xff]  }
0x1c0c   :  { %v13209_v32 = vpop.f32.mrb[78].mxu0  ;;  %v20836_v54 = vld [vmem:[#allocation15 + $0x190] sm:$0xff]  }
0x1c0d   :  { %v13212_v56 = vmax.f32 %v13207_v53, 0.0  ;;  %v17910_v57 = vpop.f32.mrb[79].mxu0  ;;  %v20835_v53 = vld [vmem:[#allocation15 + $0x188] sm:$0xff]   ;;  %v20837_v32 = vld [vmem:[#allocation15 + $0x198] sm:$0xff]  }
0x1c0e   :  { %v20839_v57 = vld [vmem:[#allocation15 + $0x1a8] sm:$0xff]  }
0x1c0f   :  { %v13213_v58 = vpack.c.bf16 %v13212_v56, %v13212_v56  ;;  %v20838_v56 = vld [vmem:[#allocation15 + $0x1a0] sm:$0xff]  }
0x1c11   :  { %17928 = vmatmul.mubr.bf16.vlgmr.msra.gmra.mrb[76].mxu1 %v13213_v58  ;;  %v17407_v58 = vld [vmem:[#allocation21 + $0x9] ss:$0 sm:$0xff] }
0x1c12   :  { %17967 = vmatprep.mubr.msk.bf16.mxu1 %vm21278_vm0, %v21277_v0  ;;  %17952 = vmatpush3.bf16.msra.mxu1 %v20810_v61 }
0x1c13   :  { %17953 = vmatprep.subr.bf16.mxu1 %v21277_v0 }
0x1c16   :  { %17954 = vmatpush3.bf16.msra.mxu1 %v20811_v62 }
0x1c17   :  { %17955 = vmatprep.subr.bf16.mxu1 %v21277_v0 }
0x1c1a   :  { %17956 = vmatpush3.bf16.msra.mxu1 %v20812_v63 }
0x1c1b   :  { %17957 = vmatprep.subr.bf16.mxu1 %v21277_v0 }
0x1c1e   :  { %17958 = vmatpush3.bf16.msra.mxu1 %v20813_v42 }
0x1c1f   :  { %17959 = vmatprep.subr.bf16.mxu1 %v21277_v0 }
0x1c22   :  { %17960 = vmatpush3.bf16.msra.mxu1 %v20814_v2 }
0x1c23   :  { %17961 = vmatprep.subr.bf16.mxu1 %v21277_v0 }
0x1c26   :  { %17962 = vmatpush3.bf16.msra.mxu1 %v20815_v3  ;;  %v20840_v3 = vld [vmem:[#allocation15 + $0x1b0] sm:$0xff]  }
0x1c27   :  { %17963 = vmatprep.subr.bf16.mxu1 %v21277_v0 }
0x1c2a   :  { %17964 = vmatpush3.bf16.msra.mxu1 %v20816_v18 }
0x1c2b   :  { %17965 = vmatprep.subr.bf16.mxu1 %v21277_v0 }
0x1c2e   :  { %17966 = vmatpush3.bf16.msra.mxu1 %v20817_v19 }
0x1c2f   :  { %17991 = vmatprep.subr.bf16.mxu1 %v21277_v0 }
0x1ce4   :  { %v13318_v5 = vpop.f32.mrb[76].mxu1 }
0x1ce5   :  { %v13319_v6 = vadd.f32 %v17380_v4, %v13318_v5  ;;  %v17929_v7 = vpop.f32.mrb[77].mxu1  ;;  %v20841_v4 = vld [vmem:[#allocation15 + $0x1b8] sm:$0xff]   ;;  %v20842_v5 = vld [vmem:[#allocation15 + $0x1c0] sm:$0xff]  }
0x1ce6   :  { %v13321_v8 = vpop.f32.mrb[78].mxu1  ;;  %v20844_v7 = vld [vmem:[#allocation15 + $0x1d0] sm:$0xff]  }
0x1ce7   :  { %v13324_v9 = vmax.f32 %v13319_v6, 0.0  ;;  %v17930_v10 = vpop.f32.mrb[79].mxu1  ;;  %v20843_v6 = vld [vmem:[#allocation15 + $0x1c8] sm:$0xff]   ;;  %v20845_v8 = vld [vmem:[#allocation15 + $0x1d8] sm:$0xff]  }
0x1ce8   :  { %v20847_v10 = vld [vmem:[#allocation15 + $0x1e8] sm:$0xff]  }
0x1ce9   :  { %v13325_v12 = vpack.c.bf16 %v13324_v9, %v13324_v9  ;;  %v20846_v9 = vld [vmem:[#allocation15 + $0x1e0] sm:$0xff]  }
0x1ceb   :  { %17948 = vmatmul.mubr.bf16.vlgmr.msra.gmra.mrb[80].mxu0 %v13325_v12  ;;  %v17416_v12 = vld [vmem:[#allocation21 + $0xa] ss:$0 sm:$0xff] }
0x1cec   :  { %17987 = vmatprep.mubr.msk.bf16.mxu0 %vm21278_vm0, %v21277_v0  ;;  %17972 = vmatpush3.bf16.msra.mxu0 %v20818_v20 }
0x1ced   :  { %17973 = vmatprep.subr.bf16.mxu0 %v21277_v0 }
0x1cf0   :  { %17974 = vmatpush3.bf16.msra.mxu0 %v20819_v21 }
0x1cf1   :  { %17975 = vmatprep.subr.bf16.mxu0 %v21277_v0 }
0x1cf4   :  { %17976 = vmatpush3.bf16.msra.mxu0 %v20820_v55 }
0x1cf5   :  { %17977 = vmatprep.subr.bf16.mxu0 %v21277_v0 }
0x1cf8   :  { %17978 = vmatpush3.bf16.msra.mxu0 %v20821_v11 }
0x1cf9   :  { %17979 = vmatprep.subr.bf16.mxu0 %v21277_v0 }
0x1cfc   :  { %17980 = vmatpush3.bf16.msra.mxu0 %v20822_v23 }
0x1cfd   :  { %17981 = vmatprep.subr.bf16.mxu0 %v21277_v0 }
0x1d00   :  { %17982 = vmatpush3.bf16.msra.mxu0 %v20823_v24  ;;  %v20848_v24 = vld [vmem:[#allocation15 + $0x1f0] sm:$0xff]  }
0x1d01   :  { %17983 = vmatprep.subr.bf16.mxu0 %v21277_v0 }
0x1d04   :  { %17984 = vmatpush3.bf16.msra.mxu0 %v20824_v34 }
0x1d05   :  { %17985 = vmatprep.subr.bf16.mxu0 %v21277_v0 }
0x1d08   :  { %17986 = vmatpush3.bf16.msra.mxu0 %v20825_v35 }
0x1d09   :  { %18011 = vmatprep.subr.bf16.mxu0 %v21277_v0 }
0x1dbe   :  { %v13430_v26 = vpop.f32.mrb[80].mxu0 }
0x1dbf   :  { %v13431_v27 = vadd.f32 %v17389_v25, %v13430_v26  ;;  %v17949_v28 = vpop.f32.mrb[81].mxu0  ;;  %v20849_v25 = vld [vmem:[#allocation15 + $0x1f8] sm:$0xff]   ;;  %v20850_v26 = vld [vmem:[#allocation15 + $0x200] sm:$0xff]  }
0x1dc0   :  { %v13433_v29 = vpop.f32.mrb[82].mxu0  ;;  %v20852_v28 = vld [vmem:[#allocation15 + $0x210] sm:$0xff]  }
0x1dc1   :  { %v13436_v30 = vmax.f32 %v13431_v27, 0.0  ;;  %v17950_v1 = vpop.f32.mrb[83].mxu0  ;;  %v20851_v27 = vld [vmem:[#allocation15 + $0x208] sm:$0xff]   ;;  %v20853_v29 = vld [vmem:[#allocation15 + $0x218] sm:$0xff]  }
0x1dc2   :  { %v20855_v1 = vld [vmem:[#allocation15 + $0x228] sm:$0xff]  }
0x1dc3   :  { %v13437_v33 = vpack.c.bf16 %v13436_v30, %v13436_v30  ;;  %v20854_v30 = vld [vmem:[#allocation15 + $0x220] sm:$0xff]  }
0x1dc5   :  { %17968 = vmatmul.mubr.bf16.vlgmr.msra.gmra.mrb[80].mxu1 %v13437_v33  ;;  %v17425_v33 = vld [vmem:[#allocation21 + $0xb] ss:$0 sm:$0xff] }
0x1dc6   :  { %18007 = vmatprep.mubr.msk.bf16.mxu1 %vm21278_vm0, %v21277_v0  ;;  %17992 = vmatpush3.bf16.msra.mxu1 %v20826_v36 }
0x1dc7   :  { %17993 = vmatprep.subr.bf16.mxu1 %v21277_v0 }
0x1dca   :  { %17994 = vmatpush3.bf16.msra.mxu1 %v20827_v37 }
0x1dcb   :  { %17995 = vmatprep.subr.bf16.mxu1 %v21277_v0 }
0x1dce   :  { %17996 = vmatpush3.bf16.msra.mxu1 %v20828_v38 }
0x1dcf   :  { %17997 = vmatprep.subr.bf16.mxu1 %v21277_v0 }
0x1dd2   :  { %17998 = vmatpush3.bf16.msra.mxu1 %v20829_v40 }
0x1dd3   :  { %17999 = vmatprep.subr.bf16.mxu1 %v21277_v0 }
0x1dd6   :  { %18000 = vmatpush3.bf16.msra.mxu1 %v20830_v41 }
0x1dd7   :  { %18001 = vmatprep.subr.bf16.mxu1 %v21277_v0 }
0x1dda   :  { %18002 = vmatpush3.bf16.msra.mxu1 %v20831_v43  ;;  %v20856_v43 = vld [vmem:[#allocation15 + $0x230] sm:$0xff]  }
0x1ddb   :  { %18003 = vmatprep.subr.bf16.mxu1 %v21277_v0 }
0x1dde   :  { %18004 = vmatpush3.bf16.msra.mxu1 %v20832_v50 }
0x1ddf   :  { %18005 = vmatprep.subr.bf16.mxu1 %v21277_v0 }
0x1de2   :  { %18006 = vmatpush3.bf16.msra.mxu1 %v20833_v51 }
0x1de3   :  { %18031 = vmatprep.subr.bf16.mxu1 %v21277_v0 }
0x1e98   :  { %v13542_v45 = vpop.f32.mrb[80].mxu1 }
0x1e99   :  { %v13543_v15 = vadd.f32 %v17398_v44, %v13542_v45  ;;  %v17969_v46 = vpop.f32.mrb[81].mxu1  ;;  %v20857_v44 = vld [vmem:[#allocation15 + $0x238] sm:$0xff]   ;;  %v20858_v45 = vld [vmem:[#allocation15 + $0x240] sm:$0xff]  }
0x1e9a   :  { %v13545_v47 = vpop.f32.mrb[82].mxu1  ;;  %v20860_v46 = vld [vmem:[#allocation15 + $0x250] sm:$0xff]  }
0x1e9b   :  { %v13548_v48 = vmax.f32 %v13543_v15, 0.0  ;;  %v17970_v22 = vpop.f32.mrb[83].mxu1  ;;  %v20859_v15 = vld [vmem:[#allocation15 + $0x248] sm:$0xff]   ;;  %v20861_v47 = vld [vmem:[#allocation15 + $0x258] sm:$0xff]  }
0x1e9c   :  { %v20863_v22 = vld [vmem:[#allocation15 + $0x268] sm:$0xff]  }
0x1e9d   :  { %v13549_v49 = vpack.c.bf16 %v13548_v48, %v13548_v48  ;;  %v20862_v48 = vld [vmem:[#allocation15 + $0x260] sm:$0xff]  }
0x1e9f   :  { %17988 = vmatmul.mubr.bf16.vlgmr.msra.gmra.mrb[84].mxu0 %v13549_v49  ;;  %v17434_v49 = vld [vmem:[#allocation21 + $0xc] ss:$0 sm:$0xff] }
0x1ea0   :  { %18027 = vmatprep.mubr.msk.bf16.mxu0 %vm21278_vm0, %v21277_v0  ;;  %18012 = vmatpush3.bf16.msra.mxu0 %v20834_v52 }
0x1ea1   :  { %18013 = vmatprep.subr.bf16.mxu0 %v21277_v0 }
0x1ea4   :  { %18014 = vmatpush3.bf16.msra.mxu0 %v20835_v53 }
0x1ea5   :  { %18015 = vmatprep.subr.bf16.mxu0 %v21277_v0 }
0x1ea8   :  { %18016 = vmatpush3.bf16.msra.mxu0 %v20836_v54 }
0x1ea9   :  { %18017 = vmatprep.subr.bf16.mxu0 %v21277_v0 }
0x1eac   :  { %18018 = vmatpush3.bf16.msra.mxu0 %v20837_v32 }
0x1ead   :  { %18019 = vmatprep.subr.bf16.mxu0 %v21277_v0 }
0x1eb0   :  { %18020 = vmatpush3.bf16.msra.mxu0 %v20838_v56 }
0x1eb1   :  { %18021 = vmatprep.subr.bf16.mxu0 %v21277_v0 }
0x1eb4   :  { %18022 = vmatpush3.bf16.msra.mxu0 %v20839_v57  ;;  %v20864_v57 = vld [vmem:[#allocation15 + $0x270] sm:$0xff]  }
0x1eb5   :  { %18023 = vmatprep.subr.bf16.mxu0 %v21277_v0 }
0x1eb8   :  { %18024 = vmatpush3.bf16.msra.mxu0 %v20840_v3 }
0x1eb9   :  { %18025 = vmatprep.subr.bf16.mxu0 %v21277_v0 }
0x1ebc   :  { %18026 = vmatpush3.bf16.msra.mxu0 %v20841_v4 }
0x1ebd   :  { %18051 = vmatprep.subr.bf16.mxu0 %v21277_v0 }
0x1f72   :  { %v13654_v59 = vpop.f32.mrb[84].mxu0 }
0x1f73   :  { %v13655_v60 = vadd.f32 %v17407_v58, %v13654_v59  ;;  %v17989_v61 = vpop.f32.mrb[85].mxu0  ;;  %v20865_v58 = vld [vmem:[#allocation15 + $0x278] sm:$0xff]   ;;  %v20866_v59 = vld [vmem:[#allocation15 + $0x280] sm:$0xff]  }
0x1f74   :  { %v13657_v62 = vpop.f32.mrb[86].mxu0  ;;  %v20868_v61 = vld [vmem:[#allocation15 + $0x290] sm:$0xff]  }
0x1f75   :  { %v13660_v63 = vmax.f32 %v13655_v60, 0.0  ;;  %v17990_v42 = vpop.f32.mrb[87].mxu0  ;;  %v20867_v60 = vld [vmem:[#allocation15 + $0x288] sm:$0xff]   ;;  %v20869_v62 = vld [vmem:[#allocation15 + $0x298] sm:$0xff]  }
0x1f76   :  { %v20871_v42 = vld [vmem:[#allocation15 + $0x2a8] sm:$0xff]  }
0x1f77   :  { %v13661_v2 = vpack.c.bf16 %v13660_v63, %v13660_v63  ;;  %v20870_v63 = vld [vmem:[#allocation15 + $0x2a0] sm:$0xff]  }
0x1f79   :  { %18008 = vmatmul.mubr.bf16.vlgmr.msra.gmra.mrb[84].mxu1 %v13661_v2  ;;  %v17443_v2 = vld [vmem:[#allocation21 + $0xd] ss:$0 sm:$0xff] }
0x1f7a   :  { %18047 = vmatprep.mubr.msk.bf16.mxu1 %vm21278_vm0, %v21277_v0  ;;  %18032 = vmatpush3.bf16.msra.mxu1 %v20842_v5 }
0x1f7b   :  { %18033 = vmatprep.subr.bf16.mxu1 %v21277_v0 }
0x1f7e   :  { %18034 = vmatpush3.bf16.msra.mxu1 %v20843_v6 }
0x1f7f   :  { %18035 = vmatprep.subr.bf16.mxu1 %v21277_v0 }
0x1f82   :  { %18036 = vmatpush3.bf16.msra.mxu1 %v20844_v7 }
0x1f83   :  { %18037 = vmatprep.subr.bf16.mxu1 %v21277_v0 }
0x1f86   :  { %18038 = vmatpush3.bf16.msra.mxu1 %v20845_v8 }
0x1f87   :  { %18039 = vmatprep.subr.bf16.mxu1 %v21277_v0 }
0x1f8a   :  { %18040 = vmatpush3.bf16.msra.mxu1 %v20846_v9 }
0x1f8b   :  { %18041 = vmatprep.subr.bf16.mxu1 %v21277_v0 }
0x1f8e   :  { %18042 = vmatpush3.bf16.msra.mxu1 %v20847_v10  ;;  %v20872_v10 = vld [vmem:[#allocation15 + $0x2b0] sm:$0xff]  }
0x1f8f   :  { %18043 = vmatprep.subr.bf16.mxu1 %v21277_v0 }
0x1f92   :  { %18044 = vmatpush3.bf16.msra.mxu1 %v20848_v24 }
0x1f93   :  { %18045 = vmatprep.subr.bf16.mxu1 %v21277_v0 }
0x1f96   :  { %18046 = vmatpush3.bf16.msra.mxu1 %v20849_v25 }
0x1f97   :  { %18071 = vmatprep.subr.bf16.mxu1 %v21277_v0 }
0x204c   :  { %v13766_v18 = vpop.f32.mrb[84].mxu1 }
0x204d   :  { %v13767_v19 = vadd.f32 %v17416_v12, %v13766_v18  ;;  %v18009_v20 = vpop.f32.mrb[85].mxu1  ;;  %v20873_v12 = vld [vmem:[#allocation15 + $0x2b8] sm:$0xff]   ;;  %v20874_v18 = vld [vmem:[#allocation15 + $0x2c0] sm:$0xff]  }
0x204e   :  { %v13769_v21 = vpop.f32.mrb[86].mxu1  ;;  %v20876_v20 = vld [vmem:[#allocation15 + $0x2d0] sm:$0xff]  }
0x204f   :  { %v13772_v55 = vmax.f32 %v13767_v19, 0.0  ;;  %v18010_v11 = vpop.f32.mrb[87].mxu1  ;;  %v20875_v19 = vld [vmem:[#allocation15 + $0x2c8] sm:$0xff]   ;;  %v20877_v21 = vld [vmem:[#allocation15 + $0x2d8] sm:$0xff]  }
0x2050   :  { %v20879_v11 = vld [vmem:[#allocation15 + $0x2e8] sm:$0xff]  }
0x2051   :  { %v13773_v23 = vpack.c.bf16 %v13772_v55, %v13772_v55  ;;  %v20878_v55 = vld [vmem:[#allocation15 + $0x2e0] sm:$0xff]  }
0x2053   :  { %18028 = vmatmul.mubr.bf16.vlgmr.msra.gmra.mrb[88].mxu0 %v13773_v23  ;;  %v17452_v23 = vld [vmem:[#allocation21 + $0xe] ss:$0 sm:$0xff] }
0x2054   :  { %18067 = vmatprep.mubr.msk.bf16.mxu0 %vm21278_vm0, %v21277_v0  ;;  %18052 = vmatpush3.bf16.msra.mxu0 %v20850_v26 }
0x2055   :  { %18053 = vmatprep.subr.bf16.mxu0 %v21277_v0 }
0x2058   :  { %18054 = vmatpush3.bf16.msra.mxu0 %v20851_v27 }
0x2059   :  { %18055 = vmatprep.subr.bf16.mxu0 %v21277_v0 }
0x205c   :  { %18056 = vmatpush3.bf16.msra.mxu0 %v20852_v28 }
0x205d   :  { %18057 = vmatprep.subr.bf16.mxu0 %v21277_v0 }
0x2060   :  { %18058 = vmatpush3.bf16.msra.mxu0 %v20853_v29 }
0x2061   :  { %18059 = vmatprep.subr.bf16.mxu0 %v21277_v0 }
0x2064   :  { %18060 = vmatpush3.bf16.msra.mxu0 %v20854_v30 }
0x2065   :  { %18061 = vmatprep.subr.bf16.mxu0 %v21277_v0 }
0x2068   :  { %18062 = vmatpush3.bf16.msra.mxu0 %v20855_v1  ;;  %v20880_v1 = vld [vmem:[#allocation15 + $0x2f0] sm:$0xff]  }
0x2069   :  { %18063 = vmatprep.subr.bf16.mxu0 %v21277_v0 }
0x206c   :  { %18064 = vmatpush3.bf16.msra.mxu0 %v20856_v43 }
0x206d   :  { %18065 = vmatprep.subr.bf16.mxu0 %v21277_v0 }
0x2070   :  { %18066 = vmatpush3.bf16.msra.mxu0 %v20857_v44 }
0x2071   :  { %18091 = vmatprep.subr.bf16.mxu0 %v21277_v0 }
0x2126   :  { %v13878_v34 = vpop.f32.mrb[88].mxu0 }
0x2127   :  { %v13879_v35 = vadd.f32 %v17425_v33, %v13878_v34  ;;  %v18029_v36 = vpop.f32.mrb[89].mxu0  ;;  %v20881_v33 = vld [vmem:[#allocation15 + $0x2f8] sm:$0xff]   ;;  %v20882_v34 = vld [vmem:[#allocation15 + $0x300] sm:$0xff]  }
0x2128   :  { %v13881_v37 = vpop.f32.mrb[90].mxu0  ;;  %v20884_v36 = vld [vmem:[#allocation15 + $0x310] sm:$0xff]  }
0x2129   :  { %v13884_v38 = vmax.f32 %v13879_v35, 0.0  ;;  %v18030_v40 = vpop.f32.mrb[91].mxu0  ;;  %v20883_v35 = vld [vmem:[#allocation15 + $0x308] sm:$0xff]   ;;  %v20885_v37 = vld [vmem:[#allocation15 + $0x318] sm:$0xff]  }
0x212a   :  { %v20887_v40 = vld [vmem:[#allocation15 + $0x328] sm:$0xff]  }
0x212b   :  { %v13885_v41 = vpack.c.bf16 %v13884_v38, %v13884_v38  ;;  %v20886_v38 = vld [vmem:[#allocation15 + $0x320] sm:$0xff]  }
0x212d   :  { %18048 = vmatmul.mubr.bf16.vlgmr.msra.gmra.mrb[88].mxu1 %v13885_v41  ;;  %v17461_v41 = vld [vmem:[#allocation21 + $0xf] ss:$0 sm:$0xff] }
0x212e   :  { %18087 = vmatprep.mubr.msk.bf16.mxu1 %vm21278_vm0, %v21277_v0  ;;  %18072 = vmatpush3.bf16.msra.mxu1 %v20858_v45 }
0x212f   :  { %18073 = vmatprep.subr.bf16.mxu1 %v21277_v0 }
0x2132   :  { %18074 = vmatpush3.bf16.msra.mxu1 %v20859_v15 }
0x2133   :  { %18075 = vmatprep.subr.bf16.mxu1 %v21277_v0 }
0x2136   :  { %18076 = vmatpush3.bf16.msra.mxu1 %v20860_v46 }
0x2137   :  { %18077 = vmatprep.subr.bf16.mxu1 %v21277_v0 }
0x213a   :  { %18078 = vmatpush3.bf16.msra.mxu1 %v20861_v47 }
0x213b   :  { %18079 = vmatprep.subr.bf16.mxu1 %v21277_v0 }
0x213e   :  { %18080 = vmatpush3.bf16.msra.mxu1 %v20862_v48 }
0x213f   :  { %18081 = vmatprep.subr.bf16.mxu1 %v21277_v0 }
0x2142   :  { %18082 = vmatpush3.bf16.msra.mxu1 %v20863_v22  ;;  %v20888_v22 = vld [vmem:[#allocation15 + $0x330] sm:$0xff]  }
0x2143   :  { %18083 = vmatprep.subr.bf16.mxu1 %v21277_v0 }
0x2146   :  { %18084 = vmatpush3.bf16.msra.mxu1 %v20864_v57 }
0x2147   :  { %18085 = vmatprep.subr.bf16.mxu1 %v21277_v0 }
0x214a   :  { %18086 = vmatpush3.bf16.msra.mxu1 %v20865_v58 }
0x214b   :  { %18111 = vmatprep.subr.bf16.mxu1 %v21277_v0 }
0x2200   :  { %v13990_v50 = vpop.f32.mrb[88].mxu1 }
0x2201   :  { %v13991_v51 = vadd.f32 %v17434_v49, %v13990_v50  ;;  %v18049_v52 = vpop.f32.mrb[89].mxu1  ;;  %v20889_v49 = vld [vmem:[#allocation15 + $0x338] sm:$0xff]   ;;  %v20890_v50 = vld [vmem:[#allocation15 + $0x340] sm:$0xff]  }
0x2202   :  { %v13993_v53 = vpop.f32.mrb[90].mxu1  ;;  %v20892_v52 = vld [vmem:[#allocation15 + $0x350] sm:$0xff]  }
0x2203   :  { %v13996_v54 = vmax.f32 %v13991_v51, 0.0  ;;  %v18050_v32 = vpop.f32.mrb[91].mxu1  ;;  %v20891_v51 = vld [vmem:[#allocation15 + $0x348] sm:$0xff]   ;;  %v20893_v53 = vld [vmem:[#allocation15 + $0x358] sm:$0xff]  }
0x2204   :  { %v20895_v32 = vld [vmem:[#allocation15 + $0x368] sm:$0xff]  }
0x2205   :  { %v13997_v56 = vpack.c.bf16 %v13996_v54, %v13996_v54  ;;  %v20894_v54 = vld [vmem:[#allocation15 + $0x360] sm:$0xff]  }
0x2207   :  { %18068 = vmatmul.mubr.bf16.vlgmr.msra.gmra.mrb[92].mxu0 %v13997_v56  ;;  %v17470_v56 = vld [vmem:[#allocation21 + $0x10] ss:$0 sm:$0xff] }
0x2208   :  { %18107 = vmatprep.mubr.msk.bf16.mxu0 %vm21278_vm0, %v21277_v0  ;;  %18092 = vmatpush3.bf16.msra.mxu0 %v20866_v59 }
0x2209   :  { %18093 = vmatprep.subr.bf16.mxu0 %v21277_v0 }
0x220c   :  { %18094 = vmatpush3.bf16.msra.mxu0 %v20867_v60 }
0x220d   :  { %18095 = vmatprep.subr.bf16.mxu0 %v21277_v0 }
0x2210   :  { %18096 = vmatpush3.bf16.msra.mxu0 %v20868_v61 }
0x2211   :  { %18097 = vmatprep.subr.bf16.mxu0 %v21277_v0 }
0x2214   :  { %18098 = vmatpush3.bf16.msra.mxu0 %v20869_v62 }
0x2215   :  { %18099 = vmatprep.subr.bf16.mxu0 %v21277_v0 }
0x2218   :  { %18100 = vmatpush3.bf16.msra.mxu0 %v20870_v63 }
0x2219   :  { %18101 = vmatprep.subr.bf16.mxu0 %v21277_v0 }
0x221c   :  { %18102 = vmatpush3.bf16.msra.mxu0 %v20871_v42  ;;  %v20896_v42 = vld [vmem:[#allocation15 + $0x370] sm:$0xff]  }
0x221d   :  { %18103 = vmatprep.subr.bf16.mxu0 %v21277_v0 }
0x2220   :  { %18104 = vmatpush3.bf16.msra.mxu0 %v20872_v10 }
0x2221   :  { %18105 = vmatprep.subr.bf16.mxu0 %v21277_v0 }
0x2224   :  { %18106 = vmatpush3.bf16.msra.mxu0 %v20873_v12 }
0x2225   :  { %18131 = vmatprep.subr.bf16.mxu0 %v21277_v0 }
0x22da   :  { %v14102_v3 = vpop.f32.mrb[92].mxu0 }
0x22db   :  { %v14103_v4 = vadd.f32 %v17443_v2, %v14102_v3  ;;  %v18069_v5 = vpop.f32.mrb[93].mxu0  ;;  %v20897_v2 = vld [vmem:[#allocation15 + $0x378] sm:$0xff]   ;;  %v20898_v3 = vld [vmem:[#allocation15 + $0x380] sm:$0xff]  }
0x22dc   :  { %v14105_v6 = vpop.f32.mrb[94].mxu0  ;;  %v20900_v5 = vld [vmem:[#allocation15 + $0x390] sm:$0xff]  }
0x22dd   :  { %v14108_v7 = vmax.f32 %v14103_v4, 0.0  ;;  %v18070_v8 = vpop.f32.mrb[95].mxu0  ;;  %v20899_v4 = vld [vmem:[#allocation15 + $0x388] sm:$0xff]   ;;  %v20901_v6 = vld [vmem:[#allocation15 + $0x398] sm:$0xff]  }
0x22de   :  { %v20903_v8 = vld [vmem:[#allocation15 + $0x3a8] sm:$0xff]  }
0x22df   :  { %v14109_v9 = vpack.c.bf16 %v14108_v7, %v14108_v7  ;;  %v20902_v7 = vld [vmem:[#allocation15 + $0x3a0] sm:$0xff]  }
0x22e1   :  { %18088 = vmatmul.mubr.bf16.vlgmr.msra.gmra.mrb[92].mxu1 %v14109_v9  ;;  %v17479_v9 = vld [vmem:[#allocation21 + $0x11] ss:$0 sm:$0xff] }
0x22e2   :  { %18127 = vmatprep.mubr.msk.bf16.mxu1 %vm21278_vm0, %v21277_v0  ;;  %18112 = vmatpush3.bf16.msra.mxu1 %v20874_v18 }
0x22e3   :  { %18113 = vmatprep.subr.bf16.mxu1 %v21277_v0 }
0x22e6   :  { %18114 = vmatpush3.bf16.msra.mxu1 %v20875_v19 }
0x22e7   :  { %18115 = vmatprep.subr.bf16.mxu1 %v21277_v0 }
0x22ea   :  { %18116 = vmatpush3.bf16.msra.mxu1 %v20876_v20 }
0x22eb   :  { %18117 = vmatprep.subr.bf16.mxu1 %v21277_v0 }
0x22ee   :  { %18118 = vmatpush3.bf16.msra.mxu1 %v20877_v21 }
0x22ef   :  { %18119 = vmatprep.subr.bf16.mxu1 %v21277_v0 }
0x22f2   :  { %18120 = vmatpush3.bf16.msra.mxu1 %v20878_v55 }
0x22f3   :  { %18121 = vmatprep.subr.bf16.mxu1 %v21277_v0 }
0x22f6   :  { %18122 = vmatpush3.bf16.msra.mxu1 %v20879_v11  ;;  %v20904_v11 = vld [vmem:[#allocation15 + $0x3b0] sm:$0xff]  }
0x22f7   :  { %18123 = vmatprep.subr.bf16.mxu1 %v21277_v0 }
0x22fa   :  { %18124 = vmatpush3.bf16.msra.mxu1 %v20880_v1 }
0x22fb   :  { %18125 = vmatprep.subr.bf16.mxu1 %v21277_v0 }
0x22fe   :  { %18126 = vmatpush3.bf16.msra.mxu1 %v20881_v33 }
0x22ff   :  { %18151 = vmatprep.subr.bf16.mxu1 %v21277_v0 }
0x23b4   :  { %v14214_v24 = vpop.f32.mrb[92].mxu1 }
0x23b5   :  { %v14215_v25 = vadd.f32 %v17452_v23, %v14214_v24  ;;  %v18089_v26 = vpop.f32.mrb[93].mxu1  ;;  %v20905_v23 = vld [vmem:[#allocation15 + $0x3b8] sm:$0xff]   ;;  %v20906_v24 = vld [vmem:[#allocation15 + $0x3c0] sm:$0xff]  }
0x23b6   :  { %v14217_v27 = vpop.f32.mrb[94].mxu1  ;;  %v20908_v26 = vld [vmem:[#allocation15 + $0x3d0] sm:$0xff]  }
0x23b7   :  { %v14220_v28 = vmax.f32 %v14215_v25, 0.0  ;;  %v18090_v29 = vpop.f32.mrb[95].mxu1  ;;  %v20907_v25 = vld [vmem:[#allocation15 + $0x3c8] sm:$0xff]   ;;  %v20909_v27 = vld [vmem:[#allocation15 + $0x3d8] sm:$0xff]  }
0x23b8   :  { %v20911_v29 = vld [vmem:[#allocation15 + $0x3e8] sm:$0xff]  }
0x23b9   :  { %v14221_v30 = vpack.c.bf16 %v14220_v28, %v14220_v28  ;;  %v20910_v28 = vld [vmem:[#allocation15 + $0x3e0] sm:$0xff]  }
0x23bb   :  { %18108 = vmatmul.mubr.bf16.vlgmr.msra.gmra.mrb[96].mxu0 %v14221_v30  ;;  %v17488_v30 = vld [vmem:[#allocation21 + $0x12] ss:$0 sm:$0xff] }
0x23bc   :  { %18147 = vmatprep.mubr.msk.bf16.mxu0 %vm21278_vm0, %v21277_v0  ;;  %18132 = vmatpush3.bf16.msra.mxu0 %v20882_v34 }
0x23bd   :  { %18133 = vmatprep.subr.bf16.mxu0 %v21277_v0 }
0x23c0   :  { %18134 = vmatpush3.bf16.msra.mxu0 %v20883_v35 }
0x23c1   :  { %18135 = vmatprep.subr.bf16.mxu0 %v21277_v0 }
0x23c4   :  { %18136 = vmatpush3.bf16.msra.mxu0 %v20884_v36 }
0x23c5   :  { %18137 = vmatprep.subr.bf16.mxu0 %v21277_v0 }
0x23c8   :  { %18138 = vmatpush3.bf16.msra.mxu0 %v20885_v37 }
0x23c9   :  { %18139 = vmatprep.subr.bf16.mxu0 %v21277_v0 }
0x23cc   :  { %18140 = vmatpush3.bf16.msra.mxu0 %v20886_v38 }
0x23cd   :  { %18141 = vmatprep.subr.bf16.mxu0 %v21277_v0 }
0x23d0   :  { %18142 = vmatpush3.bf16.msra.mxu0 %v20887_v40  ;;  %v20912_v40 = vld [vmem:[#allocation15 + $0x3f0] sm:$0xff]  }
0x23d1   :  { %18143 = vmatprep.subr.bf16.mxu0 %v21277_v0 }
0x23d4   :  { %18144 = vmatpush3.bf16.msra.mxu0 %v20888_v22 }
0x23d5   :  { %18145 = vmatprep.subr.bf16.mxu0 %v21277_v0 }
0x23d8   :  { %18146 = vmatpush3.bf16.msra.mxu0 %v20889_v49 }
0x23d9   :  { %18171 = vmatprep.subr.bf16.mxu0 %v21277_v0 }
0x248e   :  { %v14326_v43 = vpop.f32.mrb[96].mxu0 }
0x248f   :  { %v14327_v44 = vadd.f32 %v17461_v41, %v14326_v43  ;;  %v18109_v45 = vpop.f32.mrb[97].mxu0  ;;  %v20913_v41 = vld [vmem:[#allocation15 + $0x3f8] sm:$0xff]   ;;  %v20914_v43 = vld [vmem:[#allocation15 + $0x400] sm:$0xff]  }
0x2490   :  { %v14329_v15 = vpop.f32.mrb[98].mxu0  ;;  %v20916_v45 = vld [vmem:[#allocation15 + $0x410] sm:$0xff]  }
0x2491   :  { %v14332_v46 = vmax.f32 %v14327_v44, 0.0  ;;  %v18110_v47 = vpop.f32.mrb[99].mxu0  ;;  %v20915_v44 = vld [vmem:[#allocation15 + $0x408] sm:$0xff]   ;;  %v20917_v15 = vld [vmem:[#allocation15 + $0x418] sm:$0xff]  }
0x2492   :  { %v20919_v47 = vld [vmem:[#allocation15 + $0x428] sm:$0xff]  }
0x2493   :  { %v14333_v48 = vpack.c.bf16 %v14332_v46, %v14332_v46  ;;  %v20918_v46 = vld [vmem:[#allocation15 + $0x420] sm:$0xff]  }
0x2495   :  { %18128 = vmatmul.mubr.bf16.vlgmr.msra.gmra.mrb[96].mxu1 %v14333_v48  ;;  %v17497_v48 = vld [vmem:[#allocation21 + $0x13] ss:$0 sm:$0xff] }
0x2496   :  { %18167 = vmatprep.mubr.msk.bf16.mxu1 %vm21278_vm0, %v21277_v0  ;;  %18152 = vmatpush3.bf16.msra.mxu1 %v20890_v50 }
0x2497   :  { %18153 = vmatprep.subr.bf16.mxu1 %v21277_v0 }
0x249a   :  { %18154 = vmatpush3.bf16.msra.mxu1 %v20891_v51 }
0x249b   :  { %18155 = vmatprep.subr.bf16.mxu1 %v21277_v0 }
0x249e   :  { %18156 = vmatpush3.bf16.msra.mxu1 %v20892_v52 }
0x249f   :  { %18157 = vmatprep.subr.bf16.mxu1 %v21277_v0 }
0x24a2   :  { %18158 = vmatpush3.bf16.msra.mxu1 %v20893_v53 }
0x24a3   :  { %18159 = vmatprep.subr.bf16.mxu1 %v21277_v0 }
0x24a6   :  { %18160 = vmatpush3.bf16.msra.mxu1 %v20894_v54 }
0x24a7   :  { %18161 = vmatprep.subr.bf16.mxu1 %v21277_v0 }
0x24aa   :  { %18162 = vmatpush3.bf16.msra.mxu1 %v20895_v32  ;;  %v20920_v32 = vld [vmem:[#allocation15 + $0x430] sm:$0xff]  }
0x24ab   :  { %18163 = vmatprep.subr.bf16.mxu1 %v21277_v0 }
0x24ae   :  { %18164 = vmatpush3.bf16.msra.mxu1 %v20896_v42 }
0x24af   :  { %18165 = vmatprep.subr.bf16.mxu1 %v21277_v0 }
0x24b2   :  { %18166 = vmatpush3.bf16.msra.mxu1 %v20897_v2 }
0x24b3   :  { %18191 = vmatprep.subr.bf16.mxu1 %v21277_v0 }
0x2568   :  { %v14438_v57 = vpop.f32.mrb[96].mxu1 }
0x2569   :  { %v14439_v58 = vadd.f32 %v17470_v56, %v14438_v57  ;;  %v18129_v59 = vpop.f32.mrb[97].mxu1  ;;  %v20921_v56 = vld [vmem:[#allocation15 + $0x438] sm:$0xff]   ;;  %v20922_v57 = vld [vmem:[#allocation15 + $0x440] sm:$0xff]  }
0x256a   :  { %v14441_v60 = vpop.f32.mrb[98].mxu1  ;;  %v20924_v59 = vld [vmem:[#allocation15 + $0x450] sm:$0xff]  }
0x256b   :  { %v14444_v61 = vmax.f32 %v14439_v58, 0.0  ;;  %v18130_v62 = vpop.f32.mrb[99].mxu1  ;;  %v20923_v58 = vld [vmem:[#allocation15 + $0x448] sm:$0xff]   ;;  %v20925_v60 = vld [vmem:[#allocation15 + $0x458] sm:$0xff]  }
0x256c   :  { %v20927_v62 = vld [vmem:[#allocation15 + $0x468] sm:$0xff]  }
0x256d   :  { %v14445_v63 = vpack.c.bf16 %v14444_v61, %v14444_v61  ;;  %v20926_v61 = vld [vmem:[#allocation15 + $0x460] sm:$0xff]  }
0x256f   :  { %18148 = vmatmul.mubr.bf16.vlgmr.msra.gmra.mrb[100].mxu0 %v14445_v63  ;;  %v17506_v63 = vld [vmem:[#allocation21 + $0x14] ss:$0 sm:$0xff] }
0x2570   :  { %18187 = vmatprep.mubr.msk.bf16.mxu0 %vm21278_vm0, %v21277_v0  ;;  %18172 = vmatpush3.bf16.msra.mxu0 %v20898_v3 }
0x2571   :  { %18173 = vmatprep.subr.bf16.mxu0 %v21277_v0 }
0x2574   :  { %18174 = vmatpush3.bf16.msra.mxu0 %v20899_v4 }
0x2575   :  { %18175 = vmatprep.subr.bf16.mxu0 %v21277_v0 }
0x2578   :  { %18176 = vmatpush3.bf16.msra.mxu0 %v20900_v5 }
0x2579   :  { %18177 = vmatprep.subr.bf16.mxu0 %v21277_v0 }
0x257c   :  { %18178 = vmatpush3.bf16.msra.mxu0 %v20901_v6 }
0x257d   :  { %18179 = vmatprep.subr.bf16.mxu0 %v21277_v0 }
0x2580   :  { %18180 = vmatpush3.bf16.msra.mxu0 %v20902_v7 }
0x2581   :  { %18181 = vmatprep.subr.bf16.mxu0 %v21277_v0 }
0x2584   :  { %18182 = vmatpush3.bf16.msra.mxu0 %v20903_v8  ;;  %v20928_v8 = vld [vmem:[#allocation15 + $0x470] sm:$0xff]  }
0x2585   :  { %18183 = vmatprep.subr.bf16.mxu0 %v21277_v0 }
0x2588   :  { %18184 = vmatpush3.bf16.msra.mxu0 %v20904_v11  ;;  %v15130_v11 = vld [vmem:[#allocation16 + $0x60] sm:$0xff] }
0x2589   :  { %18185 = vmatprep.subr.bf16.mxu0 %v21277_v0 }
0x258c   :  { %18186 = vmatpush3.bf16.msra.mxu0 %v20905_v23 }
0x258d   :  { %18211 = vmatprep.subr.bf16.mxu0 %v21277_v0 }
0x2642   :  { %v14550_v10 = vpop.f32.mrb[100].mxu0 }
0x2643   :  { %v14551_v12 = vadd.f32 %v17479_v9, %v14550_v10  ;;  %v18149_v18 = vpop.f32.mrb[101].mxu0  ;;  %v20929_v9 = vld [vmem:[#allocation15 + $0x478] sm:$0xff]   ;;  %v15118_v10 = vld [vmem:[#allocation16] sm:$0xff] }
0x2644   :  { %v14553_v19 = vpop.f32.mrb[102].mxu0  ;;  %v15119_v18 = vld [vmem:[#allocation16 + $0x8] sm:$0xff] }
0x2645   :  { %v14556_v20 = vmax.f32 %v14551_v12, 0.0  ;;  %v18150_v21 = vpop.f32.mrb[103].mxu0  ;;  %v15122_v12 = vld [vmem:[#allocation16 + $0x20] sm:$0xff] }
0x2646   :  { %v17533_v19 = vcombine.low %v15118_v10, %v15122_v12  ;;  %v15123_v21 = vld [vmem:[#allocation16 + $0x28] sm:$0xff] }
0x2647   :  { %v14557_v55 = vpack.c.bf16 %v14556_v20, %v14556_v20  ;;  %v17534_v20 = vcombine.high %v15118_v10, %v15122_v12  ;;  %v17535_v23 = vcombine.low %v15119_v18, %v15123_v21  ;;  %v15167_v12 = vld [vmem:[#allocation16 + $0x188] sm:$0xff] }
0x2649   :  { %18168 = vmatmul.mubr.bf16.vlgmr.msra.gmra.mrb[100].mxu1 %v14557_v55  ;;  %v15126_v55 = vld [vmem:[#allocation16 + $0x40] sm:$0xff] }
0x264a   :  { %18207 = vmatprep.mubr.msk.bf16.mxu1 %vm21278_vm0, %v21277_v0  ;;  %18192 = vmatpush3.bf16.msra.mxu1 %v20906_v24  ;;  %v17536_v24 = vcombine.high %v15119_v18, %v15123_v21  ;;  %v15171_v18 = vld [vmem:[#allocation16 + $0x1a8] sm:$0xff] }
0x264b   :  { %18193 = vmatprep.subr.bf16.mxu1 %v21277_v0  ;;  %v17583_v21 = vcombine.low %v15167_v12, %v15171_v18 }
0x264e   :  { %18194 = vmatpush3.bf16.msra.mxu1 %v20907_v25  ;;  %v17542_v25 = vcombine.high %v15126_v55, %v15130_v11 }
0x264f   :  { %18195 = vmatprep.subr.bf16.mxu1 %v21277_v0 }
0x2652   :  { %18196 = vmatpush3.bf16.msra.mxu1 %v20908_v26  ;;  %v17541_v26 = vcombine.low %v15126_v55, %v15130_v11  ;;  %v15174_v55 = vld [vmem:[#allocation16 + $0x1c0] sm:$0xff] }
0x2653   :  { %18197 = vmatprep.subr.bf16.mxu1 %v21277_v0  ;;  %v15178_v11 = vld [vmem:[#allocation16 + $0x1e0] sm:$0xff] }
0x2656   :  { %18198 = vmatpush3.bf16.msra.mxu1 %v20909_v27  ;;  %v15134_v27 = vld [vmem:[#allocation16 + $0x80] sm:$0xff] }
0x2657   :  { %18199 = vmatprep.subr.bf16.mxu1 %v21277_v0 }
0x265a   :  { %18200 = vmatpush3.bf16.msra.mxu1 %v20910_v28 }
0x265b   :  { %18201 = vmatprep.subr.bf16.mxu1 %v21277_v0 }
0x265e   :  { %18202 = vmatpush3.bf16.msra.mxu1 %v20911_v29 }
0x265f   :  { %18203 = vmatprep.subr.bf16.mxu1 %v21277_v0 }
0x2662   :  { %18204 = vmatpush3.bf16.msra.mxu1 %v20912_v40  ;;  %v15158_v40 = vld [vmem:[#allocation16 + $0x140] sm:$0xff] }
0x2663   :  { %18205 = vmatprep.subr.bf16.mxu1 %v21277_v0 }
0x2666   :  { %18206 = vmatpush3.bf16.msra.mxu1 %v20913_v41  ;;  %v15162_v41 = vld [vmem:[#allocation16 + $0x160] sm:$0xff] }
0x2667   :  { %18231 = vmatprep.subr.bf16.mxu1 %v21277_v0 }
0x271c   :  { %v14662_v1 = vpop.f32.mrb[100].mxu1 }
0x271d   :  { %v14663_v33 = vadd.f32 %v17488_v30, %v14662_v1  ;;  %v18169_v34 = vpop.f32.mrb[101].mxu1  ;;  %v15142_v30 = vld [vmem:[#allocation16 + $0xc0] sm:$0xff] }
0x271e   :  { %v14665_v35 = vpop.f32.mrb[102].mxu1  ;;  %v15146_v1 = vld [vmem:[#allocation16 + $0xe0] sm:$0xff] }
0x271f   :  { %v14668_v36 = vmax.f32 %v14663_v33, 0.0  ;;  %v18170_v37 = vpop.f32.mrb[103].mxu1  ;;  %v17558_v33 = vcombine.high %v15142_v30, %v15146_v1  ;;  %v17557_v34 = vcombine.low %v15142_v30, %v15146_v1  ;;  %v15150_v35 = vld [vmem:[#allocation16 + $0x100] sm:$0xff]  ;;  %v15121_v30 = vld [vmem:[#allocation16 + $0x18] sm:$0xff] }
0x2721   :  { %v14669_v38 = vpack.c.bf16 %v14668_v36, %v14668_v36  ;;  %v15154_v36 = vld [vmem:[#allocation16 + $0x120] sm:$0xff] }
0x2722   :  { %v17566_v37 = vcombine.high %v15150_v35, %v15154_v36 }
0x2723   :  { %18188 = vmatmul.mubr.bf16.vlgmr.msra.gmra.mrb[104].mxu0 %v14669_v38  ;;  %v17565_v38 = vcombine.low %v15150_v35, %v15154_v36 }
0x2724   :  { %18227 = vmatprep.mubr.msk.bf16.mxu0 %vm21278_vm0, %v21277_v0  ;;  %18212 = vmatpush3.bf16.msra.mxu0 %v20914_v43  ;;  %v17574_v43 = vcombine.high %v15158_v40, %v15162_v41 }
0x2725   :  { %18213 = vmatprep.subr.bf16.mxu0 %v21277_v0 }
0x2728   :  { %18214 = vmatpush3.bf16.msra.mxu0 %v20915_v44  ;;  %v17573_v44 = vcombine.low %v15158_v40, %v15162_v41 }
0x2729   :  { %18215 = vmatprep.subr.bf16.mxu0 %v21277_v0 }
0x272c   :  { %18216 = vmatpush3.bf16.msra.mxu0 %v20916_v45  ;;  %v15166_v45 = vld [vmem:[#allocation16 + $0x180] sm:$0xff] }
0x272d   :  { %18217 = vmatprep.subr.bf16.mxu0 %v21277_v0 }
0x2730   :  { %18218 = vmatpush3.bf16.msra.mxu0 %v20917_v15  ;;  %v15170_v15 = vld [vmem:[#allocation16 + $0x1a0] sm:$0xff] }
0x2731   :  { %18219 = vmatprep.subr.bf16.mxu0 %v21277_v0 }
0x2734   :  { %18220 = vmatpush3.bf16.msra.mxu0 %v20918_v46  ;;  %v17582_v46 = vcombine.high %v15166_v45, %v15170_v15 }
0x2735   :  { %18221 = vmatprep.subr.bf16.mxu0 %v21277_v0 }
0x2738   :  { %18222 = vmatpush3.bf16.msra.mxu0 %v20919_v47  ;;  %v17581_v47 = vcombine.low %v15166_v45, %v15170_v15  ;;  %v15132_v45 = vld [vmem:[#allocation16 + $0x70] sm:$0xff]  ;;  %v15129_v15 = vld [vmem:[#allocation16 + $0x58] sm:$0xff] }
0x2739   :  { %18223 = vmatprep.subr.bf16.mxu0 %v21277_v0 }
0x273c   :  { %18224 = vmatpush3.bf16.msra.mxu0 %v20920_v32 }
0x273d   :  { %18225 = vmatprep.subr.bf16.mxu0 %v21277_v0 }
0x2740   :  { %18226 = vmatpush3.bf16.msra.mxu0 %v20921_v56 }
0x2741   :  { %15544 = vmatprep.subr.bf16.mxu0 %v17534_v20  ;;  %v17584_v20 = vcombine.high %v15167_v12, %v15171_v18  ;;  %v15160_v12 = vld [vmem:[#allocation16 + $0x150] sm:$0xff] }
0x2742   :  { %v15164_v18 = vld [vmem:[#allocation16 + $0x170] sm:$0xff] }
0x27f6   :  { %v14774_v22 = vpop.f32.mrb[104].mxu0 }
0x27f7   :  { %v14775_v49 = vadd.f32 %v17497_v48, %v14774_v22  ;;  %v18189_v50 = vpop.f32.mrb[105].mxu0  ;;  %v17515_v48 = vld [vmem:[#allocation21 + $0x15] ss:$0 sm:$0xff] }
0x27f8   :  { %v14777_v51 = vpop.f32.mrb[106].mxu0 }
0x27f9   :  { %v14780_v52 = vmax.f32 %v14775_v49, 0.0  ;;  %v18190_v53 = vpop.f32.mrb[107].mxu0 }
0x27fa   :  { %v15131_v53 = vld [vmem:[#allocation16 + $0x68] sm:$0xff] }
0x27fb   :  { %v14781_v54 = vpack.c.bf16 %v14780_v52, %v14780_v52  ;;  %v15127_v52 = vld [vmem:[#allocation16 + $0x48] sm:$0xff] }
0x27fd   :  { %18208 = vmatmul.mubr.bf16.vlgmr.msra.gmra.mrb[104].mxu1 %v14781_v54 }
0x27fe   :  { %18247 = vmatprep.mubr.msk.bf16.mxu1 %vm21278_vm0, %v21277_v0  ;;  %18232 = vmatpush3.bf16.msra.mxu1 %v20922_v57  ;;  %v17544_v57 = vcombine.high %v15127_v52, %v15131_v53 }
0x27ff   :  { %18233 = vmatprep.subr.bf16.mxu1 %v21277_v0 }
0x2802   :  { %18234 = vmatpush3.bf16.msra.mxu1 %v20923_v58  ;;  %v15135_v58 = vld [vmem:[#allocation16 + $0x88] sm:$0xff] }
0x2803   :  { %18235 = vmatprep.subr.bf16.mxu1 %v21277_v0 }
0x2806   :  { %18236 = vmatpush3.bf16.msra.mxu1 %v20924_v59  ;;  %v15139_v59 = vld [vmem:[#allocation16 + $0xa8] sm:$0xff] }
0x2807   :  { %18237 = vmatprep.subr.bf16.mxu1 %v21277_v0 }
0x280a   :  { %18238 = vmatpush3.bf16.msra.mxu1 %v20925_v60  ;;  %v17543_v60 = vcombine.low %v15127_v52, %v15131_v53  ;;  %v15140_v52 = vld [vmem:[#allocation16 + $0xb0] sm:$0xff]  ;;  %v15137_v53 = vld [vmem:[#allocation16 + $0x98] sm:$0xff] }
0x280b   :  { %18239 = vmatprep.subr.bf16.mxu1 %v21277_v0 }
0x280e   :  { %18240 = vmatpush3.bf16.msra.mxu1 %v20926_v61  ;;  %v17552_v61 = vcombine.high %v15135_v58, %v15139_v59 }
0x280f   :  { %18241 = vmatprep.subr.bf16.mxu1 %v21277_v0 }
0x2812   :  { %18242 = vmatpush3.bf16.msra.mxu1 %v20927_v62  ;;  %v15143_v62 = vld [vmem:[#allocation16 + $0xc8] sm:$0xff] }
0x2813   :  { %18243 = vmatprep.subr.bf16.mxu1 %v21277_v0 }
0x2816   :  { %18244 = vmatpush3.bf16.msra.mxu1 %v20928_v8  ;;  %v15163_v8 = vld [vmem:[#allocation16 + $0x168] sm:$0xff] }
0x2817   :  { %18245 = vmatprep.subr.bf16.mxu1 %v21277_v0  ;;  %v15138_v0 = vld [vmem:[#allocation16 + $0xa0] sm:$0xff] }
0x2818   :  { %v17550_v28 = vcombine.high %v15134_v27, %v15138_v0  ;;  %v17549_v29 = vcombine.low %v15134_v27, %v15138_v0 }
0x281a   :  { %18246 = vmatpush3.bf16.msra.mxu1 %v20929_v9 }
0x281b   :  { %15585 = vmatprep.subr.bf16.mxu1 %v17536_v24  ;;  %v17590_v24 = vcombine.high %v15174_v55, %v15178_v11 }
0x28d0   :  { %v14886_v42 = vpop.f32.mrb[104].mxu1 }
0x28d1   :  { %v14887_v2 = vadd.f32 %v17506_v63, %v14886_v42  ;;  %v18209_v3 = vpop.f32.mrb[105].mxu1  ;;  %v15147_v63 = vld [vmem:[#allocation16 + $0xe8] sm:$0xff]  ;;  %v17551_v42 = vcombine.low %v15135_v58, %v15139_v59  ;;  %v15144_v59 = vld [vmem:[#allocation16 + $0xd0] sm:$0xff] }
0x28d2   :  { %v14889_v4 = vpop.f32.mrb[106].mxu1  ;;  %v15151_v3 = vld [vmem:[#allocation16 + $0x108] sm:$0xff] }
0x28d3   :  { %v14892_v5 = vmax.f32 %v14887_v2, 0.0  ;;  %v18210_v6 = vpop.f32.mrb[107].mxu1  ;;  %v17560_v2 = vcombine.high %v15143_v62, %v15147_v63  ;;  %v15155_v4 = vld [vmem:[#allocation16 + $0x128] sm:$0xff] }
0x28d4   :  { %v17568_v6 = vcombine.high %v15151_v3, %v15155_v4  ;;  %v17567_v9 = vcombine.low %v15151_v3, %v15155_v4  ;;  %v15152_v4 = vld [vmem:[#allocation16 + $0x110] sm:$0xff] }
0x28d5   :  { %v14893_v7 = vpack.c.bf16 %v14892_v5, %v14892_v5  ;;  %v17559_v5 = vcombine.low %v15143_v62, %v15147_v63  ;;  %v15149_v62 = vld [vmem:[#allocation16 + $0xf8] sm:$0xff] }
0x28d7   :  { %18228 = vmatmul.mubr.bf16.vlgmr.msra.gmra.mrb[108].mxu0 %v14893_v7  ;;  %v15159_v7 = vld [vmem:[#allocation16 + $0x148] sm:$0xff] }
0x28d8   :  { %15576 = vmatprep.mubr.bf16.mxu0 %v21276_v39  ;;  %15545 = vmatpush1.bf16.msra.mxu0 %v17533_v19  ;;  %v17576_v10 = vcombine.high %v15159_v7, %v15163_v8  ;;  %v17575_v19 = vcombine.low %v15159_v7, %v15163_v8  ;;  %v15157_v7 = vld [vmem:[#allocation16 + $0x138] sm:$0xff] }
0x28d9   :  { %15546 = vmatprep.subr.bf16.mxu0 %v17542_v25  ;;  %v15179_v25 = vld [vmem:[#allocation16 + $0x1e8] sm:$0xff] }
0x28dc   :  { %15547 = vmatpush1.bf16.msra.mxu0 %v17541_v26  ;;  %v17589_v26 = vcombine.low %v15174_v55, %v15178_v11  ;;  %v17578_v11 = vcombine.high %v15160_v12, %v15164_v18 }
0x28dd   :  { %15548 = vmatprep.subr.bf16.mxu0 %v17550_v28  ;;  %v15120_v28 = vld [vmem:[#allocation16 + $0x10] sm:$0xff] }
0x28e0   :  { %15549 = vmatpush1.bf16.msra.mxu0 %v17549_v29  ;;  %v15124_v29 = vld [vmem:[#allocation16 + $0x30] sm:$0xff] }
0x28e1   :  { %15550 = vmatprep.subr.bf16.mxu0 %v17558_v33  ;;  %v17538_v1 = vcombine.high %v15120_v28, %v15124_v29  ;;  %v15125_v33 = vld [vmem:[#allocation16 + $0x38] sm:$0xff] }
0x28e2   :  { %v17539_v35 = vcombine.low %v15121_v30, %v15125_v33  ;;  %v17540_v36 = vcombine.high %v15121_v30, %v15125_v33  ;;  %v15180_v33 = vld [vmem:[#allocation16 + $0x1f0] sm:$0xff] }
0x28e4   :  { %15551 = vmatpush1.bf16.msra.mxu0 %v17557_v34  ;;  %v17537_v34 = vcombine.low %v15120_v28, %v15124_v29 }
0x28e5   :  { %15552 = vmatprep.subr.bf16.mxu0 %v17566_v37  ;;  %v17524_v37 = vld [vmem:[#allocation21 + $0x16] ss:$0 sm:$0xff] }
0x28e8   :  { %15553 = vmatpush1.bf16.msra.mxu0 %v17565_v38 }
0x28e9   :  { %15554 = vmatprep.subr.bf16.mxu0 %v17574_v43  ;;  %v15128_v43 = vld [vmem:[#allocation16 + $0x50] sm:$0xff] }
0x28ec   :  { %15555 = vmatpush1.bf16.msra.mxu0 %v17573_v44 }
0x28ed   :  { %15556 = vmatprep.subr.bf16.mxu0 %v17582_v46  ;;  %v15133_v46 = vld [vmem:[#allocation16 + $0x78] sm:$0xff] }
0x28f0   :  { %15557 = vmatpush1.bf16.msra.mxu0 %v17581_v47 }
0x28f1   :  { %15558 = vmatprep.subr.bf16.mxu0 %v17590_v24  ;;  %v15168_v24 = vld [vmem:[#allocation16 + $0x190] sm:$0xff] }
0x28f4   :  { %15559 = vmatpush1.bf16.msra.mxu0 %v17589_v26  ;;  %v15169_v26 = vld [vmem:[#allocation16 + $0x198] sm:$0xff] }
0x28f5   :  { %15626 = vmatprep.subr.bf16.mxu0 %v17538_v1  ;;  %v15176_v1 = vld [vmem:[#allocation16 + $0x1d0] sm:$0xff] }
0x29aa   :  { %v14998_v22 = vpop.f32.mrb[108].mxu0 }
0x29ab   :  { %v14999_v49 = vadd.f32 %v17515_v48, %v14998_v22  ;;  %v18229_v50 = vpop.f32.mrb[109].mxu0 }
0x29ac   :  { %v15001_v51 = vpop.f32.mrb[110].mxu0  ;;  %v17548_v50 = vcombine.high %v15129_v15, %v15133_v46 }
0x29ad   :  { %v15004_v54 = vmax.f32 %v14999_v49, 0.0  ;;  %v18230_v32 = vpop.f32.mrb[111].mxu0  ;;  %v17546_v49 = vcombine.high %v15128_v43, %v15132_v45  ;;  %v15136_v51 = vld [vmem:[#allocation16 + $0x90] sm:$0xff] }
0x29ae   :  { %v17545_v32 = vcombine.low %v15128_v43, %v15132_v45  ;;  %v17553_v63 = vcombine.low %v15136_v51, %v15140_v52 }
0x29af   :  { %v15005_v56 = vpack.c.bf16 %v15004_v54, %v15004_v54  ;;  %v15141_v54 = vld [vmem:[#allocation16 + $0xb8] sm:$0xff] }
0x29b0   :  { %v17556_v58 = vcombine.high %v15137_v53, %v15141_v54 }
0x29b1   :  { %18248 = vmatmul.mubr.bf16.vlgmr.msra.gmra.mrb[108].mxu1 %v15005_v56  ;;  %v17547_v56 = vcombine.low %v15129_v15, %v15133_v46 }
0x29b2   :  { %15586 = vmatpush1.bf16.msra.mxu1 %v17535_v23  ;;  %15617 = vmatprep.mubr.bf16.mxu1 %v21276_v39  ;;  %v15175_v23 = vld [vmem:[#allocation16 + $0x1c8] sm:$0xff] }
0x29b3   :  { %15587 = vmatprep.subr.bf16.mxu1 %v17544_v57  ;;  %v17591_v27 = vcombine.low %v15175_v23, %v15179_v25  ;;  %v17592_v0 = vcombine.high %v15175_v23, %v15179_v25  ;;  %v17554_v57 = vcombine.high %v15136_v51, %v15140_v52  ;;  %v15172_v25 = vld [vmem:[#allocation16 + $0x1b0] sm:$0xff] }
0x29b4   :  { %v17586_v29 = vcombine.high %v15168_v24, %v15172_v25 }
0x29b6   :  { %15588 = vmatpush1.bf16.msra.mxu1 %v17543_v60  ;;  %v15148_v60 = vld [vmem:[#allocation16 + $0xf0] sm:$0xff] }
0x29b7   :  { %15589 = vmatprep.subr.bf16.mxu1 %v17552_v61  ;;  %v15145_v61 = vld [vmem:[#allocation16 + $0xd8] sm:$0xff]  ;;  %v17561_v8 = vcombine.low %v15144_v59, %v15148_v60 }
0x29b8   :  { %v17564_v3 = vcombine.high %v15145_v61, %v15149_v62 }
0x29ba   :  { %15590 = vmatpush1.bf16.msra.mxu1 %v17551_v42  ;;  %v17555_v42 = vcombine.low %v15137_v53, %v15141_v54 }
0x29bb   :  { %15591 = vmatprep.subr.bf16.mxu1 %v17560_v2  ;;  %v17562_v2 = vcombine.high %v15144_v59, %v15148_v60 }
0x29be   :  { %15592 = vmatpush1.bf16.msra.mxu1 %v17559_v5  ;;  %v15156_v5 = vld [vmem:[#allocation16 + $0x130] sm:$0xff] }
0x29bf   :  { %15593 = vmatprep.subr.bf16.mxu1 %v17568_v6  ;;  %v15153_v6 = vld [vmem:[#allocation16 + $0x118] sm:$0xff] }
0x29c0   :  { %v17571_v55 = vcombine.low %v15153_v6, %v15157_v7 }
0x29c2   :  { %15594 = vmatpush1.bf16.msra.mxu1 %v17567_v9  ;;  %v17563_v9 = vcombine.low %v15145_v61, %v15149_v62 }
0x29c3   :  { %15595 = vmatprep.subr.bf16.mxu1 %v17576_v10  ;;  %v17570_v10 = vcombine.high %v15152_v4, %v15156_v5 }
0x29c6   :  { %15596 = vmatpush1.bf16.msra.mxu1 %v17575_v19  ;;  %v15161_v19 = vld [vmem:[#allocation16 + $0x158] sm:$0xff] }
0x29c7   :  { %15597 = vmatprep.subr.bf16.mxu1 %v17584_v20  ;;  %v15165_v20 = vld [vmem:[#allocation16 + $0x178] sm:$0xff] }
0x29c8   :  { %v17580_v23 = vcombine.high %v15161_v19, %v15165_v20  ;;  %v17579_v28 = vcombine.low %v15161_v19, %v15165_v20 }
0x29ca   :  { %15598 = vmatpush1.bf16.msra.mxu1 %v17583_v21  ;;  %v17569_v21 = vcombine.low %v15152_v4, %v15156_v5 }
0x29cb   :  { %15599 = vmatprep.subr.bf16.mxu1 %v17592_v0  ;;  %v17577_v0 = vcombine.low %v15160_v12, %v15164_v18 }
0x29ce   :  { %15600 = vmatpush1.bf16.msra.mxu1 %v17591_v27  ;;  %v15173_v27 = vld [vmem:[#allocation16 + $0x1b8] sm:$0xff] }
0x29cf   :  { %15667 = vmatprep.subr.bf16.mxu1 %v17540_v36  ;;  %v17588_v30 = vcombine.high %v15169_v26, %v15173_v27  ;;  %v17585_v36 = vcombine.low %v15168_v24, %v15172_v25 }
0x2a84   :  { %v15110_v38 = vpop.f32.mrb[108].mxu1 }
0x2a85   :  { %v15111_v40 = vadd.f32 %v17524_v37, %v15110_v38  ;;  %v18249_v41 = vpop.f32.mrb[109].mxu1  ;;  %v17587_v37 = vcombine.low %v15169_v26, %v15173_v27  ;;  %v17594_v38 = vcombine.high %v15176_v1, %v15180_v33 }
0x2a86   :  { %v15113_v44 = vpop.f32.mrb[110].mxu1  ;;  %v17593_v41 = vcombine.low %v15176_v1, %v15180_v33 }
0x2a87   :  { %v15116_v47 = vmax.f32 %v15111_v40, 0.0  ;;  %v18250_v48 = vpop.f32.mrb[111].mxu1  ;;  %v15182_v44 = vld [vmem:[#allocation22] sm:$0xff] }
0x2a88   :  { %v15187_v45 = vrot.slane %v15182_v44, %v21597_v14  ;;  %v15195_v15 = vrot.slane %v15182_v44, %v21616_v31  ;;  %v15191_v46 = vrot.slane %v15182_v44, %v21602_v16  ;;  %v15210_v31 = vsub.s32 6, %v21594_v13 }
0x2a89   :  { %v21934_v22 = vpack.c.bf16 %v15116_v47, %v15116_v47  ;;  %v15199_v47 = vrot.slane %v15182_v44, %v21605_v17  ;;  %v15202_v17 = vsub.s32 4, %v21594_v13 }
0x2a8a   :  { %v15211_v60 = vrot.slane %v15182_v44, %v15210_v31 }
0x2a8b   :  { %15577 = vmatmul.mubr.bf16.vlgmr.msra.gmra.mrb[112].mxu0 %v21934_v22  ;;  %15618 = vmatmul.mubr.bf16.vlgmr.msra.gmra.mrb[112].mxu1 %v21934_v22  ;;  %v15203_v59 = vrot.slane %v15182_v44, %v15202_v17 }
0x2a8c   :  { %15627 = vmatpush1.bf16.msra.mxu0 %v17537_v34  ;;  %15668 = vmatpush1.bf16.msra.mxu1 %v17539_v35  ;;  %v15177_v34 = vld [vmem:[#allocation16 + $0x1d8] sm:$0xff] }
0x2a8d   :  { %15628 = vmatprep.subr.bf16.mxu0 %v17546_v49  ;;  %15669 = vmatprep.subr.bf16.mxu1 %v17548_v50  ;;  %v15181_v35 = vld [vmem:[#allocation16 + $0x1f8] sm:$0xff] }
0x2a8e   :  { %15658 = vmatprep.mubr.bf16.mxu0 %v21276_v39  ;;  %15699 = vmatprep.mubr.bf16.mxu1 %v21276_v39  ;;  %v17572_v39 = vcombine.high %v15153_v6, %v15157_v7  ;;  %v17596_v40 = vcombine.high %v15177_v34, %v15181_v35  ;;  %v17595_v43 = vcombine.low %v15177_v34, %v15181_v35 }
0x2a90   :  { %15629 = vmatpush1.bf16.msra.mxu0 %v17545_v32  ;;  %15670 = vmatpush1.bf16.msra.mxu1 %v17547_v56 }
0x2a91   :  { %15630 = vmatprep.subr.bf16.mxu0 %v17554_v57  ;;  %15671 = vmatprep.subr.bf16.mxu1 %v17556_v58  ;;  %v15214_v58 = vsub.s32 7, %v21594_v13 }
0x2a93   :  { %v15215_v62 = vrot.slane %v15182_v44, %v15214_v58 }
0x2a94   :  { %15631 = vmatpush1.bf16.msra.mxu0 %v17553_v63  ;;  %15672 = vmatpush1.bf16.msra.mxu1 %v17555_v42 }
0x2a95   :  { %15632 = vmatprep.subr.bf16.mxu0 %v17562_v2  ;;  %15673 = vmatprep.subr.bf16.mxu1 %v17564_v3 }
0x2a98   :  { %15633 = vmatpush1.bf16.msra.mxu0 %v17561_v8  ;;  %15674 = vmatpush1.bf16.msra.mxu1 %v17563_v9 }
0x2a99   :  { %15634 = vmatprep.subr.bf16.mxu0 %v17570_v10  ;;  %15675 = vmatprep.subr.bf16.mxu1 %v17572_v39 }
0x2a9c   :  { %15635 = vmatpush1.bf16.msra.mxu0 %v17569_v21  ;;  %15676 = vmatpush1.bf16.msra.mxu1 %v17571_v55 }
0x2a9d   :  { %15636 = vmatprep.subr.bf16.mxu0 %v17578_v11  ;;  %15677 = vmatprep.subr.bf16.mxu1 %v17580_v23 }
0x2aa0   :  { %15637 = vmatpush1.bf16.msra.mxu0 %v17577_v0  ;;  %15678 = vmatpush1.bf16.msra.mxu1 %v17579_v28 }
0x2aa1   :  { %15638 = vmatprep.subr.bf16.mxu0 %v17586_v29  ;;  %15679 = vmatprep.subr.bf16.mxu1 %v17588_v30 }
0x2aa4   :  { %15639 = vmatpush1.bf16.msra.mxu0 %v17585_v36  ;;  %15680 = vmatpush1.bf16.msra.mxu1 %v17587_v37 }
0x2aa5   :  { %15640 = vmatprep.subr.bf16.mxu0 %v17594_v38  ;;  %15681 = vmatprep.subr.bf16.mxu1 %v17596_v40 }
0x2aa8   :  { %15641 = vmatpush1.bf16.msra.mxu0 %v17593_v41  ;;  %15682 = vmatpush1.bf16.msra.mxu1 %v17595_v43 }
0x2aab   :  { %15659 = vmatmul.mubr.bf16.vlgmr.msra.gmra.mrb[116].mxu0 %v21934_v22  ;;  %15700 = vmatmul.mubr.bf16.vlgmr.msra.gmra.mrb[116].mxu1 %v21934_v22  ;;  %v15206_v22 = vsub.s32 5, %v21594_v13 }
0x2aad   :  { %v15207_v61 = vrot.slane %v15182_v44, %v15206_v22 }
0x2b5e   :  { %v15578_v48 = vpop.f32.mrb[112].mxu0  ;;  %v15619_v49 = vpop.f32.mrb[112].mxu1 }
0x2b5f   :  { %v15579_v50 = vadd.f32 %v15578_v48, %v15187_v45  ;;  %v15620_v51 = vadd.f32 %v15619_v49, %v15195_v15  ;;  %v15580_v52 = vpop.f32.mrb[113].mxu0  ;;  %v15621_v53 = vpop.f32.mrb[113].mxu1 }
0x2b60   :  { %v15581_v54 = vadd.f32 %v15580_v52, %v15191_v46  ;;  %v15622_v32 = vadd.f32 %v15621_v53, %v15199_v47  ;;  %v15582_v56 = vpop.f32.mrb[114].mxu0  ;;  %v15623_v57 = vpop.f32.mrb[114].mxu1 }
0x2b61   :  { %15708 = vst [vmem:[%s21989_s15] sm:$0xff] %v15579_v50  ;;  %15710 = vst [vmem:[%s21989_s15 + $0x10] sm:$0xff] %v15620_v51  ;;  %v15583_v14 = vpop.f32.mrb[115].mxu0  ;;  %v15624_v16 = vpop.f32.mrb[115].mxu1 }
0x2b62   :  { %15709 = vst [vmem:[%s21989_s15 + $0x8] sm:$0xff] %v15581_v54  ;;  %15711 = vst [vmem:[%s21989_s15 + $0x18] sm:$0xff] %v15622_v32 }
0x2b7e   :  { %v15660_v63 = vpop.f32.mrb[116].mxu0  ;;  %v15701_v42 = vpop.f32.mrb[116].mxu1 }
0x2b7f   :  { %v15661_v2 = vadd.f32 %v15660_v63, %v15203_v59  ;;  %v15702_v3 = vadd.f32 %v15701_v42, %v15211_v60  ;;  %v15662_v4 = vpop.f32.mrb[117].mxu0  ;;  %v15703_v5 = vpop.f32.mrb[117].mxu1 }
0x2b80   :  { %v15663_v6 = vadd.f32 %v15662_v4, %v15207_v61  ;;  %v15704_v7 = vadd.f32 %v15703_v5, %v15215_v62  ;;  %v15664_v8 = vpop.f32.mrb[118].mxu0  ;;  %v15705_v9 = vpop.f32.mrb[118].mxu1 }
0x2b81   :  { %15712 = vst [vmem:[%s21989_s15 + $0x20] sm:$0xff] %v15661_v2  ;;  %15714 = vst [vmem:[%s21989_s15 + $0x30] sm:$0xff] %v15702_v3  ;;  %v15665_v13 = vpop.f32.mrb[119].mxu0  ;;  %v15706_v10 = vpop.f32.mrb[119].mxu1 }
0x2b82   :  { %15713 = vst [vmem:[%s21989_s15 + $0x28] sm:$0xff] %v15663_v6  ;;  %15715 = vst [vmem:[%s21989_s15 + $0x38] sm:$0xff] %v15704_v7 }
0x2b83   :  { %15720 = vsyncpa [#allocation3], 1 }
0x2b84   :  { %15721 = vsyncpa [#allocation5], 1 }
0x2b85   :  { %15722 = vsyncpa [#allocation8], 1 }
0x2b86   :  { %15723 = vsyncpa [#allocation11], 1 }
0x2b87   :  { %15724 = vsyncpa [#allocation14], 1 }
0x2b88   :  { %15725 = vsyncpa [#allocation17], 1 }
0x2b89   :  { %15726 = vsyncpa [#allocation20], 1 }
0x2b8a   :  { %15727 = vsyncpa [#allocation23], 1 }

</bundles_post_ra>
